<compile_context>
chip_gen: v7x
topology: tpu7x:2x2x1
jax: 0.10.0
libtpu: 0.0.40
codegen_flags: <defaults>
</compile_context>

<pallas_src>
import functools

import jax
import jax.numpy as jnp
from jax.experimental import pallas as pl
from jax.experimental.pallas import tpu as pltpu


# ----------------------------------------------------------------------------
# Pallas kernel: one subsampling branch's 5x5 "same" conv on the pooled image.
# ----------------------------------------------------------------------------

def branch_conv(xpad_bf16, w_bf16, bias_f32):
    """xpad_bf16: (B, Hp+4, Wp+4, Cin) bf16 pooled input with 2-px halo.
    w_bf16:  (5, 5, Cin, Cout) bf16 mask/kw/rw-folded weight.
    bias_f32: (1, Cout) f32 folded bias.
    Returns (B, Hp, Wp, Cout) bf16."""
    B, Hpp, Wpp, Cin = xpad_bf16.shape
    Hp, Wp = Hpp - 4, Wpp - 4
    Cout = w_bf16.shape[-1]

    # Cout tiling: 128-lane slabs at production width, full Cout when small.
    ct = Cout if Cout < 128 else 128
    assert Cout % ct == 0
    n_ct = Cout // ct
    # NOTE: with Cout < 128 (toy config) the output store is a masked partial
    # vst; production Cmax=256 uses full 128-lane tiles.

    def kernel(x_ref, w_ref, b_ref, o_ref, acc_ref):
        acc_ref[...] = jnp.zeros_like(acc_ref)
        # Single pre-mixed 5x5 tap loop; each tap is a direct offset VMEM load.
        for i in range(5):
            for j in range(5):
                patch = x_ref[0, i:i + Hp, j:j + Wp, :]        # (Hp, Wp, Cin)
                if Wp % 16 == 0:
                    # bf16 sublane tile is 16: merge is layout-preserving.
                    lhs = patch.reshape(Hp * Wp, Cin)
                else:
                    # Tiny toy widths: do the merge in f32 (well-supported
                    # relayout), then narrow back for the MXU.
                    lhs = patch.astype(jnp.float32).reshape(
                        Hp * Wp, Cin).astype(jnp.bfloat16)
                acc_ref[...] += jnp.dot(lhs, w_ref[i, j],
                                        preferred_element_type=jnp.float32)
        res = acc_ref[...] + b_ref[...]                        # (Hp*Wp, ct) f32
        o_ref[...] = res.reshape(1, Hp, Wp, ct).astype(o_ref.dtype)

    # VMEM budget from the actual block sizes (double-buffered) + scratch.
    blk_in = Hpp * Wpp * Cin * 2
    blk_w = 25 * Cin * ct * 2
    blk_b = ct * 4
    blk_out = Hp * Wp * ct * 2
    scratch_bytes = Hp * Wp * ct * 4
    vmem_need = 2 * (blk_in + blk_w + blk_b + blk_out) + scratch_bytes + (4 << 20)
    vmem_limit = int(min(max(vmem_need, 16 << 20), 64 << 20))

    return pl.pallas_call(
        kernel,
        grid=(B, n_ct),
        in_specs=[
            # Input block depends only on batch -> not re-fetched across cout.
            pl.BlockSpec((1, Hpp, Wpp, Cin), lambda b, c: (b, 0, 0, 0)),
            # Weight block depends only on the cout tile.
            pl.BlockSpec((5, 5, Cin, ct), lambda b, c: (0, 0, 0, c)),
            pl.BlockSpec((1, ct), lambda b, c: (0, c)),
        ],
        out_specs=pl.BlockSpec((1, Hp, Wp, ct), lambda b, c: (b, 0, 0, c)),
        out_shape=jax.ShapeDtypeStruct((B, Hp, Wp, Cout), jnp.bfloat16),
        scratch_shapes=[pltpu.VMEM((Hp * Wp, ct), jnp.float32)],
        compiler_params=pltpu.CompilerParams(
            dimension_semantics=("parallel", "parallel"),
            vmem_limit_bytes=vmem_limit),
    )(xpad_bf16, w_bf16, bias_f32)


# ----------------------------------------------------------------------------
# Module forward: parameter folding + cheap XLA glue around the Pallas kernels.
# ----------------------------------------------------------------------------

def fbnetv2_block_forward(x_nchw, params, *, max_out_channels, kernels,
                          factors, target_hw):
    B, Cin, H, W = x_nchw.shape
    assert H == target_hw and W == target_hw
    for f in factors:
        assert H % f == 0 and W % f == 0, "factors must divide the target size"
    assert tuple(kernels) == (3, 5), "kernel pre-mix assumes kernels == (3, 5)"
    Cmax = max_out_channels

    # Single NCHW -> NHWC transpose; per-branch pooling happens in NHWC.
    x_nhwc = jnp.transpose(x_nchw.astype(jnp.float32), (0, 2, 3, 1))

    # ---- ChannelMask parameters (folded into the conv weights below) ----
    # Mask is applied to the zero-padded INPUT of the conv, so it scales the
    # input-channel axis of the weight; zero-pad channels contribute nothing.
    mask_w = jax.nn.softmax(params["alpha"])
    # torch.round and jnp.round both round-half-to-even, so jnp.round matches.
    binary = jnp.clip(jnp.round(params["masks"]), 0.0, 1.0)
    combined = jnp.sum(mask_w[:, None] * binary, axis=0)      # (Cmax,)
    kw = jax.nn.softmax(params["conv_kernel_weights"])        # (2,): [k3, k5]
    rw = jax.nn.softmax(params["res_weights"])                # (n_factors,)

    out = None
    for fi, f in enumerate(factors):
        Hp, Wp = H // f, W // f
        # avg_pool2d(kernel=stride=f) in NHWC, f32 accumulation, bf16 emitted.
        xp = x_nhwc.reshape(B, Hp, f, Wp, f, Cin).mean(axis=(2, 4))
        xp = jnp.pad(xp.astype(jnp.bfloat16),
                     ((0, 0), (2, 2), (2, 2), (0, 0)))        # 2-px halo

        # Fold kw-mix + channel mask + rw into a single 5x5 weight/bias (f32
        # folding, bf16 cast only at the end).
        (w3, b3), (w5, b5) = params["conv"][fi]
        wmix = kw[1] * w5
        wmix = wmix.at[1:4, 1:4, :, :].add(kw[0] * w3)        # (5,5,Cmax,Cmax)
        bmix = kw[0] * b3 + kw[1] * b5                        # (1,Cmax)
        w_f = (rw[fi] * wmix[:, :, :Cin, :]
               * combined[:Cin][None, None, :, None]).astype(jnp.bfloat16)
        b_f = (rw[fi] * bmix).astype(jnp.float32)

        y = branch_conv(xp, w_f, b_f)                         # (B,Hp,Wp,Cmax) bf16

        # SmartConv trailing smart_padding: phase-0 zero-upsample back to the
        # target grid (interior pad) and accumulate the branch sum in f32.
        y = jnp.transpose(y, (0, 3, 1, 2))                    # (B,Cmax,Hp,Wp)
        up = jax.lax.pad(
            y, jnp.zeros((), y.dtype),
            ((0, 0, 0), (0, 0, 0), (0, f - 1, f - 1), (0, f - 1, f - 1)))
        up = up.astype(jnp.float32)
        out = up if out is None else out + up
    return out                                                # (B,Cmax,H,W) f32


def init_params(key, in_channels, max_out_channels, num_masks, kernels,
                factors):
    del in_channels
    n_conv_keys = 2 * len(factors) * len(kernels)
    ks = jax.random.split(key, 1 + n_conv_keys)
    params = {
        "alpha": jnp.zeros((num_masks,), jnp.float32),
        "masks": jax.random.uniform(ks[0], (num_masks, max_out_channels),
                                    jnp.float32),
        "conv_kernel_weights": jnp.zeros((len(kernels),), jnp.float32),
        "res_weights": jnp.zeros((len(factors),), jnp.float32),
    }
    conv = []
    idx = 1
    for _ in factors:
        per_k = []
        for k in kernels:
            fan_in = max_out_channels * k * k
            bound = float(fan_in) ** -0.5
            w = jax.random.uniform(
                ks[idx], (k, k, max_out_channels, max_out_channels),
                jnp.float32, -bound, bound)
            idx += 1
            b = jax.random.uniform(ks[idx], (1, max_out_channels),
                                   jnp.float32, -bound, bound)
            idx += 1
            per_k.append((w, b))
        conv.append(tuple(per_k))
    params["conv"] = conv
    return params


if __name__ == "__main__":
    # Small shapes consistent with the module structure.
    B = 2
    IN_CHANNELS = 3
    MAX_OUT_CHANNELS = 8
    NUM_MASKS = 3
    TARGET = 16
    KERNELS = (3, 5)
    FACTORS = (2, 4, 8)

    root = jax.random.PRNGKey(0)
    k_x, k_p = jax.random.split(root)

    x = jax.random.normal(k_x, (B, IN_CHANNELS, TARGET, TARGET), jnp.float32)
    params = init_params(k_p, IN_CHANNELS, MAX_OUT_CHANNELS, NUM_MASKS,
                         KERNELS, FACTORS)

    fwd = jax.jit(
        functools.partial(
            fbnetv2_block_forward,
            max_out_channels=MAX_OUT_CHANNELS,
            kernels=KERNELS,
            factors=FACTORS,
            target_hw=TARGET,
        ))

    y = fwd(x, params)
    jax.block_until_ready(y)
    assert y.shape == (B, MAX_OUT_CHANNELS, TARGET, TARGET)
    assert y.dtype == jnp.float32
    print("KERNEL_OK")
</pallas_src>

<mosaic_0001>
module attributes {stable_mosaic.version = 11 : i64} {
  func.func @kernel(%arg0: i32, %arg1: i32, %arg2: memref<1x12x12x3xbf16, #tpu.memory_space<vmem>>, %arg3: memref<5x5x3x8xbf16, #tpu.memory_space<vmem>>, %arg4: memref<1x8xf32, #tpu.memory_space<vmem>>, %arg5: memref<1x8x8x8xbf16, #tpu.memory_space<vmem>>, %arg6: memref<64x8xf32, #tpu.memory_space<vmem>>) attributes {dimension_semantics = [#tpu.dimension_semantics<parallel>, #tpu.dimension_semantics<parallel>], iteration_bounds = array<i64: 2, 1>, scalar_prefetch = 0 : i64, scratch_operands = 1 : i64, tpu.core_type = #tpu.core_type<tc>, window_params = [{transform_indices = @transform_0, window_bounds = array<i64: 1, 12, 12, 3>}, {transform_indices = @transform_1, window_bounds = array<i64: 5, 5, 3, 8>}, {transform_indices = @transform_2, window_bounds = array<i64: 1, 8>}, {transform_indices = @transform_3, window_bounds = array<i64: 1, 8, 8, 8>}]} {
    %cst = arith.constant 0.000000e+00 : f32
    %0 = vector.broadcast %cst : f32 to vector<64x8xf32>
    %c0 = arith.constant 0 : index
    %c0_0 = arith.constant 0 : index
    %1 = vector.load %arg6[%c0, %c0_0] : memref<64x8xf32, #tpu.memory_space<vmem>>, vector<64x8xf32>
    tpu.vector_store %arg6[%c0, %c0_0], %0 {strides = array<i32>} : memref<64x8xf32, #tpu.memory_space<vmem>>, vector<64x8xf32>,
    %c0_1 = arith.constant 0 : index
    %c0_2 = arith.constant 0 : index
    %c0_3 = arith.constant 0 : index
    %c0_4 = arith.constant 0 : index
    %2 = vector.load %arg2[%c0_1, %c0_2, %c0_3, %c0_4] : memref<1x12x12x3xbf16, #tpu.memory_space<vmem>>, vector<1x8x8x3xbf16>
    %3 = vector.shape_cast %2 : vector<1x8x8x3xbf16> to vector<8x8x3xbf16>
    %4 = arith.extf %3 : vector<8x8x3xbf16> to vector<8x8x3xf32>
    %5 = vector.shape_cast %4 : vector<8x8x3xf32> to vector<64x3xf32>
    %6 = arith.truncf %5 : vector<64x3xf32> to vector<64x3xbf16>
    %c0_5 = arith.constant 0 : index
    %c0_6 = arith.constant 0 : index
    %7 = vector.load %arg6[%c0_5, %c0_6] : memref<64x8xf32, #tpu.memory_space<vmem>>, vector<64x8xf32>
    %c0_7 = arith.constant 0 : index
    %c0_8 = arith.constant 0 : index
    %c0_9 = arith.constant 0 : index
    %c0_10 = arith.constant 0 : index
    %8 = vector.load %arg3[%c0_7, %c0_8, %c0_9, %c0_10] : memref<5x5x3x8xbf16, #tpu.memory_space<vmem>>, vector<1x1x3x8xbf16>
    %9 = vector.shape_cast %8 : vector<1x1x3x8xbf16> to vector<3x8xbf16>
    %cst_11 = arith.constant dense<0.000000e+00> : vector<64x8xf32>
    %10 = tpu.matmul %6, %9, %cst_11 {dimension_numbers = #tpu.dot_dimension_numbers<[1], [0], [0], [1], [0, 0, 1, 1], [], []>} : vector<64x3xbf16>, vector<3x8xbf16>, vector<64x8xf32> -> vector<64x8xf32>
    %11 = arith.addf %7, %10 : vector<64x8xf32>
    %c0_12 = arith.constant 0 : index
    %c0_13 = arith.constant 0 : index
    %12 = vector.load %arg6[%c0_12, %c0_13] : memref<64x8xf32, #tpu.memory_space<vmem>>, vector<64x8xf32>
    tpu.vector_store %arg6[%c0_12, %c0_13], %11 {strides = array<i32>} : memref<64x8xf32, #tpu.memory_space<vmem>>, vector<64x8xf32>,
    %c0_14 = arith.constant 0 : index
    %c0_15 = arith.constant 0 : index
    %c1 = arith.constant 1 : index
    %c0_16 = arith.constant 0 : index
    %13 = vector.load %arg2[%c0_14, %c0_15, %c1, %c0_16] : memref<1x12x12x3xbf16, #tpu.memory_space<vmem>>, vector<1x8x8x3xbf16>
    %14 = vector.shape_cast %13 : vector<1x8x8x3xbf16> to vector<8x8x3xbf16>
    %15 = arith.extf %14 : vector<8x8x3xbf16> to vector<8x8x3xf32>
    %16 = vector.shape_cast %15 : vector<8x8x3xf32> to vector<64x3xf32>
    %17 = arith.truncf %16 : vector<64x3xf32> to vector<64x3xbf16>
    %c0_17 = arith.constant 0 : index
    %c0_18 = arith.constant 0 : index
    %18 = vector.load %arg6[%c0_17, %c0_18] : memref<64x8xf32, #tpu.memory_space<vmem>>, vector<64x8xf32>
    %c0_19 = arith.constant 0 : index
    %c1_20 = arith.constant 1 : index
    %c0_21 = arith.constant 0 : index
    %c0_22 = arith.constant 0 : index
    %19 = vector.load %arg3[%c0_19, %c1_20, %c0_21, %c0_22] : memref<5x5x3x8xbf16, #tpu.memory_space<vmem>>, vector<1x1x3x8xbf16>
    %20 = vector.shape_cast %19 : vector<1x1x3x8xbf16> to vector<3x8xbf16>
    %cst_23 = arith.constant dense<0.000000e+00> : vector<64x8xf32>
    %21 = tpu.matmul %17, %20, %cst_23 {dimension_numbers = #tpu.dot_dimension_numbers<[1], [0], [0], [1], [0, 0, 1, 1], [], []>} : vector<64x3xbf16>, vector<3x8xbf16>, vector<64x8xf32> -> vector<64x8xf32>
    %22 = arith.addf %18, %21 : vector<64x8xf32>
    %c0_24 = arith.constant 0 : index
    %c0_25 = arith.constant 0 : index
    %23 = vector.load %arg6[%c0_24, %c0_25] : memref<64x8xf32, #tpu.memory_space<vmem>>, vector<64x8xf32>
    tpu.vector_store %arg6[%c0_24, %c0_25], %22 {strides = array<i32>} : memref<64x8xf32, #tpu.memory_space<vmem>>, vector<64x8xf32>,
    %c0_26 = arith.constant 0 : index
    %c0_27 = arith.constant 0 : index
    %c2 = arith.constant 2 : index
    %c0_28 = arith.constant 0 : index
    %24 = vector.load %arg2[%c0_26, %c0_27, %c2, %c0_28] : memref<1x12x12x3xbf16, #tpu.memory_space<vmem>>, vector<1x8x8x3xbf16>
    %25 = vector.shape_cast %24 : vector<1x8x8x3xbf16> to vector<8x8x3xbf16>
    %26 = arith.extf %25 : vector<8x8x3xbf16> to vector<8x8x3xf32>
    %27 = vector.shape_cast %26 : vector<8x8x3xf32> to vector<64x3xf32>
    %28 = arith.truncf %27 : vector<64x3xf32> to vector<64x3xbf16>
    %c0_29 = arith.constant 0 : index
    %c0_30 = arith.constant 0 : index
    %29 = vector.load %arg6[%c0_29, %c0_30] : memref<64x8xf32, #tpu.memory_space<vmem>>, vector<64x8xf32>
    %c0_31 = arith.constant 0 : index
    %c2_32 = arith.constant 2 : index
    %c0_33 = arith.constant 0 : index
    %c0_34 = arith.constant 0 : index
    %30 = vector.load %arg3[%c0_31, %c2_32, %c0_33, %c0_34] : memref<5x5x3x8xbf16, #tpu.memory_space<vmem>>, vector<1x1x3x8xbf16>
    %31 = vector.shape_cast %30 : vector<1x1x3x8xbf16> to vector<3x8xbf16>
    %cst_35 = arith.constant dense<0.000000e+00> : vector<64x8xf32>
    %32 = tpu.matmul %28, %31, %cst_35 {dimension_numbers = #tpu.dot_dimension_numbers<[1], [0], [0], [1], [0, 0, 1, 1], [], []>} : vector<64x3xbf16>, vector<3x8xbf16>, vector<64x8xf32> -> vector<64x8xf32>
    %33 = arith.addf %29, %32 : vector<64x8xf32>
    %c0_36 = arith.constant 0 : index
    %c0_37 = arith.constant 0 : index
    %34 = vector.load %arg6[%c0_36, %c0_37] : memref<64x8xf32, #tpu.memory_space<vmem>>, vector<64x8xf32>
    tpu.vector_store %arg6[%c0_36, %c0_37], %33 {strides = array<i32>} : memref<64x8xf32, #tpu.memory_space<vmem>>, vector<64x8xf32>,
    %c0_38 = arith.constant 0 : index
    %c0_39 = arith.constant 0 : index
    %c3 = arith.constant 3 : index
    %c0_40 = arith.constant 0 : index
    %35 = vector.load %arg2[%c0_38, %c0_39, %c3, %c0_40] : memref<1x12x12x3xbf16, #tpu.memory_space<vmem>>, vector<1x8x8x3xbf16>
    %36 = vector.shape_cast %35 : vector<1x8x8x3xbf16> to vector<8x8x3xbf16>
    %37 = arith.extf %36 : vector<8x8x3xbf16> to vector<8x8x3xf32>
    %38 = vector.shape_cast %37 : vector<8x8x3xf32> to vector<64x3xf32>
    %39 = arith.truncf %38 : vector<64x3xf32> to vector<64x3xbf16>
    %c0_41 = arith.constant 0 : index
    %c0_42 = arith.constant 0 : index
    %40 = vector.load %arg6[%c0_41, %c0_42] : memref<64x8xf32, #tpu.memory_space<vmem>>, vector<64x8xf32>
    %c0_43 = arith.constant 0 : index
    %c3_44 = arith.constant 3 : index
    %c0_45 = arith.constant 0 : index
    %c0_46 = arith.constant 0 : index
    %41 = vector.load %arg3[%c0_43, %c3_44, %c0_45, %c0_46] : memref<5x5x3x8xbf16, #tpu.memory_space<vmem>>, vector<1x1x3x8xbf16>
    %42 = vector.shape_cast %41 : vector<1x1x3x8xbf16> to vector<3x8xbf16>
    %cst_47 = arith.constant dense<0.000000e+00> : vector<64x8xf32>
    %43 = tpu.matmul %39, %42, %cst_47 {dimension_numbers = #tpu.dot_dimension_numbers<[1], [0], [0], [1], [0, 0, 1, 1], [], []>} : vector<64x3xbf16>, vector<3x8xbf16>, vector<64x8xf32> -> vector<64x8xf32>
    %44 = arith.addf %40, %43 : vector<64x8xf32>
    %c0_48 = arith.constant 0 : index
    %c0_49 = arith.constant 0 : index
    %45 = vector.load %arg6[%c0_48, %c0_49] : memref<64x8xf32, #tpu.memory_space<vmem>>, vector<64x8xf32>
    tpu.vector_store %arg6[%c0_48, %c0_49], %44 {strides = array<i32>} : memref<64x8xf32, #tpu.memory_space<vmem>>, vector<64x8xf32>,
    %c0_50 = arith.constant 0 : index
    %c0_51 = arith.constant 0 : index
    %c4 = arith.constant 4 : index
    %c0_52 = arith.constant 0 : index
    %46 = vector.load %arg2[%c0_50, %c0_51, %c4, %c0_52] : memref<1x12x12x3xbf16, #tpu.memory_space<vmem>>, vector<1x8x8x3xbf16>
    %47 = vector.shape_cast %46 : vector<1x8x8x3xbf16> to vector<8x8x3xbf16>
    %48 = arith.extf %47 : vector<8x8x3xbf16> to vector<8x8x3xf32>
    %49 = vector.shape_cast %48 : vector<8x8x3xf32> to vector<64x3xf32>
    %50 = arith.truncf %49 : vector<64x3xf32> to vector<64x3xbf16>
    %c0_53 = arith.constant 0 : index
    %c0_54 = arith.constant 0 : index
    %51 = vector.load %arg6[%c0_53, %c0_54] : memref<64x8xf32, #tpu.memory_space<vmem>>, vector<64x8xf32>
    %c0_55 = arith.constant 0 : index
    %c4_56 = arith.constant 4 : index
    %c0_57 = arith.constant 0 : index
    %c0_58 = arith.constant 0 : index
    %52 = vector.load %arg3[%c0_55, %c4_56, %c0_57, %c0_58] : memref<5x5x3x8xbf16, #tpu.memory_space<vmem>>, vector<1x1x3x8xbf16>
    %53 = vector.shape_cast %52 : vector<1x1x3x8xbf16> to vector<3x8xbf16>
    %cst_59 = arith.constant dense<0.000000e+00> : vector<64x8xf32>
    %54 = tpu.matmul %50, %53, %cst_59 {dimension_numbers = #tpu.dot_dimension_numbers<[1], [0], [0], [1], [0, 0, 1, 1], [], []>} : vector<64x3xbf16>, vector<3x8xbf16>, vector<64x8xf32> -> vector<64x8xf32>
    %55 = arith.addf %51, %54 : vector<64x8xf32>
    %c0_60 = arith.constant 0 : index
    %c0_61 = arith.constant 0 : index
    %56 = vector.load %arg6[%c0_60, %c0_61] : memref<64x8xf32, #tpu.memory_space<vmem>>, vector<64x8xf32>
    tpu.vector_store %arg6[%c0_60, %c0_61], %55 {strides = array<i32>} : memref<64x8xf32, #tpu.memory_space<vmem>>, vector<64x8xf32>,
    %c0_62 = arith.constant 0 : index
    %c1_63 = arith.constant 1 : index
    %c0_64 = arith.constant 0 : index
    %c0_65 = arith.constant 0 : index
    %57 = vector.load %arg2[%c0_62, %c1_63, %c0_64, %c0_65] : memref<1x12x12x3xbf16, #tpu.memory_space<vmem>>, vector<1x8x8x3xbf16>
    %58 = vector.shape_cast %57 : vector<1x8x8x3xbf16> to vector<8x8x3xbf16>
    %59 = arith.extf %58 : vector<8x8x3xbf16> to vector<8x8x3xf32>
    %60 = vector.shape_cast %59 : vector<8x8x3xf32> to vector<64x3xf32>
    %61 = arith.truncf %60 : vector<64x3xf32> to vector<64x3xbf16>
    %c0_66 = arith.constant 0 : index
    %c0_67 = arith.constant 0 : index
    %62 = vector.load %arg6[%c0_66, %c0_67] : memref<64x8xf32, #tpu.memory_space<vmem>>, vector<64x8xf32>
    %c1_68 = arith.constant 1 : index
    %c0_69 = arith.constant 0 : index
    %c0_70 = arith.constant 0 : index
    %c0_71 = arith.constant 0 : index
    %63 = vector.load %arg3[%c1_68, %c0_69, %c0_70, %c0_71] : memref<5x5x3x8xbf16, #tpu.memory_space<vmem>>, vector<1x1x3x8xbf16>
    %64 = vector.shape_cast %63 : vector<1x1x3x8xbf16> to vector<3x8xbf16>
    %cst_72 = arith.constant dense<0.000000e+00> : vector<64x8xf32>
    %65 = tpu.matmul %61, %64, %cst_72 {dimension_numbers = #tpu.dot_dimension_numbers<[1], [0], [0], [1], [0, 0, 1, 1], [], []>} : vector<64x3xbf16>, vector<3x8xbf16>, vector<64x8xf32> -> vector<64x8xf32>
    %66 = arith.addf %62, %65 : vector<64x8xf32>
    %c0_73 = arith.constant 0 : index
    %c0_74 = arith.constant 0 : index
    %67 = vector.load %arg6[%c0_73, %c0_74] : memref<64x8xf32, #tpu.memory_space<vmem>>, vector<64x8xf32>
    tpu.vector_store %arg6[%c0_73, %c0_74], %66 {strides = array<i32>} : memref<64x8xf32, #tpu.memory_space<vmem>>, vector<64x8xf32>,
    %c0_75 = arith.constant 0 : index
    %c1_76 = arith.constant 1 : index
    %c1_77 = arith.constant 1 : index
    %c0_78 = arith.constant 0 : index
    %68 = vector.load %arg2[%c0_75, %c1_76, %c1_77, %c0_78] : memref<1x12x12x3xbf16, #tpu.memory_space<vmem>>, vector<1x8x8x3xbf16>
    %69 = vector.shape_cast %68 : vector<1x8x8x3xbf16> to vector<8x8x3xbf16>
    %70 = arith.extf %69 : vector<8x8x3xbf16> to vector<8x8x3xf32>
    %71 = vector.shape_cast %70 : vector<8x8x3xf32> to vector<64x3xf32>
    %72 = arith.truncf %71 : vector<64x3xf32> to vector<64x3xbf16>
    %c0_79 = arith.constant 0 : index
    %c0_80 = arith.constant 0 : index
    %73 = vector.load %arg6[%c0_79, %c0_80] : memref<64x8xf32, #tpu.memory_space<vmem>>, vector<64x8xf32>
    %c1_81 = arith.constant 1 : index
    %c1_82 = arith.constant 1 : index
    %c0_83 = arith.constant 0 : index
    %c0_84 = arith.constant 0 : index
    %74 = vector.load %arg3[%c1_81, %c1_82, %c0_83, %c0_84] : memref<5x5x3x8xbf16, #tpu.memory_space<vmem>>, vector<1x1x3x8xbf16>
    %75 = vector.shape_cast %74 : vector<1x1x3x8xbf16> to vector<3x8xbf16>
    %cst_85 = arith.constant dense<0.000000e+00> : vector<64x8xf32>
    %76 = tpu.matmul %72, %75, %cst_85 {dimension_numbers = #tpu.dot_dimension_numbers<[1], [0], [0], [1], [0, 0, 1, 1], [], []>} : vector<64x3xbf16>, vector<3x8xbf16>, vector<64x8xf32> -> vector<64x8xf32>
    %77 = arith.addf %73, %76 : vector<64x8xf32>
    %c0_86 = arith.constant 0 : index
    %c0_87 = arith.constant 0 : index
    %78 = vector.load %arg6[%c0_86, %c0_87] : memref<64x8xf32, #tpu.memory_space<vmem>>, vector<64x8xf32>
    tpu.vector_store %arg6[%c0_86, %c0_87], %77 {strides = array<i32>} : memref<64x8xf32, #tpu.memory_space<vmem>>, vector<64x8xf32>,
    %c0_88 = arith.constant 0 : index
    %c1_89 = arith.constant 1 : index
    %c2_90 = arith.constant 2 : index
    %c0_91 = arith.constant 0 : index
    %79 = vector.load %arg2[%c0_88, %c1_89, %c2_90, %c0_91] : memref<1x12x12x3xbf16, #tpu.memory_space<vmem>>, vector<1x8x8x3xbf16>
    %80 = vector.shape_cast %79 : vector<1x8x8x3xbf16> to vector<8x8x3xbf16>
    %81 = arith.extf %80 : vector<8x8x3xbf16> to vector<8x8x3xf32>
    %82 = vector.shape_cast %81 : vector<8x8x3xf32> to vector<64x3xf32>
    %83 = arith.truncf %82 : vector<64x3xf32> to vector<64x3xbf16>
    %c0_92 = arith.constant 0 : index
    %c0_93 = arith.constant 0 : index
    %84 = vector.load %arg6[%c0_92, %c0_93] : memref<64x8xf32, #tpu.memory_space<vmem>>, vector<64x8xf32>
    %c1_94 = arith.constant 1 : index
    %c2_95 = arith.constant 2 : index
    %c0_96 = arith.constant 0 : index
    %c0_97 = arith.constant 0 : index
    %85 = vector.load %arg3[%c1_94, %c2_95, %c0_96, %c0_97] : memref<5x5x3x8xbf16, #tpu.memory_space<vmem>>, vector<1x1x3x8xbf16>
    %86 = vector.shape_cast %85 : vector<1x1x3x8xbf16> to vector<3x8xbf16>
    %cst_98 = arith.constant dense<0.000000e+00> : vector<64x8xf32>
    %87 = tpu.matmul %83, %86, %cst_98 {dimension_numbers = #tpu.dot_dimension_numbers<[1], [0], [0], [1], [0, 0, 1, 1], [], []>} : vector<64x3xbf16>, vector<3x8xbf16>, vector<64x8xf32> -> vector<64x8xf32>
    %88 = arith.addf %84, %87 : vector<64x8xf32>
    %c0_99 = arith.constant 0 : index
    %c0_100 = arith.constant 0 : index
    %89 = vector.load %arg6[%c0_99, %c0_100] : memref<64x8xf32, #tpu.memory_space<vmem>>, vector<64x8xf32>
    tpu.vector_store %arg6[%c0_99, %c0_100], %88 {strides = array<i32>} : memref<64x8xf32, #tpu.memory_space<vmem>>, vector<64x8xf32>,
    %c0_101 = arith.constant 0 : index
    %c1_102 = arith.constant 1 : index
    %c3_103 = arith.constant 3 : index
    %c0_104 = arith.constant 0 : index
    %90 = vector.load %arg2[%c0_101, %c1_102, %c3_103, %c0_104] : memref<1x12x12x3xbf16, #tpu.memory_space<vmem>>, vector<1x8x8x3xbf16>
    %91 = vector.shape_cast %90 : vector<1x8x8x3xbf16> to vector<8x8x3xbf16>
    %92 = arith.extf %91 : vector<8x8x3xbf16> to vector<8x8x3xf32>
    %93 = vector.shape_cast %92 : vector<8x8x3xf32> to vector<64x3xf32>
    %94 = arith.truncf %93 : vector<64x3xf32> to vector<64x3xbf16>
    %c0_105 = arith.constant 0 : index
    %c0_106 = arith.constant 0 : index
    %95 = vector.load %arg6[%c0_105, %c0_106] : memref<64x8xf32, #tpu.memory_space<vmem>>, vector<64x8xf32>
    %c1_107 = arith.constant 1 : index
    %c3_108 = arith.constant 3 : index
    %c0_109 = arith.constant 0 : index
    %c0_110 = arith.constant 0 : index
    %96 = vector.load %arg3[%c1_107, %c3_108, %c0_109, %c0_110] : memref<5x5x3x8xbf16, #tpu.memory_space<vmem>>, vector<1x1x3x8xbf16>
    %97 = vector.shape_cast %96 : vector<1x1x3x8xbf16> to vector<3x8xbf16>
    %cst_111 = arith.constant dense<0.000000e+00> : vector<64x8xf32>
    %98 = tpu.matmul %94, %97, %cst_111 {dimension_numbers = #tpu.dot_dimension_numbers<[1], [0], [0], [1], [0, 0, 1, 1], [], []>} : vector<64x3xbf16>, vector<3x8xbf16>, vector<64x8xf32> -> vector<64x8xf32>
    %99 = arith.addf %95, %98 : vector<64x8xf32>
    %c0_112 = arith.constant 0 : index
    %c0_113 = arith.constant 0 : index
    %100 = vector.load %arg6[%c0_112, %c0_113] : memref<64x8xf32, #tpu.memory_space<vmem>>, vector<64x8xf32>
    tpu.vector_store %arg6[%c0_112, %c0_113], %99 {strides = array<i32>} : memref<64x8xf32, #tpu.memory_space<vmem>>, vector<64x8xf32>,
    %c0_114 = arith.constant 0 : index
    %c1_115 = arith.constant 1 : index
    %c4_116 = arith.constant 4 : index
    %c0_117 = arith.constant 0 : index
    %101 = vector.load %arg2[%c0_114, %c1_115, %c4_116, %c0_117] : memref<1x12x12x3xbf16, #tpu.memory_space<vmem>>, vector<1x8x8x3xbf16>
    %102 = vector.shape_cast %101 : vector<1x8x8x3xbf16> to vector<8x8x3xbf16>
    %103 = arith.extf %102 : vector<8x8x3xbf16> to vector<8x8x3xf32>
    %104 = vector.shape_cast %103 : vector<8x8x3xf32> to vector<64x3xf32>
    %105 = arith.truncf %104 : vector<64x3xf32> to vector<64x3xbf16>
    %c0_118 = arith.constant 0 : index
    %c0_119 = arith.constant 0 : index
    %106 = vector.load %arg6[%c0_118, %c0_119] : memref<64x8xf32, #tpu.memory_space<vmem>>, vector<64x8xf32>
    %c1_120 = arith.constant 1 : index
    %c4_121 = arith.constant 4 : index
    %c0_122 = arith.constant 0 : index
    %c0_123 = arith.constant 0 : index
    %107 = vector.load %arg3[%c1_120, %c4_121, %c0_122, %c0_123] : memref<5x5x3x8xbf16, #tpu.memory_space<vmem>>, vector<1x1x3x8xbf16>
    %108 = vector.shape_cast %107 : vector<1x1x3x8xbf16> to vector<3x8xbf16>
    %cst_124 = arith.constant dense<0.000000e+00> : vector<64x8xf32>
    %109 = tpu.matmul %105, %108, %cst_124 {dimension_numbers = #tpu.dot_dimension_numbers<[1], [0], [0], [1], [0, 0, 1, 1], [], []>} : vector<64x3xbf16>, vector<3x8xbf16>, vector<64x8xf32> -> vector<64x8xf32>
    %110 = arith.addf %106, %109 : vector<64x8xf32>
    %c0_125 = arith.constant 0 : index
    %c0_126 = arith.constant 0 : index
    %111 = vector.load %arg6[%c0_125, %c0_126] : memref<64x8xf32, #tpu.memory_space<vmem>>, vector<64x8xf32>
    tpu.vector_store %arg6[%c0_125, %c0_126], %110 {strides = array<i32>} : memref<64x8xf32, #tpu.memory_space<vmem>>, vector<64x8xf32>,
    %c0_127 = arith.constant 0 : index
    %c2_128 = arith.constant 2 : index
    %c0_129 = arith.constant 0 : index
    %c0_130 = arith.constant 0 : index
    %112 = vector.load %arg2[%c0_127, %c2_128, %c0_129, %c0_130] : memref<1x12x12x3xbf16, #tpu.memory_space<vmem>>, vector<1x8x8x3xbf16>
    %113 = vector.shape_cast %112 : vector<1x8x8x3xbf16> to vector<8x8x3xbf16>
    %114 = arith.extf %113 : vector<8x8x3xbf16> to vector<8x8x3xf32>
    %115 = vector.shape_cast %114 : vector<8x8x3xf32> to vector<64x3xf32>
    %116 = arith.truncf %115 : vector<64x3xf32> to vector<64x3xbf16>
    %c0_131 = arith.constant 0 : index
    %c0_132 = arith.constant 0 : index
    %117 = vector.load %arg6[%c0_131, %c0_132] : memref<64x8xf32, #tpu.memory_space<vmem>>, vector<64x8xf32>
    %c2_133 = arith.constant 2 : index
    %c0_134 = arith.constant 0 : index
    %c0_135 = arith.constant 0 : index
    %c0_136 = arith.constant 0 : index
    %118 = vector.load %arg3[%c2_133, %c0_134, %c0_135, %c0_136] : memref<5x5x3x8xbf16, #tpu.memory_space<vmem>>, vector<1x1x3x8xbf16>
    %119 = vector.shape_cast %118 : vector<1x1x3x8xbf16> to vector<3x8xbf16>
    %cst_137 = arith.constant dense<0.000000e+00> : vector<64x8xf32>
    %120 = tpu.matmul %116, %119, %cst_137 {dimension_numbers = #tpu.dot_dimension_numbers<[1], [0], [0], [1], [0, 0, 1, 1], [], []>} : vector<64x3xbf16>, vector<3x8xbf16>, vector<64x8xf32> -> vector<64x8xf32>
    %121 = arith.addf %117, %120 : vector<64x8xf32>
    %c0_138 = arith.constant 0 : index
    %c0_139 = arith.constant 0 : index
    %122 = vector.load %arg6[%c0_138, %c0_139] : memref<64x8xf32, #tpu.memory_space<vmem>>, vector<64x8xf32>
    tpu.vector_store %arg6[%c0_138, %c0_139], %121 {strides = array<i32>} : memref<64x8xf32, #tpu.memory_space<vmem>>, vector<64x8xf32>,
    %c0_140 = arith.constant 0 : index
    %c2_141 = arith.constant 2 : index
    %c1_142 = arith.constant 1 : index
    %c0_143 = arith.constant 0 : index
    %123 = vector.load %arg2[%c0_140, %c2_141, %c1_142, %c0_143] : memref<1x12x12x3xbf16, #tpu.memory_space<vmem>>, vector<1x8x8x3xbf16>
    %124 = vector.shape_cast %123 : vector<1x8x8x3xbf16> to vector<8x8x3xbf16>
    %125 = arith.extf %124 : vector<8x8x3xbf16> to vector<8x8x3xf32>
    %126 = vector.shape_cast %125 : vector<8x8x3xf32> to vector<64x3xf32>
    %127 = arith.truncf %126 : vector<64x3xf32> to vector<64x3xbf16>
    %c0_144 = arith.constant 0 : index
    %c0_145 = arith.constant 0 : index
    %128 = vector.load %arg6[%c0_144, %c0_145] : memref<64x8xf32, #tpu.memory_space<vmem>>, vector<64x8xf32>
    %c2_146 = arith.constant 2 : index
    %c1_147 = arith.constant 1 : index
    %c0_148 = arith.constant 0 : index
    %c0_149 = arith.constant 0 : index
    %129 = vector.load %arg3[%c2_146, %c1_147, %c0_148, %c0_149] : memref<5x5x3x8xbf16, #tpu.memory_space<vmem>>, vector<1x1x3x8xbf16>
    %130 = vector.shape_cast %129 : vector<1x1x3x8xbf16> to vector<3x8xbf16>
    %cst_150 = arith.constant dense<0.000000e+00> : vector<64x8xf32>
    %131 = tpu.matmul %127, %130, %cst_150 {dimension_numbers = #tpu.dot_dimension_numbers<[1], [0], [0], [1], [0, 0, 1, 1], [], []>} : vector<64x3xbf16>, vector<3x8xbf16>, vector<64x8xf32> -> vector<64x8xf32>
    %132 = arith.addf %128, %131 : vector<64x8xf32>
    %c0_151 = arith.constant 0 : index
    %c0_152 = arith.constant 0 : index
    %133 = vector.load %arg6[%c0_151, %c0_152] : memref<64x8xf32, #tpu.memory_space<vmem>>, vector<64x8xf32>
    tpu.vector_store %arg6[%c0_151, %c0_152], %132 {strides = array<i32>} : memref<64x8xf32, #tpu.memory_space<vmem>>, vector<64x8xf32>,
    %c0_153 = arith.constant 0 : index
    %c2_154 = arith.constant 2 : index
    %c2_155 = arith.constant 2 : index
    %c0_156 = arith.constant 0 : index
    %134 = vector.load %arg2[%c0_153, %c2_154, %c2_155, %c0_156] : memref<1x12x12x3xbf16, #tpu.memory_space<vmem>>, vector<1x8x8x3xbf16>
    %135 = vector.shape_cast %134 : vector<1x8x8x3xbf16> to vector<8x8x3xbf16>
    %136 = arith.extf %135 : vector<8x8x3xbf16> to vector<8x8x3xf32>
    %137 = vector.shape_cast %136 : vector<8x8x3xf32> to vector<64x3xf32>
    %138 = arith.truncf %137 : vector<64x3xf32> to vector<64x3xbf16>
    %c0_157 = arith.constant 0 : index
    %c0_158 = arith.constant 0 : index
    %139 = vector.load %arg6[%c0_157, %c0_158] : memref<64x8xf32, #tpu.memory_space<vmem>>, vector<64x8xf32>
    %c2_159 = arith.constant 2 : index
    %c2_160 = arith.constant 2 : index
    %c0_161 = arith.constant 0 : index
    %c0_162 = arith.constant 0 : index
    %140 = vector.load %arg3[%c2_159, %c2_160, %c0_161, %c0_162] : memref<5x5x3x8xbf16, #tpu.memory_space<vmem>>, vector<1x1x3x8xbf16>
    %141 = vector.shape_cast %140 : vector<1x1x3x8xbf16> to vector<3x8xbf16>
    %cst_163 = arith.constant dense<0.000000e+00> : vector<64x8xf32>
    %142 = tpu.matmul %138, %141, %cst_163 {dimension_numbers = #tpu.dot_dimension_numbers<[1], [0], [0], [1], [0, 0, 1, 1], [], []>} : vector<64x3xbf16>, vector<3x8xbf16>, vector<64x8xf32> -> vector<64x8xf32>
    %143 = arith.addf %139, %142 : vector<64x8xf32>
    %c0_164 = arith.constant 0 : index
    %c0_165 = arith.constant 0 : index
    %144 = vector.load %arg6[%c0_164, %c0_165] : memref<64x8xf32, #tpu.memory_space<vmem>>, vector<64x8xf32>
    tpu.vector_store %arg6[%c0_164, %c0_165], %143 {strides = array<i32>} : memref<64x8xf32, #tpu.memory_space<vmem>>, vector<64x8xf32>,
    %c0_166 = arith.constant 0 : index
    %c2_167 = arith.constant 2 : index
    %c3_168 = arith.constant 3 : index
    %c0_169 = arith.constant 0 : index
    %145 = vector.load %arg2[%c0_166, %c2_167, %c3_168, %c0_169] : memref<1x12x12x3xbf16, #tpu.memory_space<vmem>>, vector<1x8x8x3xbf16>
    %146 = vector.shape_cast %145 : vector<1x8x8x3xbf16> to vector<8x8x3xbf16>
    %147 = arith.extf %146 : vector<8x8x3xbf16> to vector<8x8x3xf32>
    %148 = vector.shape_cast %147 : vector<8x8x3xf32> to vector<64x3xf32>
    %149 = arith.truncf %148 : vector<64x3xf32> to vector<64x3xbf16>
    %c0_170 = arith.constant 0 : index
    %c0_171 = arith.constant 0 : index
    %150 = vector.load %arg6[%c0_170, %c0_171] : memref<64x8xf32, #tpu.memory_space<vmem>>, vector<64x8xf32>
    %c2_172 = arith.constant 2 : index
    %c3_173 = arith.constant 3 : index
    %c0_174 = arith.constant 0 : index
    %c0_175 = arith.constant 0 : index
    %151 = vector.load %arg3[%c2_172, %c3_173, %c0_174, %c0_175] : memref<5x5x3x8xbf16, #tpu.memory_space<vmem>>, vector<1x1x3x8xbf16>
    %152 = vector.shape_cast %151 : vector<1x1x3x8xbf16> to vector<3x8xbf16>
    %cst_176 = arith.constant dense<0.000000e+00> : vector<64x8xf32>
    %153 = tpu.matmul %149, %152, %cst_176 {dimension_numbers = #tpu.dot_dimension_numbers<[1], [0], [0], [1], [0, 0, 1, 1], [], []>} : vector<64x3xbf16>, vector<3x8xbf16>, vector<64x8xf32> -> vector<64x8xf32>
    %154 = arith.addf %150, %153 : vector<64x8xf32>
    %c0_177 = arith.constant 0 : index
    %c0_178 = arith.constant 0 : index
    %155 = vector.load %arg6[%c0_177, %c0_178] : memref<64x8xf32, #tpu.memory_space<vmem>>, vector<64x8xf32>
    tpu.vector_store %arg6[%c0_177, %c0_178], %154 {strides = array<i32>} : memref<64x8xf32, #tpu.memory_space<vmem>>, vector<64x8xf32>,
    %c0_179 = arith.constant 0 : index
    %c2_180 = arith.constant 2 : index
    %c4_181 = arith.constant 4 : index
    %c0_182 = arith.constant 0 : index
    %156 = vector.load %arg2[%c0_179, %c2_180, %c4_181, %c0_182] : memref<1x12x12x3xbf16, #tpu.memory_space<vmem>>, vector<1x8x8x3xbf16>
    %157 = vector.shape_cast %156 : vector<1x8x8x3xbf16> to vector<8x8x3xbf16>
    %158 = arith.extf %157 : vector<8x8x3xbf16> to vector<8x8x3xf32>
    %159 = vector.shape_cast %158 : vector<8x8x3xf32> to vector<64x3xf32>
    %160 = arith.truncf %159 : vector<64x3xf32> to vector<64x3xbf16>
    %c0_183 = arith.constant 0 : index
    %c0_184 = arith.constant 0 : index
    %161 = vector.load %arg6[%c0_183, %c0_184] : memref<64x8xf32, #tpu.memory_space<vmem>>, vector<64x8xf32>
    %c2_185 = arith.constant 2 : index
    %c4_186 = arith.constant 4 : index
    %c0_187 = arith.constant 0 : index
    %c0_188 = arith.constant 0 : index
    %162 = vector.load %arg3[%c2_185, %c4_186, %c0_187, %c0_188] : memref<5x5x3x8xbf16, #tpu.memory_space<vmem>>, vector<1x1x3x8xbf16>
    %163 = vector.shape_cast %162 : vector<1x1x3x8xbf16> to vector<3x8xbf16>
    %cst_189 = arith.constant dense<0.000000e+00> : vector<64x8xf32>
    %164 = tpu.matmul %160, %163, %cst_189 {dimension_numbers = #tpu.dot_dimension_numbers<[1], [0], [0], [1], [0, 0, 1, 1], [], []>} : vector<64x3xbf16>, vector<3x8xbf16>, vector<64x8xf32> -> vector<64x8xf32>
    %165 = arith.addf %161, %164 : vector<64x8xf32>
    %c0_190 = arith.constant 0 : index
    %c0_191 = arith.constant 0 : index
    %166 = vector.load %arg6[%c0_190, %c0_191] : memref<64x8xf32, #tpu.memory_space<vmem>>, vector<64x8xf32>
    tpu.vector_store %arg6[%c0_190, %c0_191], %165 {strides = array<i32>} : memref<64x8xf32, #tpu.memory_space<vmem>>, vector<64x8xf32>,
    %c0_192 = arith.constant 0 : index
    %c3_193 = arith.constant 3 : index
    %c0_194 = arith.constant 0 : index
    %c0_195 = arith.constant 0 : index
    %167 = vector.load %arg2[%c0_192, %c3_193, %c0_194, %c0_195] : memref<1x12x12x3xbf16, #tpu.memory_space<vmem>>, vector<1x8x8x3xbf16>
    %168 = vector.shape_cast %167 : vector<1x8x8x3xbf16> to vector<8x8x3xbf16>
    %169 = arith.extf %168 : vector<8x8x3xbf16> to vector<8x8x3xf32>
    %170 = vector.shape_cast %169 : vector<8x8x3xf32> to vector<64x3xf32>
    %171 = arith.truncf %170 : vector<64x3xf32> to vector<64x3xbf16>
    %c0_196 = arith.constant 0 : index
    %c0_197 = arith.constant 0 : index
    %172 = vector.load %arg6[%c0_196, %c0_197] : memref<64x8xf32, #tpu.memory_space<vmem>>, vector<64x8xf32>
    %c3_198 = arith.constant 3 : index
    %c0_199 = arith.constant 0 : index
    %c0_200 = arith.constant 0 : index
    %c0_201 = arith.constant 0 : index
    %173 = vector.load %arg3[%c3_198, %c0_199, %c0_200, %c0_201] : memref<5x5x3x8xbf16, #tpu.memory_space<vmem>>, vector<1x1x3x8xbf16>
    %174 = vector.shape_cast %173 : vector<1x1x3x8xbf16> to vector<3x8xbf16>
    %cst_202 = arith.constant dense<0.000000e+00> : vector<64x8xf32>
    %175 = tpu.matmul %171, %174, %cst_202 {dimension_numbers = #tpu.dot_dimension_numbers<[1], [0], [0], [1], [0, 0, 1, 1], [], []>} : vector<64x3xbf16>, vector<3x8xbf16>, vector<64x8xf32> -> vector<64x8xf32>
    %176 = arith.addf %172, %175 : vector<64x8xf32>
    %c0_203 = arith.constant 0 : index
    %c0_204 = arith.constant 0 : index
    %177 = vector.load %arg6[%c0_203, %c0_204] : memref<64x8xf32, #tpu.memory_space<vmem>>, vector<64x8xf32>
    tpu.vector_store %arg6[%c0_203, %c0_204], %176 {strides = array<i32>} : memref<64x8xf32, #tpu.memory_space<vmem>>, vector<64x8xf32>,
    %c0_205 = arith.constant 0 : index
    %c3_206 = arith.constant 3 : index
    %c1_207 = arith.constant 1 : index
    %c0_208 = arith.constant 0 : index
    %178 = vector.load %arg2[%c0_205, %c3_206, %c1_207, %c0_208] : memref<1x12x12x3xbf16, #tpu.memory_space<vmem>>, vector<1x8x8x3xbf16>
    %179 = vector.shape_cast %178 : vector<1x8x8x3xbf16> to vector<8x8x3xbf16>
    %180 = arith.extf %179 : vector<8x8x3xbf16> to vector<8x8x3xf32>
    %181 = vector.shape_cast %180 : vector<8x8x3xf32> to vector<64x3xf32>
    %182 = arith.truncf %181 : vector<64x3xf32> to vector<64x3xbf16>
    %c0_209 = arith.constant 0 : index
    %c0_210 = arith.constant 0 : index
    %183 = vector.load %arg6[%c0_209, %c0_210] : memref<64x8xf32, #tpu.memory_space<vmem>>, vector<64x8xf32>
    %c3_211 = arith.constant 3 : index
    %c1_212 = arith.constant 1 : index
    %c0_213 = arith.constant 0 : index
    %c0_214 = arith.constant 0 : index
    %184 = vector.load %arg3[%c3_211, %c1_212, %c0_213, %c0_214] : memref<5x5x3x8xbf16, #tpu.memory_space<vmem>>, vector<1x1x3x8xbf16>
    %185 = vector.shape_cast %184 : vector<1x1x3x8xbf16> to vector<3x8xbf16>
    %cst_215 = arith.constant dense<0.000000e+00> : vector<64x8xf32>
    %186 = tpu.matmul %182, %185, %cst_215 {dimension_numbers = #tpu.dot_dimension_numbers<[1], [0], [0], [1], [0, 0, 1, 1], [], []>} : vector<64x3xbf16>, vector<3x8xbf16>, vector<64x8xf32> -> vector<64x8xf32>
    %187 = arith.addf %183, %186 : vector<64x8xf32>
    %c0_216 = arith.constant 0 : index
    %c0_217 = arith.constant 0 : index
    %188 = vector.load %arg6[%c0_216, %c0_217] : memref<64x8xf32, #tpu.memory_space<vmem>>, vector<64x8xf32>
    tpu.vector_store %arg6[%c0_216, %c0_217], %187 {strides = array<i32>} : memref<64x8xf32, #tpu.memory_space<vmem>>, vector<64x8xf32>,
    %c0_218 = arith.constant 0 : index
    %c3_219 = arith.constant 3 : index
    %c2_220 = arith.constant 2 : index
    %c0_221 = arith.constant 0 : index
    %189 = vector.load %arg2[%c0_218, %c3_219, %c2_220, %c0_221] : memref<1x12x12x3xbf16, #tpu.memory_space<vmem>>, vector<1x8x8x3xbf16>
    %190 = vector.shape_cast %189 : vector<1x8x8x3xbf16> to vector<8x8x3xbf16>
    %191 = arith.extf %190 : vector<8x8x3xbf16> to vector<8x8x3xf32>
    %192 = vector.shape_cast %191 : vector<8x8x3xf32> to vector<64x3xf32>
    %193 = arith.truncf %192 : vector<64x3xf32> to vector<64x3xbf16>
    %c0_222 = arith.constant 0 : index
    %c0_223 = arith.constant 0 : index
    %194 = vector.load %arg6[%c0_222, %c0_223] : memref<64x8xf32, #tpu.memory_space<vmem>>, vector<64x8xf32>
    %c3_224 = arith.constant 3 : index
    %c2_225 = arith.constant 2 : index
    %c0_226 = arith.constant 0 : index
    %c0_227 = arith.constant 0 : index
    %195 = vector.load %arg3[%c3_224, %c2_225, %c0_226, %c0_227] : memref<5x5x3x8xbf16, #tpu.memory_space<vmem>>, vector<1x1x3x8xbf16>
    %196 = vector.shape_cast %195 : vector<1x1x3x8xbf16> to vector<3x8xbf16>
    %cst_228 = arith.constant dense<0.000000e+00> : vector<64x8xf32>
    %197 = tpu.matmul %193, %196, %cst_228 {dimension_numbers = #tpu.dot_dimension_numbers<[1], [0], [0], [1], [0, 0, 1, 1], [], []>} : vector<64x3xbf16>, vector<3x8xbf16>, vector<64x8xf32> -> vector<64x8xf32>
    %198 = arith.addf %194, %197 : vector<64x8xf32>
    %c0_229 = arith.constant 0 : index
    %c0_230 = arith.constant 0 : index
    %199 = vector.load %arg6[%c0_229, %c0_230] : memref<64x8xf32, #tpu.memory_space<vmem>>, vector<64x8xf32>
    tpu.vector_store %arg6[%c0_229, %c0_230], %198 {strides = array<i32>} : memref<64x8xf32, #tpu.memory_space<vmem>>, vector<64x8xf32>,
    %c0_231 = arith.constant 0 : index
    %c3_232 = arith.constant 3 : index
    %c3_233 = arith.constant 3 : index
    %c0_234 = arith.constant 0 : index
    %200 = vector.load %arg2[%c0_231, %c3_232, %c3_233, %c0_234] : memref<1x12x12x3xbf16, #tpu.memory_space<vmem>>, vector<1x8x8x3xbf16>
    %201 = vector.shape_cast %200 : vector<1x8x8x3xbf16> to vector<8x8x3xbf16>
    %202 = arith.extf %201 : vector<8x8x3xbf16> to vector<8x8x3xf32>
    %203 = vector.shape_cast %202 : vector<8x8x3xf32> to vector<64x3xf32>
    %204 = arith.truncf %203 : vector<64x3xf32> to vector<64x3xbf16>
    %c0_235 = arith.constant 0 : index
    %c0_236 = arith.constant 0 : index
    %205 = vector.load %arg6[%c0_235, %c0_236] : memref<64x8xf32, #tpu.memory_space<vmem>>, vector<64x8xf32>
    %c3_237 = arith.constant 3 : index
    %c3_238 = arith.constant 3 : index
    %c0_239 = arith.constant 0 : index
    %c0_240 = arith.constant 0 : index
    %206 = vector.load %arg3[%c3_237, %c3_238, %c0_239, %c0_240] : memref<5x5x3x8xbf16, #tpu.memory_space<vmem>>, vector<1x1x3x8xbf16>
    %207 = vector.shape_cast %206 : vector<1x1x3x8xbf16> to vector<3x8xbf16>
    %cst_241 = arith.constant dense<0.000000e+00> : vector<64x8xf32>
    %208 = tpu.matmul %204, %207, %cst_241 {dimension_numbers = #tpu.dot_dimension_numbers<[1], [0], [0], [1], [0, 0, 1, 1], [], []>} : vector<64x3xbf16>, vector<3x8xbf16>, vector<64x8xf32> -> vector<64x8xf32>
    %209 = arith.addf %205, %208 : vector<64x8xf32>
    %c0_242 = arith.constant 0 : index
    %c0_243 = arith.constant 0 : index
    %210 = vector.load %arg6[%c0_242, %c0_243] : memref<64x8xf32, #tpu.memory_space<vmem>>, vector<64x8xf32>
    tpu.vector_store %arg6[%c0_242, %c0_243], %209 {strides = array<i32>} : memref<64x8xf32, #tpu.memory_space<vmem>>, vector<64x8xf32>,
    %c0_244 = arith.constant 0 : index
    %c3_245 = arith.constant 3 : index
    %c4_246 = arith.constant 4 : index
    %c0_247 = arith.constant 0 : index
    %211 = vector.load %arg2[%c0_244, %c3_245, %c4_246, %c0_247] : memref<1x12x12x3xbf16, #tpu.memory_space<vmem>>, vector<1x8x8x3xbf16>
    %212 = vector.shape_cast %211 : vector<1x8x8x3xbf16> to vector<8x8x3xbf16>
    %213 = arith.extf %212 : vector<8x8x3xbf16> to vector<8x8x3xf32>
    %214 = vector.shape_cast %213 : vector<8x8x3xf32> to vector<64x3xf32>
    %215 = arith.truncf %214 : vector<64x3xf32> to vector<64x3xbf16>
    %c0_248 = arith.constant 0 : index
    %c0_249 = arith.constant 0 : index
    %216 = vector.load %arg6[%c0_248, %c0_249] : memref<64x8xf32, #tpu.memory_space<vmem>>, vector<64x8xf32>
    %c3_250 = arith.constant 3 : index
    %c4_251 = arith.constant 4 : index
    %c0_252 = arith.constant 0 : index
    %c0_253 = arith.constant 0 : index
    %217 = vector.load %arg3[%c3_250, %c4_251, %c0_252, %c0_253] : memref<5x5x3x8xbf16, #tpu.memory_space<vmem>>, vector<1x1x3x8xbf16>
    %218 = vector.shape_cast %217 : vector<1x1x3x8xbf16> to vector<3x8xbf16>
    %cst_254 = arith.constant dense<0.000000e+00> : vector<64x8xf32>
    %219 = tpu.matmul %215, %218, %cst_254 {dimension_numbers = #tpu.dot_dimension_numbers<[1], [0], [0], [1], [0, 0, 1, 1], [], []>} : vector<64x3xbf16>, vector<3x8xbf16>, vector<64x8xf32> -> vector<64x8xf32>
    %220 = arith.addf %216, %219 : vector<64x8xf32>
    %c0_255 = arith.constant 0 : index
    %c0_256 = arith.constant 0 : index
    %221 = vector.load %arg6[%c0_255, %c0_256] : memref<64x8xf32, #tpu.memory_space<vmem>>, vector<64x8xf32>
    tpu.vector_store %arg6[%c0_255, %c0_256], %220 {strides = array<i32>} : memref<64x8xf32, #tpu.memory_space<vmem>>, vector<64x8xf32>,
    %c0_257 = arith.constant 0 : index
    %c4_258 = arith.constant 4 : index
    %c0_259 = arith.constant 0 : index
    %c0_260 = arith.constant 0 : index
    %222 = vector.load %arg2[%c0_257, %c4_258, %c0_259, %c0_260] : memref<1x12x12x3xbf16, #tpu.memory_space<vmem>>, vector<1x8x8x3xbf16>
    %223 = vector.shape_cast %222 : vector<1x8x8x3xbf16> to vector<8x8x3xbf16>
    %224 = arith.extf %223 : vector<8x8x3xbf16> to vector<8x8x3xf32>
    %225 = vector.shape_cast %224 : vector<8x8x3xf32> to vector<64x3xf32>
    %226 = arith.truncf %225 : vector<64x3xf32> to vector<64x3xbf16>
    %c0_261 = arith.constant 0 : index
    %c0_262 = arith.constant 0 : index
    %227 = vector.load %arg6[%c0_261, %c0_262] : memref<64x8xf32, #tpu.memory_space<vmem>>, vector<64x8xf32>
    %c4_263 = arith.constant 4 : index
    %c0_264 = arith.constant 0 : index
    %c0_265 = arith.constant 0 : index
    %c0_266 = arith.constant 0 : index
    %228 = vector.load %arg3[%c4_263, %c0_264, %c0_265, %c0_266] : memref<5x5x3x8xbf16, #tpu.memory_space<vmem>>, vector<1x1x3x8xbf16>
    %229 = vector.shape_cast %228 : vector<1x1x3x8xbf16> to vector<3x8xbf16>
    %cst_267 = arith.constant dense<0.000000e+00> : vector<64x8xf32>
    %230 = tpu.matmul %226, %229, %cst_267 {dimension_numbers = #tpu.dot_dimension_numbers<[1], [0], [0], [1], [0, 0, 1, 1], [], []>} : vector<64x3xbf16>, vector<3x8xbf16>, vector<64x8xf32> -> vector<64x8xf32>
    %231 = arith.addf %227, %230 : vector<64x8xf32>
    %c0_268 = arith.constant 0 : index
    %c0_269 = arith.constant 0 : index
    %232 = vector.load %arg6[%c0_268, %c0_269] : memref<64x8xf32, #tpu.memory_space<vmem>>, vector<64x8xf32>
    tpu.vector_store %arg6[%c0_268, %c0_269], %231 {strides = array<i32>} : memref<64x8xf32, #tpu.memory_space<vmem>>, vector<64x8xf32>,
    %c0_270 = arith.constant 0 : index
    %c4_271 = arith.constant 4 : index
    %c1_272 = arith.constant 1 : index
    %c0_273 = arith.constant 0 : index
    %233 = vector.load %arg2[%c0_270, %c4_271, %c1_272, %c0_273] : memref<1x12x12x3xbf16, #tpu.memory_space<vmem>>, vector<1x8x8x3xbf16>
    %234 = vector.shape_cast %233 : vector<1x8x8x3xbf16> to vector<8x8x3xbf16>
    %235 = arith.extf %234 : vector<8x8x3xbf16> to vector<8x8x3xf32>
    %236 = vector.shape_cast %235 : vector<8x8x3xf32> to vector<64x3xf32>
    %237 = arith.truncf %236 : vector<64x3xf32> to vector<64x3xbf16>
    %c0_274 = arith.constant 0 : index
    %c0_275 = arith.constant 0 : index
    %238 = vector.load %arg6[%c0_274, %c0_275] : memref<64x8xf32, #tpu.memory_space<vmem>>, vector<64x8xf32>
    %c4_276 = arith.constant 4 : index
    %c1_277 = arith.constant 1 : index
    %c0_278 = arith.constant 0 : index
    %c0_279 = arith.constant 0 : index
    %239 = vector.load %arg3[%c4_276, %c1_277, %c0_278, %c0_279] : memref<5x5x3x8xbf16, #tpu.memory_space<vmem>>, vector<1x1x3x8xbf16>
    %240 = vector.shape_cast %239 : vector<1x1x3x8xbf16> to vector<3x8xbf16>
    %cst_280 = arith.constant dense<0.000000e+00> : vector<64x8xf32>
    %241 = tpu.matmul %237, %240, %cst_280 {dimension_numbers = #tpu.dot_dimension_numbers<[1], [0], [0], [1], [0, 0, 1, 1], [], []>} : vector<64x3xbf16>, vector<3x8xbf16>, vector<64x8xf32> -> vector<64x8xf32>
    %242 = arith.addf %238, %241 : vector<64x8xf32>
    %c0_281 = arith.constant 0 : index
    %c0_282 = arith.constant 0 : index
    %243 = vector.load %arg6[%c0_281, %c0_282] : memref<64x8xf32, #tpu.memory_space<vmem>>, vector<64x8xf32>
    tpu.vector_store %arg6[%c0_281, %c0_282], %242 {strides = array<i32>} : memref<64x8xf32, #tpu.memory_space<vmem>>, vector<64x8xf32>,
    %c0_283 = arith.constant 0 : index
    %c4_284 = arith.constant 4 : index
    %c2_285 = arith.constant 2 : index
    %c0_286 = arith.constant 0 : index
    %244 = vector.load %arg2[%c0_283, %c4_284, %c2_285, %c0_286] : memref<1x12x12x3xbf16, #tpu.memory_space<vmem>>, vector<1x8x8x3xbf16>
    %245 = vector.shape_cast %244 : vector<1x8x8x3xbf16> to vector<8x8x3xbf16>
    %246 = arith.extf %245 : vector<8x8x3xbf16> to vector<8x8x3xf32>
    %247 = vector.shape_cast %246 : vector<8x8x3xf32> to vector<64x3xf32>
    %248 = arith.truncf %247 : vector<64x3xf32> to vector<64x3xbf16>
    %c0_287 = arith.constant 0 : index
    %c0_288 = arith.constant 0 : index
    %249 = vector.load %arg6[%c0_287, %c0_288] : memref<64x8xf32, #tpu.memory_space<vmem>>, vector<64x8xf32>
    %c4_289 = arith.constant 4 : index
    %c2_290 = arith.constant 2 : index
    %c0_291 = arith.constant 0 : index
    %c0_292 = arith.constant 0 : index
    %250 = vector.load %arg3[%c4_289, %c2_290, %c0_291, %c0_292] : memref<5x5x3x8xbf16, #tpu.memory_space<vmem>>, vector<1x1x3x8xbf16>
    %251 = vector.shape_cast %250 : vector<1x1x3x8xbf16> to vector<3x8xbf16>
    %cst_293 = arith.constant dense<0.000000e+00> : vector<64x8xf32>
    %252 = tpu.matmul %248, %251, %cst_293 {dimension_numbers = #tpu.dot_dimension_numbers<[1], [0], [0], [1], [0, 0, 1, 1], [], []>} : vector<64x3xbf16>, vector<3x8xbf16>, vector<64x8xf32> -> vector<64x8xf32>
    %253 = arith.addf %249, %252 : vector<64x8xf32>
    %c0_294 = arith.constant 0 : index
    %c0_295 = arith.constant 0 : index
    %254 = vector.load %arg6[%c0_294, %c0_295] : memref<64x8xf32, #tpu.memory_space<vmem>>, vector<64x8xf32>
    tpu.vector_store %arg6[%c0_294, %c0_295], %253 {strides = array<i32>} : memref<64x8xf32, #tpu.memory_space<vmem>>, vector<64x8xf32>,
    %c0_296 = arith.constant 0 : index
    %c4_297 = arith.constant 4 : index
    %c3_298 = arith.constant 3 : index
    %c0_299 = arith.constant 0 : index
    %255 = vector.load %arg2[%c0_296, %c4_297, %c3_298, %c0_299] : memref<1x12x12x3xbf16, #tpu.memory_space<vmem>>, vector<1x8x8x3xbf16>
    %256 = vector.shape_cast %255 : vector<1x8x8x3xbf16> to vector<8x8x3xbf16>
    %257 = arith.extf %256 : vector<8x8x3xbf16> to vector<8x8x3xf32>
    %258 = vector.shape_cast %257 : vector<8x8x3xf32> to vector<64x3xf32>
    %259 = arith.truncf %258 : vector<64x3xf32> to vector<64x3xbf16>
    %c0_300 = arith.constant 0 : index
    %c0_301 = arith.constant 0 : index
    %260 = vector.load %arg6[%c0_300, %c0_301] : memref<64x8xf32, #tpu.memory_space<vmem>>, vector<64x8xf32>
    %c4_302 = arith.constant 4 : index
    %c3_303 = arith.constant 3 : index
    %c0_304 = arith.constant 0 : index
    %c0_305 = arith.constant 0 : index
    %261 = vector.load %arg3[%c4_302, %c3_303, %c0_304, %c0_305] : memref<5x5x3x8xbf16, #tpu.memory_space<vmem>>, vector<1x1x3x8xbf16>
    %262 = vector.shape_cast %261 : vector<1x1x3x8xbf16> to vector<3x8xbf16>
    %cst_306 = arith.constant dense<0.000000e+00> : vector<64x8xf32>
    %263 = tpu.matmul %259, %262, %cst_306 {dimension_numbers = #tpu.dot_dimension_numbers<[1], [0], [0], [1], [0, 0, 1, 1], [], []>} : vector<64x3xbf16>, vector<3x8xbf16>, vector<64x8xf32> -> vector<64x8xf32>
    %264 = arith.addf %260, %263 : vector<64x8xf32>
    %c0_307 = arith.constant 0 : index
    %c0_308 = arith.constant 0 : index
    %265 = vector.load %arg6[%c0_307, %c0_308] : memref<64x8xf32, #tpu.memory_space<vmem>>, vector<64x8xf32>
    tpu.vector_store %arg6[%c0_307, %c0_308], %264 {strides = array<i32>} : memref<64x8xf32, #tpu.memory_space<vmem>>, vector<64x8xf32>,
    %c0_309 = arith.constant 0 : index
    %c4_310 = arith.constant 4 : index
    %c4_311 = arith.constant 4 : index
    %c0_312 = arith.constant 0 : index
    %266 = vector.load %arg2[%c0_309, %c4_310, %c4_311, %c0_312] : memref<1x12x12x3xbf16, #tpu.memory_space<vmem>>, vector<1x8x8x3xbf16>
    %267 = vector.shape_cast %266 : vector<1x8x8x3xbf16> to vector<8x8x3xbf16>
    %268 = arith.extf %267 : vector<8x8x3xbf16> to vector<8x8x3xf32>
    %269 = vector.shape_cast %268 : vector<8x8x3xf32> to vector<64x3xf32>
    %270 = arith.truncf %269 : vector<64x3xf32> to vector<64x3xbf16>
    %c0_313 = arith.constant 0 : index
    %c0_314 = arith.constant 0 : index
    %271 = vector.load %arg6[%c0_313, %c0_314] : memref<64x8xf32, #tpu.memory_space<vmem>>, vector<64x8xf32>
    %c4_315 = arith.constant 4 : index
    %c4_316 = arith.constant 4 : index
    %c0_317 = arith.constant 0 : index
    %c0_318 = arith.constant 0 : index
    %272 = vector.load %arg3[%c4_315, %c4_316, %c0_317, %c0_318] : memref<5x5x3x8xbf16, #tpu.memory_space<vmem>>, vector<1x1x3x8xbf16>
    %273 = vector.shape_cast %272 : vector<1x1x3x8xbf16> to vector<3x8xbf16>
    %cst_319 = arith.constant dense<0.000000e+00> : vector<64x8xf32>
    %274 = tpu.matmul %270, %273, %cst_319 {dimension_numbers = #tpu.dot_dimension_numbers<[1], [0], [0], [1], [0, 0, 1, 1], [], []>} : vector<64x3xbf16>, vector<3x8xbf16>, vector<64x8xf32> -> vector<64x8xf32>
    %275 = arith.addf %271, %274 : vector<64x8xf32>
    %c0_320 = arith.constant 0 : index
    %c0_321 = arith.constant 0 : index
    %276 = vector.load %arg6[%c0_320, %c0_321] : memref<64x8xf32, #tpu.memory_space<vmem>>, vector<64x8xf32>
    tpu.vector_store %arg6[%c0_320, %c0_321], %275 {strides = array<i32>} : memref<64x8xf32, #tpu.memory_space<vmem>>, vector<64x8xf32>,
    %c0_322 = arith.constant 0 : index
    %c0_323 = arith.constant 0 : index
    %277 = vector.load %arg6[%c0_322, %c0_323] : memref<64x8xf32, #tpu.memory_space<vmem>>, vector<64x8xf32>
    %c0_324 = arith.constant 0 : index
    %c0_325 = arith.constant 0 : index
    %278 = vector.load %arg4[%c0_324, %c0_325] : memref<1x8xf32, #tpu.memory_space<vmem>>, vector<1x8xf32>
    %279 = vector.broadcast %278 : vector<1x8xf32> to vector<64x8xf32>
    %280 = arith.addf %277, %279 : vector<64x8xf32>
    %281 = vector.shape_cast %280 : vector<64x8xf32> to vector<1x8x8x8xf32>
    %282 = arith.truncf %281 : vector<1x8x8x8xf32> to vector<1x8x8x8xbf16>
    %c0_326 = arith.constant 0 : index
    %c0_327 = arith.constant 0 : index
    %c0_328 = arith.constant 0 : index
    %c0_329 = arith.constant 0 : index
    %283 = vector.load %arg5[%c0_326, %c0_327, %c0_328, %c0_329] : memref<1x8x8x8xbf16, #tpu.memory_space<vmem>>, vector<1x8x8x8xbf16>
    tpu.vector_store %arg5[%c0_326, %c0_327, %c0_328, %c0_329], %282 {strides = array<i32>} : memref<1x8x8x8xbf16, #tpu.memory_space<vmem>>, vector<1x8x8x8xbf16>,
    return
  }
  func.func @transform_0(%arg0: i32, %arg1: i32) -> (i32, i32, i32, i32) {
    %c0_i32 = arith.constant 0 : i32
    %c0_i32_0 = arith.constant 0 : i32
    %c0_i32_1 = arith.constant 0 : i32
    %c0_i32_2 = arith.constant 0 : i32
    return %arg0, %c0_i32, %c0_i32_0, %c0_i32_1 : i32, i32, i32, i32
  }
  func.func @transform_1(%arg0: i32, %arg1: i32) -> (i32, i32, i32, i32) {
    %c0_i32 = arith.constant 0 : i32
    %c0_i32_0 = arith.constant 0 : i32
    %c0_i32_1 = arith.constant 0 : i32
    %c0_i32_2 = arith.constant 0 : i32
    return %c0_i32, %c0_i32_0, %c0_i32_1, %arg1 : i32, i32, i32, i32
  }
  func.func @transform_2(%arg0: i32, %arg1: i32) -> (i32, i32) {
    %c0_i32 = arith.constant 0 : i32
    %c0_i32_0 = arith.constant 0 : i32
    return %c0_i32, %arg1 : i32, i32
  }
  func.func @transform_3(%arg0: i32, %arg1: i32) -> (i32, i32, i32, i32) {
    %c0_i32 = arith.constant 0 : i32
    %c0_i32_0 = arith.constant 0 : i32
    %c0_i32_1 = arith.constant 0 : i32
    return %arg0, %c0_i32, %c0_i32_0, %arg1 : i32, i32, i32, i32
  }
}

module attributes {stable_mosaic.version = 11 : i64} {
  func.func @kernel(%arg0: i32, %arg1: i32, %arg2: memref<1x8x8x3xbf16, #tpu.memory_space<vmem>>, %arg3: memref<5x5x3x8xbf16, #tpu.memory_space<vmem>>, %arg4: memref<1x8xf32, #tpu.memory_space<vmem>>, %arg5: memref<1x4x4x8xbf16, #tpu.memory_space<vmem>>, %arg6: memref<16x8xf32, #tpu.memory_space<vmem>>) attributes {dimension_semantics = [#tpu.dimension_semantics<parallel>, #tpu.dimension_semantics<parallel>], iteration_bounds = array<i64: 2, 1>, scalar_prefetch = 0 : i64, scratch_operands = 1 : i64, tpu.core_type = #tpu.core_type<tc>, window_params = [{transform_indices = @transform_0, window_bounds = array<i64: 1, 8, 8, 3>}, {transform_indices = @transform_1, window_bounds = array<i64: 5, 5, 3, 8>}, {transform_indices = @transform_2, window_bounds = array<i64: 1, 8>}, {transform_indices = @transform_3, window_bounds = array<i64: 1, 4, 4, 8>}]} {
    %cst = arith.constant 0.000000e+00 : f32
    %0 = vector.broadcast %cst : f32 to vector<16x8xf32>
    %c0 = arith.constant 0 : index
    %c0_0 = arith.constant 0 : index
    %1 = vector.load %arg6[%c0, %c0_0] : memref<16x8xf32, #tpu.memory_space<vmem>>, vector<16x8xf32>
    tpu.vector_store %arg6[%c0, %c0_0], %0 {strides = array<i32>} : memref<16x8xf32, #tpu.memory_space<vmem>>, vector<16x8xf32>,
    %c0_1 = arith.constant 0 : index
    %c0_2 = arith.constant 0 : index
    %c0_3 = arith.constant 0 : index
    %c0_4 = arith.constant 0 : index
    %2 = vector.load %arg2[%c0_1, %c0_2, %c0_3, %c0_4] : memref<1x8x8x3xbf16, #tpu.memory_space<vmem>>, vector<1x4x4x3xbf16>
    %3 = vector.shape_cast %2 : vector<1x4x4x3xbf16> to vector<4x4x3xbf16>
    %4 = arith.extf %3 : vector<4x4x3xbf16> to vector<4x4x3xf32>
    %5 = vector.shape_cast %4 : vector<4x4x3xf32> to vector<16x3xf32>
    %6 = arith.truncf %5 : vector<16x3xf32> to vector<16x3xbf16>
    %c0_5 = arith.constant 0 : index
    %c0_6 = arith.constant 0 : index
    %7 = vector.load %arg6[%c0_5, %c0_6] : memref<16x8xf32, #tpu.memory_space<vmem>>, vector<16x8xf32>
    %c0_7 = arith.constant 0 : index
    %c0_8 = arith.constant 0 : index
    %c0_9 = arith.constant 0 : index
    %c0_10 = arith.constant 0 : index
    %8 = vector.load %arg3[%c0_7, %c0_8, %c0_9, %c0_10] : memref<5x5x3x8xbf16, #tpu.memory_space<vmem>>, vector<1x1x3x8xbf16>
    %9 = vector.shape_cast %8 : vector<1x1x3x8xbf16> to vector<3x8xbf16>
    %cst_11 = arith.constant dense<0.000000e+00> : vector<16x8xf32>
    %10 = tpu.matmul %6, %9, %cst_11 {dimension_numbers = #tpu.dot_dimension_numbers<[1], [0], [0], [1], [0, 0, 1, 1], [], []>} : vector<16x3xbf16>, vector<3x8xbf16>, vector<16x8xf32> -> vector<16x8xf32>
    %11 = arith.addf %7, %10 : vector<16x8xf32>
    %c0_12 = arith.constant 0 : index
    %c0_13 = arith.constant 0 : index
    %12 = vector.load %arg6[%c0_12, %c0_13] : memref<16x8xf32, #tpu.memory_space<vmem>>, vector<16x8xf32>
    tpu.vector_store %arg6[%c0_12, %c0_13], %11 {strides = array<i32>} : memref<16x8xf32, #tpu.memory_space<vmem>>, vector<16x8xf32>,
    %c0_14 = arith.constant 0 : index
    %c0_15 = arith.constant 0 : index
    %c1 = arith.constant 1 : index
    %c0_16 = arith.constant 0 : index
    %13 = vector.load %arg2[%c0_14, %c0_15, %c1, %c0_16] : memref<1x8x8x3xbf16, #tpu.memory_space<vmem>>, vector<1x4x4x3xbf16>
    %14 = vector.shape_cast %13 : vector<1x4x4x3xbf16> to vector<4x4x3xbf16>
    %15 = arith.extf %14 : vector<4x4x3xbf16> to vector<4x4x3xf32>
    %16 = vector.shape_cast %15 : vector<4x4x3xf32> to vector<16x3xf32>
    %17 = arith.truncf %16 : vector<16x3xf32> to vector<16x3xbf16>
    %c0_17 = arith.constant 0 : index
    %c0_18 = arith.constant 0 : index
    %18 = vector.load %arg6[%c0_17, %c0_18] : memref<16x8xf32, #tpu.memory_space<vmem>>, vector<16x8xf32>
    %c0_19 = arith.constant 0 : index
    %c1_20 = arith.constant 1 : index
    %c0_21 = arith.constant 0 : index
    %c0_22 = arith.constant 0 : index
    %19 = vector.load %arg3[%c0_19, %c1_20, %c0_21, %c0_22] : memref<5x5x3x8xbf16, #tpu.memory_space<vmem>>, vector<1x1x3x8xbf16>
    %20 = vector.shape_cast %19 : vector<1x1x3x8xbf16> to vector<3x8xbf16>
    %cst_23 = arith.constant dense<0.000000e+00> : vector<16x8xf32>
    %21 = tpu.matmul %17, %20, %cst_23 {dimension_numbers = #tpu.dot_dimension_numbers<[1], [0], [0], [1], [0, 0, 1, 1], [], []>} : vector<16x3xbf16>, vector<3x8xbf16>, vector<16x8xf32> -> vector<16x8xf32>
    %22 = arith.addf %18, %21 : vector<16x8xf32>
    %c0_24 = arith.constant 0 : index
    %c0_25 = arith.constant 0 : index
    %23 = vector.load %arg6[%c0_24, %c0_25] : memref<16x8xf32, #tpu.memory_space<vmem>>, vector<16x8xf32>
    tpu.vector_store %arg6[%c0_24, %c0_25], %22 {strides = array<i32>} : memref<16x8xf32, #tpu.memory_space<vmem>>, vector<16x8xf32>,
    %c0_26 = arith.constant 0 : index
    %c0_27 = arith.constant 0 : index
    %c2 = arith.constant 2 : index
    %c0_28 = arith.constant 0 : index
    %24 = vector.load %arg2[%c0_26, %c0_27, %c2, %c0_28] : memref<1x8x8x3xbf16, #tpu.memory_space<vmem>>, vector<1x4x4x3xbf16>
    %25 = vector.shape_cast %24 : vector<1x4x4x3xbf16> to vector<4x4x3xbf16>
    %26 = arith.extf %25 : vector<4x4x3xbf16> to vector<4x4x3xf32>
    %27 = vector.shape_cast %26 : vector<4x4x3xf32> to vector<16x3xf32>
    %28 = arith.truncf %27 : vector<16x3xf32> to vector<16x3xbf16>
    %c0_29 = arith.constant 0 : index
    %c0_30 = arith.constant 0 : index
    %29 = vector.load %arg6[%c0_29, %c0_30] : memref<16x8xf32, #tpu.memory_space<vmem>>, vector<16x8xf32>
    %c0_31 = arith.constant 0 : index
    %c2_32 = arith.constant 2 : index
    %c0_33 = arith.constant 0 : index
    %c0_34 = arith.constant 0 : index
    %30 = vector.load %arg3[%c0_31, %c2_32, %c0_33, %c0_34] : memref<5x5x3x8xbf16, #tpu.memory_space<vmem>>, vector<1x1x3x8xbf16>
    %31 = vector.shape_cast %30 : vector<1x1x3x8xbf16> to vector<3x8xbf16>
    %cst_35 = arith.constant dense<0.000000e+00> : vector<16x8xf32>
    %32 = tpu.matmul %28, %31, %cst_35 {dimension_numbers = #tpu.dot_dimension_numbers<[1], [0], [0], [1], [0, 0, 1, 1], [], []>} : vector<16x3xbf16>, vector<3x8xbf16>, vector<16x8xf32> -> vector<16x8xf32>
    %33 = arith.addf %29, %32 : vector<16x8xf32>
    %c0_36 = arith.constant 0 : index
    %c0_37 = arith.constant 0 : index
    %34 = vector.load %arg6[%c0_36, %c0_37] : memref<16x8xf32, #tpu.memory_space<vmem>>, vector<16x8xf32>
    tpu.vector_store %arg6[%c0_36, %c0_37], %33 {strides = array<i32>} : memref<16x8xf32, #tpu.memory_space<vmem>>, vector<16x8xf32>,
    %c0_38 = arith.constant 0 : index
    %c0_39 = arith.constant 0 : index
    %c3 = arith.constant 3 : index
    %c0_40 = arith.constant 0 : index
    %35 = vector.load %arg2[%c0_38, %c0_39, %c3, %c0_40] : memref<1x8x8x3xbf16, #tpu.memory_space<vmem>>, vector<1x4x4x3xbf16>
    %36 = vector.shape_cast %35 : vector<1x4x4x3xbf16> to vector<4x4x3xbf16>
    %37 = arith.extf %36 : vector<4x4x3xbf16> to vector<4x4x3xf32>
    %38 = vector.shape_cast %37 : vector<4x4x3xf32> to vector<16x3xf32>
    %39 = arith.truncf %38 : vector<16x3xf32> to vector<16x3xbf16>
    %c0_41 = arith.constant 0 : index
    %c0_42 = arith.constant 0 : index
    %40 = vector.load %arg6[%c0_41, %c0_42] : memref<16x8xf32, #tpu.memory_space<vmem>>, vector<16x8xf32>
    %c0_43 = arith.constant 0 : index
    %c3_44 = arith.constant 3 : index
    %c0_45 = arith.constant 0 : index
    %c0_46 = arith.constant 0 : index
    %41 = vector.load %arg3[%c0_43, %c3_44, %c0_45, %c0_46] : memref<5x5x3x8xbf16, #tpu.memory_space<vmem>>, vector<1x1x3x8xbf16>
    %42 = vector.shape_cast %41 : vector<1x1x3x8xbf16> to vector<3x8xbf16>
    %cst_47 = arith.constant dense<0.000000e+00> : vector<16x8xf32>
    %43 = tpu.matmul %39, %42, %cst_47 {dimension_numbers = #tpu.dot_dimension_numbers<[1], [0], [0], [1], [0, 0, 1, 1], [], []>} : vector<16x3xbf16>, vector<3x8xbf16>, vector<16x8xf32> -> vector<16x8xf32>
    %44 = arith.addf %40, %43 : vector<16x8xf32>
    %c0_48 = arith.constant 0 : index
    %c0_49 = arith.constant 0 : index
    %45 = vector.load %arg6[%c0_48, %c0_49] : memref<16x8xf32, #tpu.memory_space<vmem>>, vector<16x8xf32>
    tpu.vector_store %arg6[%c0_48, %c0_49], %44 {strides = array<i32>} : memref<16x8xf32, #tpu.memory_space<vmem>>, vector<16x8xf32>,
    %c0_50 = arith.constant 0 : index
    %c0_51 = arith.constant 0 : index
    %c4 = arith.constant 4 : index
    %c0_52 = arith.constant 0 : index
    %46 = vector.load %arg2[%c0_50, %c0_51, %c4, %c0_52] : memref<1x8x8x3xbf16, #tpu.memory_space<vmem>>, vector<1x4x4x3xbf16>
    %47 = vector.shape_cast %46 : vector<1x4x4x3xbf16> to vector<4x4x3xbf16>
    %48 = arith.extf %47 : vector<4x4x3xbf16> to vector<4x4x3xf32>
    %49 = vector.shape_cast %48 : vector<4x4x3xf32> to vector<16x3xf32>
    %50 = arith.truncf %49 : vector<16x3xf32> to vector<16x3xbf16>
    %c0_53 = arith.constant 0 : index
    %c0_54 = arith.constant 0 : index
    %51 = vector.load %arg6[%c0_53, %c0_54] : memref<16x8xf32, #tpu.memory_space<vmem>>, vector<16x8xf32>
    %c0_55 = arith.constant 0 : index
    %c4_56 = arith.constant 4 : index
    %c0_57 = arith.constant 0 : index
    %c0_58 = arith.constant 0 : index
    %52 = vector.load %arg3[%c0_55, %c4_56, %c0_57, %c0_58] : memref<5x5x3x8xbf16, #tpu.memory_space<vmem>>, vector<1x1x3x8xbf16>
    %53 = vector.shape_cast %52 : vector<1x1x3x8xbf16> to vector<3x8xbf16>
    %cst_59 = arith.constant dense<0.000000e+00> : vector<16x8xf32>
    %54 = tpu.matmul %50, %53, %cst_59 {dimension_numbers = #tpu.dot_dimension_numbers<[1], [0], [0], [1], [0, 0, 1, 1], [], []>} : vector<16x3xbf16>, vector<3x8xbf16>, vector<16x8xf32> -> vector<16x8xf32>
    %55 = arith.addf %51, %54 : vector<16x8xf32>
    %c0_60 = arith.constant 0 : index
    %c0_61 = arith.constant 0 : index
    %56 = vector.load %arg6[%c0_60, %c0_61] : memref<16x8xf32, #tpu.memory_space<vmem>>, vector<16x8xf32>
    tpu.vector_store %arg6[%c0_60, %c0_61], %55 {strides = array<i32>} : memref<16x8xf32, #tpu.memory_space<vmem>>, vector<16x8xf32>,
    %c0_62 = arith.constant 0 : index
    %c1_63 = arith.constant 1 : index
    %c0_64 = arith.constant 0 : index
    %c0_65 = arith.constant 0 : index
    %57 = vector.load %arg2[%c0_62, %c1_63, %c0_64, %c0_65] : memref<1x8x8x3xbf16, #tpu.memory_space<vmem>>, vector<1x4x4x3xbf16>
    %58 = vector.shape_cast %57 : vector<1x4x4x3xbf16> to vector<4x4x3xbf16>
    %59 = arith.extf %58 : vector<4x4x3xbf16> to vector<4x4x3xf32>
    %60 = vector.shape_cast %59 : vector<4x4x3xf32> to vector<16x3xf32>
    %61 = arith.truncf %60 : vector<16x3xf32> to vector<16x3xbf16>
    %c0_66 = arith.constant 0 : index
    %c0_67 = arith.constant 0 : index
    %62 = vector.load %arg6[%c0_66, %c0_67] : memref<16x8xf32, #tpu.memory_space<vmem>>, vector<16x8xf32>
    %c1_68 = arith.constant 1 : index
    %c0_69 = arith.constant 0 : index
    %c0_70 = arith.constant 0 : index
    %c0_71 = arith.constant 0 : index
    %63 = vector.load %arg3[%c1_68, %c0_69, %c0_70, %c0_71] : memref<5x5x3x8xbf16, #tpu.memory_space<vmem>>, vector<1x1x3x8xbf16>
    %64 = vector.shape_cast %63 : vector<1x1x3x8xbf16> to vector<3x8xbf16>
    %cst_72 = arith.constant dense<0.000000e+00> : vector<16x8xf32>
    %65 = tpu.matmul %61, %64, %cst_72 {dimension_numbers = #tpu.dot_dimension_numbers<[1], [0], [0], [1], [0, 0, 1, 1], [], []>} : vector<16x3xbf16>, vector<3x8xbf16>, vector<16x8xf32> -> vector<16x8xf32>
    %66 = arith.addf %62, %65 : vector<16x8xf32>
    %c0_73 = arith.constant 0 : index
    %c0_74 = arith.constant 0 : index
    %67 = vector.load %arg6[%c0_73, %c0_74] : memref<16x8xf32, #tpu.memory_space<vmem>>, vector<16x8xf32>
    tpu.vector_store %arg6[%c0_73, %c0_74], %66 {strides = array<i32>} : memref<16x8xf32, #tpu.memory_space<vmem>>, vector<16x8xf32>,
    %c0_75 = arith.constant 0 : index
    %c1_76 = arith.constant 1 : index
    %c1_77 = arith.constant 1 : index
    %c0_78 = arith.constant 0 : index
    %68 = vector.load %arg2[%c0_75, %c1_76, %c1_77, %c0_78] : memref<1x8x8x3xbf16, #tpu.memory_space<vmem>>, vector<1x4x4x3xbf16>
    %69 = vector.shape_cast %68 : vector<1x4x4x3xbf16> to vector<4x4x3xbf16>
    %70 = arith.extf %69 : vector<4x4x3xbf16> to vector<4x4x3xf32>
    %71 = vector.shape_cast %70 : vector<4x4x3xf32> to vector<16x3xf32>
    %72 = arith.truncf %71 : vector<16x3xf32> to vector<16x3xbf16>
    %c0_79 = arith.constant 0 : index
    %c0_80 = arith.constant 0 : index
    %73 = vector.load %arg6[%c0_79, %c0_80] : memref<16x8xf32, #tpu.memory_space<vmem>>, vector<16x8xf32>
    %c1_81 = arith.constant 1 : index
    %c1_82 = arith.constant 1 : index
    %c0_83 = arith.constant 0 : index
    %c0_84 = arith.constant 0 : index
    %74 = vector.load %arg3[%c1_81, %c1_82, %c0_83, %c0_84] : memref<5x5x3x8xbf16, #tpu.memory_space<vmem>>, vector<1x1x3x8xbf16>
    %75 = vector.shape_cast %74 : vector<1x1x3x8xbf16> to vector<3x8xbf16>
    %cst_85 = arith.constant dense<0.000000e+00> : vector<16x8xf32>
    %76 = tpu.matmul %72, %75, %cst_85 {dimension_numbers = #tpu.dot_dimension_numbers<[1], [0], [0], [1], [0, 0, 1, 1], [], []>} : vector<16x3xbf16>, vector<3x8xbf16>, vector<16x8xf32> -> vector<16x8xf32>
    %77 = arith.addf %73, %76 : vector<16x8xf32>
    %c0_86 = arith.constant 0 : index
    %c0_87 = arith.constant 0 : index
    %78 = vector.load %arg6[%c0_86, %c0_87] : memref<16x8xf32, #tpu.memory_space<vmem>>, vector<16x8xf32>
    tpu.vector_store %arg6[%c0_86, %c0_87], %77 {strides = array<i32>} : memref<16x8xf32, #tpu.memory_space<vmem>>, vector<16x8xf32>,
    %c0_88 = arith.constant 0 : index
    %c1_89 = arith.constant 1 : index
    %c2_90 = arith.constant 2 : index
    %c0_91 = arith.constant 0 : index
    %79 = vector.load %arg2[%c0_88, %c1_89, %c2_90, %c0_91] : memref<1x8x8x3xbf16, #tpu.memory_space<vmem>>, vector<1x4x4x3xbf16>
    %80 = vector.shape_cast %79 : vector<1x4x4x3xbf16> to vector<4x4x3xbf16>
    %81 = arith.extf %80 : vector<4x4x3xbf16> to vector<4x4x3xf32>
    %82 = vector.shape_cast %81 : vector<4x4x3xf32> to vector<16x3xf32>
    %83 = arith.truncf %82 : vector<16x3xf32> to vector<16x3xbf16>
    %c0_92 = arith.constant 0 : index
    %c0_93 = arith.constant 0 : index
    %84 = vector.load %arg6[%c0_92, %c0_93] : memref<16x8xf32, #tpu.memory_space<vmem>>, vector<16x8xf32>
    %c1_94 = arith.constant 1 : index
    %c2_95 = arith.constant 2 : index
    %c0_96 = arith.constant 0 : index
    %c0_97 = arith.constant 0 : index
    %85 = vector.load %arg3[%c1_94, %c2_95, %c0_96, %c0_97] : memref<5x5x3x8xbf16, #tpu.memory_space<vmem>>, vector<1x1x3x8xbf16>
    %86 = vector.shape_cast %85 : vector<1x1x3x8xbf16> to vector<3x8xbf16>
    %cst_98 = arith.constant dense<0.000000e+00> : vector<16x8xf32>
    %87 = tpu.matmul %83, %86, %cst_98 {dimension_numbers = #tpu.dot_dimension_numbers<[1], [0], [0], [1], [0, 0, 1, 1], [], []>} : vector<16x3xbf16>, vector<3x8xbf16>, vector<16x8xf32> -> vector<16x8xf32>
    %88 = arith.addf %84, %87 : vector<16x8xf32>
    %c0_99 = arith.constant 0 : index
    %c0_100 = arith.constant 0 : index
    %89 = vector.load %arg6[%c0_99, %c0_100] : memref<16x8xf32, #tpu.memory_space<vmem>>, vector<16x8xf32>
    tpu.vector_store %arg6[%c0_99, %c0_100], %88 {strides = array<i32>} : memref<16x8xf32, #tpu.memory_space<vmem>>, vector<16x8xf32>,
    %c0_101 = arith.constant 0 : index
    %c1_102 = arith.constant 1 : index
    %c3_103 = arith.constant 3 : index
    %c0_104 = arith.constant 0 : index
    %90 = vector.load %arg2[%c0_101, %c1_102, %c3_103, %c0_104] : memref<1x8x8x3xbf16, #tpu.memory_space<vmem>>, vector<1x4x4x3xbf16>
    %91 = vector.shape_cast %90 : vector<1x4x4x3xbf16> to vector<4x4x3xbf16>
    %92 = arith.extf %91 : vector<4x4x3xbf16> to vector<4x4x3xf32>
    %93 = vector.shape_cast %92 : vector<4x4x3xf32> to vector<16x3xf32>
    %94 = arith.truncf %93 : vector<16x3xf32> to vector<16x3xbf16>
    %c0_105 = arith.constant 0 : index
    %c0_106 = arith.constant 0 : index
    %95 = vector.load %arg6[%c0_105, %c0_106] : memref<16x8xf32, #tpu.memory_space<vmem>>, vector<16x8xf32>
    %c1_107 = arith.constant 1 : index
    %c3_108 = arith.constant 3 : index
    %c0_109 = arith.constant 0 : index
    %c0_110 = arith.constant 0 : index
    %96 = vector.load %arg3[%c1_107, %c3_108, %c0_109, %c0_110] : memref<5x5x3x8xbf16, #tpu.memory_space<vmem>>, vector<1x1x3x8xbf16>
    %97 = vector.shape_cast %96 : vector<1x1x3x8xbf16> to vector<3x8xbf16>
    %cst_111 = arith.constant dense<0.000000e+00> : vector<16x8xf32>
    %98 = tpu.matmul %94, %97, %cst_111 {dimension_numbers = #tpu.dot_dimension_numbers<[1], [0], [0], [1], [0, 0, 1, 1], [], []>} : vector<16x3xbf16>, vector<3x8xbf16>, vector<16x8xf32> -> vector<16x8xf32>
    %99 = arith.addf %95, %98 : vector<16x8xf32>
    %c0_112 = arith.constant 0 : index
    %c0_113 = arith.constant 0 : index
    %100 = vector.load %arg6[%c0_112, %c0_113] : memref<16x8xf32, #tpu.memory_space<vmem>>, vector<16x8xf32>
    tpu.vector_store %arg6[%c0_112, %c0_113], %99 {strides = array<i32>} : memref<16x8xf32, #tpu.memory_space<vmem>>, vector<16x8xf32>,
    %c0_114 = arith.constant 0 : index
    %c1_115 = arith.constant 1 : index
    %c4_116 = arith.constant 4 : index
    %c0_117 = arith.constant 0 : index
    %101 = vector.load %arg2[%c0_114, %c1_115, %c4_116, %c0_117] : memref<1x8x8x3xbf16, #tpu.memory_space<vmem>>, vector<1x4x4x3xbf16>
    %102 = vector.shape_cast %101 : vector<1x4x4x3xbf16> to vector<4x4x3xbf16>
    %103 = arith.extf %102 : vector<4x4x3xbf16> to vector<4x4x3xf32>
    %104 = vector.shape_cast %103 : vector<4x4x3xf32> to vector<16x3xf32>
    %105 = arith.truncf %104 : vector<16x3xf32> to vector<16x3xbf16>
    %c0_118 = arith.constant 0 : index
    %c0_119 = arith.constant 0 : index
    %106 = vector.load %arg6[%c0_118, %c0_119] : memref<16x8xf32, #tpu.memory_space<vmem>>, vector<16x8xf32>
    %c1_120 = arith.constant 1 : index
    %c4_121 = arith.constant 4 : index
    %c0_122 = arith.constant 0 : index
    %c0_123 = arith.constant 0 : index
    %107 = vector.load %arg3[%c1_120, %c4_121, %c0_122, %c0_123] : memref<5x5x3x8xbf16, #tpu.memory_space<vmem>>, vector<1x1x3x8xbf16>
    %108 = vector.shape_cast %107 : vector<1x1x3x8xbf16> to vector<3x8xbf16>
    %cst_124 = arith.constant dense<0.000000e+00> : vector<16x8xf32>
    %109 = tpu.matmul %105, %108, %cst_124 {dimension_numbers = #tpu.dot_dimension_numbers<[1], [0], [0], [1], [0, 0, 1, 1], [], []>} : vector<16x3xbf16>, vector<3x8xbf16>, vector<16x8xf32> -> vector<16x8xf32>
    %110 = arith.addf %106, %109 : vector<16x8xf32>
    %c0_125 = arith.constant 0 : index
    %c0_126 = arith.constant 0 : index
    %111 = vector.load %arg6[%c0_125, %c0_126] : memref<16x8xf32, #tpu.memory_space<vmem>>, vector<16x8xf32>
    tpu.vector_store %arg6[%c0_125, %c0_126], %110 {strides = array<i32>} : memref<16x8xf32, #tpu.memory_space<vmem>>, vector<16x8xf32>,
    %c0_127 = arith.constant 0 : index
    %c2_128 = arith.constant 2 : index
    %c0_129 = arith.constant 0 : index
    %c0_130 = arith.constant 0 : index
    %112 = vector.load %arg2[%c0_127, %c2_128, %c0_129, %c0_130] : memref<1x8x8x3xbf16, #tpu.memory_space<vmem>>, vector<1x4x4x3xbf16>
    %113 = vector.shape_cast %112 : vector<1x4x4x3xbf16> to vector<4x4x3xbf16>
    %114 = arith.extf %113 : vector<4x4x3xbf16> to vector<4x4x3xf32>
    %115 = vector.shape_cast %114 : vector<4x4x3xf32> to vector<16x3xf32>
    %116 = arith.truncf %115 : vector<16x3xf32> to vector<16x3xbf16>
    %c0_131 = arith.constant 0 : index
    %c0_132 = arith.constant 0 : index
    %117 = vector.load %arg6[%c0_131, %c0_132] : memref<16x8xf32, #tpu.memory_space<vmem>>, vector<16x8xf32>
    %c2_133 = arith.constant 2 : index
    %c0_134 = arith.constant 0 : index
    %c0_135 = arith.constant 0 : index
    %c0_136 = arith.constant 0 : index
    %118 = vector.load %arg3[%c2_133, %c0_134, %c0_135, %c0_136] : memref<5x5x3x8xbf16, #tpu.memory_space<vmem>>, vector<1x1x3x8xbf16>
    %119 = vector.shape_cast %118 : vector<1x1x3x8xbf16> to vector<3x8xbf16>
    %cst_137 = arith.constant dense<0.000000e+00> : vector<16x8xf32>
    %120 = tpu.matmul %116, %119, %cst_137 {dimension_numbers = #tpu.dot_dimension_numbers<[1], [0], [0], [1], [0, 0, 1, 1], [], []>} : vector<16x3xbf16>, vector<3x8xbf16>, vector<16x8xf32> -> vector<16x8xf32>
    %121 = arith.addf %117, %120 : vector<16x8xf32>
    %c0_138 = arith.constant 0 : index
    %c0_139 = arith.constant 0 : index
    %122 = vector.load %arg6[%c0_138, %c0_139] : memref<16x8xf32, #tpu.memory_space<vmem>>, vector<16x8xf32>
    tpu.vector_store %arg6[%c0_138, %c0_139], %121 {strides = array<i32>} : memref<16x8xf32, #tpu.memory_space<vmem>>, vector<16x8xf32>,
    %c0_140 = arith.constant 0 : index
    %c2_141 = arith.constant 2 : index
    %c1_142 = arith.constant 1 : index
    %c0_143 = arith.constant 0 : index
    %123 = vector.load %arg2[%c0_140, %c2_141, %c1_142, %c0_143] : memref<1x8x8x3xbf16, #tpu.memory_space<vmem>>, vector<1x4x4x3xbf16>
    %124 = vector.shape_cast %123 : vector<1x4x4x3xbf16> to vector<4x4x3xbf16>
    %125 = arith.extf %124 : vector<4x4x3xbf16> to vector<4x4x3xf32>
    %126 = vector.shape_cast %125 : vector<4x4x3xf32> to vector<16x3xf32>
    %127 = arith.truncf %126 : vector<16x3xf32> to vector<16x3xbf16>
    %c0_144 = arith.constant 0 : index
    %c0_145 = arith.constant 0 : index
    %128 = vector.load %arg6[%c0_144, %c0_145] : memref<16x8xf32, #tpu.memory_space<vmem>>, vector<16x8xf32>
    %c2_146 = arith.constant 2 : index
    %c1_147 = arith.constant 1 : index
    %c0_148 = arith.constant 0 : index
    %c0_149 = arith.constant 0 : index
    %129 = vector.load %arg3[%c2_146, %c1_147, %c0_148, %c0_149] : memref<5x5x3x8xbf16, #tpu.memory_space<vmem>>, vector<1x1x3x8xbf16>
    %130 = vector.shape_cast %129 : vector<1x1x3x8xbf16> to vector<3x8xbf16>
    %cst_150 = arith.constant dense<0.000000e+00> : vector<16x8xf32>
    %131 = tpu.matmul %127, %130, %cst_150 {dimension_numbers = #tpu.dot_dimension_numbers<[1], [0], [0], [1], [0, 0, 1, 1], [], []>} : vector<16x3xbf16>, vector<3x8xbf16>, vector<16x8xf32> -> vector<16x8xf32>
    %132 = arith.addf %128, %131 : vector<16x8xf32>
    %c0_151 = arith.constant 0 : index
    %c0_152 = arith.constant 0 : index
    %133 = vector.load %arg6[%c0_151, %c0_152] : memref<16x8xf32, #tpu.memory_space<vmem>>, vector<16x8xf32>
    tpu.vector_store %arg6[%c0_151, %c0_152], %132 {strides = array<i32>} : memref<16x8xf32, #tpu.memory_space<vmem>>, vector<16x8xf32>,
    %c0_153 = arith.constant 0 : index
    %c2_154 = arith.constant 2 : index
    %c2_155 = arith.constant 2 : index
    %c0_156 = arith.constant 0 : index
    %134 = vector.load %arg2[%c0_153, %c2_154, %c2_155, %c0_156] : memref<1x8x8x3xbf16, #tpu.memory_space<vmem>>, vector<1x4x4x3xbf16>
    %135 = vector.shape_cast %134 : vector<1x4x4x3xbf16> to vector<4x4x3xbf16>
    %136 = arith.extf %135 : vector<4x4x3xbf16> to vector<4x4x3xf32>
    %137 = vector.shape_cast %136 : vector<4x4x3xf32> to vector<16x3xf32>
    %138 = arith.truncf %137 : vector<16x3xf32> to vector<16x3xbf16>
    %c0_157 = arith.constant 0 : index
    %c0_158 = arith.constant 0 : index
    %139 = vector.load %arg6[%c0_157, %c0_158] : memref<16x8xf32, #tpu.memory_space<vmem>>, vector<16x8xf32>
    %c2_159 = arith.constant 2 : index
    %c2_160 = arith.constant 2 : index
    %c0_161 = arith.constant 0 : index
    %c0_162 = arith.constant 0 : index
    %140 = vector.load %arg3[%c2_159, %c2_160, %c0_161, %c0_162] : memref<5x5x3x8xbf16, #tpu.memory_space<vmem>>, vector<1x1x3x8xbf16>
    %141 = vector.shape_cast %140 : vector<1x1x3x8xbf16> to vector<3x8xbf16>
    %cst_163 = arith.constant dense<0.000000e+00> : vector<16x8xf32>
    %142 = tpu.matmul %138, %141, %cst_163 {dimension_numbers = #tpu.dot_dimension_numbers<[1], [0], [0], [1], [0, 0, 1, 1], [], []>} : vector<16x3xbf16>, vector<3x8xbf16>, vector<16x8xf32> -> vector<16x8xf32>
    %143 = arith.addf %139, %142 : vector<16x8xf32>
    %c0_164 = arith.constant 0 : index
    %c0_165 = arith.constant 0 : index
    %144 = vector.load %arg6[%c0_164, %c0_165] : memref<16x8xf32, #tpu.memory_space<vmem>>, vector<16x8xf32>
    tpu.vector_store %arg6[%c0_164, %c0_165], %143 {strides = array<i32>} : memref<16x8xf32, #tpu.memory_space<vmem>>, vector<16x8xf32>,
    %c0_166 = arith.constant 0 : index
    %c2_167 = arith.constant 2 : index
    %c3_168 = arith.constant 3 : index
    %c0_169 = arith.constant 0 : index
    %145 = vector.load %arg2[%c0_166, %c2_167, %c3_168, %c0_169] : memref<1x8x8x3xbf16, #tpu.memory_space<vmem>>, vector<1x4x4x3xbf16>
    %146 = vector.shape_cast %145 : vector<1x4x4x3xbf16> to vector<4x4x3xbf16>
    %147 = arith.extf %146 : vector<4x4x3xbf16> to vector<4x4x3xf32>
    %148 = vector.shape_cast %147 : vector<4x4x3xf32> to vector<16x3xf32>
    %149 = arith.truncf %148 : vector<16x3xf32> to vector<16x3xbf16>
    %c0_170 = arith.constant 0 : index
    %c0_171 = arith.constant 0 : index
    %150 = vector.load %arg6[%c0_170, %c0_171] : memref<16x8xf32, #tpu.memory_space<vmem>>, vector<16x8xf32>
    %c2_172 = arith.constant 2 : index
    %c3_173 = arith.constant 3 : index
    %c0_174 = arith.constant 0 : index
    %c0_175 = arith.constant 0 : index
    %151 = vector.load %arg3[%c2_172, %c3_173, %c0_174, %c0_175] : memref<5x5x3x8xbf16, #tpu.memory_space<vmem>>, vector<1x1x3x8xbf16>
    %152 = vector.shape_cast %151 : vector<1x1x3x8xbf16> to vector<3x8xbf16>
    %cst_176 = arith.constant dense<0.000000e+00> : vector<16x8xf32>
    %153 = tpu.matmul %149, %152, %cst_176 {dimension_numbers = #tpu.dot_dimension_numbers<[1], [0], [0], [1], [0, 0, 1, 1], [], []>} : vector<16x3xbf16>, vector<3x8xbf16>, vector<16x8xf32> -> vector<16x8xf32>
    %154 = arith.addf %150, %153 : vector<16x8xf32>
    %c0_177 = arith.constant 0 : index
    %c0_178 = arith.constant 0 : index
    %155 = vector.load %arg6[%c0_177, %c0_178] : memref<16x8xf32, #tpu.memory_space<vmem>>, vector<16x8xf32>
    tpu.vector_store %arg6[%c0_177, %c0_178], %154 {strides = array<i32>} : memref<16x8xf32, #tpu.memory_space<vmem>>, vector<16x8xf32>,
    %c0_179 = arith.constant 0 : index
    %c2_180 = arith.constant 2 : index
    %c4_181 = arith.constant 4 : index
    %c0_182 = arith.constant 0 : index
    %156 = vector.load %arg2[%c0_179, %c2_180, %c4_181, %c0_182] : memref<1x8x8x3xbf16, #tpu.memory_space<vmem>>, vector<1x4x4x3xbf16>
    %157 = vector.shape_cast %156 : vector<1x4x4x3xbf16> to vector<4x4x3xbf16>
    %158 = arith.extf %157 : vector<4x4x3xbf16> to vector<4x4x3xf32>
    %159 = vector.shape_cast %158 : vector<4x4x3xf32> to vector<16x3xf32>
    %160 = arith.truncf %159 : vector<16x3xf32> to vector<16x3xbf16>
    %c0_183 = arith.constant 0 : index
    %c0_184 = arith.constant 0 : index
    %161 = vector.load %arg6[%c0_183, %c0_184] : memref<16x8xf32, #tpu.memory_space<vmem>>, vector<16x8xf32>
    %c2_185 = arith.constant 2 : index
    %c4_186 = arith.constant 4 : index
    %c0_187 = arith.constant 0 : index
    %c0_188 = arith.constant 0 : index
    %162 = vector.load %arg3[%c2_185, %c4_186, %c0_187, %c0_188] : memref<5x5x3x8xbf16, #tpu.memory_space<vmem>>, vector<1x1x3x8xbf16>
    %163 = vector.shape_cast %162 : vector<1x1x3x8xbf16> to vector<3x8xbf16>
    %cst_189 = arith.constant dense<0.000000e+00> : vector<16x8xf32>
    %164 = tpu.matmul %160, %163, %cst_189 {dimension_numbers = #tpu.dot_dimension_numbers<[1], [0], [0], [1], [0, 0, 1, 1], [], []>} : vector<16x3xbf16>, vector<3x8xbf16>, vector<16x8xf32> -> vector<16x8xf32>
    %165 = arith.addf %161, %164 : vector<16x8xf32>
    %c0_190 = arith.constant 0 : index
    %c0_191 = arith.constant 0 : index
    %166 = vector.load %arg6[%c0_190, %c0_191] : memref<16x8xf32, #tpu.memory_space<vmem>>, vector<16x8xf32>
    tpu.vector_store %arg6[%c0_190, %c0_191], %165 {strides = array<i32>} : memref<16x8xf32, #tpu.memory_space<vmem>>, vector<16x8xf32>,
    %c0_192 = arith.constant 0 : index
    %c3_193 = arith.constant 3 : index
    %c0_194 = arith.constant 0 : index
    %c0_195 = arith.constant 0 : index
    %167 = vector.load %arg2[%c0_192, %c3_193, %c0_194, %c0_195] : memref<1x8x8x3xbf16, #tpu.memory_space<vmem>>, vector<1x4x4x3xbf16>
    %168 = vector.shape_cast %167 : vector<1x4x4x3xbf16> to vector<4x4x3xbf16>
    %169 = arith.extf %168 : vector<4x4x3xbf16> to vector<4x4x3xf32>
    %170 = vector.shape_cast %169 : vector<4x4x3xf32> to vector<16x3xf32>
    %171 = arith.truncf %170 : vector<16x3xf32> to vector<16x3xbf16>
    %c0_196 = arith.constant 0 : index
    %c0_197 = arith.constant 0 : index
    %172 = vector.load %arg6[%c0_196, %c0_197] : memref<16x8xf32, #tpu.memory_space<vmem>>, vector<16x8xf32>
    %c3_198 = arith.constant 3 : index
    %c0_199 = arith.constant 0 : index
    %c0_200 = arith.constant 0 : index
    %c0_201 = arith.constant 0 : index
    %173 = vector.load %arg3[%c3_198, %c0_199, %c0_200, %c0_201] : memref<5x5x3x8xbf16, #tpu.memory_space<vmem>>, vector<1x1x3x8xbf16>
    %174 = vector.shape_cast %173 : vector<1x1x3x8xbf16> to vector<3x8xbf16>
    %cst_202 = arith.constant dense<0.000000e+00> : vector<16x8xf32>
    %175 = tpu.matmul %171, %174, %cst_202 {dimension_numbers = #tpu.dot_dimension_numbers<[1], [0], [0], [1], [0, 0, 1, 1], [], []>} : vector<16x3xbf16>, vector<3x8xbf16>, vector<16x8xf32> -> vector<16x8xf32>
    %176 = arith.addf %172, %175 : vector<16x8xf32>
    %c0_203 = arith.constant 0 : index
    %c0_204 = arith.constant 0 : index
    %177 = vector.load %arg6[%c0_203, %c0_204] : memref<16x8xf32, #tpu.memory_space<vmem>>, vector<16x8xf32>
    tpu.vector_store %arg6[%c0_203, %c0_204], %176 {strides = array<i32>} : memref<16x8xf32, #tpu.memory_space<vmem>>, vector<16x8xf32>,
    %c0_205 = arith.constant 0 : index
    %c3_206 = arith.constant 3 : index
    %c1_207 = arith.constant 1 : index
    %c0_208 = arith.constant 0 : index
    %178 = vector.load %arg2[%c0_205, %c3_206, %c1_207, %c0_208] : memref<1x8x8x3xbf16, #tpu.memory_space<vmem>>, vector<1x4x4x3xbf16>
    %179 = vector.shape_cast %178 : vector<1x4x4x3xbf16> to vector<4x4x3xbf16>
    %180 = arith.extf %179 : vector<4x4x3xbf16> to vector<4x4x3xf32>
    %181 = vector.shape_cast %180 : vector<4x4x3xf32> to vector<16x3xf32>
    %182 = arith.truncf %181 : vector<16x3xf32> to vector<16x3xbf16>
    %c0_209 = arith.constant 0 : index
    %c0_210 = arith.constant 0 : index
    %183 = vector.load %arg6[%c0_209, %c0_210] : memref<16x8xf32, #tpu.memory_space<vmem>>, vector<16x8xf32>
    %c3_211 = arith.constant 3 : index
    %c1_212 = arith.constant 1 : index
    %c0_213 = arith.constant 0 : index
    %c0_214 = arith.constant 0 : index
    %184 = vector.load %arg3[%c3_211, %c1_212, %c0_213, %c0_214] : memref<5x5x3x8xbf16, #tpu.memory_space<vmem>>, vector<1x1x3x8xbf16>
    %185 = vector.shape_cast %184 : vector<1x1x3x8xbf16> to vector<3x8xbf16>
    %cst_215 = arith.constant dense<0.000000e+00> : vector<16x8xf32>
    %186 = tpu.matmul %182, %185, %cst_215 {dimension_numbers = #tpu.dot_dimension_numbers<[1], [0], [0], [1], [0, 0, 1, 1], [], []>} : vector<16x3xbf16>, vector<3x8xbf16>, vector<16x8xf32> -> vector<16x8xf32>
    %187 = arith.addf %183, %186 : vector<16x8xf32>
    %c0_216 = arith.constant 0 : index
    %c0_217 = arith.constant 0 : index
    %188 = vector.load %arg6[%c0_216, %c0_217] : memref<16x8xf32, #tpu.memory_space<vmem>>, vector<16x8xf32>
    tpu.vector_store %arg6[%c0_216, %c0_217], %187 {strides = array<i32>} : memref<16x8xf32, #tpu.memory_space<vmem>>, vector<16x8xf32>,
    %c0_218 = arith.constant 0 : index
    %c3_219 = arith.constant 3 : index
    %c2_220 = arith.constant 2 : index
    %c0_221 = arith.constant 0 : index
    %189 = vector.load %arg2[%c0_218, %c3_219, %c2_220, %c0_221] : memref<1x8x8x3xbf16, #tpu.memory_space<vmem>>, vector<1x4x4x3xbf16>
    %190 = vector.shape_cast %189 : vector<1x4x4x3xbf16> to vector<4x4x3xbf16>
    %191 = arith.extf %190 : vector<4x4x3xbf16> to vector<4x4x3xf32>
    %192 = vector.shape_cast %191 : vector<4x4x3xf32> to vector<16x3xf32>
    %193 = arith.truncf %192 : vector<16x3xf32> to vector<16x3xbf16>
    %c0_222 = arith.constant 0 : index
    %c0_223 = arith.constant 0 : index
    %194 = vector.load %arg6[%c0_222, %c0_223] : memref<16x8xf32, #tpu.memory_space<vmem>>, vector<16x8xf32>
    %c3_224 = arith.constant 3 : index
    %c2_225 = arith.constant 2 : index
    %c0_226 = arith.constant 0 : index
    %c0_227 = arith.constant 0 : index
    %195 = vector.load %arg3[%c3_224, %c2_225, %c0_226, %c0_227] : memref<5x5x3x8xbf16, #tpu.memory_space<vmem>>, vector<1x1x3x8xbf16>
    %196 = vector.shape_cast %195 : vector<1x1x3x8xbf16> to vector<3x8xbf16>
    %cst_228 = arith.constant dense<0.000000e+00> : vector<16x8xf32>
    %197 = tpu.matmul %193, %196, %cst_228 {dimension_numbers = #tpu.dot_dimension_numbers<[1], [0], [0], [1], [0, 0, 1, 1], [], []>} : vector<16x3xbf16>, vector<3x8xbf16>, vector<16x8xf32> -> vector<16x8xf32>
    %198 = arith.addf %194, %197 : vector<16x8xf32>
    %c0_229 = arith.constant 0 : index
    %c0_230 = arith.constant 0 : index
    %199 = vector.load %arg6[%c0_229, %c0_230] : memref<16x8xf32, #tpu.memory_space<vmem>>, vector<16x8xf32>
    tpu.vector_store %arg6[%c0_229, %c0_230], %198 {strides = array<i32>} : memref<16x8xf32, #tpu.memory_space<vmem>>, vector<16x8xf32>,
    %c0_231 = arith.constant 0 : index
    %c3_232 = arith.constant 3 : index
    %c3_233 = arith.constant 3 : index
    %c0_234 = arith.constant 0 : index
    %200 = vector.load %arg2[%c0_231, %c3_232, %c3_233, %c0_234] : memref<1x8x8x3xbf16, #tpu.memory_space<vmem>>, vector<1x4x4x3xbf16>
    %201 = vector.shape_cast %200 : vector<1x4x4x3xbf16> to vector<4x4x3xbf16>
    %202 = arith.extf %201 : vector<4x4x3xbf16> to vector<4x4x3xf32>
    %203 = vector.shape_cast %202 : vector<4x4x3xf32> to vector<16x3xf32>
    %204 = arith.truncf %203 : vector<16x3xf32> to vector<16x3xbf16>
    %c0_235 = arith.constant 0 : index
    %c0_236 = arith.constant 0 : index
    %205 = vector.load %arg6[%c0_235, %c0_236] : memref<16x8xf32, #tpu.memory_space<vmem>>, vector<16x8xf32>
    %c3_237 = arith.constant 3 : index
    %c3_238 = arith.constant 3 : index
    %c0_239 = arith.constant 0 : index
    %c0_240 = arith.constant 0 : index
    %206 = vector.load %arg3[%c3_237, %c3_238, %c0_239, %c0_240] : memref<5x5x3x8xbf16, #tpu.memory_space<vmem>>, vector<1x1x3x8xbf16>
    %207 = vector.shape_cast %206 : vector<1x1x3x8xbf16> to vector<3x8xbf16>
    %cst_241 = arith.constant dense<0.000000e+00> : vector<16x8xf32>
    %208 = tpu.matmul %204, %207, %cst_241 {dimension_numbers = #tpu.dot_dimension_numbers<[1], [0], [0], [1], [0, 0, 1, 1], [], []>} : vector<16x3xbf16>, vector<3x8xbf16>, vector<16x8xf32> -> vector<16x8xf32>
    %209 = arith.addf %205, %208 : vector<16x8xf32>
    %c0_242 = arith.constant 0 : index
    %c0_243 = arith.constant 0 : index
    %210 = vector.load %arg6[%c0_242, %c0_243] : memref<16x8xf32, #tpu.memory_space<vmem>>, vector<16x8xf32>
    tpu.vector_store %arg6[%c0_242, %c0_243], %209 {strides = array<i32>} : memref<16x8xf32, #tpu.memory_space<vmem>>, vector<16x8xf32>,
    %c0_244 = arith.constant 0 : index
    %c3_245 = arith.constant 3 : index
    %c4_246 = arith.constant 4 : index
    %c0_247 = arith.constant 0 : index
    %211 = vector.load %arg2[%c0_244, %c3_245, %c4_246, %c0_247] : memref<1x8x8x3xbf16, #tpu.memory_space<vmem>>, vector<1x4x4x3xbf16>
    %212 = vector.shape_cast %211 : vector<1x4x4x3xbf16> to vector<4x4x3xbf16>
    %213 = arith.extf %212 : vector<4x4x3xbf16> to vector<4x4x3xf32>
    %214 = vector.shape_cast %213 : vector<4x4x3xf32> to vector<16x3xf32>
    %215 = arith.truncf %214 : vector<16x3xf32> to vector<16x3xbf16>
    %c0_248 = arith.constant 0 : index
    %c0_249 = arith.constant 0 : index
    %216 = vector.load %arg6[%c0_248, %c0_249] : memref<16x8xf32, #tpu.memory_space<vmem>>, vector<16x8xf32>
    %c3_250 = arith.constant 3 : index
    %c4_251 = arith.constant 4 : index
    %c0_252 = arith.constant 0 : index
    %c0_253 = arith.constant 0 : index
    %217 = vector.load %arg3[%c3_250, %c4_251, %c0_252, %c0_253] : memref<5x5x3x8xbf16, #tpu.memory_space<vmem>>, vector<1x1x3x8xbf16>
    %218 = vector.shape_cast %217 : vector<1x1x3x8xbf16> to vector<3x8xbf16>
    %cst_254 = arith.constant dense<0.000000e+00> : vector<16x8xf32>
    %219 = tpu.matmul %215, %218, %cst_254 {dimension_numbers = #tpu.dot_dimension_numbers<[1], [0], [0], [1], [0, 0, 1, 1], [], []>} : vector<16x3xbf16>, vector<3x8xbf16>, vector<16x8xf32> -> vector<16x8xf32>
    %220 = arith.addf %216, %219 : vector<16x8xf32>
    %c0_255 = arith.constant 0 : index
    %c0_256 = arith.constant 0 : index
    %221 = vector.load %arg6[%c0_255, %c0_256] : memref<16x8xf32, #tpu.memory_space<vmem>>, vector<16x8xf32>
    tpu.vector_store %arg6[%c0_255, %c0_256], %220 {strides = array<i32>} : memref<16x8xf32, #tpu.memory_space<vmem>>, vector<16x8xf32>,
    %c0_257 = arith.constant 0 : index
    %c4_258 = arith.constant 4 : index
    %c0_259 = arith.constant 0 : index
    %c0_260 = arith.constant 0 : index
    %222 = vector.load %arg2[%c0_257, %c4_258, %c0_259, %c0_260] : memref<1x8x8x3xbf16, #tpu.memory_space<vmem>>, vector<1x4x4x3xbf16>
    %223 = vector.shape_cast %222 : vector<1x4x4x3xbf16> to vector<4x4x3xbf16>
    %224 = arith.extf %223 : vector<4x4x3xbf16> to vector<4x4x3xf32>
    %225 = vector.shape_cast %224 : vector<4x4x3xf32> to vector<16x3xf32>
    %226 = arith.truncf %225 : vector<16x3xf32> to vector<16x3xbf16>
    %c0_261 = arith.constant 0 : index
    %c0_262 = arith.constant 0 : index
    %227 = vector.load %arg6[%c0_261, %c0_262] : memref<16x8xf32, #tpu.memory_space<vmem>>, vector<16x8xf32>
    %c4_263 = arith.constant 4 : index
    %c0_264 = arith.constant 0 : index
    %c0_265 = arith.constant 0 : index
    %c0_266 = arith.constant 0 : index
    %228 = vector.load %arg3[%c4_263, %c0_264, %c0_265, %c0_266] : memref<5x5x3x8xbf16, #tpu.memory_space<vmem>>, vector<1x1x3x8xbf16>
    %229 = vector.shape_cast %228 : vector<1x1x3x8xbf16> to vector<3x8xbf16>
    %cst_267 = arith.constant dense<0.000000e+00> : vector<16x8xf32>
    %230 = tpu.matmul %226, %229, %cst_267 {dimension_numbers = #tpu.dot_dimension_numbers<[1], [0], [0], [1], [0, 0, 1, 1], [], []>} : vector<16x3xbf16>, vector<3x8xbf16>, vector<16x8xf32> -> vector<16x8xf32>
    %231 = arith.addf %227, %230 : vector<16x8xf32>
    %c0_268 = arith.constant 0 : index
    %c0_269 = arith.constant 0 : index
    %232 = vector.load %arg6[%c0_268, %c0_269] : memref<16x8xf32, #tpu.memory_space<vmem>>, vector<16x8xf32>
    tpu.vector_store %arg6[%c0_268, %c0_269], %231 {strides = array<i32>} : memref<16x8xf32, #tpu.memory_space<vmem>>, vector<16x8xf32>,
    %c0_270 = arith.constant 0 : index
    %c4_271 = arith.constant 4 : index
    %c1_272 = arith.constant 1 : index
    %c0_273 = arith.constant 0 : index
    %233 = vector.load %arg2[%c0_270, %c4_271, %c1_272, %c0_273] : memref<1x8x8x3xbf16, #tpu.memory_space<vmem>>, vector<1x4x4x3xbf16>
    %234 = vector.shape_cast %233 : vector<1x4x4x3xbf16> to vector<4x4x3xbf16>
    %235 = arith.extf %234 : vector<4x4x3xbf16> to vector<4x4x3xf32>
    %236 = vector.shape_cast %235 : vector<4x4x3xf32> to vector<16x3xf32>
    %237 = arith.truncf %236 : vector<16x3xf32> to vector<16x3xbf16>
    %c0_274 = arith.constant 0 : index
    %c0_275 = arith.constant 0 : index
    %238 = vector.load %arg6[%c0_274, %c0_275] : memref<16x8xf32, #tpu.memory_space<vmem>>, vector<16x8xf32>
    %c4_276 = arith.constant 4 : index
    %c1_277 = arith.constant 1 : index
    %c0_278 = arith.constant 0 : index
    %c0_279 = arith.constant 0 : index
    %239 = vector.load %arg3[%c4_276, %c1_277, %c0_278, %c0_279] : memref<5x5x3x8xbf16, #tpu.memory_space<vmem>>, vector<1x1x3x8xbf16>
    %240 = vector.shape_cast %239 : vector<1x1x3x8xbf16> to vector<3x8xbf16>
    %cst_280 = arith.constant dense<0.000000e+00> : vector<16x8xf32>
    %241 = tpu.matmul %237, %240, %cst_280 {dimension_numbers = #tpu.dot_dimension_numbers<[1], [0], [0], [1], [0, 0, 1, 1], [], []>} : vector<16x3xbf16>, vector<3x8xbf16>, vector<16x8xf32> -> vector<16x8xf32>
    %242 = arith.addf %238, %241 : vector<16x8xf32>
    %c0_281 = arith.constant 0 : index
    %c0_282 = arith.constant 0 : index
    %243 = vector.load %arg6[%c0_281, %c0_282] : memref<16x8xf32, #tpu.memory_space<vmem>>, vector<16x8xf32>
    tpu.vector_store %arg6[%c0_281, %c0_282], %242 {strides = array<i32>} : memref<16x8xf32, #tpu.memory_space<vmem>>, vector<16x8xf32>,
    %c0_283 = arith.constant 0 : index
    %c4_284 = arith.constant 4 : index
    %c2_285 = arith.constant 2 : index
    %c0_286 = arith.constant 0 : index
    %244 = vector.load %arg2[%c0_283, %c4_284, %c2_285, %c0_286] : memref<1x8x8x3xbf16, #tpu.memory_space<vmem>>, vector<1x4x4x3xbf16>
    %245 = vector.shape_cast %244 : vector<1x4x4x3xbf16> to vector<4x4x3xbf16>
    %246 = arith.extf %245 : vector<4x4x3xbf16> to vector<4x4x3xf32>
    %247 = vector.shape_cast %246 : vector<4x4x3xf32> to vector<16x3xf32>
    %248 = arith.truncf %247 : vector<16x3xf32> to vector<16x3xbf16>
    %c0_287 = arith.constant 0 : index
    %c0_288 = arith.constant 0 : index
    %249 = vector.load %arg6[%c0_287, %c0_288] : memref<16x8xf32, #tpu.memory_space<vmem>>, vector<16x8xf32>
    %c4_289 = arith.constant 4 : index
    %c2_290 = arith.constant 2 : index
    %c0_291 = arith.constant 0 : index
    %c0_292 = arith.constant 0 : index
    %250 = vector.load %arg3[%c4_289, %c2_290, %c0_291, %c0_292] : memref<5x5x3x8xbf16, #tpu.memory_space<vmem>>, vector<1x1x3x8xbf16>
    %251 = vector.shape_cast %250 : vector<1x1x3x8xbf16> to vector<3x8xbf16>
    %cst_293 = arith.constant dense<0.000000e+00> : vector<16x8xf32>
    %252 = tpu.matmul %248, %251, %cst_293 {dimension_numbers = #tpu.dot_dimension_numbers<[1], [0], [0], [1], [0, 0, 1, 1], [], []>} : vector<16x3xbf16>, vector<3x8xbf16>, vector<16x8xf32> -> vector<16x8xf32>
    %253 = arith.addf %249, %252 : vector<16x8xf32>
    %c0_294 = arith.constant 0 : index
    %c0_295 = arith.constant 0 : index
    %254 = vector.load %arg6[%c0_294, %c0_295] : memref<16x8xf32, #tpu.memory_space<vmem>>, vector<16x8xf32>
    tpu.vector_store %arg6[%c0_294, %c0_295], %253 {strides = array<i32>} : memref<16x8xf32, #tpu.memory_space<vmem>>, vector<16x8xf32>,
    %c0_296 = arith.constant 0 : index
    %c4_297 = arith.constant 4 : index
    %c3_298 = arith.constant 3 : index
    %c0_299 = arith.constant 0 : index
    %255 = vector.load %arg2[%c0_296, %c4_297, %c3_298, %c0_299] : memref<1x8x8x3xbf16, #tpu.memory_space<vmem>>, vector<1x4x4x3xbf16>
    %256 = vector.shape_cast %255 : vector<1x4x4x3xbf16> to vector<4x4x3xbf16>
    %257 = arith.extf %256 : vector<4x4x3xbf16> to vector<4x4x3xf32>
    %258 = vector.shape_cast %257 : vector<4x4x3xf32> to vector<16x3xf32>
    %259 = arith.truncf %258 : vector<16x3xf32> to vector<16x3xbf16>
    %c0_300 = arith.constant 0 : index
    %c0_301 = arith.constant 0 : index
    %260 = vector.load %arg6[%c0_300, %c0_301] : memref<16x8xf32, #tpu.memory_space<vmem>>, vector<16x8xf32>
    %c4_302 = arith.constant 4 : index
    %c3_303 = arith.constant 3 : index
    %c0_304 = arith.constant 0 : index
    %c0_305 = arith.constant 0 : index
    %261 = vector.load %arg3[%c4_302, %c3_303, %c0_304, %c0_305] : memref<5x5x3x8xbf16, #tpu.memory_space<vmem>>, vector<1x1x3x8xbf16>
    %262 = vector.shape_cast %261 : vector<1x1x3x8xbf16> to vector<3x8xbf16>
    %cst_306 = arith.constant dense<0.000000e+00> : vector<16x8xf32>
    %263 = tpu.matmul %259, %262, %cst_306 {dimension_numbers = #tpu.dot_dimension_numbers<[1], [0], [0], [1], [0, 0, 1, 1], [], []>} : vector<16x3xbf16>, vector<3x8xbf16>, vector<16x8xf32> -> vector<16x8xf32>
    %264 = arith.addf %260, %263 : vector<16x8xf32>
    %c0_307 = arith.constant 0 : index
    %c0_308 = arith.constant 0 : index
    %265 = vector.load %arg6[%c0_307, %c0_308] : memref<16x8xf32, #tpu.memory_space<vmem>>, vector<16x8xf32>
    tpu.vector_store %arg6[%c0_307, %c0_308], %264 {strides = array<i32>} : memref<16x8xf32, #tpu.memory_space<vmem>>, vector<16x8xf32>,
    %c0_309 = arith.constant 0 : index
    %c4_310 = arith.constant 4 : index
    %c4_311 = arith.constant 4 : index
    %c0_312 = arith.constant 0 : index
    %266 = vector.load %arg2[%c0_309, %c4_310, %c4_311, %c0_312] : memref<1x8x8x3xbf16, #tpu.memory_space<vmem>>, vector<1x4x4x3xbf16>
    %267 = vector.shape_cast %266 : vector<1x4x4x3xbf16> to vector<4x4x3xbf16>
    %268 = arith.extf %267 : vector<4x4x3xbf16> to vector<4x4x3xf32>
    %269 = vector.shape_cast %268 : vector<4x4x3xf32> to vector<16x3xf32>
    %270 = arith.truncf %269 : vector<16x3xf32> to vector<16x3xbf16>
    %c0_313 = arith.constant 0 : index
    %c0_314 = arith.constant 0 : index
    %271 = vector.load %arg6[%c0_313, %c0_314] : memref<16x8xf32, #tpu.memory_space<vmem>>, vector<16x8xf32>
    %c4_315 = arith.constant 4 : index
    %c4_316 = arith.constant 4 : index
    %c0_317 = arith.constant 0 : index
    %c0_318 = arith.constant 0 : index
    %272 = vector.load %arg3[%c4_315, %c4_316, %c0_317, %c0_318] : memref<5x5x3x8xbf16, #tpu.memory_space<vmem>>, vector<1x1x3x8xbf16>
    %273 = vector.shape_cast %272 : vector<1x1x3x8xbf16> to vector<3x8xbf16>
    %cst_319 = arith.constant dense<0.000000e+00> : vector<16x8xf32>
    %274 = tpu.matmul %270, %273, %cst_319 {dimension_numbers = #tpu.dot_dimension_numbers<[1], [0], [0], [1], [0, 0, 1, 1], [], []>} : vector<16x3xbf16>, vector<3x8xbf16>, vector<16x8xf32> -> vector<16x8xf32>
    %275 = arith.addf %271, %274 : vector<16x8xf32>
    %c0_320 = arith.constant 0 : index
    %c0_321 = arith.constant 0 : index
    %276 = vector.load %arg6[%c0_320, %c0_321] : memref<16x8xf32, #tpu.memory_space<vmem>>, vector<16x8xf32>
    tpu.vector_store %arg6[%c0_320, %c0_321], %275 {strides = array<i32>} : memref<16x8xf32, #tpu.memory_space<vmem>>, vector<16x8xf32>,
    %c0_322 = arith.constant 0 : index
    %c0_323 = arith.constant 0 : index
    %277 = vector.load %arg6[%c0_322, %c0_323] : memref<16x8xf32, #tpu.memory_space<vmem>>, vector<16x8xf32>
    %c0_324 = arith.constant 0 : index
    %c0_325 = arith.constant 0 : index
    %278 = vector.load %arg4[%c0_324, %c0_325] : memref<1x8xf32, #tpu.memory_space<vmem>>, vector<1x8xf32>
    %279 = vector.broadcast %278 : vector<1x8xf32> to vector<16x8xf32>
    %280 = arith.addf %277, %279 : vector<16x8xf32>
    %281 = vector.shape_cast %280 : vector<16x8xf32> to vector<1x4x4x8xf32>
    %282 = arith.truncf %281 : vector<1x4x4x8xf32> to vector<1x4x4x8xbf16>
    %c0_326 = arith.constant 0 : index
    %c0_327 = arith.constant 0 : index
    %c0_328 = arith.constant 0 : index
    %c0_329 = arith.constant 0 : index
    %283 = vector.load %arg5[%c0_326, %c0_327, %c0_328, %c0_329] : memref<1x4x4x8xbf16, #tpu.memory_space<vmem>>, vector<1x4x4x8xbf16>
    tpu.vector_store %arg5[%c0_326, %c0_327, %c0_328, %c0_329], %282 {strides = array<i32>} : memref<1x4x4x8xbf16, #tpu.memory_space<vmem>>, vector<1x4x4x8xbf16>,
    return
  }
  func.func @transform_0(%arg0: i32, %arg1: i32) -> (i32, i32, i32, i32) {
    %c0_i32 = arith.constant 0 : i32
    %c0_i32_0 = arith.constant 0 : i32
    %c0_i32_1 = arith.constant 0 : i32
    %c0_i32_2 = arith.constant 0 : i32
    return %arg0, %c0_i32, %c0_i32_0, %c0_i32_1 : i32, i32, i32, i32
  }
  func.func @transform_1(%arg0: i32, %arg1: i32) -> (i32, i32, i32, i32) {
    %c0_i32 = arith.constant 0 : i32
    %c0_i32_0 = arith.constant 0 : i32
    %c0_i32_1 = arith.constant 0 : i32
    %c0_i32_2 = arith.constant 0 : i32
    return %c0_i32, %c0_i32_0, %c0_i32_1, %arg1 : i32, i32, i32, i32
  }
  func.func @transform_2(%arg0: i32, %arg1: i32) -> (i32, i32) {
    %c0_i32 = arith.constant 0 : i32
    %c0_i32_0 = arith.constant 0 : i32
    return %c0_i32, %arg1 : i32, i32
  }
  func.func @transform_3(%arg0: i32, %arg1: i32) -> (i32, i32, i32, i32) {
    %c0_i32 = arith.constant 0 : i32
    %c0_i32_0 = arith.constant 0 : i32
    %c0_i32_1 = arith.constant 0 : i32
    return %arg0, %c0_i32, %c0_i32_0, %arg1 : i32, i32, i32, i32
  }
}

module attributes {stable_mosaic.version = 11 : i64} {
  func.func @kernel(%arg0: i32, %arg1: i32, %arg2: memref<1x6x6x3xbf16, #tpu.memory_space<vmem>>, %arg3: memref<5x5x3x8xbf16, #tpu.memory_space<vmem>>, %arg4: memref<1x8xf32, #tpu.memory_space<vmem>>, %arg5: memref<1x2x2x8xbf16, #tpu.memory_space<vmem>>, %arg6: memref<4x8xf32, #tpu.memory_space<vmem>>) attributes {dimension_semantics = [#tpu.dimension_semantics<parallel>, #tpu.dimension_semantics<parallel>], iteration_bounds = array<i64: 2, 1>, scalar_prefetch = 0 : i64, scratch_operands = 1 : i64, tpu.core_type = #tpu.core_type<tc>, window_params = [{transform_indices = @transform_0, window_bounds = array<i64: 1, 6, 6, 3>}, {transform_indices = @transform_1, window_bounds = array<i64: 5, 5, 3, 8>}, {transform_indices = @transform_2, window_bounds = array<i64: 1, 8>}, {transform_indices = @transform_3, window_bounds = array<i64: 1, 2, 2, 8>}]} {
    %cst = arith.constant 0.000000e+00 : f32
    %0 = vector.broadcast %cst : f32 to vector<4x8xf32>
    %c0 = arith.constant 0 : index
    %c0_0 = arith.constant 0 : index
    %1 = vector.load %arg6[%c0, %c0_0] : memref<4x8xf32, #tpu.memory_space<vmem>>, vector<4x8xf32>
    tpu.vector_store %arg6[%c0, %c0_0], %0 {strides = array<i32>} : memref<4x8xf32, #tpu.memory_space<vmem>>, vector<4x8xf32>,
    %c0_1 = arith.constant 0 : index
    %c0_2 = arith.constant 0 : index
    %c0_3 = arith.constant 0 : index
    %c0_4 = arith.constant 0 : index
    %2 = vector.load %arg2[%c0_1, %c0_2, %c0_3, %c0_4] : memref<1x6x6x3xbf16, #tpu.memory_space<vmem>>, vector<1x2x2x3xbf16>
    %3 = vector.shape_cast %2 : vector<1x2x2x3xbf16> to vector<2x2x3xbf16>
    %4 = arith.extf %3 : vector<2x2x3xbf16> to vector<2x2x3xf32>
    %5 = vector.shape_cast %4 : vector<2x2x3xf32> to vector<4x3xf32>
    %6 = arith.truncf %5 : vector<4x3xf32> to vector<4x3xbf16>
    %c0_5 = arith.constant 0 : index
    %c0_6 = arith.constant 0 : index
    %7 = vector.load %arg6[%c0_5, %c0_6] : memref<4x8xf32, #tpu.memory_space<vmem>>, vector<4x8xf32>
    %c0_7 = arith.constant 0 : index
    %c0_8 = arith.constant 0 : index
    %c0_9 = arith.constant 0 : index
    %c0_10 = arith.constant 0 : index
    %8 = vector.load %arg3[%c0_7, %c0_8, %c0_9, %c0_10] : memref<5x5x3x8xbf16, #tpu.memory_space<vmem>>, vector<1x1x3x8xbf16>
    %9 = vector.shape_cast %8 : vector<1x1x3x8xbf16> to vector<3x8xbf16>
    %cst_11 = arith.constant dense<0.000000e+00> : vector<4x8xf32>
    %10 = tpu.matmul %6, %9, %cst_11 {dimension_numbers = #tpu.dot_dimension_numbers<[1], [0], [0], [1], [0, 0, 1, 1], [], []>} : vector<4x3xbf16>, vector<3x8xbf16>, vector<4x8xf32> -> vector<4x8xf32>
    %11 = arith.addf %7, %10 : vector<4x8xf32>
    %c0_12 = arith.constant 0 : index
    %c0_13 = arith.constant 0 : index
    %12 = vector.load %arg6[%c0_12, %c0_13] : memref<4x8xf32, #tpu.memory_space<vmem>>, vector<4x8xf32>
    tpu.vector_store %arg6[%c0_12, %c0_13], %11 {strides = array<i32>} : memref<4x8xf32, #tpu.memory_space<vmem>>, vector<4x8xf32>,
    %c0_14 = arith.constant 0 : index
    %c0_15 = arith.constant 0 : index
    %c1 = arith.constant 1 : index
    %c0_16 = arith.constant 0 : index
    %13 = vector.load %arg2[%c0_14, %c0_15, %c1, %c0_16] : memref<1x6x6x3xbf16, #tpu.memory_space<vmem>>, vector<1x2x2x3xbf16>
    %14 = vector.shape_cast %13 : vector<1x2x2x3xbf16> to vector<2x2x3xbf16>
    %15 = arith.extf %14 : vector<2x2x3xbf16> to vector<2x2x3xf32>
    %16 = vector.shape_cast %15 : vector<2x2x3xf32> to vector<4x3xf32>
    %17 = arith.truncf %16 : vector<4x3xf32> to vector<4x3xbf16>
    %c0_17 = arith.constant 0 : index
    %c0_18 = arith.constant 0 : index
    %18 = vector.load %arg6[%c0_17, %c0_18] : memref<4x8xf32, #tpu.memory_space<vmem>>, vector<4x8xf32>
    %c0_19 = arith.constant 0 : index
    %c1_20 = arith.constant 1 : index
    %c0_21 = arith.constant 0 : index
    %c0_22 = arith.constant 0 : index
    %19 = vector.load %arg3[%c0_19, %c1_20, %c0_21, %c0_22] : memref<5x5x3x8xbf16, #tpu.memory_space<vmem>>, vector<1x1x3x8xbf16>
    %20 = vector.shape_cast %19 : vector<1x1x3x8xbf16> to vector<3x8xbf16>
    %cst_23 = arith.constant dense<0.000000e+00> : vector<4x8xf32>
    %21 = tpu.matmul %17, %20, %cst_23 {dimension_numbers = #tpu.dot_dimension_numbers<[1], [0], [0], [1], [0, 0, 1, 1], [], []>} : vector<4x3xbf16>, vector<3x8xbf16>, vector<4x8xf32> -> vector<4x8xf32>
    %22 = arith.addf %18, %21 : vector<4x8xf32>
    %c0_24 = arith.constant 0 : index
    %c0_25 = arith.constant 0 : index
    %23 = vector.load %arg6[%c0_24, %c0_25] : memref<4x8xf32, #tpu.memory_space<vmem>>, vector<4x8xf32>
    tpu.vector_store %arg6[%c0_24, %c0_25], %22 {strides = array<i32>} : memref<4x8xf32, #tpu.memory_space<vmem>>, vector<4x8xf32>,
    %c0_26 = arith.constant 0 : index
    %c0_27 = arith.constant 0 : index
    %c2 = arith.constant 2 : index
    %c0_28 = arith.constant 0 : index
    %24 = vector.load %arg2[%c0_26, %c0_27, %c2, %c0_28] : memref<1x6x6x3xbf16, #tpu.memory_space<vmem>>, vector<1x2x2x3xbf16>
    %25 = vector.shape_cast %24 : vector<1x2x2x3xbf16> to vector<2x2x3xbf16>
    %26 = arith.extf %25 : vector<2x2x3xbf16> to vector<2x2x3xf32>
    %27 = vector.shape_cast %26 : vector<2x2x3xf32> to vector<4x3xf32>
    %28 = arith.truncf %27 : vector<4x3xf32> to vector<4x3xbf16>
    %c0_29 = arith.constant 0 : index
    %c0_30 = arith.constant 0 : index
    %29 = vector.load %arg6[%c0_29, %c0_30] : memref<4x8xf32, #tpu.memory_space<vmem>>, vector<4x8xf32>
    %c0_31 = arith.constant 0 : index
    %c2_32 = arith.constant 2 : index
    %c0_33 = arith.constant 0 : index
    %c0_34 = arith.constant 0 : index
    %30 = vector.load %arg3[%c0_31, %c2_32, %c0_33, %c0_34] : memref<5x5x3x8xbf16, #tpu.memory_space<vmem>>, vector<1x1x3x8xbf16>
    %31 = vector.shape_cast %30 : vector<1x1x3x8xbf16> to vector<3x8xbf16>
    %cst_35 = arith.constant dense<0.000000e+00> : vector<4x8xf32>
    %32 = tpu.matmul %28, %31, %cst_35 {dimension_numbers = #tpu.dot_dimension_numbers<[1], [0], [0], [1], [0, 0, 1, 1], [], []>} : vector<4x3xbf16>, vector<3x8xbf16>, vector<4x8xf32> -> vector<4x8xf32>
    %33 = arith.addf %29, %32 : vector<4x8xf32>
    %c0_36 = arith.constant 0 : index
    %c0_37 = arith.constant 0 : index
    %34 = vector.load %arg6[%c0_36, %c0_37] : memref<4x8xf32, #tpu.memory_space<vmem>>, vector<4x8xf32>
    tpu.vector_store %arg6[%c0_36, %c0_37], %33 {strides = array<i32>} : memref<4x8xf32, #tpu.memory_space<vmem>>, vector<4x8xf32>,
    %c0_38 = arith.constant 0 : index
    %c0_39 = arith.constant 0 : index
    %c3 = arith.constant 3 : index
    %c0_40 = arith.constant 0 : index
    %35 = vector.load %arg2[%c0_38, %c0_39, %c3, %c0_40] : memref<1x6x6x3xbf16, #tpu.memory_space<vmem>>, vector<1x2x2x3xbf16>
    %36 = vector.shape_cast %35 : vector<1x2x2x3xbf16> to vector<2x2x3xbf16>
    %37 = arith.extf %36 : vector<2x2x3xbf16> to vector<2x2x3xf32>
    %38 = vector.shape_cast %37 : vector<2x2x3xf32> to vector<4x3xf32>
    %39 = arith.truncf %38 : vector<4x3xf32> to vector<4x3xbf16>
    %c0_41 = arith.constant 0 : index
    %c0_42 = arith.constant 0 : index
    %40 = vector.load %arg6[%c0_41, %c0_42] : memref<4x8xf32, #tpu.memory_space<vmem>>, vector<4x8xf32>
    %c0_43 = arith.constant 0 : index
    %c3_44 = arith.constant 3 : index
    %c0_45 = arith.constant 0 : index
    %c0_46 = arith.constant 0 : index
    %41 = vector.load %arg3[%c0_43, %c3_44, %c0_45, %c0_46] : memref<5x5x3x8xbf16, #tpu.memory_space<vmem>>, vector<1x1x3x8xbf16>
    %42 = vector.shape_cast %41 : vector<1x1x3x8xbf16> to vector<3x8xbf16>
    %cst_47 = arith.constant dense<0.000000e+00> : vector<4x8xf32>
    %43 = tpu.matmul %39, %42, %cst_47 {dimension_numbers = #tpu.dot_dimension_numbers<[1], [0], [0], [1], [0, 0, 1, 1], [], []>} : vector<4x3xbf16>, vector<3x8xbf16>, vector<4x8xf32> -> vector<4x8xf32>
    %44 = arith.addf %40, %43 : vector<4x8xf32>
    %c0_48 = arith.constant 0 : index
    %c0_49 = arith.constant 0 : index
    %45 = vector.load %arg6[%c0_48, %c0_49] : memref<4x8xf32, #tpu.memory_space<vmem>>, vector<4x8xf32>
    tpu.vector_store %arg6[%c0_48, %c0_49], %44 {strides = array<i32>} : memref<4x8xf32, #tpu.memory_space<vmem>>, vector<4x8xf32>,
    %c0_50 = arith.constant 0 : index
    %c0_51 = arith.constant 0 : index
    %c4 = arith.constant 4 : index
    %c0_52 = arith.constant 0 : index
    %46 = vector.load %arg2[%c0_50, %c0_51, %c4, %c0_52] : memref<1x6x6x3xbf16, #tpu.memory_space<vmem>>, vector<1x2x2x3xbf16>
    %47 = vector.shape_cast %46 : vector<1x2x2x3xbf16> to vector<2x2x3xbf16>
    %48 = arith.extf %47 : vector<2x2x3xbf16> to vector<2x2x3xf32>
    %49 = vector.shape_cast %48 : vector<2x2x3xf32> to vector<4x3xf32>
    %50 = arith.truncf %49 : vector<4x3xf32> to vector<4x3xbf16>
    %c0_53 = arith.constant 0 : index
    %c0_54 = arith.constant 0 : index
    %51 = vector.load %arg6[%c0_53, %c0_54] : memref<4x8xf32, #tpu.memory_space<vmem>>, vector<4x8xf32>
    %c0_55 = arith.constant 0 : index
    %c4_56 = arith.constant 4 : index
    %c0_57 = arith.constant 0 : index
    %c0_58 = arith.constant 0 : index
    %52 = vector.load %arg3[%c0_55, %c4_56, %c0_57, %c0_58] : memref<5x5x3x8xbf16, #tpu.memory_space<vmem>>, vector<1x1x3x8xbf16>
    %53 = vector.shape_cast %52 : vector<1x1x3x8xbf16> to vector<3x8xbf16>
    %cst_59 = arith.constant dense<0.000000e+00> : vector<4x8xf32>
    %54 = tpu.matmul %50, %53, %cst_59 {dimension_numbers = #tpu.dot_dimension_numbers<[1], [0], [0], [1], [0, 0, 1, 1], [], []>} : vector<4x3xbf16>, vector<3x8xbf16>, vector<4x8xf32> -> vector<4x8xf32>
    %55 = arith.addf %51, %54 : vector<4x8xf32>
    %c0_60 = arith.constant 0 : index
    %c0_61 = arith.constant 0 : index
    %56 = vector.load %arg6[%c0_60, %c0_61] : memref<4x8xf32, #tpu.memory_space<vmem>>, vector<4x8xf32>
    tpu.vector_store %arg6[%c0_60, %c0_61], %55 {strides = array<i32>} : memref<4x8xf32, #tpu.memory_space<vmem>>, vector<4x8xf32>,
    %c0_62 = arith.constant 0 : index
    %c1_63 = arith.constant 1 : index
    %c0_64 = arith.constant 0 : index
    %c0_65 = arith.constant 0 : index
    %57 = vector.load %arg2[%c0_62, %c1_63, %c0_64, %c0_65] : memref<1x6x6x3xbf16, #tpu.memory_space<vmem>>, vector<1x2x2x3xbf16>
    %58 = vector.shape_cast %57 : vector<1x2x2x3xbf16> to vector<2x2x3xbf16>
    %59 = arith.extf %58 : vector<2x2x3xbf16> to vector<2x2x3xf32>
    %60 = vector.shape_cast %59 : vector<2x2x3xf32> to vector<4x3xf32>
    %61 = arith.truncf %60 : vector<4x3xf32> to vector<4x3xbf16>
    %c0_66 = arith.constant 0 : index
    %c0_67 = arith.constant 0 : index
    %62 = vector.load %arg6[%c0_66, %c0_67] : memref<4x8xf32, #tpu.memory_space<vmem>>, vector<4x8xf32>
    %c1_68 = arith.constant 1 : index
    %c0_69 = arith.constant 0 : index
    %c0_70 = arith.constant 0 : index
    %c0_71 = arith.constant 0 : index
    %63 = vector.load %arg3[%c1_68, %c0_69, %c0_70, %c0_71] : memref<5x5x3x8xbf16, #tpu.memory_space<vmem>>, vector<1x1x3x8xbf16>
    %64 = vector.shape_cast %63 : vector<1x1x3x8xbf16> to vector<3x8xbf16>
    %cst_72 = arith.constant dense<0.000000e+00> : vector<4x8xf32>
    %65 = tpu.matmul %61, %64, %cst_72 {dimension_numbers = #tpu.dot_dimension_numbers<[1], [0], [0], [1], [0, 0, 1, 1], [], []>} : vector<4x3xbf16>, vector<3x8xbf16>, vector<4x8xf32> -> vector<4x8xf32>
    %66 = arith.addf %62, %65 : vector<4x8xf32>
    %c0_73 = arith.constant 0 : index
    %c0_74 = arith.constant 0 : index
    %67 = vector.load %arg6[%c0_73, %c0_74] : memref<4x8xf32, #tpu.memory_space<vmem>>, vector<4x8xf32>
    tpu.vector_store %arg6[%c0_73, %c0_74], %66 {strides = array<i32>} : memref<4x8xf32, #tpu.memory_space<vmem>>, vector<4x8xf32>,
    %c0_75 = arith.constant 0 : index
    %c1_76 = arith.constant 1 : index
    %c1_77 = arith.constant 1 : index
    %c0_78 = arith.constant 0 : index
    %68 = vector.load %arg2[%c0_75, %c1_76, %c1_77, %c0_78] : memref<1x6x6x3xbf16, #tpu.memory_space<vmem>>, vector<1x2x2x3xbf16>
    %69 = vector.shape_cast %68 : vector<1x2x2x3xbf16> to vector<2x2x3xbf16>
    %70 = arith.extf %69 : vector<2x2x3xbf16> to vector<2x2x3xf32>
    %71 = vector.shape_cast %70 : vector<2x2x3xf32> to vector<4x3xf32>
    %72 = arith.truncf %71 : vector<4x3xf32> to vector<4x3xbf16>
    %c0_79 = arith.constant 0 : index
    %c0_80 = arith.constant 0 : index
    %73 = vector.load %arg6[%c0_79, %c0_80] : memref<4x8xf32, #tpu.memory_space<vmem>>, vector<4x8xf32>
    %c1_81 = arith.constant 1 : index
    %c1_82 = arith.constant 1 : index
    %c0_83 = arith.constant 0 : index
    %c0_84 = arith.constant 0 : index
    %74 = vector.load %arg3[%c1_81, %c1_82, %c0_83, %c0_84] : memref<5x5x3x8xbf16, #tpu.memory_space<vmem>>, vector<1x1x3x8xbf16>
    %75 = vector.shape_cast %74 : vector<1x1x3x8xbf16> to vector<3x8xbf16>
    %cst_85 = arith.constant dense<0.000000e+00> : vector<4x8xf32>
    %76 = tpu.matmul %72, %75, %cst_85 {dimension_numbers = #tpu.dot_dimension_numbers<[1], [0], [0], [1], [0, 0, 1, 1], [], []>} : vector<4x3xbf16>, vector<3x8xbf16>, vector<4x8xf32> -> vector<4x8xf32>
    %77 = arith.addf %73, %76 : vector<4x8xf32>
    %c0_86 = arith.constant 0 : index
    %c0_87 = arith.constant 0 : index
    %78 = vector.load %arg6[%c0_86, %c0_87] : memref<4x8xf32, #tpu.memory_space<vmem>>, vector<4x8xf32>
    tpu.vector_store %arg6[%c0_86, %c0_87], %77 {strides = array<i32>} : memref<4x8xf32, #tpu.memory_space<vmem>>, vector<4x8xf32>,
    %c0_88 = arith.constant 0 : index
    %c1_89 = arith.constant 1 : index
    %c2_90 = arith.constant 2 : index
    %c0_91 = arith.constant 0 : index
    %79 = vector.load %arg2[%c0_88, %c1_89, %c2_90, %c0_91] : memref<1x6x6x3xbf16, #tpu.memory_space<vmem>>, vector<1x2x2x3xbf16>
    %80 = vector.shape_cast %79 : vector<1x2x2x3xbf16> to vector<2x2x3xbf16>
    %81 = arith.extf %80 : vector<2x2x3xbf16> to vector<2x2x3xf32>
    %82 = vector.shape_cast %81 : vector<2x2x3xf32> to vector<4x3xf32>
    %83 = arith.truncf %82 : vector<4x3xf32> to vector<4x3xbf16>
    %c0_92 = arith.constant 0 : index
    %c0_93 = arith.constant 0 : index
    %84 = vector.load %arg6[%c0_92, %c0_93] : memref<4x8xf32, #tpu.memory_space<vmem>>, vector<4x8xf32>
    %c1_94 = arith.constant 1 : index
    %c2_95 = arith.constant 2 : index
    %c0_96 = arith.constant 0 : index
    %c0_97 = arith.constant 0 : index
    %85 = vector.load %arg3[%c1_94, %c2_95, %c0_96, %c0_97] : memref<5x5x3x8xbf16, #tpu.memory_space<vmem>>, vector<1x1x3x8xbf16>
    %86 = vector.shape_cast %85 : vector<1x1x3x8xbf16> to vector<3x8xbf16>
    %cst_98 = arith.constant dense<0.000000e+00> : vector<4x8xf32>
    %87 = tpu.matmul %83, %86, %cst_98 {dimension_numbers = #tpu.dot_dimension_numbers<[1], [0], [0], [1], [0, 0, 1, 1], [], []>} : vector<4x3xbf16>, vector<3x8xbf16>, vector<4x8xf32> -> vector<4x8xf32>
    %88 = arith.addf %84, %87 : vector<4x8xf32>
    %c0_99 = arith.constant 0 : index
    %c0_100 = arith.constant 0 : index
    %89 = vector.load %arg6[%c0_99, %c0_100] : memref<4x8xf32, #tpu.memory_space<vmem>>, vector<4x8xf32>
    tpu.vector_store %arg6[%c0_99, %c0_100], %88 {strides = array<i32>} : memref<4x8xf32, #tpu.memory_space<vmem>>, vector<4x8xf32>,
    %c0_101 = arith.constant 0 : index
    %c1_102 = arith.constant 1 : index
    %c3_103 = arith.constant 3 : index
    %c0_104 = arith.constant 0 : index
    %90 = vector.load %arg2[%c0_101, %c1_102, %c3_103, %c0_104] : memref<1x6x6x3xbf16, #tpu.memory_space<vmem>>, vector<1x2x2x3xbf16>
    %91 = vector.shape_cast %90 : vector<1x2x2x3xbf16> to vector<2x2x3xbf16>
    %92 = arith.extf %91 : vector<2x2x3xbf16> to vector<2x2x3xf32>
    %93 = vector.shape_cast %92 : vector<2x2x3xf32> to vector<4x3xf32>
    %94 = arith.truncf %93 : vector<4x3xf32> to vector<4x3xbf16>
    %c0_105 = arith.constant 0 : index
    %c0_106 = arith.constant 0 : index
    %95 = vector.load %arg6[%c0_105, %c0_106] : memref<4x8xf32, #tpu.memory_space<vmem>>, vector<4x8xf32>
    %c1_107 = arith.constant 1 : index
    %c3_108 = arith.constant 3 : index
    %c0_109 = arith.constant 0 : index
    %c0_110 = arith.constant 0 : index
    %96 = vector.load %arg3[%c1_107, %c3_108, %c0_109, %c0_110] : memref<5x5x3x8xbf16, #tpu.memory_space<vmem>>, vector<1x1x3x8xbf16>
    %97 = vector.shape_cast %96 : vector<1x1x3x8xbf16> to vector<3x8xbf16>
    %cst_111 = arith.constant dense<0.000000e+00> : vector<4x8xf32>
    %98 = tpu.matmul %94, %97, %cst_111 {dimension_numbers = #tpu.dot_dimension_numbers<[1], [0], [0], [1], [0, 0, 1, 1], [], []>} : vector<4x3xbf16>, vector<3x8xbf16>, vector<4x8xf32> -> vector<4x8xf32>
    %99 = arith.addf %95, %98 : vector<4x8xf32>
    %c0_112 = arith.constant 0 : index
    %c0_113 = arith.constant 0 : index
    %100 = vector.load %arg6[%c0_112, %c0_113] : memref<4x8xf32, #tpu.memory_space<vmem>>, vector<4x8xf32>
    tpu.vector_store %arg6[%c0_112, %c0_113], %99 {strides = array<i32>} : memref<4x8xf32, #tpu.memory_space<vmem>>, vector<4x8xf32>,
    %c0_114 = arith.constant 0 : index
    %c1_115 = arith.constant 1 : index
    %c4_116 = arith.constant 4 : index
    %c0_117 = arith.constant 0 : index
    %101 = vector.load %arg2[%c0_114, %c1_115, %c4_116, %c0_117] : memref<1x6x6x3xbf16, #tpu.memory_space<vmem>>, vector<1x2x2x3xbf16>
    %102 = vector.shape_cast %101 : vector<1x2x2x3xbf16> to vector<2x2x3xbf16>
    %103 = arith.extf %102 : vector<2x2x3xbf16> to vector<2x2x3xf32>
    %104 = vector.shape_cast %103 : vector<2x2x3xf32> to vector<4x3xf32>
    %105 = arith.truncf %104 : vector<4x3xf32> to vector<4x3xbf16>
    %c0_118 = arith.constant 0 : index
    %c0_119 = arith.constant 0 : index
    %106 = vector.load %arg6[%c0_118, %c0_119] : memref<4x8xf32, #tpu.memory_space<vmem>>, vector<4x8xf32>
    %c1_120 = arith.constant 1 : index
    %c4_121 = arith.constant 4 : index
    %c0_122 = arith.constant 0 : index
    %c0_123 = arith.constant 0 : index
    %107 = vector.load %arg3[%c1_120, %c4_121, %c0_122, %c0_123] : memref<5x5x3x8xbf16, #tpu.memory_space<vmem>>, vector<1x1x3x8xbf16>
    %108 = vector.shape_cast %107 : vector<1x1x3x8xbf16> to vector<3x8xbf16>
    %cst_124 = arith.constant dense<0.000000e+00> : vector<4x8xf32>
    %109 = tpu.matmul %105, %108, %cst_124 {dimension_numbers = #tpu.dot_dimension_numbers<[1], [0], [0], [1], [0, 0, 1, 1], [], []>} : vector<4x3xbf16>, vector<3x8xbf16>, vector<4x8xf32> -> vector<4x8xf32>
    %110 = arith.addf %106, %109 : vector<4x8xf32>
    %c0_125 = arith.constant 0 : index
    %c0_126 = arith.constant 0 : index
    %111 = vector.load %arg6[%c0_125, %c0_126] : memref<4x8xf32, #tpu.memory_space<vmem>>, vector<4x8xf32>
    tpu.vector_store %arg6[%c0_125, %c0_126], %110 {strides = array<i32>} : memref<4x8xf32, #tpu.memory_space<vmem>>, vector<4x8xf32>,
    %c0_127 = arith.constant 0 : index
    %c2_128 = arith.constant 2 : index
    %c0_129 = arith.constant 0 : index
    %c0_130 = arith.constant 0 : index
    %112 = vector.load %arg2[%c0_127, %c2_128, %c0_129, %c0_130] : memref<1x6x6x3xbf16, #tpu.memory_space<vmem>>, vector<1x2x2x3xbf16>
    %113 = vector.shape_cast %112 : vector<1x2x2x3xbf16> to vector<2x2x3xbf16>
    %114 = arith.extf %113 : vector<2x2x3xbf16> to vector<2x2x3xf32>
    %115 = vector.shape_cast %114 : vector<2x2x3xf32> to vector<4x3xf32>
    %116 = arith.truncf %115 : vector<4x3xf32> to vector<4x3xbf16>
    %c0_131 = arith.constant 0 : index
    %c0_132 = arith.constant 0 : index
    %117 = vector.load %arg6[%c0_131, %c0_132] : memref<4x8xf32, #tpu.memory_space<vmem>>, vector<4x8xf32>
    %c2_133 = arith.constant 2 : index
    %c0_134 = arith.constant 0 : index
    %c0_135 = arith.constant 0 : index
    %c0_136 = arith.constant 0 : index
    %118 = vector.load %arg3[%c2_133, %c0_134, %c0_135, %c0_136] : memref<5x5x3x8xbf16, #tpu.memory_space<vmem>>, vector<1x1x3x8xbf16>
    %119 = vector.shape_cast %118 : vector<1x1x3x8xbf16> to vector<3x8xbf16>
    %cst_137 = arith.constant dense<0.000000e+00> : vector<4x8xf32>
    %120 = tpu.matmul %116, %119, %cst_137 {dimension_numbers = #tpu.dot_dimension_numbers<[1], [0], [0], [1], [0, 0, 1, 1], [], []>} : vector<4x3xbf16>, vector<3x8xbf16>, vector<4x8xf32> -> vector<4x8xf32>
    %121 = arith.addf %117, %120 : vector<4x8xf32>
    %c0_138 = arith.constant 0 : index
    %c0_139 = arith.constant 0 : index
    %122 = vector.load %arg6[%c0_138, %c0_139] : memref<4x8xf32, #tpu.memory_space<vmem>>, vector<4x8xf32>
    tpu.vector_store %arg6[%c0_138, %c0_139], %121 {strides = array<i32>} : memref<4x8xf32, #tpu.memory_space<vmem>>, vector<4x8xf32>,
    %c0_140 = arith.constant 0 : index
    %c2_141 = arith.constant 2 : index
    %c1_142 = arith.constant 1 : index
    %c0_143 = arith.constant 0 : index
    %123 = vector.load %arg2[%c0_140, %c2_141, %c1_142, %c0_143] : memref<1x6x6x3xbf16, #tpu.memory_space<vmem>>, vector<1x2x2x3xbf16>
    %124 = vector.shape_cast %123 : vector<1x2x2x3xbf16> to vector<2x2x3xbf16>
    %125 = arith.extf %124 : vector<2x2x3xbf16> to vector<2x2x3xf32>
    %126 = vector.shape_cast %125 : vector<2x2x3xf32> to vector<4x3xf32>
    %127 = arith.truncf %126 : vector<4x3xf32> to vector<4x3xbf16>
    %c0_144 = arith.constant 0 : index
    %c0_145 = arith.constant 0 : index
    %128 = vector.load %arg6[%c0_144, %c0_145] : memref<4x8xf32, #tpu.memory_space<vmem>>, vector<4x8xf32>
    %c2_146 = arith.constant 2 : index
    %c1_147 = arith.constant 1 : index
    %c0_148 = arith.constant 0 : index
    %c0_149 = arith.constant 0 : index
    %129 = vector.load %arg3[%c2_146, %c1_147, %c0_148, %c0_149] : memref<5x5x3x8xbf16, #tpu.memory_space<vmem>>, vector<1x1x3x8xbf16>
    %130 = vector.shape_cast %129 : vector<1x1x3x8xbf16> to vector<3x8xbf16>
    %cst_150 = arith.constant dense<0.000000e+00> : vector<4x8xf32>
    %131 = tpu.matmul %127, %130, %cst_150 {dimension_numbers = #tpu.dot_dimension_numbers<[1], [0], [0], [1], [0, 0, 1, 1], [], []>} : vector<4x3xbf16>, vector<3x8xbf16>, vector<4x8xf32> -> vector<4x8xf32>
    %132 = arith.addf %128, %131 : vector<4x8xf32>
    %c0_151 = arith.constant 0 : index
    %c0_152 = arith.constant 0 : index
    %133 = vector.load %arg6[%c0_151, %c0_152] : memref<4x8xf32, #tpu.memory_space<vmem>>, vector<4x8xf32>
    tpu.vector_store %arg6[%c0_151, %c0_152], %132 {strides = array<i32>} : memref<4x8xf32, #tpu.memory_space<vmem>>, vector<4x8xf32>,
    %c0_153 = arith.constant 0 : index
    %c2_154 = arith.constant 2 : index
    %c2_155 = arith.constant 2 : index
    %c0_156 = arith.constant 0 : index
    %134 = vector.load %arg2[%c0_153, %c2_154, %c2_155, %c0_156] : memref<1x6x6x3xbf16, #tpu.memory_space<vmem>>, vector<1x2x2x3xbf16>
    %135 = vector.shape_cast %134 : vector<1x2x2x3xbf16> to vector<2x2x3xbf16>
    %136 = arith.extf %135 : vector<2x2x3xbf16> to vector<2x2x3xf32>
    %137 = vector.shape_cast %136 : vector<2x2x3xf32> to vector<4x3xf32>
    %138 = arith.truncf %137 : vector<4x3xf32> to vector<4x3xbf16>
    %c0_157 = arith.constant 0 : index
    %c0_158 = arith.constant 0 : index
    %139 = vector.load %arg6[%c0_157, %c0_158] : memref<4x8xf32, #tpu.memory_space<vmem>>, vector<4x8xf32>
    %c2_159 = arith.constant 2 : index
    %c2_160 = arith.constant 2 : index
    %c0_161 = arith.constant 0 : index
    %c0_162 = arith.constant 0 : index
    %140 = vector.load %arg3[%c2_159, %c2_160, %c0_161, %c0_162] : memref<5x5x3x8xbf16, #tpu.memory_space<vmem>>, vector<1x1x3x8xbf16>
    %141 = vector.shape_cast %140 : vector<1x1x3x8xbf16> to vector<3x8xbf16>
    %cst_163 = arith.constant dense<0.000000e+00> : vector<4x8xf32>
    %142 = tpu.matmul %138, %141, %cst_163 {dimension_numbers = #tpu.dot_dimension_numbers<[1], [0], [0], [1], [0, 0, 1, 1], [], []>} : vector<4x3xbf16>, vector<3x8xbf16>, vector<4x8xf32> -> vector<4x8xf32>
    %143 = arith.addf %139, %142 : vector<4x8xf32>
    %c0_164 = arith.constant 0 : index
    %c0_165 = arith.constant 0 : index
    %144 = vector.load %arg6[%c0_164, %c0_165] : memref<4x8xf32, #tpu.memory_space<vmem>>, vector<4x8xf32>
    tpu.vector_store %arg6[%c0_164, %c0_165], %143 {strides = array<i32>} : memref<4x8xf32, #tpu.memory_space<vmem>>, vector<4x8xf32>,
    %c0_166 = arith.constant 0 : index
    %c2_167 = arith.constant 2 : index
    %c3_168 = arith.constant 3 : index
    %c0_169 = arith.constant 0 : index
    %145 = vector.load %arg2[%c0_166, %c2_167, %c3_168, %c0_169] : memref<1x6x6x3xbf16, #tpu.memory_space<vmem>>, vector<1x2x2x3xbf16>
    %146 = vector.shape_cast %145 : vector<1x2x2x3xbf16> to vector<2x2x3xbf16>
    %147 = arith.extf %146 : vector<2x2x3xbf16> to vector<2x2x3xf32>
    %148 = vector.shape_cast %147 : vector<2x2x3xf32> to vector<4x3xf32>
    %149 = arith.truncf %148 : vector<4x3xf32> to vector<4x3xbf16>
    %c0_170 = arith.constant 0 : index
    %c0_171 = arith.constant 0 : index
    %150 = vector.load %arg6[%c0_170, %c0_171] : memref<4x8xf32, #tpu.memory_space<vmem>>, vector<4x8xf32>
    %c2_172 = arith.constant 2 : index
    %c3_173 = arith.constant 3 : index
    %c0_174 = arith.constant 0 : index
    %c0_175 = arith.constant 0 : index
    %151 = vector.load %arg3[%c2_172, %c3_173, %c0_174, %c0_175] : memref<5x5x3x8xbf16, #tpu.memory_space<vmem>>, vector<1x1x3x8xbf16>
    %152 = vector.shape_cast %151 : vector<1x1x3x8xbf16> to vector<3x8xbf16>
    %cst_176 = arith.constant dense<0.000000e+00> : vector<4x8xf32>
    %153 = tpu.matmul %149, %152, %cst_176 {dimension_numbers = #tpu.dot_dimension_numbers<[1], [0], [0], [1], [0, 0, 1, 1], [], []>} : vector<4x3xbf16>, vector<3x8xbf16>, vector<4x8xf32> -> vector<4x8xf32>
    %154 = arith.addf %150, %153 : vector<4x8xf32>
    %c0_177 = arith.constant 0 : index
    %c0_178 = arith.constant 0 : index
    %155 = vector.load %arg6[%c0_177, %c0_178] : memref<4x8xf32, #tpu.memory_space<vmem>>, vector<4x8xf32>
    tpu.vector_store %arg6[%c0_177, %c0_178], %154 {strides = array<i32>} : memref<4x8xf32, #tpu.memory_space<vmem>>, vector<4x8xf32>,
    %c0_179 = arith.constant 0 : index
    %c2_180 = arith.constant 2 : index
    %c4_181 = arith.constant 4 : index
    %c0_182 = arith.constant 0 : index
    %156 = vector.load %arg2[%c0_179, %c2_180, %c4_181, %c0_182] : memref<1x6x6x3xbf16, #tpu.memory_space<vmem>>, vector<1x2x2x3xbf16>
    %157 = vector.shape_cast %156 : vector<1x2x2x3xbf16> to vector<2x2x3xbf16>
    %158 = arith.extf %157 : vector<2x2x3xbf16> to vector<2x2x3xf32>
    %159 = vector.shape_cast %158 : vector<2x2x3xf32> to vector<4x3xf32>
    %160 = arith.truncf %159 : vector<4x3xf32> to vector<4x3xbf16>
    %c0_183 = arith.constant 0 : index
    %c0_184 = arith.constant 0 : index
    %161 = vector.load %arg6[%c0_183, %c0_184] : memref<4x8xf32, #tpu.memory_space<vmem>>, vector<4x8xf32>
    %c2_185 = arith.constant 2 : index
    %c4_186 = arith.constant 4 : index
    %c0_187 = arith.constant 0 : index
    %c0_188 = arith.constant 0 : index
    %162 = vector.load %arg3[%c2_185, %c4_186, %c0_187, %c0_188] : memref<5x5x3x8xbf16, #tpu.memory_space<vmem>>, vector<1x1x3x8xbf16>
    %163 = vector.shape_cast %162 : vector<1x1x3x8xbf16> to vector<3x8xbf16>
    %cst_189 = arith.constant dense<0.000000e+00> : vector<4x8xf32>
    %164 = tpu.matmul %160, %163, %cst_189 {dimension_numbers = #tpu.dot_dimension_numbers<[1], [0], [0], [1], [0, 0, 1, 1], [], []>} : vector<4x3xbf16>, vector<3x8xbf16>, vector<4x8xf32> -> vector<4x8xf32>
    %165 = arith.addf %161, %164 : vector<4x8xf32>
    %c0_190 = arith.constant 0 : index
    %c0_191 = arith.constant 0 : index
    %166 = vector.load %arg6[%c0_190, %c0_191] : memref<4x8xf32, #tpu.memory_space<vmem>>, vector<4x8xf32>
    tpu.vector_store %arg6[%c0_190, %c0_191], %165 {strides = array<i32>} : memref<4x8xf32, #tpu.memory_space<vmem>>, vector<4x8xf32>,
    %c0_192 = arith.constant 0 : index
    %c3_193 = arith.constant 3 : index
    %c0_194 = arith.constant 0 : index
    %c0_195 = arith.constant 0 : index
    %167 = vector.load %arg2[%c0_192, %c3_193, %c0_194, %c0_195] : memref<1x6x6x3xbf16, #tpu.memory_space<vmem>>, vector<1x2x2x3xbf16>
    %168 = vector.shape_cast %167 : vector<1x2x2x3xbf16> to vector<2x2x3xbf16>
    %169 = arith.extf %168 : vector<2x2x3xbf16> to vector<2x2x3xf32>
    %170 = vector.shape_cast %169 : vector<2x2x3xf32> to vector<4x3xf32>
    %171 = arith.truncf %170 : vector<4x3xf32> to vector<4x3xbf16>
    %c0_196 = arith.constant 0 : index
    %c0_197 = arith.constant 0 : index
    %172 = vector.load %arg6[%c0_196, %c0_197] : memref<4x8xf32, #tpu.memory_space<vmem>>, vector<4x8xf32>
    %c3_198 = arith.constant 3 : index
    %c0_199 = arith.constant 0 : index
    %c0_200 = arith.constant 0 : index
    %c0_201 = arith.constant 0 : index
    %173 = vector.load %arg3[%c3_198, %c0_199, %c0_200, %c0_201] : memref<5x5x3x8xbf16, #tpu.memory_space<vmem>>, vector<1x1x3x8xbf16>
    %174 = vector.shape_cast %173 : vector<1x1x3x8xbf16> to vector<3x8xbf16>
    %cst_202 = arith.constant dense<0.000000e+00> : vector<4x8xf32>
    %175 = tpu.matmul %171, %174, %cst_202 {dimension_numbers = #tpu.dot_dimension_numbers<[1], [0], [0], [1], [0, 0, 1, 1], [], []>} : vector<4x3xbf16>, vector<3x8xbf16>, vector<4x8xf32> -> vector<4x8xf32>
    %176 = arith.addf %172, %175 : vector<4x8xf32>
    %c0_203 = arith.constant 0 : index
    %c0_204 = arith.constant 0 : index
    %177 = vector.load %arg6[%c0_203, %c0_204] : memref<4x8xf32, #tpu.memory_space<vmem>>, vector<4x8xf32>
    tpu.vector_store %arg6[%c0_203, %c0_204], %176 {strides = array<i32>} : memref<4x8xf32, #tpu.memory_space<vmem>>, vector<4x8xf32>,
    %c0_205 = arith.constant 0 : index
    %c3_206 = arith.constant 3 : index
    %c1_207 = arith.constant 1 : index
    %c0_208 = arith.constant 0 : index
    %178 = vector.load %arg2[%c0_205, %c3_206, %c1_207, %c0_208] : memref<1x6x6x3xbf16, #tpu.memory_space<vmem>>, vector<1x2x2x3xbf16>
    %179 = vector.shape_cast %178 : vector<1x2x2x3xbf16> to vector<2x2x3xbf16>
    %180 = arith.extf %179 : vector<2x2x3xbf16> to vector<2x2x3xf32>
    %181 = vector.shape_cast %180 : vector<2x2x3xf32> to vector<4x3xf32>
    %182 = arith.truncf %181 : vector<4x3xf32> to vector<4x3xbf16>
    %c0_209 = arith.constant 0 : index
    %c0_210 = arith.constant 0 : index
    %183 = vector.load %arg6[%c0_209, %c0_210] : memref<4x8xf32, #tpu.memory_space<vmem>>, vector<4x8xf32>
    %c3_211 = arith.constant 3 : index
    %c1_212 = arith.constant 1 : index
    %c0_213 = arith.constant 0 : index
    %c0_214 = arith.constant 0 : index
    %184 = vector.load %arg3[%c3_211, %c1_212, %c0_213, %c0_214] : memref<5x5x3x8xbf16, #tpu.memory_space<vmem>>, vector<1x1x3x8xbf16>
    %185 = vector.shape_cast %184 : vector<1x1x3x8xbf16> to vector<3x8xbf16>
    %cst_215 = arith.constant dense<0.000000e+00> : vector<4x8xf32>
    %186 = tpu.matmul %182, %185, %cst_215 {dimension_numbers = #tpu.dot_dimension_numbers<[1], [0], [0], [1], [0, 0, 1, 1], [], []>} : vector<4x3xbf16>, vector<3x8xbf16>, vector<4x8xf32> -> vector<4x8xf32>
    %187 = arith.addf %183, %186 : vector<4x8xf32>
    %c0_216 = arith.constant 0 : index
    %c0_217 = arith.constant 0 : index
    %188 = vector.load %arg6[%c0_216, %c0_217] : memref<4x8xf32, #tpu.memory_space<vmem>>, vector<4x8xf32>
    tpu.vector_store %arg6[%c0_216, %c0_217], %187 {strides = array<i32>} : memref<4x8xf32, #tpu.memory_space<vmem>>, vector<4x8xf32>,
    %c0_218 = arith.constant 0 : index
    %c3_219 = arith.constant 3 : index
    %c2_220 = arith.constant 2 : index
    %c0_221 = arith.constant 0 : index
    %189 = vector.load %arg2[%c0_218, %c3_219, %c2_220, %c0_221] : memref<1x6x6x3xbf16, #tpu.memory_space<vmem>>, vector<1x2x2x3xbf16>
    %190 = vector.shape_cast %189 : vector<1x2x2x3xbf16> to vector<2x2x3xbf16>
    %191 = arith.extf %190 : vector<2x2x3xbf16> to vector<2x2x3xf32>
    %192 = vector.shape_cast %191 : vector<2x2x3xf32> to vector<4x3xf32>
    %193 = arith.truncf %192 : vector<4x3xf32> to vector<4x3xbf16>
    %c0_222 = arith.constant 0 : index
    %c0_223 = arith.constant 0 : index
    %194 = vector.load %arg6[%c0_222, %c0_223] : memref<4x8xf32, #tpu.memory_space<vmem>>, vector<4x8xf32>
    %c3_224 = arith.constant 3 : index
    %c2_225 = arith.constant 2 : index
    %c0_226 = arith.constant 0 : index
    %c0_227 = arith.constant 0 : index
    %195 = vector.load %arg3[%c3_224, %c2_225, %c0_226, %c0_227] : memref<5x5x3x8xbf16, #tpu.memory_space<vmem>>, vector<1x1x3x8xbf16>
    %196 = vector.shape_cast %195 : vector<1x1x3x8xbf16> to vector<3x8xbf16>
    %cst_228 = arith.constant dense<0.000000e+00> : vector<4x8xf32>
    %197 = tpu.matmul %193, %196, %cst_228 {dimension_numbers = #tpu.dot_dimension_numbers<[1], [0], [0], [1], [0, 0, 1, 1], [], []>} : vector<4x3xbf16>, vector<3x8xbf16>, vector<4x8xf32> -> vector<4x8xf32>
    %198 = arith.addf %194, %197 : vector<4x8xf32>
    %c0_229 = arith.constant 0 : index
    %c0_230 = arith.constant 0 : index
    %199 = vector.load %arg6[%c0_229, %c0_230] : memref<4x8xf32, #tpu.memory_space<vmem>>, vector<4x8xf32>
    tpu.vector_store %arg6[%c0_229, %c0_230], %198 {strides = array<i32>} : memref<4x8xf32, #tpu.memory_space<vmem>>, vector<4x8xf32>,
    %c0_231 = arith.constant 0 : index
    %c3_232 = arith.constant 3 : index
    %c3_233 = arith.constant 3 : index
    %c0_234 = arith.constant 0 : index
    %200 = vector.load %arg2[%c0_231, %c3_232, %c3_233, %c0_234] : memref<1x6x6x3xbf16, #tpu.memory_space<vmem>>, vector<1x2x2x3xbf16>
    %201 = vector.shape_cast %200 : vector<1x2x2x3xbf16> to vector<2x2x3xbf16>
    %202 = arith.extf %201 : vector<2x2x3xbf16> to vector<2x2x3xf32>
    %203 = vector.shape_cast %202 : vector<2x2x3xf32> to vector<4x3xf32>
    %204 = arith.truncf %203 : vector<4x3xf32> to vector<4x3xbf16>
    %c0_235 = arith.constant 0 : index
    %c0_236 = arith.constant 0 : index
    %205 = vector.load %arg6[%c0_235, %c0_236] : memref<4x8xf32, #tpu.memory_space<vmem>>, vector<4x8xf32>
    %c3_237 = arith.constant 3 : index
    %c3_238 = arith.constant 3 : index
    %c0_239 = arith.constant 0 : index
    %c0_240 = arith.constant 0 : index
    %206 = vector.load %arg3[%c3_237, %c3_238, %c0_239, %c0_240] : memref<5x5x3x8xbf16, #tpu.memory_space<vmem>>, vector<1x1x3x8xbf16>
    %207 = vector.shape_cast %206 : vector<1x1x3x8xbf16> to vector<3x8xbf16>
    %cst_241 = arith.constant dense<0.000000e+00> : vector<4x8xf32>
    %208 = tpu.matmul %204, %207, %cst_241 {dimension_numbers = #tpu.dot_dimension_numbers<[1], [0], [0], [1], [0, 0, 1, 1], [], []>} : vector<4x3xbf16>, vector<3x8xbf16>, vector<4x8xf32> -> vector<4x8xf32>
    %209 = arith.addf %205, %208 : vector<4x8xf32>
    %c0_242 = arith.constant 0 : index
    %c0_243 = arith.constant 0 : index
    %210 = vector.load %arg6[%c0_242, %c0_243] : memref<4x8xf32, #tpu.memory_space<vmem>>, vector<4x8xf32>
    tpu.vector_store %arg6[%c0_242, %c0_243], %209 {strides = array<i32>} : memref<4x8xf32, #tpu.memory_space<vmem>>, vector<4x8xf32>,
    %c0_244 = arith.constant 0 : index
    %c3_245 = arith.constant 3 : index
    %c4_246 = arith.constant 4 : index
    %c0_247 = arith.constant 0 : index
    %211 = vector.load %arg2[%c0_244, %c3_245, %c4_246, %c0_247] : memref<1x6x6x3xbf16, #tpu.memory_space<vmem>>, vector<1x2x2x3xbf16>
    %212 = vector.shape_cast %211 : vector<1x2x2x3xbf16> to vector<2x2x3xbf16>
    %213 = arith.extf %212 : vector<2x2x3xbf16> to vector<2x2x3xf32>
    %214 = vector.shape_cast %213 : vector<2x2x3xf32> to vector<4x3xf32>
    %215 = arith.truncf %214 : vector<4x3xf32> to vector<4x3xbf16>
    %c0_248 = arith.constant 0 : index
    %c0_249 = arith.constant 0 : index
    %216 = vector.load %arg6[%c0_248, %c0_249] : memref<4x8xf32, #tpu.memory_space<vmem>>, vector<4x8xf32>
    %c3_250 = arith.constant 3 : index
    %c4_251 = arith.constant 4 : index
    %c0_252 = arith.constant 0 : index
    %c0_253 = arith.constant 0 : index
    %217 = vector.load %arg3[%c3_250, %c4_251, %c0_252, %c0_253] : memref<5x5x3x8xbf16, #tpu.memory_space<vmem>>, vector<1x1x3x8xbf16>
    %218 = vector.shape_cast %217 : vector<1x1x3x8xbf16> to vector<3x8xbf16>
    %cst_254 = arith.constant dense<0.000000e+00> : vector<4x8xf32>
    %219 = tpu.matmul %215, %218, %cst_254 {dimension_numbers = #tpu.dot_dimension_numbers<[1], [0], [0], [1], [0, 0, 1, 1], [], []>} : vector<4x3xbf16>, vector<3x8xbf16>, vector<4x8xf32> -> vector<4x8xf32>
    %220 = arith.addf %216, %219 : vector<4x8xf32>
    %c0_255 = arith.constant 0 : index
    %c0_256 = arith.constant 0 : index
    %221 = vector.load %arg6[%c0_255, %c0_256] : memref<4x8xf32, #tpu.memory_space<vmem>>, vector<4x8xf32>
    tpu.vector_store %arg6[%c0_255, %c0_256], %220 {strides = array<i32>} : memref<4x8xf32, #tpu.memory_space<vmem>>, vector<4x8xf32>,
    %c0_257 = arith.constant 0 : index
    %c4_258 = arith.constant 4 : index
    %c0_259 = arith.constant 0 : index
    %c0_260 = arith.constant 0 : index
    %222 = vector.load %arg2[%c0_257, %c4_258, %c0_259, %c0_260] : memref<1x6x6x3xbf16, #tpu.memory_space<vmem>>, vector<1x2x2x3xbf16>
    %223 = vector.shape_cast %222 : vector<1x2x2x3xbf16> to vector<2x2x3xbf16>
    %224 = arith.extf %223 : vector<2x2x3xbf16> to vector<2x2x3xf32>
    %225 = vector.shape_cast %224 : vector<2x2x3xf32> to vector<4x3xf32>
    %226 = arith.truncf %225 : vector<4x3xf32> to vector<4x3xbf16>
    %c0_261 = arith.constant 0 : index
    %c0_262 = arith.constant 0 : index
    %227 = vector.load %arg6[%c0_261, %c0_262] : memref<4x8xf32, #tpu.memory_space<vmem>>, vector<4x8xf32>
    %c4_263 = arith.constant 4 : index
    %c0_264 = arith.constant 0 : index
    %c0_265 = arith.constant 0 : index
    %c0_266 = arith.constant 0 : index
    %228 = vector.load %arg3[%c4_263, %c0_264, %c0_265, %c0_266] : memref<5x5x3x8xbf16, #tpu.memory_space<vmem>>, vector<1x1x3x8xbf16>
    %229 = vector.shape_cast %228 : vector<1x1x3x8xbf16> to vector<3x8xbf16>
    %cst_267 = arith.constant dense<0.000000e+00> : vector<4x8xf32>
    %230 = tpu.matmul %226, %229, %cst_267 {dimension_numbers = #tpu.dot_dimension_numbers<[1], [0], [0], [1], [0, 0, 1, 1], [], []>} : vector<4x3xbf16>, vector<3x8xbf16>, vector<4x8xf32> -> vector<4x8xf32>
    %231 = arith.addf %227, %230 : vector<4x8xf32>
    %c0_268 = arith.constant 0 : index
    %c0_269 = arith.constant 0 : index
    %232 = vector.load %arg6[%c0_268, %c0_269] : memref<4x8xf32, #tpu.memory_space<vmem>>, vector<4x8xf32>
    tpu.vector_store %arg6[%c0_268, %c0_269], %231 {strides = array<i32>} : memref<4x8xf32, #tpu.memory_space<vmem>>, vector<4x8xf32>,
    %c0_270 = arith.constant 0 : index
    %c4_271 = arith.constant 4 : index
    %c1_272 = arith.constant 1 : index
    %c0_273 = arith.constant 0 : index
    %233 = vector.load %arg2[%c0_270, %c4_271, %c1_272, %c0_273] : memref<1x6x6x3xbf16, #tpu.memory_space<vmem>>, vector<1x2x2x3xbf16>
    %234 = vector.shape_cast %233 : vector<1x2x2x3xbf16> to vector<2x2x3xbf16>
    %235 = arith.extf %234 : vector<2x2x3xbf16> to vector<2x2x3xf32>
    %236 = vector.shape_cast %235 : vector<2x2x3xf32> to vector<4x3xf32>
    %237 = arith.truncf %236 : vector<4x3xf32> to vector<4x3xbf16>
    %c0_274 = arith.constant 0 : index
    %c0_275 = arith.constant 0 : index
    %238 = vector.load %arg6[%c0_274, %c0_275] : memref<4x8xf32, #tpu.memory_space<vmem>>, vector<4x8xf32>
    %c4_276 = arith.constant 4 : index
    %c1_277 = arith.constant 1 : index
    %c0_278 = arith.constant 0 : index
    %c0_279 = arith.constant 0 : index
    %239 = vector.load %arg3[%c4_276, %c1_277, %c0_278, %c0_279] : memref<5x5x3x8xbf16, #tpu.memory_space<vmem>>, vector<1x1x3x8xbf16>
    %240 = vector.shape_cast %239 : vector<1x1x3x8xbf16> to vector<3x8xbf16>
    %cst_280 = arith.constant dense<0.000000e+00> : vector<4x8xf32>
    %241 = tpu.matmul %237, %240, %cst_280 {dimension_numbers = #tpu.dot_dimension_numbers<[1], [0], [0], [1], [0, 0, 1, 1], [], []>} : vector<4x3xbf16>, vector<3x8xbf16>, vector<4x8xf32> -> vector<4x8xf32>
    %242 = arith.addf %238, %241 : vector<4x8xf32>
    %c0_281 = arith.constant 0 : index
    %c0_282 = arith.constant 0 : index
    %243 = vector.load %arg6[%c0_281, %c0_282] : memref<4x8xf32, #tpu.memory_space<vmem>>, vector<4x8xf32>
    tpu.vector_store %arg6[%c0_281, %c0_282], %242 {strides = array<i32>} : memref<4x8xf32, #tpu.memory_space<vmem>>, vector<4x8xf32>,
    %c0_283 = arith.constant 0 : index
    %c4_284 = arith.constant 4 : index
    %c2_285 = arith.constant 2 : index
    %c0_286 = arith.constant 0 : index
    %244 = vector.load %arg2[%c0_283, %c4_284, %c2_285, %c0_286] : memref<1x6x6x3xbf16, #tpu.memory_space<vmem>>, vector<1x2x2x3xbf16>
    %245 = vector.shape_cast %244 : vector<1x2x2x3xbf16> to vector<2x2x3xbf16>
    %246 = arith.extf %245 : vector<2x2x3xbf16> to vector<2x2x3xf32>
    %247 = vector.shape_cast %246 : vector<2x2x3xf32> to vector<4x3xf32>
    %248 = arith.truncf %247 : vector<4x3xf32> to vector<4x3xbf16>
    %c0_287 = arith.constant 0 : index
    %c0_288 = arith.constant 0 : index
    %249 = vector.load %arg6[%c0_287, %c0_288] : memref<4x8xf32, #tpu.memory_space<vmem>>, vector<4x8xf32>
    %c4_289 = arith.constant 4 : index
    %c2_290 = arith.constant 2 : index
    %c0_291 = arith.constant 0 : index
    %c0_292 = arith.constant 0 : index
    %250 = vector.load %arg3[%c4_289, %c2_290, %c0_291, %c0_292] : memref<5x5x3x8xbf16, #tpu.memory_space<vmem>>, vector<1x1x3x8xbf16>
    %251 = vector.shape_cast %250 : vector<1x1x3x8xbf16> to vector<3x8xbf16>
    %cst_293 = arith.constant dense<0.000000e+00> : vector<4x8xf32>
    %252 = tpu.matmul %248, %251, %cst_293 {dimension_numbers = #tpu.dot_dimension_numbers<[1], [0], [0], [1], [0, 0, 1, 1], [], []>} : vector<4x3xbf16>, vector<3x8xbf16>, vector<4x8xf32> -> vector<4x8xf32>
    %253 = arith.addf %249, %252 : vector<4x8xf32>
    %c0_294 = arith.constant 0 : index
    %c0_295 = arith.constant 0 : index
    %254 = vector.load %arg6[%c0_294, %c0_295] : memref<4x8xf32, #tpu.memory_space<vmem>>, vector<4x8xf32>
    tpu.vector_store %arg6[%c0_294, %c0_295], %253 {strides = array<i32>} : memref<4x8xf32, #tpu.memory_space<vmem>>, vector<4x8xf32>,
    %c0_296 = arith.constant 0 : index
    %c4_297 = arith.constant 4 : index
    %c3_298 = arith.constant 3 : index
    %c0_299 = arith.constant 0 : index
    %255 = vector.load %arg2[%c0_296, %c4_297, %c3_298, %c0_299] : memref<1x6x6x3xbf16, #tpu.memory_space<vmem>>, vector<1x2x2x3xbf16>
    %256 = vector.shape_cast %255 : vector<1x2x2x3xbf16> to vector<2x2x3xbf16>
    %257 = arith.extf %256 : vector<2x2x3xbf16> to vector<2x2x3xf32>
    %258 = vector.shape_cast %257 : vector<2x2x3xf32> to vector<4x3xf32>
    %259 = arith.truncf %258 : vector<4x3xf32> to vector<4x3xbf16>
    %c0_300 = arith.constant 0 : index
    %c0_301 = arith.constant 0 : index
    %260 = vector.load %arg6[%c0_300, %c0_301] : memref<4x8xf32, #tpu.memory_space<vmem>>, vector<4x8xf32>
    %c4_302 = arith.constant 4 : index
    %c3_303 = arith.constant 3 : index
    %c0_304 = arith.constant 0 : index
    %c0_305 = arith.constant 0 : index
    %261 = vector.load %arg3[%c4_302, %c3_303, %c0_304, %c0_305] : memref<5x5x3x8xbf16, #tpu.memory_space<vmem>>, vector<1x1x3x8xbf16>
    %262 = vector.shape_cast %261 : vector<1x1x3x8xbf16> to vector<3x8xbf16>
    %cst_306 = arith.constant dense<0.000000e+00> : vector<4x8xf32>
    %263 = tpu.matmul %259, %262, %cst_306 {dimension_numbers = #tpu.dot_dimension_numbers<[1], [0], [0], [1], [0, 0, 1, 1], [], []>} : vector<4x3xbf16>, vector<3x8xbf16>, vector<4x8xf32> -> vector<4x8xf32>
    %264 = arith.addf %260, %263 : vector<4x8xf32>
    %c0_307 = arith.constant 0 : index
    %c0_308 = arith.constant 0 : index
    %265 = vector.load %arg6[%c0_307, %c0_308] : memref<4x8xf32, #tpu.memory_space<vmem>>, vector<4x8xf32>
    tpu.vector_store %arg6[%c0_307, %c0_308], %264 {strides = array<i32>} : memref<4x8xf32, #tpu.memory_space<vmem>>, vector<4x8xf32>,
    %c0_309 = arith.constant 0 : index
    %c4_310 = arith.constant 4 : index
    %c4_311 = arith.constant 4 : index
    %c0_312 = arith.constant 0 : index
    %266 = vector.load %arg2[%c0_309, %c4_310, %c4_311, %c0_312] : memref<1x6x6x3xbf16, #tpu.memory_space<vmem>>, vector<1x2x2x3xbf16>
    %267 = vector.shape_cast %266 : vector<1x2x2x3xbf16> to vector<2x2x3xbf16>
    %268 = arith.extf %267 : vector<2x2x3xbf16> to vector<2x2x3xf32>
    %269 = vector.shape_cast %268 : vector<2x2x3xf32> to vector<4x3xf32>
    %270 = arith.truncf %269 : vector<4x3xf32> to vector<4x3xbf16>
    %c0_313 = arith.constant 0 : index
    %c0_314 = arith.constant 0 : index
    %271 = vector.load %arg6[%c0_313, %c0_314] : memref<4x8xf32, #tpu.memory_space<vmem>>, vector<4x8xf32>
    %c4_315 = arith.constant 4 : index
    %c4_316 = arith.constant 4 : index
    %c0_317 = arith.constant 0 : index
    %c0_318 = arith.constant 0 : index
    %272 = vector.load %arg3[%c4_315, %c4_316, %c0_317, %c0_318] : memref<5x5x3x8xbf16, #tpu.memory_space<vmem>>, vector<1x1x3x8xbf16>
    %273 = vector.shape_cast %272 : vector<1x1x3x8xbf16> to vector<3x8xbf16>
    %cst_319 = arith.constant dense<0.000000e+00> : vector<4x8xf32>
    %274 = tpu.matmul %270, %273, %cst_319 {dimension_numbers = #tpu.dot_dimension_numbers<[1], [0], [0], [1], [0, 0, 1, 1], [], []>} : vector<4x3xbf16>, vector<3x8xbf16>, vector<4x8xf32> -> vector<4x8xf32>
    %275 = arith.addf %271, %274 : vector<4x8xf32>
    %c0_320 = arith.constant 0 : index
    %c0_321 = arith.constant 0 : index
    %276 = vector.load %arg6[%c0_320, %c0_321] : memref<4x8xf32, #tpu.memory_space<vmem>>, vector<4x8xf32>
    tpu.vector_store %arg6[%c0_320, %c0_321], %275 {strides = array<i32>} : memref<4x8xf32, #tpu.memory_space<vmem>>, vector<4x8xf32>,
    %c0_322 = arith.constant 0 : index
    %c0_323 = arith.constant 0 : index
    %277 = vector.load %arg6[%c0_322, %c0_323] : memref<4x8xf32, #tpu.memory_space<vmem>>, vector<4x8xf32>
    %c0_324 = arith.constant 0 : index
    %c0_325 = arith.constant 0 : index
    %278 = vector.load %arg4[%c0_324, %c0_325] : memref<1x8xf32, #tpu.memory_space<vmem>>, vector<1x8xf32>
    %279 = vector.broadcast %278 : vector<1x8xf32> to vector<4x8xf32>
    %280 = arith.addf %277, %279 : vector<4x8xf32>
    %281 = vector.shape_cast %280 : vector<4x8xf32> to vector<1x2x2x8xf32>
    %282 = arith.truncf %281 : vector<1x2x2x8xf32> to vector<1x2x2x8xbf16>
    %c0_326 = arith.constant 0 : index
    %c0_327 = arith.constant 0 : index
    %c0_328 = arith.constant 0 : index
    %c0_329 = arith.constant 0 : index
    %283 = vector.load %arg5[%c0_326, %c0_327, %c0_328, %c0_329] : memref<1x2x2x8xbf16, #tpu.memory_space<vmem>>, vector<1x2x2x8xbf16>
    tpu.vector_store %arg5[%c0_326, %c0_327, %c0_328, %c0_329], %282 {strides = array<i32>} : memref<1x2x2x8xbf16, #tpu.memory_space<vmem>>, vector<1x2x2x8xbf16>,
    return
  }
  func.func @transform_0(%arg0: i32, %arg1: i32) -> (i32, i32, i32, i32) {
    %c0_i32 = arith.constant 0 : i32
    %c0_i32_0 = arith.constant 0 : i32
    %c0_i32_1 = arith.constant 0 : i32
    %c0_i32_2 = arith.constant 0 : i32
    return %arg0, %c0_i32, %c0_i32_0, %c0_i32_1 : i32, i32, i32, i32
  }
  func.func @transform_1(%arg0: i32, %arg1: i32) -> (i32, i32, i32, i32) {
    %c0_i32 = arith.constant 0 : i32
    %c0_i32_0 = arith.constant 0 : i32
    %c0_i32_1 = arith.constant 0 : i32
    %c0_i32_2 = arith.constant 0 : i32
    return %c0_i32, %c0_i32_0, %c0_i32_1, %arg1 : i32, i32, i32, i32
  }
  func.func @transform_2(%arg0: i32, %arg1: i32) -> (i32, i32) {
    %c0_i32 = arith.constant 0 : i32
    %c0_i32_0 = arith.constant 0 : i32
    return %c0_i32, %arg1 : i32, i32
  }
  func.func @transform_3(%arg0: i32, %arg1: i32) -> (i32, i32, i32, i32) {
    %c0_i32 = arith.constant 0 : i32
    %c0_i32_0 = arith.constant 0 : i32
    %c0_i32_1 = arith.constant 0 : i32
    return %arg0, %c0_i32, %c0_i32_0, %arg1 : i32, i32, i32, i32
  }
}

</mosaic_0001>

<bundles_post_ra>
// kernel: fbnetv2_block_forward.4
= control target key start
LH: loop header
LB: loop body
LE: loop exit
PB: predicated region body
PF: predicated region fallthrough
CT: control target
= control target key end

     0   :  { %s2981_s12 = smov 0   ;;  %s2983_s13 = smov 0   ;;  %s3681_s0 = inlined_call_operand.vmem [shape: bf16[2,8,8,3], index: 0, kind: input, shape index: {}]   ;;  %s3682_s1 = inlined_call_operand.vmem [shape: bf16[5,5,3,8], index: 1, kind: input, shape index: {}]   ;;  %s3683_s2 = inlined_call_operand.vmem [shape: f32[1,8], index: 2, kind: input, shape index: {}]   ;;  %s3684_s3 = inlined_call_operand.vmem [shape: bf16[2,4,4,8], index: 3, kind: output, shape index: {}]  }
   0x1   :  { %s2985_s14 = smov 0  }
   0x2 LB: > { %s25_s15 = sadd.s32 1, %s2952_s13  ;;  %p2498_p0 = scmp.ge.s32.totalorder %s2956_s14, 1  ;;  %s2956_s14 = sphi %s2985_s14, %s13_s14   ;;  %s2952_s13 = sphi %s2983_s13, %s3692_s13   ;;  %s2948_s12 = sphi %s2981_s12, %s3691_s12  }
   0x3   : > { %p27_p1 = scmp.ge.s32.totalorder %s25_s15, 2  ;;  %p168_p2 = scmp.lt.s32.totalorder %s2956_s14, 3 }
   0x5   : > { %s3694_s15 = smov (%p27_p1, %s25_s15), 0  ;;  %p169_p3 = pnand %p2498_p0, %p168_p2 }
   0x6   : > { %v245_v0 = vld [vmem:[%s3682_s1] sm:$0x3] (!%p169_p3)  ;;  %vm250_vm0 = vcmask (!%p169_p3), 1040384   ;;  %vm251_vm1 = vcmask (!%p169_p3), 1041408   ;;  %v2958_v1 = vmov (!%p169_p3), 0.0   ;;  %v2959_v2 = vmov (!%p169_p3), 65535  }
   0x7   : > { %172 = sbr.rel (%p169_p3) target bundleno = 496 (0x1f0), region = 32  ;;  %2757 = vmatprep.subr.bf16.mxu0 (!%p169_p3), %v2958_v1  ;;  %v252_v3 = vsel (!%p169_p3), %vm250_vm0, 4294967295, %v2959_v2  ;;  %p202_p4 = scmp.lt.s32.totalorder (!%p169_p3), %s2948_s12, 1  ;;  %2763 = vmatprep.subr.bf16.mxu1 (!%p169_p3), %v2958_v1  ;;  %v2508_v4 = vld [vmem:[%s3682_s1 + $0x2] sm:$0x3] (!%p169_p3)  ;;  %vm2960_vm2 = vmmov (!%p169_p3), 0  }
   0x8   : > { %v3009_v5 = vsel (!%p169_p3), %vm251_vm1, %v252_v3, 0  ;;  %2759 = vmatprep.mubr.msk.bf16.mxu0 (!%p169_p3), %vm2960_vm2, %v2958_v1  ;;  %2765 = vmatprep.mubr.msk.bf16.mxu1 (!%p169_p3), %vm2960_vm2, %v2958_v1  ;;  %v3018_v6 = vld [vmem:[%s3682_s1 + $0x4] sm:$0x3] (!%p169_p3)  ;;  %vm318_vm3 = vcmask (!%p169_p3), 1042432   ;;  %v3027_v9 = vld [vmem:[%s3682_s1 + $0x6] sm:$0x3] (!%p169_p3) }
   0x9   : > { %v255_v7 = vand.u32 (!%p169_p3), %v3009_v5, %v245_v0  ;;  %v350_v8 = vand.u32 (!%p169_p3), %v2508_v4, %v3009_v5  ;;  %v3032_v10 = vld [vmem:[%s3682_s1 + $0x8] sm:$0x3] (!%p169_p3)  ;;  %vm246_vm4 = vcmask (!%p169_p3), 23552   ;;  %vm319_vm5 = vcmask (!%p169_p3), 1046532   ;;  %v3037_v11 = vld [vmem:[%s3682_s1 + $0xa] sm:$0x3] (!%p169_p3) }
   0xa   : > { %v3042_v12 = vld [vmem:[%s3682_s1 + $0xc] sm:$0x3] (!%p169_p3)  ;;  %vm223_vm6 = vcmask (!%p169_p3), 64512   ;;  %v444_v13 = vand.u32 (!%p169_p3), %v3018_v6, %v3009_v5  ;;  %vm413_vm7 = vcmask (!%p169_p3), 1045508   ;;  %v3050_v14 = vld [vmem:[%s3682_s1 + $0xe] sm:$0x3] (!%p169_p3)  ;;  %v538_v16 = vand.u32 (!%p169_p3), %v3027_v9, %v3009_v5  ;;  %vm3114_vm8 = vmor (!%p169_p3), %vm318_vm3, %vm319_vm5 }
   0xb   : > { %2758 = vmatpush3.bf16.msra.mxu0 (!%p169_p3), %v255_v7  ;;  %2764 = vmatpush3.bf16.msra.mxu1 (!%p169_p3), %v350_v8  ;;  %v3055_v15 = vld [vmem:[%s3682_s1 + $0x10] sm:$0x3] (!%p169_p3)  ;;  %224 = vst.msk [vmem:[#allocation2] sm:$0xff] (!%p169_p3), %vm223_vm6, %v2958_v1  ;;  %225 = vst.msk [vmem:[#allocation2 + $0x8] sm:$0xff] (!%p169_p3), %vm223_vm6, %v2958_v1  ;;  %v614_v17 = vand.u32 (!%p169_p3), %v3032_v10, %v3009_v5  ;;  %v687_v18 = vand.u32 (!%p169_p3), %v3037_v11, %v3009_v5  ;;  %v3077_v19 = vld [vmem:[%s3682_s1 + $0x12] sm:$0x3] (!%p169_p3) }
   0xc   : > { %2769 = vmatprep.subr.bf16.mxu0 (!%p169_p3), %v2958_v1  ;;  %2775 = vmatprep.subr.bf16.mxu1 (!%p169_p3), %v2958_v1  ;;  %v3082_v20 = vld [vmem:[%s3682_s1 + $0x14] sm:$0x3] (!%p169_p3)  ;;  %v3087_v21 = vld [vmem:[%s3682_s1 + $0x16] sm:$0x3] (!%p169_p3)  ;;  %v779_v25 = vand.u32 (!%p169_p3), %v3042_v12, %v3009_v5  ;;  %v871_v26 = vand.u32 (!%p169_p3), %v3050_v14, %v3009_v5  ;;  %v963_v27 = vand.u32 (!%p169_p3), %v3055_v15, %v3009_v5  ;;  %vm507_vm9 = vcmask (!%p169_p3), 1044484   ;;  %vm3135_vm10 = vmor (!%p169_p3), %vm251_vm1, %vm413_vm7 }
   0xd   : > { %v1039_v28 = vand.u32 (!%p169_p3), %v3077_v19, %v3009_v5  ;;  %v1112_v35 = vand.u32 (!%p169_p3), %v3082_v20, %v3009_v5  ;;  %v1204_v42 = vand.u32 (!%p169_p3), %v3087_v21, %v3009_v5  ;;  %vm3162_vm11 = vmor (!%p169_p3), %vm250_vm0, %vm507_vm9  ;;  %v2604_v21 = vld [vmem:[%s3682_s1 + $0x1a] sm:$0x3] (!%p169_p3)  ;;  %vm2382_vm12 = vcmask (!%p169_p3), 58368  }
   0xe   : > { %s3696_s12 = smov (!%p202_p4, %s2948_s12), 1 }
   0xf   : > { %s2705_s30 = sshll.u32 %s3696_s12, 5  ;;  %s2706_s26 = sshll.u32 %s3696_s12, 3 }
  0x10   : > { %s3064_s10 = scalar_lea.vmem %s3681_s0, %s2705_s30  ;;  %s221_s29 = scalar_lea.vmem %s3684_s3, %s2706_s26 }
  0x11   : > { %v226_v22 = vld [vmem:[%s3064_s10] sm:$0x3]  ;;  %v227_v23 = vld [vmem:[%s3064_s10 + $0x4] sm:$0x3]  ;;  %v228_v24 = vld [vmem:[%s3064_s10 + $0x8] sm:$0x3] }
  0x12   : > { %v229_v29 = vld [vmem:[%s3064_s10 + $0xc] sm:$0x3]  ;;  %v230_v30 = vunpack.c.l.bf16 %v226_v22  ;;  %v231_v31 = vunpack.c.l.bf16 %v227_v23  ;;  %v232_v32 = vunpack.c.l.bf16 %v228_v24  ;;  %v302_v33 = vld [vmem:[%s3064_s10] sm:$0x7]  ;;  %v303_v34 = vld [vmem:[%s3064_s10 + $0x4] sm:$0x7] }
  0x13   : > { %v233_v36 = vunpack.c.l.bf16 %v229_v29  ;;  %v304_v37 = vld [vmem:[%s3064_s10 + $0x8] sm:$0x7]  ;;  %v305_v38 = vld [vmem:[%s3064_s10 + $0xc] sm:$0x7]  ;;  %v306_v39 = vunpack.c.l.bf16 %v302_v33  ;;  %v307_v40 = vunpack.c.l.bf16 %v303_v34  ;;  %v397_v41 = vld [vmem:[%s3064_s10] sm:$0x6] }
  0x14   : > { %v238_v43 = vcombine.low %v230_v30, %v231_v31  ;;  %v308_v44 = vunpack.c.l.bf16 %v304_v37  ;;  %v309_v45 = vunpack.c.l.bf16 %v305_v38  ;;  %v401_v46 = vunpack.c.l.bf16 %v397_v41  ;;  %v398_v51 = vld [vmem:[%s3064_s10 + $0x4] sm:$0x6]  ;;  %v399_v52 = vld [vmem:[%s3064_s10 + $0x8] sm:$0x6]  ;;  %v400_v58 = vld [vmem:[%s3064_s10 + $0xc] sm:$0x6] }
  0x15   : > { %v239_v47 = vcombine.low %v232_v32, %v233_v36  ;;  %v314_v48 = vcombine.high %v306_v39, %v306_v39  ;;  %v315_v49 = vcombine.high %v307_v40, %v307_v40  ;;  %v2504_v50 = vrot.slane %v306_v39, 9  ;;  %v491_v37 = vld [vmem:[%s3064_s10] sm:$0xe]  ;;  %v492_v38 = vld [vmem:[%s3064_s10 + $0x4] sm:$0xe] }
  0x16   : > { %v316_v53 = vcombine.high %v308_v44, %v308_v44  ;;  %v317_v54 = vcombine.high %v309_v45, %v309_v45  ;;  %v2505_v56 = vrot.slane %v307_v40, 9  ;;  %v2506_v57 = vrot.slane %v308_v44, 9  ;;  %v493_v39 = vld [vmem:[%s3064_s10 + $0x8] sm:$0xe] }
  0x17   : > { %v242_v59 = vpack.c.bf16 %v239_v47, %v238_v43  ;;  %v323_v60 = vrot.slane %v314_v48, 5  ;;  %v327_v61 = vrot.slane %v315_v49, 5  ;;  %v2507_v62 = vrot.slane %v309_v45, 9  ;;  %v494_v43 = vld [vmem:[%s3064_s10 + $0xc] sm:$0xe] }
  0x18   : > { %v331_v63 = vrot.slane %v316_v53, 5  ;;  %v335_v0 = vrot.slane %v317_v54, 5  ;;  %v402_v2 = vunpack.c.l.bf16 %v398_v51  ;;  %v403_v3 = vunpack.c.l.bf16 %v399_v52 }
  0x19   : > { %2760 = vmatmul.mubr.msk.bf16.vlgmr.msra.gmra.mrb[0].mxu0 %vm246_vm4, %v242_v59  ;;  %v324_v4 = vsel %vm3114_vm8, %v2504_v50, %v323_v60  ;;  %v328_v7 = vsel %vm3114_vm8, %v2505_v56, %v327_v61  ;;  %v404_v8 = vunpack.c.l.bf16 %v400_v58  ;;  %v409_v22 = vcombine.high %v401_v46, %v401_v46  ;;  %v585_v61 = vld [vmem:[%s3064_s10] sm:$0xc] }
  0x1a   : > { %v332_v23 = vsel %vm3114_vm8, %v2506_v57, %v331_v63  ;;  %v336_v24 = vsel %vm3114_vm8, %v2507_v62, %v335_v0  ;;  %v337_v29 = vcombine.low %v324_v4, %v328_v7  ;;  %2770 = vmatpush3.bf16.msra.mxu0 %v444_v13  ;;  %2771 = vmatprep.mubr.msk.bf16.mxu0 %vm2960_vm2, %v2958_v1  ;;  %v2510_v31 = vrot.slane %v401_v46, 10  ;;  %v586_v62 = vld [vmem:[%s3064_s10 + $0x4] sm:$0xc]  ;;  %v588_v4 = vld [vmem:[%s3064_s10 + $0xc] sm:$0xc] }
  0x1b   : > { %v338_v32 = vcombine.low %v332_v23, %v336_v24  ;;  %v410_v33 = vcombine.high %v402_v2, %v402_v2  ;;  %v411_v34 = vcombine.high %v403_v3, %v403_v3  ;;  %v412_v36 = vcombine.high %v404_v8, %v404_v8  ;;  %2781 = vmatprep.subr.bf16.mxu0 %v2958_v1  ;;  %v2526_v24 = vld [vmem:[%s3064_s10 + $0x4] sm:$0x3] }
  0x1c   : > { %v417_v6 = vrot.slane %v409_v22, 6  ;;  %v2511_v13 = vrot.slane %v402_v2, 10  ;;  %v2512_v40 = vrot.slane %v403_v3, 10  ;;  %v2513_v41 = vrot.slane %v404_v8, 10 }
  0x1d   : > { %v341_v44 = vpack.c.bf16 %v338_v32, %v337_v29  ;;  %v421_v45 = vrot.slane %v410_v33, 6  ;;  %v425_v47 = vrot.slane %v411_v34, 6  ;;  %v429_v48 = vrot.slane %v412_v36, 6  ;;  %v2527_v34 = vld [vmem:[%s3064_s10 + $0x8] sm:$0x3] }
  0x1e   : > { %v418_v46 = vsel %vm3135_vm10, %v2510_v31, %v417_v6  ;;  %v495_v49 = vunpack.c.l.bf16 %v491_v37  ;;  %v496_v50 = vunpack.c.l.bf16 %v492_v38  ;;  %v497_v51 = vunpack.c.l.bf16 %v493_v39  ;;  %v2528_v6 = vld [vmem:[%s3064_s10 + $0xc] sm:$0x3] }
  0x1f   : > { %2766 = vmatmul.mubr.msk.bf16.vlgmr.msra.gmra.mrb[0].mxu1 %vm246_vm4, %v341_v44  ;;  %v422_v52 = vsel %vm3135_vm10, %v2511_v13, %v421_v45  ;;  %v426_v53 = vsel %vm3135_vm10, %v2512_v40, %v425_v47  ;;  %v430_v54 = vsel %vm3135_vm10, %v2513_v41, %v429_v48  ;;  %v498_v56 = vunpack.c.l.bf16 %v494_v43  ;;  %v2529_v13 = vld [vmem:[%s3064_s10 + $0x10] sm:$0x3]  ;;  %v2532_v40 = vld [vmem:[%s3064_s10 + $0x4] sm:$0x7]  ;;  %v2533_v47 = vld [vmem:[%s3064_s10 + $0x8] sm:$0x7] }
  0x20   : > { %v431_v57 = vcombine.low %v418_v46, %v422_v52  ;;  %v432_v58 = vcombine.low %v426_v53, %v430_v54  ;;  %2776 = vmatpush3.bf16.msra.mxu1 %v538_v16  ;;  %2777 = vmatprep.mubr.msk.bf16.mxu1 %vm2960_vm2, %v2958_v1  ;;  %v503_v59 = vcombine.high %v495_v49, %v495_v49  ;;  %v2516_v60 = vrot.slane %v495_v49, 11  ;;  %v587_v16 = vld [vmem:[%s3064_s10 + $0x8] sm:$0xc]  ;;  %v2534_v48 = vld [vmem:[%s3064_s10 + $0xc] sm:$0x7] }
  0x21   : > { %v504_v63 = vcombine.high %v496_v50, %v496_v50  ;;  %v505_v0 = vcombine.high %v497_v51, %v497_v51  ;;  %v506_v2 = vcombine.high %v498_v56, %v498_v56  ;;  %v2517_v9 = vrot.slane %v496_v50, 11  ;;  %2787 = vmatprep.subr.bf16.mxu1 %v2958_v1  ;;  %v2535_v52 = vld [vmem:[%s3064_s10 + $0x10] sm:$0x7] }
  0x22   : > { %v435_v7 = vpack.c.bf16 %v432_v58, %v431_v57  ;;  %v511_v8 = vrot.slane %v503_v59, 7  ;;  %v2518_v22 = vrot.slane %v497_v51, 11  ;;  %v2519_v23 = vrot.slane %v498_v56, 11 }
  0x23   : > { %v515_v29 = vrot.slane %v504_v63, 7  ;;  %v519_v31 = vrot.slane %v505_v0, 7  ;;  %v523_v32 = vrot.slane %v506_v2, 7  ;;  %v589_v33 = vunpack.c.l.bf16 %v585_v61  ;;  %v2542_v0 = vld [vmem:[%s3064_s10 + $0x4] sm:$0x6] }
  0x24   : > { %2772 = vmatmul.mubr.msk.bf16.vlgmr.msra.gmra.mrb[4].mxu0 %vm246_vm4, %v435_v7  ;;  %v512_v36 = vsel %vm3162_vm11, %v2516_v60, %v511_v8  ;;  %v590_v37 = vunpack.c.l.bf16 %v586_v62  ;;  %v591_v38 = vunpack.c.l.bf16 %v587_v16  ;;  %v592_v39 = vunpack.c.l.bf16 %v588_v4  ;;  %v2543_v7 = vld [vmem:[%s3064_s10 + $0x8] sm:$0x6]  ;;  %v2544_v8 = vld [vmem:[%s3064_s10 + $0xc] sm:$0x6] }
  0x25   : > { %v516_v41 = vsel %vm3162_vm11, %v2517_v9, %v515_v29  ;;  %v520_v43 = vsel %vm3162_vm11, %v2518_v22, %v519_v31  ;;  %v524_v44 = vsel %vm3162_vm11, %v2519_v23, %v523_v32  ;;  %2782 = vmatpush3.bf16.msra.mxu0 %v614_v17  ;;  %2783 = vmatprep.mubr.msk.bf16.mxu0 %vm2960_vm2, %v2958_v1  ;;  %v666_v45 = vunpack.c.l.bf16 %v2526_v24  ;;  %v2545_v31 = vld [vmem:[%s3064_s10 + $0x10] sm:$0x6] }
  0x26   : > { %v525_v46 = vcombine.low %v512_v36, %v516_v41  ;;  %v526_v49 = vcombine.low %v520_v43, %v524_v44  ;;  %v2522_v50 = vcombine.high %v589_v33, %v590_v37  ;;  %v2523_v51 = vcombine.high %v591_v38, %v592_v39  ;;  %2793 = vmatprep.subr.bf16.mxu0 %v2958_v1  ;;  %v2552_v44 = vld [vmem:[%s3064_s10 + $0x4] sm:$0xe] }
  0x27   : > { %v667_v53 = vunpack.c.l.bf16 %v2527_v34  ;;  %v668_v54 = vunpack.c.l.bf16 %v2528_v6  ;;  %v669_v56 = vunpack.c.l.bf16 %v2529_v13  ;;  %v738_v10 = vunpack.c.l.bf16 %v2532_v40 }
  0x28   : > { %v529_v17 = vpack.c.bf16 %v526_v49, %v525_v46  ;;  %v605_v57 = vpack.c.bf16 %v2523_v51, %v2522_v50  ;;  %v739_v58 = vunpack.c.l.bf16 %v2533_v47  ;;  %v740_v59 = vunpack.c.l.bf16 %v2534_v48  ;;  %v2553_v49 = vld [vmem:[%s3064_s10 + $0x8] sm:$0xe]  ;;  %v2554_v50 = vld [vmem:[%s3064_s10 + $0xc] sm:$0xe] }
  0x29   : > { %v674_v60 = vcombine.low %v666_v45, %v667_v53  ;;  %v675_v61 = vcombine.low %v668_v54, %v669_v56  ;;  %v741_v62 = vunpack.c.l.bf16 %v2535_v52  ;;  %v746_v63 = vcombine.high %v738_v10, %v738_v10  ;;  %v2555_v56 = vld [vmem:[%s3064_s10 + $0x10] sm:$0xe] }
  0x2a   : > { %2778 = vmatmul.mubr.msk.bf16.vlgmr.msra.gmra.mrb[4].mxu1 %vm246_vm4, %v529_v17  ;;  %v747_v2 = vcombine.high %v739_v58, %v739_v58  ;;  %v748_v9 = vcombine.high %v740_v59, %v740_v59  ;;  %v2536_v16 = vrot.slane %v738_v10, 9  ;;  %v2537_v4 = vrot.slane %v739_v58, 9 }
  0x2b   : > { %2788 = vmatpush3.bf16.msra.mxu1 %v687_v18  ;;  %2789 = vmatprep.mubr.msk.bf16.mxu1 %vm2960_vm2, %v2958_v1  ;;  %v678_v22 = vpack.c.bf16 %v675_v61, %v674_v60  ;;  %v749_v23 = vcombine.high %v741_v62, %v741_v62  ;;  %v752_v24 = vrot.slane %v746_v63, 5  ;;  %v2538_v29 = vrot.slane %v740_v59, 9 }
  0x2c   : > { %2784 = vmatmul.mubr.msk.bf16.vlgmr.msra.gmra.mrb[8].mxu0 %vm246_vm4, %v605_v57  ;;  %v756_v32 = vrot.slane %v747_v2, 5  ;;  %v760_v33 = vrot.slane %v748_v9, 5  ;;  %v2539_v34 = vrot.slane %v741_v62, 9  ;;  %2799 = vmatprep.subr.bf16.mxu1 %v2958_v1  ;;  %v830_v36 = vunpack.c.l.bf16 %v2542_v0 }
  0x2d   : > { %2794 = vmatpush3.bf16.msra.mxu0 %v779_v25  ;;  %2795 = vmatprep.mubr.msk.bf16.mxu0 %vm2960_vm2, %v2958_v1  ;;  %v753_v11 = vsel %vm3114_vm8, %v2536_v16, %v752_v24  ;;  %v764_v18 = vrot.slane %v749_v23, 5  ;;  %v831_v37 = vunpack.c.l.bf16 %v2543_v7  ;;  %v832_v38 = vunpack.c.l.bf16 %v2544_v8  ;;  %v2562_v7 = vld [vmem:[%s3064_s10 + $0x4] sm:$0xc]  ;;  %v2563_v8 = vld [vmem:[%s3064_s10 + $0x8] sm:$0xc] }
  0x2e   : > { %v757_v39 = vsel %vm3114_vm8, %v2537_v4, %v756_v32  ;;  %v761_v6 = vsel %vm3114_vm8, %v2538_v29, %v760_v33  ;;  %v833_v12 = vunpack.c.l.bf16 %v2545_v31  ;;  %v838_v13 = vcombine.high %v830_v36, %v830_v36  ;;  %2805 = vmatprep.subr.bf16.mxu0 %v2958_v1  ;;  %v2564_v31 = vld [vmem:[%s3064_s10 + $0xc] sm:$0xc]  ;;  %v2565_v32 = vld [vmem:[%s3064_s10 + $0x10] sm:$0xc] }
  0x2f   : > { %v765_v25 = vsel %vm3114_vm8, %v2539_v34, %v764_v18  ;;  %v766_v40 = vcombine.low %v753_v11, %v757_v39  ;;  %v839_v41 = vcombine.high %v831_v37, %v831_v37  ;;  %v840_v43 = vcombine.high %v832_v38, %v832_v38  ;;  %v2571_v39 = vld [vmem:[%s3064_s10 + $0xc] sm:$0x3] }
  0x30   : > { %v767_v45 = vcombine.low %v761_v6, %v765_v25  ;;  %v841_v47 = vcombine.high %v833_v12, %v833_v12  ;;  %v2546_v48 = vrot.slane %v830_v36, 10  ;;  %v844_v46 = vrot.slane %v838_v13, 6  ;;  %v2570_v36 = vld [vmem:[%s3064_s10 + $0x8] sm:$0x3]  ;;  %v2572_v6 = vld [vmem:[%s3064_s10 + $0x10] sm:$0x3] }
  0x31   : > { %v2547_v51 = vrot.slane %v831_v37, 10  ;;  %v848_v52 = vrot.slane %v839_v41, 6  ;;  %v2548_v53 = vrot.slane %v832_v38, 10  ;;  %v852_v54 = vrot.slane %v840_v43, 6  ;;  %v2573_v41 = vld [vmem:[%s3064_s10 + $0x14] sm:$0x3] }
  0x32   : > { %2790 = vmatmul.mubr.msk.bf16.vlgmr.msra.gmra.mrb[8].mxu1 %vm246_vm4, %v678_v22  ;;  %v770_v10 = vpack.c.bf16 %v767_v45, %v766_v40  ;;  %v845_v17 = vsel %vm3135_vm10, %v2546_v48, %v844_v46  ;;  %v2549_v57 = vrot.slane %v833_v12, 10  ;;  %v856_v58 = vrot.slane %v841_v47, 6  ;;  %v2576_v43 = vld [vmem:[%s3064_s10 + $0x8] sm:$0x7] }
  0x33   : > { %2800 = vmatpush3.bf16.msra.mxu1 %v871_v26  ;;  %2801 = vmatprep.mubr.msk.bf16.mxu1 %vm2960_vm2, %v2958_v1  ;;  %v849_v59 = vsel %vm3135_vm10, %v2547_v51, %v848_v52  ;;  %v853_v60 = vsel %vm3135_vm10, %v2548_v53, %v852_v54  ;;  %v922_v61 = vunpack.c.l.bf16 %v2552_v44  ;;  %v923_v62 = vunpack.c.l.bf16 %v2553_v49  ;;  %v2577_v44 = vld [vmem:[%s3064_s10 + $0xc] sm:$0x7]  ;;  %v2578_v49 = vld [vmem:[%s3064_s10 + $0x10] sm:$0x7]  ;;  %v2579_v54 = vld [vmem:[%s3064_s10 + $0x14] sm:$0x7] }
  0x34   : > { %2796 = vmatmul.mubr.msk.bf16.vlgmr.msra.gmra.mrb[12].mxu0 %vm246_vm4, %v770_v10  ;;  %v857_v63 = vsel %vm3135_vm10, %v2549_v57, %v856_v58  ;;  %v858_v14 = vcombine.low %v845_v17, %v849_v59  ;;  %v924_v26 = vunpack.c.l.bf16 %v2554_v50  ;;  %v925_v0 = vunpack.c.l.bf16 %v2555_v56  ;;  %2811 = vmatprep.subr.bf16.mxu1 %v2958_v1 }
  0x35   : > { %v859_v2 = vcombine.low %v853_v60, %v857_v63  ;;  %2806 = vmatpush3.bf16.msra.mxu0 %v963_v27  ;;  %2807 = vmatprep.mubr.msk.bf16.mxu0 %vm2960_vm2, %v2958_v1  ;;  %v930_v9 = vcombine.high %v922_v61, %v922_v61  ;;  %v931_v16 = vcombine.high %v923_v62, %v923_v62  ;;  %v2556_v4 = vrot.slane %v922_v61, 11 }
  0x36   : > { %v932_v22 = vcombine.high %v924_v26, %v924_v26  ;;  %v933_v23 = vcombine.high %v925_v0, %v925_v0  ;;  %v2557_v24 = vrot.slane %v923_v62, 11  ;;  %v2558_v29 = vrot.slane %v924_v26, 11  ;;  %2817 = vmatprep.subr.bf16.mxu0 %v2958_v1  ;;  %v2586_v26 = vld [vmem:[%s3064_s10 + $0x8] sm:$0x6] }
  0x37   : > { %v862_v15 = vpack.c.bf16 %v859_v2, %v858_v14  ;;  %v936_v27 = vrot.slane %v930_v9, 7  ;;  %v940_v33 = vrot.slane %v931_v16, 7  ;;  %v2559_v34 = vrot.slane %v925_v0, 11  ;;  %v2594_v14 = vld [vmem:[%s3682_s1 + $0x18] sm:$0x3] }
  0x38   : > { %v944_v11 = vrot.slane %v932_v22, 7  ;;  %v948_v18 = vrot.slane %v933_v23, 7  ;;  %v1014_v37 = vunpack.c.l.bf16 %v2562_v7  ;;  %v1015_v38 = vunpack.c.l.bf16 %v2563_v8 }
  0x39   : > { %v937_v12 = vsel %vm3162_vm11, %v2556_v4, %v936_v27  ;;  %v941_v13 = vsel %vm3162_vm11, %v2557_v24, %v940_v33  ;;  %v1016_v25 = vunpack.c.l.bf16 %v2564_v31  ;;  %v1017_v40 = vunpack.c.l.bf16 %v2565_v32  ;;  %v2587_v4 = vld [vmem:[%s3064_s10 + $0xc] sm:$0x6]  ;;  %v2588_v24 = vld [vmem:[%s3064_s10 + $0x10] sm:$0x6] }
  0x3a   : > { %2802 = vmatmul.mubr.msk.bf16.vlgmr.msra.gmra.mrb[12].mxu1 %vm246_vm4, %v862_v15  ;;  %v945_v45 = vsel %vm3162_vm11, %v2558_v29, %v944_v11  ;;  %v949_v47 = vsel %vm3162_vm11, %v2559_v34, %v948_v18  ;;  %v950_v48 = vcombine.low %v937_v12, %v941_v13  ;;  %v2566_v46 = vcombine.high %v1014_v37, %v1015_v38  ;;  %v2589_v29 = vld [vmem:[%s3064_s10 + $0x14] sm:$0x6] }
  0x3b   : > { %v951_v50 = vcombine.low %v945_v45, %v949_v47  ;;  %2812 = vmatpush3.bf16.msra.mxu1 %v1039_v28  ;;  %2813 = vmatprep.mubr.msk.bf16.mxu1 %vm2960_vm2, %v2958_v1  ;;  %v2567_v51 = vcombine.high %v1016_v25, %v1017_v40  ;;  %v1091_v52 = vunpack.c.l.bf16 %v2570_v36  ;;  %v1092_v53 = vunpack.c.l.bf16 %v2571_v39 }
  0x3c   : > { %v1093_v56 = vunpack.c.l.bf16 %v2572_v6  ;;  %v1094_v10 = vunpack.c.l.bf16 %v2573_v41  ;;  %2823 = vmatprep.subr.bf16.mxu1 %v2958_v1  ;;  %v1163_v17 = vunpack.c.l.bf16 %v2576_v43  ;;  %v1164_v57 = vunpack.c.l.bf16 %v2577_v44  ;;  %v2596_v41 = vld [vmem:[%s3064_s10 + $0x8] sm:$0xe]  ;;  %v2597_v43 = vld [vmem:[%s3064_s10 + $0xc] sm:$0xe] }
  0x3d   : > { %v954_v58 = vpack.c.bf16 %v951_v50, %v950_v48  ;;  %v1030_v59 = vpack.c.bf16 %v2567_v51, %v2566_v46  ;;  %v1099_v60 = vcombine.low %v1091_v52, %v1092_v53  ;;  %v1165_v19 = vunpack.c.l.bf16 %v2578_v49  ;;  %v2598_v46 = vld [vmem:[%s3064_s10 + $0x10] sm:$0xe]  ;;  %v2599_v53 = vld [vmem:[%s3064_s10 + $0x14] sm:$0xe] }
  0x3e   : > { %v1100_v28 = vcombine.low %v1093_v56, %v1094_v10  ;;  %v1166_v61 = vunpack.c.l.bf16 %v2579_v54  ;;  %v1171_v62 = vcombine.high %v1163_v17, %v1163_v17  ;;  %v1172_v63 = vcombine.high %v1164_v57, %v1164_v57 }
  0x3f   : > { %2808 = vmatmul.mubr.msk.bf16.vlgmr.msra.gmra.mrb[16].mxu0 %vm246_vm4, %v954_v58  ;;  %v1173_v0 = vcombine.high %v1165_v19, %v1165_v19  ;;  %v2580_v2 = vrot.slane %v1163_v17, 9  ;;  %v2581_v9 = vrot.slane %v1164_v57, 9  ;;  %v2582_v16 = vrot.slane %v1165_v19, 9 }
  0x40   : > { %2818 = vmatpush3.bf16.msra.mxu0 %v1112_v35  ;;  %2819 = vmatprep.mubr.msk.bf16.mxu0 %vm2960_vm2, %v2958_v1  ;;  %v1103_v7 = vpack.c.bf16 %v1100_v28, %v1099_v60  ;;  %v1174_v8 = vcombine.high %v1166_v61, %v1166_v61  ;;  %v1177_v22 = vrot.slane %v1171_v62, 5  ;;  %v1181_v23 = vrot.slane %v1172_v63, 5  ;;  %v2612_v63 = vld [vmem:[%s3682_s1 + $0x1c] sm:$0x3] }
  0x41   : > { %v1185_v31 = vrot.slane %v1173_v0, 5  ;;  %v2583_v32 = vrot.slane %v1166_v61, 9  ;;  %2829 = vmatprep.subr.bf16.mxu0 %v2958_v1  ;;  %v1296_v15 = vand.u32 %v2594_v14, %v3009_v5  ;;  %v1255_v27 = vunpack.c.l.bf16 %v2586_v26  ;;  %v2606_v14 = vld [vmem:[%s3064_s10 + $0x8] sm:$0xc]  ;;  %v2607_v26 = vld [vmem:[%s3064_s10 + $0xc] sm:$0xc] }
  0x42   : > { %2814 = vmatmul.mubr.msk.bf16.vlgmr.msra.gmra.mrb[16].mxu1 %vm246_vm4, %v1030_v59  ;;  %v1178_v20 = vsel %vm3114_vm8, %v2580_v2, %v1177_v22  ;;  %v1182_v35 = vsel %vm3114_vm8, %v2581_v9, %v1181_v23  ;;  %v1189_v33 = vrot.slane %v1174_v8, 5  ;;  %v1256_v34 = vunpack.c.l.bf16 %v2587_v4  ;;  %v2608_v4 = vld [vmem:[%s3064_s10 + $0x10] sm:$0xc] }
  0x43   : > { %2824 = vmatpush3.bf16.msra.mxu1 %v1204_v42  ;;  %2825 = vmatprep.mubr.msk.bf16.mxu1 %vm2960_vm2, %v2958_v1  ;;  %v1186_v36 = vsel %vm3114_vm8, %v2582_v16, %v1185_v31  ;;  %v1191_v11 = vcombine.low %v1178_v20, %v1182_v35  ;;  %v1257_v18 = vunpack.c.l.bf16 %v2588_v24  ;;  %v1258_v37 = vunpack.c.l.bf16 %v2589_v29  ;;  %v2609_v24 = vld [vmem:[%s3064_s10 + $0x14] sm:$0xc]  ;;  %v2618_v29 = vld [vmem:[%s3682_s1 + $0x1e] sm:$0x3]  ;;  %v2614_v20 = vld [vmem:[%s3064_s10 + $0xc] sm:$0x3] }
  0x44   : > { %v1190_v38 = vsel %vm3114_vm8, %v2583_v32, %v1189_v33  ;;  %v1263_v39 = vcombine.high %v1255_v27, %v1255_v27  ;;  %v1264_v6 = vcombine.high %v1256_v34, %v1256_v34  ;;  %v2590_v12 = vrot.slane %v1255_v27, 10  ;;  %2835 = vmatprep.subr.bf16.mxu1 %v2958_v1  ;;  %v2615_v35 = vld [vmem:[%s3064_s10 + $0x10] sm:$0x3] }
  0x45   : > { %v1192_v42 = vcombine.low %v1186_v36, %v1190_v38  ;;  %v1265_v13 = vcombine.high %v1257_v18, %v1257_v18  ;;  %v1266_v25 = vcombine.high %v1258_v37, %v1258_v37  ;;  %v2591_v40 = vrot.slane %v1256_v34, 10 }
  0x46   : > { %v1269_v44 = vrot.slane %v1263_v39, 6  ;;  %v1273_v45 = vrot.slane %v1264_v6, 6  ;;  %v2592_v47 = vrot.slane %v1257_v18, 10  ;;  %v2593_v48 = vrot.slane %v1258_v37, 10  ;;  %v2616_v18 = vld [vmem:[%s3064_s10 + $0x14] sm:$0x3] }
  0x47   : > { %2820 = vmatmul.mubr.msk.bf16.vlgmr.msra.gmra.mrb[20].mxu0 %vm246_vm4, %v1103_v7  ;;  %v1195_v49 = vpack.c.bf16 %v1192_v42, %v1191_v11  ;;  %v1277_v50 = vrot.slane %v1265_v13, 6  ;;  %v1281_v51 = vrot.slane %v1266_v25, 6  ;;  %v1388_v52 = vand.u32 %v2604_v21, %v3009_v5  ;;  %v2617_v37 = vld [vmem:[%s3064_s10 + $0x18] sm:$0x3]  ;;  %v2628_v21 = vld [vmem:[%s3682_s1 + $0x20] sm:$0x3] }
  0x48   : > { %2830 = vmatpush3.bf16.msra.mxu0 %v1296_v15  ;;  %2831 = vmatprep.mubr.msk.bf16.mxu0 %vm2960_vm2, %v2958_v1  ;;  %v1270_v54 = vsel %vm3135_vm10, %v2590_v12, %v1269_v44  ;;  %v1274_v56 = vsel %vm3135_vm10, %v2591_v40, %v1273_v45  ;;  %v1347_v10 = vunpack.c.l.bf16 %v2596_v41  ;;  %v1348_v17 = vunpack.c.l.bf16 %v2597_v43  ;;  %v2620_v42 = vld [vmem:[%s3064_s10 + $0xc] sm:$0x7]  ;;  %v2621_v13 = vld [vmem:[%s3064_s10 + $0x10] sm:$0x7]  ;;  %v2622_v44 = vld [vmem:[%s3064_s10 + $0x14] sm:$0x7] }
  0x49   : > { %v1278_v57 = vsel %vm3135_vm10, %v2592_v47, %v1277_v50  ;;  %v1282_v58 = vsel %vm3135_vm10, %v2593_v48, %v1281_v51  ;;  %v1283_v59 = vcombine.low %v1270_v54, %v1274_v56  ;;  %v1349_v60 = vunpack.c.l.bf16 %v2598_v46  ;;  %2841 = vmatprep.subr.bf16.mxu0 %v2958_v1 }
  0x4a   : > { %2826 = vmatmul.mubr.msk.bf16.vlgmr.msra.gmra.mrb[20].mxu1 %vm246_vm4, %v1195_v49  ;;  %v1284_v19 = vcombine.low %v1278_v57, %v1282_v58  ;;  %v1350_v28 = vunpack.c.l.bf16 %v2599_v53  ;;  %v1355_v61 = vcombine.high %v1347_v10, %v1347_v10  ;;  %v1356_v62 = vcombine.high %v1348_v17, %v1348_v17  ;;  %v2623_v49 = vld [vmem:[%s3064_s10 + $0x18] sm:$0x7] }
  0x4b   : > { %2836 = vmatpush3.bf16.msra.mxu1 %v1388_v52  ;;  %2837 = vmatprep.mubr.msk.bf16.mxu1 %vm2960_vm2, %v2958_v1  ;;  %v1357_v0 = vcombine.high %v1349_v60, %v1349_v60  ;;  %v2600_v2 = vrot.slane %v1347_v10, 11  ;;  %v2601_v9 = vrot.slane %v1348_v17, 11  ;;  %v2602_v16 = vrot.slane %v1349_v60, 11 }
  0x4c   : > { %v1287_v7 = vpack.c.bf16 %v1284_v19, %v1283_v59  ;;  %v1358_v8 = vcombine.high %v1350_v28, %v1350_v28  ;;  %v1361_v22 = vrot.slane %v1355_v61, 7  ;;  %v1365_v23 = vrot.slane %v1356_v62, 7  ;;  %2847 = vmatprep.subr.bf16.mxu1 %v2958_v1  ;;  %v2638_v19 = vld [vmem:[%s3682_s1 + $0x22] sm:$0x3] }
  0x4d   : > { %v1369_v31 = vrot.slane %v1357_v0, 7  ;;  %v2603_v32 = vrot.slane %v1350_v28, 11  ;;  %v1464_v15 = vand.u32 %v2612_v63, %v3009_v5  ;;  %v1439_v27 = vunpack.c.l.bf16 %v2606_v14  ;;  %v2630_v28 = vld [vmem:[%s3064_s10 + $0xc] sm:$0x6] }
  0x4e   : > { %v1362_v33 = vsel %vm3162_vm11, %v2600_v2, %v1361_v22  ;;  %v1366_v34 = vsel %vm3162_vm11, %v2601_v9, %v1365_v23  ;;  %v1373_v36 = vrot.slane %v1358_v8, 7  ;;  %v1440_v11 = vunpack.c.l.bf16 %v2607_v26  ;;  %v2631_v26 = vld [vmem:[%s3064_s10 + $0x10] sm:$0x6] }
  0x4f   : > { %2832 = vmatmul.mubr.msk.bf16.vlgmr.msra.gmra.mrb[24].mxu0 %vm246_vm4, %v1287_v7  ;;  %v1370_v38 = vsel %vm3162_vm11, %v2602_v16, %v1369_v31  ;;  %v1375_v39 = vcombine.low %v1362_v33, %v1366_v34  ;;  %v1441_v6 = vunpack.c.l.bf16 %v2608_v4  ;;  %v1442_v12 = vunpack.c.l.bf16 %v2609_v24  ;;  %v2632_v4 = vld [vmem:[%s3064_s10 + $0x14] sm:$0x6]  ;;  %v2633_v7 = vld [vmem:[%s3064_s10 + $0x18] sm:$0x6] }
  0x50   : > { %v1374_v25 = vsel %vm3162_vm11, %v2603_v32, %v1373_v36  ;;  %2842 = vmatpush3.bf16.msra.mxu0 %v1464_v15  ;;  %2843 = vmatprep.mubr.msk.bf16.mxu0 %vm2960_vm2, %v2958_v1  ;;  %v2610_v40 = vcombine.high %v1439_v27, %v1440_v11  ;;  %v1537_v41 = vand.u32 %v2618_v29, %v3009_v5  ;;  %v1516_v43 = vunpack.c.l.bf16 %v2614_v20 }
  0x51   : > { %v1376_v45 = vcombine.low %v1370_v38, %v1374_v25  ;;  %v2611_v47 = vcombine.high %v1441_v6, %v1442_v12  ;;  %v1517_v48 = vunpack.c.l.bf16 %v2615_v35  ;;  %v1518_v46 = vunpack.c.l.bf16 %v2616_v18  ;;  %2853 = vmatprep.subr.bf16.mxu0 %v2958_v1 }
  0x52   : > { %v1519_v50 = vunpack.c.l.bf16 %v2617_v37  ;;  %v1629_v51 = vand.u32 %v2628_v21, %v3009_v5  ;;  %v1588_v52 = vunpack.c.l.bf16 %v2620_v42  ;;  %v1589_v53 = vunpack.c.l.bf16 %v2621_v13  ;;  %v2648_v37 = vld [vmem:[%s3682_s1 + $0x24] sm:$0x3]  ;;  %v2640_v21 = vld [vmem:[%s3064_s10 + $0xc] sm:$0xe]  ;;  %v2641_v42 = vld [vmem:[%s3064_s10 + $0x10] sm:$0xe] }
  0x53   : > { %v1379_v54 = vpack.c.bf16 %v1376_v45, %v1375_v39  ;;  %v1455_v56 = vpack.c.bf16 %v2611_v47, %v2610_v40  ;;  %v1524_v10 = vcombine.low %v1516_v43, %v1517_v48  ;;  %v1590_v17 = vunpack.c.l.bf16 %v2622_v44  ;;  %v2642_v43 = vld [vmem:[%s3064_s10 + $0x14] sm:$0xe] }
  0x54   : > { %v1525_v57 = vcombine.low %v1518_v46, %v1519_v50  ;;  %v1591_v58 = vunpack.c.l.bf16 %v2623_v49  ;;  %v1596_v59 = vcombine.high %v1588_v52, %v1588_v52  ;;  %v1597_v60 = vcombine.high %v1589_v53, %v1589_v53  ;;  %v2643_v46 = vld [vmem:[%s3064_s10 + $0x18] sm:$0xe] }
  0x55   : > { %2838 = vmatmul.mubr.msk.bf16.vlgmr.msra.gmra.mrb[24].mxu1 %vm246_vm4, %v1379_v54  ;;  %v1598_v61 = vcombine.high %v1590_v17, %v1590_v17  ;;  %v2624_v62 = vrot.slane %v1588_v52, 9  ;;  %v2625_v63 = vrot.slane %v1589_v53, 9  ;;  %v2626_v14 = vrot.slane %v1590_v17, 9 }
  0x56   : > { %2848 = vmatpush3.bf16.msra.mxu1 %v1537_v41  ;;  %2849 = vmatprep.mubr.msk.bf16.mxu1 %vm2960_vm2, %v2958_v1  ;;  %v1528_v0 = vpack.c.bf16 %v1525_v57, %v1524_v10  ;;  %v1599_v2 = vcombine.high %v1591_v58, %v1591_v58  ;;  %v1602_v9 = vrot.slane %v1596_v59, 5  ;;  %v1606_v16 = vrot.slane %v1597_v60, 5  ;;  %v2656_v60 = vld [vmem:[%s3682_s1 + $0x26] sm:$0x3] }
  0x57   : > { %2844 = vmatmul.mubr.msk.bf16.vlgmr.msra.gmra.mrb[28].mxu0 %vm246_vm4, %v1455_v56  ;;  %v1610_v8 = vrot.slane %v1598_v61, 5  ;;  %v2627_v22 = vrot.slane %v1591_v58, 9  ;;  %2859 = vmatprep.subr.bf16.mxu1 %v2958_v1  ;;  %v1721_v23 = vand.u32 %v2638_v19, %v3009_v5  ;;  %v1680_v24 = vunpack.c.l.bf16 %v2630_v28  ;;  %v2650_v19 = vld [vmem:[%s3064_s10 + $0xc] sm:$0xc]  ;;  %v2651_v28 = vld [vmem:[%s3064_s10 + $0x10] sm:$0xc] }
  0x58   : > { %2854 = vmatpush3.bf16.msra.mxu0 %v1629_v51  ;;  %2855 = vmatprep.mubr.msk.bf16.mxu0 %vm2960_vm2, %v2958_v1  ;;  %v1603_v29 = vsel %vm3114_vm8, %v2624_v62, %v1602_v9  ;;  %v1607_v31 = vsel %vm3114_vm8, %v2625_v63, %v1606_v16  ;;  %v1614_v32 = vrot.slane %v1599_v2, 5  ;;  %v1681_v15 = vunpack.c.l.bf16 %v2631_v26  ;;  %v2652_v26 = vld [vmem:[%s3064_s10 + $0x14] sm:$0xc] }
  0x59   : > { %v1611_v27 = vsel %vm3114_vm8, %v2626_v14, %v1610_v8  ;;  %v1616_v20 = vcombine.low %v1603_v29, %v1607_v31  ;;  %v1682_v35 = vunpack.c.l.bf16 %v2632_v4  ;;  %v1683_v33 = vunpack.c.l.bf16 %v2633_v7  ;;  %2865 = vmatprep.subr.bf16.mxu0 %v2958_v1  ;;  %v2653_v4 = vld [vmem:[%s3064_s10 + $0x18] sm:$0xc]  ;;  %v2662_v7 = vld [vmem:[%s3682_s1 + $0x28] sm:$0x3]  ;;  %v2658_v29 = vld [vmem:[%s3064_s10 + $0x10] sm:$0x3] }
  0x5a   : > { %v1615_v34 = vsel %vm3114_vm8, %v2627_v22, %v1614_v32  ;;  %v1688_v36 = vcombine.high %v1680_v24, %v1680_v24  ;;  %v1689_v11 = vcombine.high %v1681_v15, %v1681_v15  ;;  %v2634_v18 = vrot.slane %v1680_v24, 10  ;;  %v2659_v31 = vld [vmem:[%s3064_s10 + $0x14] sm:$0x3] }
  0x5b   : > { %v1617_v38 = vcombine.low %v1611_v27, %v1615_v34  ;;  %v1690_v39 = vcombine.high %v1682_v35, %v1682_v35  ;;  %v1691_v6 = vcombine.high %v1683_v33, %v1683_v33  ;;  %v2635_v12 = vrot.slane %v1681_v15, 10 }
  0x5c   : > { %v1694_v13 = vrot.slane %v1688_v36, 6  ;;  %v1698_v25 = vrot.slane %v1689_v11, 6  ;;  %v2636_v40 = vrot.slane %v1682_v35, 10  ;;  %v2637_v41 = vrot.slane %v1683_v33, 10  ;;  %v2660_v35 = vld [vmem:[%s3064_s10 + $0x18] sm:$0x3] }
  0x5d   : > { %2850 = vmatmul.mubr.msk.bf16.vlgmr.msra.gmra.mrb[28].mxu1 %vm246_vm4, %v1528_v0  ;;  %v1620_v44 = vpack.c.bf16 %v1617_v38, %v1616_v20  ;;  %v1702_v45 = vrot.slane %v1690_v39, 6  ;;  %v1706_v47 = vrot.slane %v1691_v6, 6  ;;  %v1813_v48 = vand.u32 %v2648_v37, %v3009_v5  ;;  %v2661_v33 = vld [vmem:[%s3064_s10 + $0x1c] sm:$0x3]  ;;  %v2672_v37 = vld [vmem:[%s3682_s1 + $0x2a] sm:$0x3] }
  0x5e   : > { %2860 = vmatpush3.bf16.msra.mxu1 %v1721_v23  ;;  %2861 = vmatprep.mubr.msk.bf16.mxu1 %vm2960_vm2, %v2958_v1  ;;  %v1695_v49 = vsel %vm3135_vm10, %v2634_v18, %v1694_v13  ;;  %v1699_v50 = vsel %vm3135_vm10, %v2635_v12, %v1698_v25  ;;  %v1772_v51 = vunpack.c.l.bf16 %v2640_v21  ;;  %v1773_v52 = vunpack.c.l.bf16 %v2641_v42  ;;  %v2664_v38 = vld [vmem:[%s3064_s10 + $0x10] sm:$0x7]  ;;  %v2665_v39 = vld [vmem:[%s3064_s10 + $0x14] sm:$0x7]  ;;  %v2666_v13 = vld [vmem:[%s3064_s10 + $0x18] sm:$0x7] }
  0x5f   : > { %2856 = vmatmul.mubr.msk.bf16.vlgmr.msra.gmra.mrb[32].mxu0 %vm246_vm4, %v1620_v44  ;;  %v1703_v53 = vsel %vm3135_vm10, %v2636_v40, %v1702_v45  ;;  %v1707_v54 = vsel %vm3135_vm10, %v2637_v41, %v1706_v47  ;;  %v1708_v56 = vcombine.low %v1695_v49, %v1699_v50  ;;  %v1774_v10 = vunpack.c.l.bf16 %v2642_v43  ;;  %2871 = vmatprep.subr.bf16.mxu1 %v2958_v1  ;;  %v2667_v44 = vld [vmem:[%s3064_s10 + $0x1c] sm:$0x7] }
  0x60   : > { %v1709_v17 = vcombine.low %v1703_v53, %v1707_v54  ;;  %2866 = vmatpush3.bf16.msra.mxu0 %v1813_v48  ;;  %2867 = vmatprep.mubr.msk.bf16.mxu0 %vm2960_vm2, %v2958_v1  ;;  %v1775_v57 = vunpack.c.l.bf16 %v2643_v46  ;;  %v1780_v58 = vcombine.high %v1772_v51, %v1772_v51  ;;  %v1781_v59 = vcombine.high %v1773_v52, %v1773_v52 }
  0x61   : > { %v1782_v61 = vcombine.high %v1774_v10, %v1774_v10  ;;  %v2644_v62 = vrot.slane %v1772_v51, 11  ;;  %v2645_v63 = vrot.slane %v1773_v52, 11  ;;  %v2646_v14 = vrot.slane %v1774_v10, 11  ;;  %2877 = vmatprep.subr.bf16.mxu0 %v2958_v1 }
  0x62   : > { %v1712_v0 = vpack.c.bf16 %v1709_v17, %v1708_v56  ;;  %v1783_v2 = vcombine.high %v1775_v57, %v1775_v57  ;;  %v1786_v9 = vrot.slane %v1780_v58, 7  ;;  %v1790_v16 = vrot.slane %v1781_v59, 7  ;;  %v2674_v17 = vld [vmem:[%s3064_s10 + $0x10] sm:$0x6] }
  0x63   : > { %v1794_v8 = vrot.slane %v1782_v61, 7  ;;  %v2647_v22 = vrot.slane %v1775_v57, 11  ;;  %v1889_v23 = vand.u32 %v2656_v60, %v3009_v5  ;;  %v1864_v24 = vunpack.c.l.bf16 %v2650_v19  ;;  %v2675_v57 = vld [vmem:[%s3064_s10 + $0x14] sm:$0x6] }
  0x64   : > { %v1787_v32 = vsel %vm3162_vm11, %v2644_v62, %v1786_v9  ;;  %v1791_v15 = vsel %vm3162_vm11, %v2645_v63, %v1790_v16  ;;  %v1798_v27 = vrot.slane %v1783_v2, 7  ;;  %v1865_v20 = vunpack.c.l.bf16 %v2651_v28  ;;  %v2676_v28 = vld [vmem:[%s3064_s10 + $0x18] sm:$0x6] }
  0x65   : > { %2862 = vmatmul.mubr.msk.bf16.vlgmr.msra.gmra.mrb[32].mxu1 %vm246_vm4, %v1712_v0  ;;  %v1795_v34 = vsel %vm3162_vm11, %v2646_v14, %v1794_v8  ;;  %v1800_v36 = vcombine.low %v1787_v32, %v1791_v15  ;;  %v1866_v11 = vunpack.c.l.bf16 %v2652_v26  ;;  %v1867_v18 = vunpack.c.l.bf16 %v2653_v4  ;;  %v2682_v26 = vld [vmem:[%s3682_s1 + $0x2c] sm:$0x3]  ;;  %v2677_v0 = vld [vmem:[%s3064_s10 + $0x1c] sm:$0x6] }
  0x66   : > { %v1799_v6 = vsel %vm3162_vm11, %v2647_v22, %v1798_v27  ;;  %2872 = vmatpush3.bf16.msra.mxu1 %v1889_v23  ;;  %2873 = vmatprep.mubr.msk.bf16.mxu1 %vm2960_vm2, %v2958_v1  ;;  %v2654_v12 = vcombine.high %v1864_v24, %v1865_v20  ;;  %v1962_v21 = vand.u32 %v2662_v7, %v3009_v5  ;;  %v1941_v42 = vunpack.c.l.bf16 %v2658_v29 }
  0x67   : > { %v1801_v25 = vcombine.low %v1795_v34, %v1799_v6  ;;  %v2655_v40 = vcombine.high %v1866_v11, %v1867_v18  ;;  %v1942_v41 = vunpack.c.l.bf16 %v2659_v31  ;;  %v1943_v43 = vunpack.c.l.bf16 %v2660_v35  ;;  %2883 = vmatprep.subr.bf16.mxu1 %v2958_v1 }
  0x68   : > { %v1944_v45 = vunpack.c.l.bf16 %v2661_v33  ;;  %v2054_v47 = vand.u32 %v2672_v37, %v3009_v5  ;;  %v2013_v48 = vunpack.c.l.bf16 %v2664_v38  ;;  %v2014_v46 = vunpack.c.l.bf16 %v2665_v39  ;;  %v2684_v33 = vld [vmem:[%s3064_s10 + $0x10] sm:$0xe]  ;;  %v2685_v37 = vld [vmem:[%s3064_s10 + $0x14] sm:$0xe]  ;;  %v2686_v38 = vld [vmem:[%s3064_s10 + $0x18] sm:$0xe] }
  0x69   : > { %v1804_v49 = vpack.c.bf16 %v1801_v25, %v1800_v36  ;;  %v1880_v50 = vpack.c.bf16 %v2655_v40, %v2654_v12  ;;  %v1949_v51 = vcombine.low %v1941_v42, %v1942_v41  ;;  %v2015_v52 = vunpack.c.l.bf16 %v2666_v13  ;;  %v2687_v42 = vld [vmem:[%s3064_s10 + $0x1c] sm:$0xe] }
  0x6a   : > { %v1950_v53 = vcombine.low %v1943_v43, %v1944_v45  ;;  %v2016_v54 = vunpack.c.l.bf16 %v2667_v44  ;;  %v2021_v56 = vcombine.high %v2013_v48, %v2013_v48  ;;  %v2022_v10 = vcombine.high %v2014_v46, %v2014_v46 }
  0x6b   : > { %2868 = vmatmul.mubr.msk.bf16.vlgmr.msra.gmra.mrb[36].mxu0 %vm246_vm4, %v1804_v49  ;;  %v2023_v58 = vcombine.high %v2015_v52, %v2015_v52  ;;  %v2668_v59 = vrot.slane %v2013_v48, 9  ;;  %v2669_v60 = vrot.slane %v2014_v46, 9  ;;  %v2670_v19 = vrot.slane %v2015_v52, 9 }
  0x6c   : > { %2878 = vmatpush3.bf16.msra.mxu0 %v1962_v21  ;;  %2879 = vmatprep.mubr.msk.bf16.mxu0 %vm2960_vm2, %v2958_v1  ;;  %v1953_v61 = vpack.c.bf16 %v1950_v53, %v1949_v51  ;;  %v2024_v62 = vcombine.high %v2016_v54, %v2016_v54  ;;  %v2027_v63 = vrot.slane %v2021_v56, 5  ;;  %v2031_v14 = vrot.slane %v2022_v10, 5  ;;  %v2692_v51 = vld [vmem:[%s3682_s1 + $0x2e] sm:$0x3] }
  0x6d   : > { %2874 = vmatmul.mubr.msk.bf16.vlgmr.msra.gmra.mrb[36].mxu1 %vm246_vm4, %v1880_v50  ;;  %v2035_v2 = vrot.slane %v2023_v58, 5  ;;  %v2671_v9 = vrot.slane %v2016_v54, 9  ;;  %2889 = vmatprep.subr.bf16.mxu0 %v2958_v1  ;;  %v2146_v16 = vand.u32 %v2682_v26, %v3009_v5  ;;  %v2105_v4 = vunpack.c.l.bf16 %v2674_v17 }
  0x6e   : > { %2884 = vmatpush3.bf16.msra.mxu1 %v2054_v47  ;;  %2885 = vmatprep.mubr.msk.bf16.mxu1 %vm2960_vm2, %v2958_v1  ;;  %v2028_v7 = vsel %vm3114_vm8, %v2668_v59, %v2027_v63  ;;  %v2032_v8 = vsel %vm3114_vm8, %v2669_v60, %v2031_v14  ;;  %v2039_v22 = vrot.slane %v2024_v62, 5  ;;  %v2106_v23 = vunpack.c.l.bf16 %v2675_v57 }
  0x6f   : > { %v2036_v24 = vsel %vm3114_vm8, %v2670_v19, %v2035_v2  ;;  %v2041_v29 = vcombine.low %v2028_v7, %v2032_v8  ;;  %v2107_v31 = vunpack.c.l.bf16 %v2676_v28  ;;  %v2108_v32 = vunpack.c.l.bf16 %v2677_v0  ;;  %2895 = vmatprep.subr.bf16.mxu1 %v2958_v1  ;;  %v2696_v7 = vld [vmem:[%s3064_s10 + $0x18] sm:$0xc]  ;;  %v2700_v8 = vld [vmem:[%s3682_s1 + $0x30] sm:$0x3] }
  0x70   : > { %v2040_v15 = vsel %vm3114_vm8, %v2671_v9, %v2039_v22  ;;  %v2113_v27 = vcombine.high %v2105_v4, %v2105_v4  ;;  %v2114_v20 = vcombine.high %v2106_v23, %v2106_v23  ;;  %v2678_v35 = vrot.slane %v2105_v4, 10  ;;  %v2695_v4 = vld [vmem:[%s3064_s10 + $0x14] sm:$0xc]  ;;  %v2697_v22 = vld [vmem:[%s3064_s10 + $0x1c] sm:$0xc] }
  0x71   : > { %v2042_v34 = vcombine.low %v2036_v24, %v2040_v15  ;;  %v2115_v36 = vcombine.high %v2107_v31, %v2107_v31  ;;  %v2116_v11 = vcombine.high %v2108_v32, %v2108_v32  ;;  %v2679_v18 = vrot.slane %v2106_v23, 10 }
  0x72   : > { %v2119_v39 = vrot.slane %v2113_v27, 6  ;;  %v2123_v6 = vrot.slane %v2114_v20, 6  ;;  %v2680_v12 = vrot.slane %v2107_v31, 10  ;;  %v2681_v21 = vrot.slane %v2108_v32, 10  ;;  %v243_v27 = vld [vmem:[#allocation2] sm:$0xff] }
  0x73   : > { %2880 = vmatmul.mubr.msk.bf16.vlgmr.msra.gmra.mrb[40].mxu0 %vm246_vm4, %v1953_v61  ;;  %v2045_v55 = vpack.c.bf16 %v2042_v34, %v2041_v29  ;;  %v2127_v13 = vrot.slane %v2115_v36, 6  ;;  %v2131_v25 = vrot.slane %v2116_v11, 6  ;;  %v2197_v40 = vunpack.c.l.bf16 %v2684_v33 }
  0x74   : > { %2890 = vmatpush3.bf16.msra.mxu0 %v2146_v16  ;;  %2891 = vmatprep.mubr.msk.bf16.mxu0 %vm2960_vm2, %v2958_v1  ;;  %v2120_v41 = vsel %vm3135_vm10, %v2678_v35, %v2119_v39  ;;  %v2124_v43 = vsel %vm3135_vm10, %v2679_v18, %v2123_v6  ;;  %v2198_v44 = vunpack.c.l.bf16 %v2685_v37  ;;  %v2199_v45 = vunpack.c.l.bf16 %v2686_v38  ;;  %v2694_v16 = vld [vmem:[%s3064_s10 + $0x10] sm:$0xc]  ;;  %v244_v35 = vld [vmem:[#allocation2 + $0x8] sm:$0xff] }
  0x75   : > { %2886 = vmatmul.mubr.msk.bf16.vlgmr.msra.gmra.mrb[40].mxu1 %vm246_vm4, %v2045_v55  ;;  %v2128_v47 = vsel %vm3135_vm10, %v2680_v12, %v2127_v13  ;;  %v2132_v48 = vsel %vm3135_vm10, %v2681_v21, %v2131_v25  ;;  %v2133_v46 = vcombine.low %v2120_v41, %v2124_v43  ;;  %v2200_v49 = vunpack.c.l.bf16 %v2687_v42  ;;  %2901 = vmatprep.subr.bf16.mxu0 %v2958_v1 }
  0x76   : > { %v2134_v50 = vcombine.low %v2128_v47, %v2132_v48  ;;  %2897 = vmatprep.mubr.msk.bf16.mxu1 %vm2960_vm2, %v2958_v1  ;;  %v2205_v52 = vcombine.high %v2197_v40, %v2197_v40  ;;  %v2206_v53 = vcombine.high %v2198_v44, %v2198_v44  ;;  %v2207_v54 = vcombine.high %v2199_v45, %v2199_v45 }
  0x77   : > { %v2238_v56 = vand.u32 %v2692_v51, %v3009_v5  ;;  %v2208_v10 = vcombine.high %v2200_v49, %v2200_v49  ;;  %v2688_v30 = vrot.slane %v2197_v40, 11  ;;  %v2689_v17 = vrot.slane %v2198_v44, 11 }
  0x78   : > { %v2137_v57 = vpack.c.bf16 %v2134_v50, %v2133_v46  ;;  %v2211_v58 = vrot.slane %v2205_v52, 7  ;;  %v2215_v59 = vrot.slane %v2206_v53, 7  ;;  %v2690_v60 = vrot.slane %v2199_v45, 11 }
  0x79   : > { %2896 = vmatpush3.bf16.msra.mxu1 %v2238_v56  ;;  %v2219_v19 = vrot.slane %v2207_v54, 7  ;;  %v2691_v28 = vrot.slane %v2200_v49, 11  ;;  %v2223_v61 = vrot.slane %v2208_v10, 7  ;;  %v2289_v23 = vunpack.c.l.bf16 %v2694_v16 }
  0x7a   : > { %v2212_v62 = vsel %vm3162_vm11, %v2688_v30, %v2211_v58  ;;  %v2216_v63 = vsel %vm3162_vm11, %v2689_v17, %v2215_v59  ;;  %v2290_v24 = vunpack.c.l.bf16 %v2695_v4  ;;  %v2291_v3 = vunpack.c.l.bf16 %v2696_v7 }
  0x7b   : > { %2892 = vmatmul.mubr.msk.bf16.vlgmr.msra.gmra.mrb[44].mxu0 %vm246_vm4, %v2137_v57  ;;  %v2220_v14 = vsel %vm3162_vm11, %v2690_v60, %v2219_v19  ;;  %v2224_v26 = vsel %vm3162_vm11, %v2691_v28, %v2223_v61  ;;  %v2225_v0 = vcombine.low %v2212_v62, %v2216_v63  ;;  %v2314_v29 = vand.u32 %v2700_v8, %v3009_v5 }
  0x7c   : > { %v2226_v2 = vcombine.low %v2220_v14, %v2224_v26  ;;  %2903 = vmatprep.mubr.msk.bf16.mxu0 %vm2960_vm2, %v2958_v1  ;;  %v2292_v31 = vunpack.c.l.bf16 %v2697_v22  ;;  %v2698_v32 = vcombine.high %v2289_v23, %v2290_v24 }
  0x7d   : > { %2902 = vmatpush3.bf16.msra.mxu0 %v2314_v29 }
  0x7e   : > { %v2229_v9 = vpack.c.bf16 %v2226_v2, %v2225_v0  ;;  %v2699_v1 = vcombine.high %v2291_v3, %v2292_v31 }
  0x80   : > { %2898 = vmatmul.mubr.msk.bf16.vlgmr.msra.gmra.mrb[44].mxu1 %vm246_vm4, %v2229_v9  ;;  %v2305_v15 = vpack.c.bf16 %v2699_v1, %v2698_v32 }
  0x83   : > { %2904 = vmatmul.mubr.msk.bf16.vlgmr.msra.gmra.mrb[48].mxu0 %vm246_vm4, %v2305_v15 }
  0xec   : > { %v291_v20 = vpop.f32.mrb[0].mxu0 }
  0xed   : > { %v298_v33 = vadd.f32 %v291_v20, %v243_v27  ;;  %v2761_v34 = vpop.f32.mrb[1].mxu0 }
  0xee   : > { %v294_v36 = vpop.f32.mrb[2].mxu0 }
  0xef   : > { %300 = vst.msk [vmem:[#allocation2] sm:$0xff] %vm223_vm6, %v298_v33  ;;  %v299_v11 = vadd.f32 %v294_v36, %v244_v35  ;;  %v2762_v18 = vpop.f32.mrb[3].mxu0 }
  0xf1   : > { %301 = vst.msk [vmem:[#allocation2 + $0x8] sm:$0xff] %vm223_vm6, %v299_v11 }
  0xf2   : > { %v386_v5 = vpop.f32.mrb[0].mxu1 }
  0xf3   : > { %v2767_v37 = vpop.f32.mrb[1].mxu1 }
  0xf4   : > { %v389_v38 = vpop.f32.mrb[2].mxu1 }
  0xf5   : > { %v2768_v39 = vpop.f32.mrb[3].mxu1 }
  0xf6   : > { %v342_v6 = vld [vmem:[#allocation2] sm:$0xff] }
  0xf7   : > { %v393_v12 = vadd.f32 %v386_v5, %v342_v6  ;;  %v480_v21 = vpop.f32.mrb[4].mxu0 }
  0xf8   : > { %v343_v42 = vld [vmem:[#allocation2 + $0x8] sm:$0xff]  ;;  %v2773_v55 = vpop.f32.mrb[5].mxu0 }
  0xf9   : > { %395 = vst.msk [vmem:[#allocation2] sm:$0xff] %vm223_vm6, %v393_v12  ;;  %v394_v13 = vadd.f32 %v389_v38, %v343_v42  ;;  %v483_v25 = vpop.f32.mrb[6].mxu0 }
  0xfa   : > { %v2774_v40 = vpop.f32.mrb[7].mxu0 }
  0xfb   : > { %396 = vst.msk [vmem:[#allocation2 + $0x8] sm:$0xff] %vm223_vm6, %v394_v13 }
  0xfd   : > { %v574_v41 = vpop.f32.mrb[4].mxu1 }
  0xfe   : > { %v2779_v43 = vpop.f32.mrb[5].mxu1 }
  0xff   : > { %v577_v44 = vpop.f32.mrb[6].mxu1  ;;  %v650_v45 = vpop.f32.mrb[8].mxu0 }
 0x100   : > { %v436_v47 = vld [vmem:[#allocation2] sm:$0xff]  ;;  %v2780_v48 = vpop.f32.mrb[7].mxu1  ;;  %v2785_v46 = vpop.f32.mrb[9].mxu0 }
 0x101   : > { %v487_v49 = vadd.f32 %v480_v21, %v436_v47  ;;  %v653_v50 = vpop.f32.mrb[10].mxu0 }
 0x102   : > { %v437_v51 = vld [vmem:[#allocation2 + $0x8] sm:$0xff]  ;;  %v2786_v52 = vpop.f32.mrb[11].mxu0 }
 0x103   : > { %489 = vst.msk [vmem:[#allocation2] sm:$0xff] %vm223_vm6, %v487_v49  ;;  %v488_v53 = vadd.f32 %v483_v25, %v437_v51 }
 0x105   : > { %490 = vst.msk [vmem:[#allocation2 + $0x8] sm:$0xff] %vm223_vm6, %v488_v53  ;;  %v723_v54 = vpop.f32.mrb[8].mxu1 }
 0x106   : > { %v2791_v56 = vpop.f32.mrb[9].mxu1 }
 0x107   : > { %v726_v10 = vpop.f32.mrb[10].mxu1  ;;  %v815_v30 = vpop.f32.mrb[12].mxu0 }
 0x108   : > { %v2792_v17 = vpop.f32.mrb[11].mxu1  ;;  %v2797_v57 = vpop.f32.mrb[13].mxu0 }
 0x109   : > { %v818_v58 = vpop.f32.mrb[14].mxu0 }
 0x10a   : > { %v530_v59 = vld [vmem:[#allocation2] sm:$0xff]  ;;  %v2798_v60 = vpop.f32.mrb[15].mxu0 }
 0x10b   : > { %v581_v19 = vadd.f32 %v574_v41, %v530_v59 }
 0x10c   : > { %v531_v28 = vld [vmem:[#allocation2 + $0x8] sm:$0xff] }
 0x10d   : > { %583 = vst.msk [vmem:[#allocation2] sm:$0xff] %vm223_vm6, %v581_v19  ;;  %v582_v61 = vadd.f32 %v577_v44, %v531_v28  ;;  %v907_v62 = vpop.f32.mrb[12].mxu1 }
 0x10e   : > { %v2803_v63 = vpop.f32.mrb[13].mxu1 }
 0x10f   : > { %584 = vst.msk [vmem:[#allocation2 + $0x8] sm:$0xff] %vm223_vm6, %v582_v61  ;;  %v910_v14 = vpop.f32.mrb[14].mxu1 }
 0x110   : > { %v2804_v26 = vpop.f32.mrb[15].mxu1 }
 0x112   : > { %v3521_v0 = vpop.f32.mrb[16].mxu0 }
 0x113   : > { %v2809_v2 = vpop.f32.mrb[17].mxu0 }
 0x114   : > { %v606_v9 = vld [vmem:[#allocation2] sm:$0xff]  ;;  %v3523_v16 = vpop.f32.mrb[18].mxu0 }
 0x115   : > { %v657_v4 = vadd.f32 %v650_v45, %v606_v9  ;;  %v2810_v7 = vpop.f32.mrb[19].mxu0  ;;  %v3525_v8 = vpop.f32.mrb[16].mxu1 }
 0x116   : > { %v607_v22 = vld [vmem:[#allocation2 + $0x8] sm:$0xff]  ;;  %v2815_v23 = vpop.f32.mrb[17].mxu1 }
 0x117   : > { %659 = vst.msk [vmem:[#allocation2] sm:$0xff] %vm223_vm6, %v657_v4  ;;  %v658_v24 = vadd.f32 %v653_v50, %v607_v22  ;;  %v3528_v3 = vpop.f32.mrb[18].mxu1 }
 0x118   : > { %v2816_v29 = vpop.f32.mrb[19].mxu1 }
 0x119   : > { %660 = vst.msk [vmem:[#allocation2 + $0x8] sm:$0xff] %vm223_vm6, %v658_v24 }
 0x11a   : > { %v3531_v31 = vpop.f32.mrb[20].mxu0 }
 0x11b   : > { %v2821_v32 = vpop.f32.mrb[21].mxu0 }
 0x11c   : > { %v3533_v1 = vpop.f32.mrb[22].mxu0 }
 0x11d   : > { %v2822_v15 = vpop.f32.mrb[23].mxu0  ;;  %v3535_v27 = vpop.f32.mrb[20].mxu1 }
 0x11e   : > { %v679_v20 = vld [vmem:[#allocation2] sm:$0xff]  ;;  %v2827_v35 = vpop.f32.mrb[21].mxu1 }
 0x11f   : > { %v730_v33 = vadd.f32 %v723_v54, %v679_v20  ;;  %v3537_v34 = vpop.f32.mrb[22].mxu1 }
 0x120   : > { %v680_v36 = vld [vmem:[#allocation2 + $0x8] sm:$0xff]  ;;  %v2828_v11 = vpop.f32.mrb[23].mxu1 }
 0x121   : > { %732 = vst.msk [vmem:[#allocation2] sm:$0xff] %vm223_vm6, %v730_v33  ;;  %v731_v18 = vadd.f32 %v726_v10, %v680_v36 }
 0x122   : > { %v3540_v5 = vpop.f32.mrb[24].mxu0 }
 0x123   : > { %733 = vst.msk [vmem:[#allocation2 + $0x8] sm:$0xff] %vm223_vm6, %v731_v18  ;;  %v2833_v37 = vpop.f32.mrb[25].mxu0 }
 0x124   : > { %v3543_v38 = vpop.f32.mrb[26].mxu0 }
 0x125   : > { %v2834_v39 = vpop.f32.mrb[27].mxu0 }
 0x128   : > { %v771_v6 = vld [vmem:[#allocation2] sm:$0xff]  ;;  %v3545_v12 = vpop.f32.mrb[24].mxu1 }
 0x129   : > { %v822_v21 = vadd.f32 %v815_v30, %v771_v6  ;;  %v2839_v42 = vpop.f32.mrb[25].mxu1 }
 0x12a   : > { %v772_v55 = vld [vmem:[#allocation2 + $0x8] sm:$0xff]  ;;  %v3547_v13 = vpop.f32.mrb[26].mxu1  ;;  %v3549_v25 = vpop.f32.mrb[28].mxu0 }
 0x12b   : > { %824 = vst.msk [vmem:[#allocation2] sm:$0xff] %vm223_vm6, %v822_v21  ;;  %v823_v40 = vadd.f32 %v818_v58, %v772_v55  ;;  %v2840_v41 = vpop.f32.mrb[27].mxu1  ;;  %v2845_v43 = vpop.f32.mrb[29].mxu0 }
 0x12c   : > { %v3552_v44 = vpop.f32.mrb[30].mxu0 }
 0x12d   : > { %825 = vst.msk [vmem:[#allocation2 + $0x8] sm:$0xff] %vm223_vm6, %v823_v40  ;;  %v2846_v45 = vpop.f32.mrb[31].mxu0 }
 0x130   : > { %v3555_v47 = vpop.f32.mrb[28].mxu1 }
 0x131   : > { %v2851_v48 = vpop.f32.mrb[29].mxu1 }
 0x132   : > { %v863_v46 = vld [vmem:[#allocation2] sm:$0xff]  ;;  %v3557_v49 = vpop.f32.mrb[30].mxu1  ;;  %v3559_v50 = vpop.f32.mrb[32].mxu0 }
 0x133   : > { %v914_v51 = vadd.f32 %v907_v62, %v863_v46  ;;  %v2852_v52 = vpop.f32.mrb[31].mxu1  ;;  %v2857_v53 = vpop.f32.mrb[33].mxu0 }
 0x134   : > { %v864_v54 = vld [vmem:[#allocation2 + $0x8] sm:$0xff]  ;;  %v3561_v56 = vpop.f32.mrb[34].mxu0 }
 0x135   : > { %916 = vst.msk [vmem:[#allocation2] sm:$0xff] %vm223_vm6, %v914_v51  ;;  %v915_v10 = vadd.f32 %v910_v14, %v864_v54  ;;  %v2858_v30 = vpop.f32.mrb[35].mxu0 }
 0x137   : > { %917 = vst.msk [vmem:[#allocation2 + $0x8] sm:$0xff] %vm223_vm6, %v915_v10 }
 0x138   : > { %v3565_v17 = vpop.f32.mrb[32].mxu1 }
 0x139   : > { %v2863_v57 = vpop.f32.mrb[33].mxu1 }
 0x13a   : > { %v3567_v58 = vpop.f32.mrb[34].mxu1 }
 0x13b   : > { %v2864_v59 = vpop.f32.mrb[35].mxu1 }
 0x13c   : > { %v955_v60 = vld [vmem:[#allocation2] sm:$0xff] }
 0x13d   : > { %v1006_v19 = vadd.f32 %v3521_v0, %v955_v60 }
 0x13e   : > { %v956_v28 = vld [vmem:[#allocation2 + $0x8] sm:$0xff]  ;;  %v3570_v61 = vpop.f32.mrb[36].mxu0 }
 0x13f   : > { %1008 = vst.msk [vmem:[#allocation2] sm:$0xff] %vm223_vm6, %v1006_v19  ;;  %v1007_v62 = vadd.f32 %v3523_v16, %v956_v28  ;;  %v2869_v63 = vpop.f32.mrb[37].mxu0 }
 0x140   : > { %v3574_v14 = vpop.f32.mrb[38].mxu0  ;;  %v3576_v26 = vpop.f32.mrb[36].mxu1 }
 0x141   : > { %1009 = vst.msk [vmem:[#allocation2 + $0x8] sm:$0xff] %vm223_vm6, %v1007_v62  ;;  %v2870_v2 = vpop.f32.mrb[39].mxu0  ;;  %v2875_v9 = vpop.f32.mrb[37].mxu1 }
 0x142   : > { %v3579_v4 = vpop.f32.mrb[38].mxu1 }
 0x143   : > { %v2876_v7 = vpop.f32.mrb[39].mxu1 }
 0x146   : > { %v1031_v0 = vld [vmem:[#allocation2] sm:$0xff]  ;;  %v3581_v22 = vpop.f32.mrb[40].mxu0 }
 0x147   : > { %v1082_v23 = vadd.f32 %v3525_v8, %v1031_v0  ;;  %v2881_v24 = vpop.f32.mrb[41].mxu0 }
 0x148   : > { %v1032_v29 = vld [vmem:[#allocation2 + $0x8] sm:$0xff]  ;;  %v3584_v16 = vpop.f32.mrb[42].mxu0  ;;  %v3586_v32 = vpop.f32.mrb[40].mxu1 }
 0x149   : > { %1084 = vst.msk [vmem:[#allocation2] sm:$0xff] %vm223_vm6, %v1082_v23  ;;  %v1083_v15 = vadd.f32 %v3528_v3, %v1032_v29  ;;  %v2882_v20 = vpop.f32.mrb[43].mxu0  ;;  %v2887_v35 = vpop.f32.mrb[41].mxu1 }
 0x14a   : > { %v3590_v33 = vpop.f32.mrb[42].mxu1 }
 0x14b   : > { %1085 = vst.msk [vmem:[#allocation2 + $0x8] sm:$0xff] %vm223_vm6, %v1083_v15  ;;  %v2888_v36 = vpop.f32.mrb[43].mxu1 }
 0x14e   : > { %v3593_v11 = vpop.f32.mrb[44].mxu0 }
 0x14f   : > { %v2893_v8 = vpop.f32.mrb[45].mxu0 }
 0x150   : > { %v1104_v18 = vld [vmem:[#allocation2] sm:$0xff]  ;;  %v3595_v37 = vpop.f32.mrb[46].mxu0 }
 0x151   : > { %v1155_v39 = vadd.f32 %v3531_v31, %v1104_v18  ;;  %v2894_v6 = vpop.f32.mrb[47].mxu0 }
 0x152   : > { %v1105_v21 = vld [vmem:[#allocation2 + $0x8] sm:$0xff] }
 0x153   : > { %1157 = vst.msk [vmem:[#allocation2] sm:$0xff] %vm223_vm6, %v1155_v39  ;;  %v1156_v3 = vadd.f32 %v3533_v1, %v1105_v21  ;;  %v3600_v42 = vpop.f32.mrb[44].mxu1 }
 0x154   : > { %v2899_v55 = vpop.f32.mrb[45].mxu1 }
 0x155   : > { %1158 = vst.msk [vmem:[#allocation2 + $0x8] sm:$0xff] %vm223_vm6, %v1156_v3  ;;  %v3603_v40 = vpop.f32.mrb[46].mxu1 }
 0x156   : > { %v2900_v41 = vpop.f32.mrb[47].mxu1  ;;  %v3605_v45 = vpop.f32.mrb[48].mxu0 }
 0x157   : > { %v2905_v31 = vpop.f32.mrb[49].mxu0 }
 0x158   : > { %v3608_v51 = vpop.f32.mrb[50].mxu0 }
 0x159   : > { %v2906_v52 = vpop.f32.mrb[51].mxu0 }
 0x15a   : > { %v1196_v43 = vld [vmem:[#allocation2] sm:$0xff] }
 0x15b   : > { %v1247_v48 = vadd.f32 %v3535_v27, %v1196_v43 }
 0x15c   : > { %v1197_v46 = vld [vmem:[#allocation2 + $0x8] sm:$0xff] }
 0x15d   : > { %1249 = vst.msk [vmem:[#allocation2] sm:$0xff] %vm223_vm6, %v1247_v48  ;;  %v1248_v1 = vadd.f32 %v3537_v34, %v1197_v46 }
 0x15f   : > { %1250 = vst.msk [vmem:[#allocation2 + $0x8] sm:$0xff] %vm223_vm6, %v1248_v1 }
 0x164   : > { %v1288_v53 = vld [vmem:[#allocation2] sm:$0xff] }
 0x165   : > { %v1339_v54 = vadd.f32 %v3540_v5, %v1288_v53 }
 0x166   : > { %v1289_v10 = vld [vmem:[#allocation2 + $0x8] sm:$0xff] }
 0x167   : > { %1341 = vst.msk [vmem:[#allocation2] sm:$0xff] %vm223_vm6, %v1339_v54  ;;  %v1340_v30 = vadd.f32 %v3543_v38, %v1289_v10 }
 0x169   : > { %1342 = vst.msk [vmem:[#allocation2 + $0x8] sm:$0xff] %vm223_vm6, %v1340_v30 }
 0x16e   : > { %v1380_v27 = vld [vmem:[#allocation2] sm:$0xff] }
 0x16f   : > { %v1431_v57 = vadd.f32 %v3545_v12, %v1380_v27 }
 0x170   : > { %v1381_v59 = vld [vmem:[#allocation2 + $0x8] sm:$0xff] }
 0x171   : > { %1433 = vst.msk [vmem:[#allocation2] sm:$0xff] %vm223_vm6, %v1431_v57  ;;  %v1432_v34 = vadd.f32 %v3547_v13, %v1381_v59 }
 0x173   : > { %1434 = vst.msk [vmem:[#allocation2 + $0x8] sm:$0xff] %vm223_vm6, %v1432_v34 }
 0x178   : > { %v1456_v60 = vld [vmem:[#allocation2] sm:$0xff] }
 0x179   : > { %v1507_v5 = vadd.f32 %v3549_v25, %v1456_v60 }
 0x17a   : > { %v1457_v19 = vld [vmem:[#allocation2 + $0x8] sm:$0xff] }
 0x17b   : > { %1509 = vst.msk [vmem:[#allocation2] sm:$0xff] %vm223_vm6, %v1507_v5  ;;  %v1508_v38 = vadd.f32 %v3552_v44, %v1457_v19 }
 0x17d   : > { %1510 = vst.msk [vmem:[#allocation2 + $0x8] sm:$0xff] %vm223_vm6, %v1508_v38 }
 0x182   : > { %v1529_v28 = vld [vmem:[#allocation2] sm:$0xff] }
 0x183   : > { %v1580_v12 = vadd.f32 %v3555_v47, %v1529_v28 }
 0x184   : > { %v1530_v62 = vld [vmem:[#allocation2 + $0x8] sm:$0xff] }
 0x185   : > { %1582 = vst.msk [vmem:[#allocation2] sm:$0xff] %vm223_vm6, %v1580_v12  ;;  %v1581_v13 = vadd.f32 %v3557_v49, %v1530_v62 }
 0x187   : > { %1583 = vst.msk [vmem:[#allocation2 + $0x8] sm:$0xff] %vm223_vm6, %v1581_v13 }
 0x18c   : > { %v1621_v63 = vld [vmem:[#allocation2] sm:$0xff] }
 0x18d   : > { %v1672_v25 = vadd.f32 %v3559_v50, %v1621_v63 }
 0x18e   : > { %v1622_v2 = vld [vmem:[#allocation2 + $0x8] sm:$0xff] }
 0x18f   : > { %1674 = vst.msk [vmem:[#allocation2] sm:$0xff] %vm223_vm6, %v1672_v25  ;;  %v1673_v44 = vadd.f32 %v3561_v56, %v1622_v2 }
 0x191   : > { %1675 = vst.msk [vmem:[#allocation2 + $0x8] sm:$0xff] %vm223_vm6, %v1673_v44 }
 0x196   : > { %v1713_v9 = vld [vmem:[#allocation2] sm:$0xff] }
 0x197   : > { %v1764_v47 = vadd.f32 %v3565_v17, %v1713_v9 }
 0x198   : > { %v1714_v7 = vld [vmem:[#allocation2 + $0x8] sm:$0xff] }
 0x199   : > { %1766 = vst.msk [vmem:[#allocation2] sm:$0xff] %vm223_vm6, %v1764_v47  ;;  %v1765_v49 = vadd.f32 %v3567_v58, %v1714_v7 }
 0x19b   : > { %1767 = vst.msk [vmem:[#allocation2 + $0x8] sm:$0xff] %vm223_vm6, %v1765_v49 }
 0x1a0   : > { %v1805_v0 = vld [vmem:[#allocation2] sm:$0xff] }
 0x1a1   : > { %v1856_v50 = vadd.f32 %v3570_v61, %v1805_v0 }
 0x1a2   : > { %v1806_v23 = vld [vmem:[#allocation2 + $0x8] sm:$0xff] }
 0x1a3   : > { %1858 = vst.msk [vmem:[#allocation2] sm:$0xff] %vm223_vm6, %v1856_v50  ;;  %v1857_v56 = vadd.f32 %v3574_v14, %v1806_v23 }
 0x1a5   : > { %1859 = vst.msk [vmem:[#allocation2 + $0x8] sm:$0xff] %vm223_vm6, %v1857_v56 }
 0x1aa   : > { %v1881_v24 = vld [vmem:[#allocation2] sm:$0xff] }
 0x1ab   : > { %v1932_v17 = vadd.f32 %v3576_v26, %v1881_v24 }
 0x1ac   : > { %v1882_v29 = vld [vmem:[#allocation2 + $0x8] sm:$0xff] }
 0x1ad   : > { %1934 = vst.msk [vmem:[#allocation2] sm:$0xff] %vm223_vm6, %v1932_v17  ;;  %v1933_v58 = vadd.f32 %v3579_v4, %v1882_v29 }
 0x1af   : > { %1935 = vst.msk [vmem:[#allocation2 + $0x8] sm:$0xff] %vm223_vm6, %v1933_v58 }
 0x1b4   : > { %v1954_v15 = vld [vmem:[#allocation2] sm:$0xff] }
 0x1b5   : > { %v2005_v61 = vadd.f32 %v3581_v22, %v1954_v15 }
 0x1b6   : > { %v1955_v20 = vld [vmem:[#allocation2 + $0x8] sm:$0xff] }
 0x1b7   : > { %2007 = vst.msk [vmem:[#allocation2] sm:$0xff] %vm223_vm6, %v2005_v61  ;;  %v2006_v14 = vadd.f32 %v3584_v16, %v1955_v20 }
 0x1b9   : > { %2008 = vst.msk [vmem:[#allocation2 + $0x8] sm:$0xff] %vm223_vm6, %v2006_v14 }
 0x1be   : > { %v2046_v35 = vld [vmem:[#allocation2] sm:$0xff] }
 0x1bf   : > { %v2097_v26 = vadd.f32 %v3586_v32, %v2046_v35 }
 0x1c0   : > { %v2047_v36 = vld [vmem:[#allocation2 + $0x8] sm:$0xff] }
 0x1c1   : > { %2099 = vst.msk [vmem:[#allocation2] sm:$0xff] %vm223_vm6, %v2097_v26  ;;  %v2098_v4 = vadd.f32 %v3590_v33, %v2047_v36 }
 0x1c3   : > { %2100 = vst.msk [vmem:[#allocation2 + $0x8] sm:$0xff] %vm223_vm6, %v2098_v4 }
 0x1c8   : > { %v2138_v8 = vld [vmem:[#allocation2] sm:$0xff] }
 0x1c9   : > { %v2189_v22 = vadd.f32 %v3593_v11, %v2138_v8 }
 0x1ca   : > { %v2139_v18 = vld [vmem:[#allocation2 + $0x8] sm:$0xff] }
 0x1cb   : > { %2191 = vst.msk [vmem:[#allocation2] sm:$0xff] %vm223_vm6, %v2189_v22  ;;  %v2190_v16 = vadd.f32 %v3595_v37, %v2139_v18 }
 0x1cd   : > { %2192 = vst.msk [vmem:[#allocation2 + $0x8] sm:$0xff] %vm223_vm6, %v2190_v16 }
 0x1d2   : > { %v2230_v39 = vld [vmem:[#allocation2] sm:$0xff] }
 0x1d3   : > { %v2281_v32 = vadd.f32 %v3600_v42, %v2230_v39  ;;  %v2702_v42 = vld [vmem:[%s3683_s2] ss:$0 sm:$0xff] }
 0x1d4   : > { %v2231_v6 = vld [vmem:[#allocation2 + $0x8] sm:$0xff] }
 0x1d5   : > { %2283 = vst.msk [vmem:[#allocation2] sm:$0xff] %vm223_vm6, %v2281_v32  ;;  %v2282_v33 = vadd.f32 %v3603_v40, %v2231_v6 }
 0x1d7   : > { %2284 = vst.msk [vmem:[#allocation2 + $0x8] sm:$0xff] %vm223_vm6, %v2282_v33 }
 0x1dc   : > { %v2306_v21 = vld [vmem:[#allocation2] sm:$0xff] }
 0x1dd   : > { %v2357_v11 = vadd.f32 %v3605_v45, %v2306_v21 }
 0x1de   : > { %v2307_v3 = vld [vmem:[#allocation2 + $0x8] sm:$0xff] }
 0x1df   : > { %2359 = vst.msk [vmem:[#allocation2] sm:$0xff] %vm223_vm6, %v2357_v11  ;;  %v2358_v37 = vadd.f32 %v3608_v51, %v2307_v3 }
 0x1e1   : > { %2360 = vst.msk [vmem:[#allocation2 + $0x8] sm:$0xff] %vm223_vm6, %v2358_v37 }
 0x1e6   : > { %v2361_v55 = vld [vmem:[#allocation2] sm:$0xff] }
 0x1e7   : > { %v2370_v41 = vadd.f32 %v2702_v42, %v2361_v55 }
 0x1e8   : > { %v2362_v40 = vld [vmem:[#allocation2 + $0x8] sm:$0xff] }
 0x1e9   : > { %v2374_v43 = vcombine.high %v2370_v41, %v2370_v41  ;;  %v2378_v45 = vpack.c.bf16 %v2370_v41, %v2370_v41  ;;  %v2371_v48 = vadd.f32 %v2702_v42, %v2362_v40 }
 0x1eb   : > { %v2379_v31 = vpack.c.bf16 %v2374_v43, %v2374_v43  ;;  %2383 = vst.msk [vmem:[%s221_s29] sm:$0x3] %vm2382_vm12, %v2378_v45  ;;  %v2375_v46 = vcombine.high %v2371_v48, %v2371_v48  ;;  %v2380_v51 = vpack.c.bf16 %v2371_v48, %v2371_v48 }
 0x1ed   : > { %2384 = vst.msk [vmem:[%s221_s29 + $0x2] sm:$0x3] %vm2382_vm12, %v2379_v31  ;;  %v2381_v1 = vpack.c.bf16 %v2375_v46, %v2375_v46  ;;  %2385 = vst.msk [vmem:[%s221_s29 + $0x4] sm:$0x3] %vm2382_vm12, %v2380_v51 }
 0x1ef   : > { %2386 = vst.msk [vmem:[%s221_s29 + $0x6] sm:$0x3] %vm2382_vm12, %v2381_v1 }
 0x1f0 PF: > { %s13_s14 = sadd.s32 1, %s2956_s14   ;;  %s3691_s12 = smov %s2952_s13 }
 0x1f1   : > { %p10_p5 = scmp.ge.s32.totalorder %s13_s14, 4   ;;  %s3692_s13 = smov %s3694_s15 }
 0x1f3   :  { %12 = sbr.rel (!%p10_p5) target bundleno = 2 (0x2), region = 96 }

// kernel: fbnetv2_block_forward.5
= control target key start
LH: loop header
LB: loop body
LE: loop exit
PB: predicated region body
PF: predicated region fallthrough
CT: control target
= control target key end

     0   :  { %s2919_s12 = smov 0   ;;  %s2921_s13 = smov 0   ;;  %s3402_s0 = inlined_call_operand.vmem [shape: bf16[2,6,6,3], index: 0, kind: input, shape index: {}]   ;;  %s3403_s1 = inlined_call_operand.vmem [shape: bf16[5,5,3,8], index: 1, kind: input, shape index: {}]   ;;  %s3404_s2 = inlined_call_operand.vmem [shape: f32[1,8], index: 2, kind: input, shape index: {}]   ;;  %s3405_s3 = inlined_call_operand.vmem [shape: bf16[2,2,2,8], index: 3, kind: output, shape index: {}]  }
   0x1   :  { %s2923_s14 = smov 0  }
   0x2 LB: > { %s25_s15 = sadd.s32 1, %s2889_s13  ;;  %p2522_p0 = scmp.ge.s32.totalorder %s2893_s14, 1  ;;  %s2893_s14 = sphi %s2923_s14, %s13_s14   ;;  %s2889_s13 = sphi %s2921_s13, %s3411_s13   ;;  %s2885_s12 = sphi %s2919_s12, %s3410_s12  }
   0x3   : > { %p27_p1 = scmp.ge.s32.totalorder %s25_s15, 2  ;;  %p168_p2 = scmp.lt.s32.totalorder %s2893_s14, 3 }
   0x5   : > { %s3413_s15 = smov (%p27_p1, %s25_s15), 0  ;;  %p169_p3 = pnand %p2522_p0, %p168_p2 }
   0x6   : > { %v240_v0 = vld [vmem:[%s3403_s1] sm:$0x3] (!%p169_p3)  ;;  %vm245_vm0 = vcmask (!%p169_p3), 1040384   ;;  %vm246_vm1 = vcmask (!%p169_p3), 1041408   ;;  %v2895_v1 = vmov (!%p169_p3), 0.0   ;;  %v2896_v2 = vmov (!%p169_p3), 65535  }
   0x7   : > { %172 = sbr.rel (%p169_p3) target bundleno = 498 (0x1f2), region = 32  ;;  %2692 = vmatprep.subr.bf16.mxu0 (!%p169_p3), %v2895_v1  ;;  %v247_v3 = vsel (!%p169_p3), %vm245_vm0, 4294967295, %v2896_v2  ;;  %p201_p4 = scmp.lt.s32.totalorder (!%p169_p3), %s2885_s12, 1  ;;  %v233_v4 = vlaneseq (!%p169_p3)  ;;  %2698 = vmatprep.subr.bf16.mxu1 (!%p169_p3), %v2895_v1  ;;  %vm2897_vm2 = vmmov (!%p169_p3), 0   ;;  %v2898_v6 = vmov (!%p169_p3), 1983009808  }
   0x8   : > { %v2943_v5 = vsel (!%p169_p3), %vm246_vm1, %v247_v3, 0  ;;  %2694 = vmatprep.mubr.msk.bf16.mxu0 (!%p169_p3), %vm2897_vm2, %v2895_v1  ;;  %v231_v7 = vunpack.c.l.s4 (!%p169_p3), %v2898_v6  ;;  %v2528_v8 = vld [vmem:[%s3403_s1 + $0x2] sm:$0x3] (!%p169_p3)  ;;  %2700 = vmatprep.mubr.msk.bf16.mxu1 (!%p169_p3), %vm2897_vm2, %v2895_v1  ;;  %vm316_vm3 = vcmask (!%p169_p3), 1042434   ;;  %vm221_vm4 = vcmask (!%p169_p3), 60416  }
   0x9   : > { %v250_v9 = vand.u32 (!%p169_p3), %v2943_v5, %v240_v0  ;;  %v234_v10 = vshrl.u32 (!%p169_p3), %v233_v4, 7  ;;  %v347_v11 = vand.u32 (!%p169_p3), %v2528_v8, %v2943_v5  ;;  %222 = vst.msk [vmem:[#allocation2] sm:$0xf] (!%p169_p3), %vm221_vm4, %v2895_v1  ;;  %vm241_vm5 = vcmask (!%p169_p3), 23552   ;;  %vm2969_vm6 = vmor (!%p169_p3), %vm245_vm0, %vm316_vm3  ;;  %v2531_v15 = vld [vmem:[%s3403_s1 + $0x4] sm:$0x3] (!%p169_p3) }
   0xa   : > { %v232_v12 = vunpack.c.0.s8 (!%p169_p3), %v231_v7  ;;  %vm318_vm7 = vcmask (!%p169_p3), 1044484   ;;  %vm320_vm8 = vcmask (!%p169_p3), 1046534   ;;  %v430_v26 = vand.u32 (!%p169_p3), %v2531_v15, %v2943_v5  ;;  %v2535_v52 = vld [vmem:[%s3403_s1 + $0x6] sm:$0x3] (!%p169_p3)  ;;  %v2537_v62 = vld [vmem:[%s3403_s1 + $0x8] sm:$0x3] (!%p169_p3) }
   0xb   : > { %2693 = vmatpush3.bf16.msra.mxu0 (!%p169_p3), %v250_v9  ;;  %2699 = vmatpush3.bf16.msra.mxu1 (!%p169_p3), %v347_v11  ;;  %vm319_vm9 = vmor (!%p169_p3), %vm2969_vm6, %vm318_vm7  ;;  %v537_v2 = vand.u32 (!%p169_p3), %v2535_v52, %v2943_v5  ;;  %vm2414_vm11 = vcmask (!%p169_p3), 57344  }
   0xc   : > { %2704 = vmatprep.subr.bf16.mxu0 (!%p169_p3), %v2895_v1  ;;  %2710 = vmatprep.subr.bf16.mxu1 (!%p169_p3), %v2895_v1  ;;  %v2966_v13 = vsub.s32 (!%p169_p3), %v232_v12, %v234_v10  ;;  %vm2995_vm10 = vmor (!%p169_p3), %vm319_vm9, %vm320_vm8 }
   0xe   : > { %s3415_s12 = smov (!%p201_p4, %s2885_s12), 1 }
   0xf   : > { %s2842_s20 = smul.u32 24, %s3415_s12  ;;  %s2524_s27 = sshll.u32 %s3415_s12, 1 }
  0x10   : > { %s219_s30 = scalar_lea.vmem %s3405_s3, %s2524_s27 }
  0x11   : > { %s2964_s23 = scalar_lea.vmem %s3402_s0, %s2842_s20 }
  0x12   : > { %v223_v16 = vld [vmem:[%s2964_s23] sm:$0x1]  ;;  %v224_v17 = vld [vmem:[%s2964_s23 + $0x4] sm:$0x1]  ;;  %v391_v23 = vld [vmem:[%s2964_s23] sm:$0x2] }
  0x13   : > { %v294_v18 = vld [vmem:[%s2964_s23] sm:$0x3]  ;;  %v225_v19 = vunpack.c.l.bf16 %v223_v16  ;;  %v226_v20 = vunpack.c.l.bf16 %v224_v17  ;;  %v295_v21 = vld [vmem:[%s2964_s23 + $0x4] sm:$0x3]  ;;  %v393_v27 = vunpack.c.l.bf16 %v391_v23  ;;  %v581_v31 = vld [vmem:[%s2964_s23] sm:$0x4] }
  0x14   : > { %v296_v22 = vunpack.c.l.bf16 %v294_v18  ;;  %v392_v24 = vld [vmem:[%s2964_s23 + $0x4] sm:$0x2]  ;;  %v297_v25 = vunpack.c.l.bf16 %v295_v21  ;;  %v474_v29 = vld [vmem:[%s2964_s23] sm:$0x6]  ;;  %v583_v39 = vunpack.c.l.bf16 %v581_v31  ;;  %v582_v49 = vld [vmem:[%s2964_s23 + $0x4] sm:$0x4]  ;;  %v620_v18 = vand.u32 %v2537_v62, %v2943_v5 }
  0x15   : > { %v394_v28 = vunpack.c.l.bf16 %v392_v24  ;;  %v475_v30 = vld [vmem:[%s2964_s23 + $0x4] sm:$0x6]  ;;  %v229_v32 = vcombine.low %v225_v19, %v226_v20  ;;  %v476_v34 = vunpack.c.l.bf16 %v474_v29  ;;  %v403_v37 = vrot.slane %v393_v27, %v2966_v13  ;;  %v2539_v6 = vld [vmem:[%s2964_s23 + $0x4] sm:$0x1]  ;;  %v2540_v12 = vld [vmem:[%s2964_s23 + $0x8] sm:$0x1] }
  0x16   : > { %v306_v33 = vrot.slane %v296_v22, %v2966_v13  ;;  %v477_v35 = vunpack.c.l.bf16 %v475_v30  ;;  %v314_v36 = vrot.slane %v297_v25, %v2966_v13  ;;  %v584_v63 = vunpack.c.l.bf16 %v582_v49  ;;  %v2543_v7 = vld [vmem:[%s2964_s23 + $0x4] sm:$0x3]  ;;  %v2544_v14 = vld [vmem:[%s2964_s23 + $0x8] sm:$0x3]  ;;  %v2541_v30 = vld [vmem:[%s3403_s1 + $0xa] sm:$0x3] }
  0x17   : > { %v411_v38 = vrot.slane %v394_v28, %v2966_v13  ;;  %v236_v40 = vrot.slane %v229_v32, %v2966_v13  ;;  %v480_v43 = vcombine.high %v476_v34, %v476_v34  ;;  %v487_v48 = vrot.slane %v476_v34, %v2966_v13  ;;  %v2550_v34 = vld [vmem:[%s2964_s23 + $0x8] sm:$0x2] }
  0x18   : > { %v307_v41 = vcombine.high %v306_v33, %v306_v33  ;;  %v2526_v42 = vrot.slane %v306_v33, 9  ;;  %v315_v44 = vcombine.high %v314_v36, %v314_v36  ;;  %v2527_v46 = vrot.slane %v314_v36, 9  ;;  %v2549_v33 = vld [vmem:[%s2964_s23 + $0x4] sm:$0x2] }
  0x19   : > { %v2530_v47 = vcombine.high %v403_v37, %v411_v38  ;;  %v238_v50 = vpack.c.bf16 %v236_v40, %v236_v40  ;;  %v494_v53 = vrot.slane %v480_v43, %v2966_v13  ;;  %v496_v54 = vcombine.high %v477_v35, %v477_v35  ;;  %v2555_v40 = vld [vmem:[%s2964_s23 + $0x8] sm:$0x6] }
  0x1a   : > { %v324_v51 = vrot.slane %v307_v41, 7  ;;  %v328_v55 = vrot.slane %v315_v44, 7  ;;  %v495_v57 = vcombine.high %v487_v48, %v487_v48  ;;  %v503_v58 = vrot.slane %v477_v35, %v2966_v13  ;;  %v2554_v35 = vld [vmem:[%s2964_s23 + $0x4] sm:$0x6] }
  0x1b   : > { %v420_v56 = vrot.slane %v2530_v47, %v2966_v13  ;;  %2695 = vmatmul.mubr.msk.bf16.vlgmr.msra.gmra.mrb[0].mxu0 %vm241_vm5, %v238_v50  ;;  %v510_v60 = vrot.slane %v496_v54, %v2966_v13  ;;  %v514_v61 = vrot.slane %v494_v53, 7  ;;  %v587_v10 = vcombine.high %v583_v39, %v583_v39  ;;  %v2547_v54 = vld [vmem:[%s3403_s1 + $0xc] sm:$0x3] }
  0x1c   : > { %v325_v59 = vsel %vm2995_vm10, %v2526_v42, %v324_v51  ;;  %v329_v0 = vsel %vm2995_vm10, %v2527_v46, %v328_v55  ;;  %2705 = vmatpush3.bf16.msra.mxu0 %v430_v26  ;;  %2706 = vmatprep.mubr.msk.bf16.mxu0 %vm2897_vm2, %v2895_v1  ;;  %v511_v3 = vcombine.high %v503_v58, %v503_v58  ;;  %v2533_v4 = vrot.slane %v495_v57, 9  ;;  %v2560_v46 = vld [vmem:[%s2964_s23 + $0x4] sm:$0x4]  ;;  %v2561_v51 = vld [vmem:[%s2964_s23 + $0x8] sm:$0x4] }
  0x1d   : > { %v330_v8 = vcombine.low %v325_v59, %v329_v0  ;;  %v518_v9 = vrot.slane %v510_v60, 7  ;;  %2716 = vmatprep.subr.bf16.mxu0 %v2895_v1  ;;  %v595_v11 = vcombine.high %v584_v63, %v584_v63  ;;  %v422_v15 = vpack.c.bf16 %v420_v56, %v420_v56 }
  0x1e   : > { %v515_v16 = vsel %vm2995_vm10, %v2533_v4, %v514_v61  ;;  %v2534_v17 = vrot.slane %v511_v3, 9  ;;  %v594_v20 = vrot.slane %v587_v10, %v2966_v13  ;;  %v734_v22 = vunpack.c.l.bf16 %v2543_v7 }
  0x1f   : > { %v337_v19 = vrot.slane %v330_v8, %v2966_v13  ;;  %v602_v21 = vrot.slane %v595_v11, %v2966_v13  ;;  %v667_v24 = vunpack.c.l.bf16 %v2539_v6  ;;  %v668_v25 = vunpack.c.l.bf16 %v2540_v12  ;;  %v2568_v11 = vld [vmem:[%s2964_s23 + $0x8] sm:$0x3] }
  0x20   : > { %v519_v23 = vsel %vm2995_vm10, %v2534_v17, %v518_v9  ;;  %v735_v26 = vunpack.c.l.bf16 %v2544_v14  ;;  %v744_v31 = vrot.slane %v734_v22, %v2966_v13  ;;  %v688_v41 = vand.u32 %v2541_v30, %v2943_v5  ;;  %v2569_v17 = vld [vmem:[%s2964_s23 + $0xc] sm:$0x3]  ;;  %v2552_v22 = vld [vmem:[%s3403_s1 + $0xe] sm:$0x3] }
  0x21   : > { %v339_v27 = vpack.c.bf16 %v337_v19, %v337_v19  ;;  %v520_v28 = vcombine.low %v515_v16, %v519_v23  ;;  %v603_v29 = vcombine.low %v594_v20, %v602_v21  ;;  %v671_v42 = vcombine.low %v667_v24, %v668_v25 }
  0x22   : > { %v752_v32 = vrot.slane %v735_v26, %v2966_v13  ;;  %v745_v38 = vcombine.high %v744_v31, %v744_v31  ;;  %v2545_v39 = vrot.slane %v744_v31, 9  ;;  %v825_v48 = vunpack.c.l.bf16 %v2549_v33  ;;  %v2558_v26 = vld [vmem:[%s3403_s1 + $0x10] sm:$0x3] }
  0x23   : > { %2701 = vmatmul.mubr.msk.bf16.vlgmr.msra.gmra.mrb[0].mxu1 %vm241_vm5, %v339_v27  ;;  %2707 = vmatmul.mubr.msk.bf16.vlgmr.msra.gmra.mrb[4].mxu0 %vm241_vm5, %v422_v15  ;;  %v527_v36 = vrot.slane %v520_v28, %v2966_v13  ;;  %v610_v37 = vrot.slane %v603_v29, %v2966_v13  ;;  %v826_v49 = vunpack.c.l.bf16 %v2550_v34  ;;  %v908_v50 = vunpack.c.l.bf16 %v2554_v35  ;;  %v2564_v28 = vld [vmem:[%s2964_s23 + $0x8] sm:$0x1]  ;;  %v2565_v29 = vld [vmem:[%s2964_s23 + $0xc] sm:$0x1] }
  0x24   : > { %2711 = vmatpush3.bf16.msra.mxu1 %v537_v2  ;;  %2712 = vmatprep.mubr.msk.bf16.mxu1 %vm2897_vm2, %v2895_v1  ;;  %v753_v43 = vcombine.high %v752_v32, %v752_v32  ;;  %v2546_v44 = vrot.slane %v752_v32, 9  ;;  %v756_v47 = vrot.slane %v745_v38, 7  ;;  %v909_v56 = vunpack.c.l.bf16 %v2555_v40 }
  0x25   : > { %2717 = vmatpush3.bf16.msra.mxu0 %v620_v18  ;;  %2718 = vmatprep.mubr.msk.bf16.mxu0 %vm2897_vm2, %v2895_v1  ;;  %v529_v52 = vpack.c.bf16 %v527_v36, %v527_v36  ;;  %v612_v53 = vpack.c.bf16 %v610_v37, %v610_v37  ;;  %v912_v58 = vcombine.high %v908_v50, %v908_v50  ;;  %v1015_v60 = vunpack.c.l.bf16 %v2560_v46  ;;  %v2580_v46 = vld [vmem:[%s2964_s23 + $0xc] sm:$0x6] }
  0x26   : > { %2722 = vmatprep.subr.bf16.mxu1 %v2895_v1  ;;  %2728 = vmatprep.subr.bf16.mxu0 %v2895_v1  ;;  %v760_v55 = vrot.slane %v753_v43, 7  ;;  %v757_v57 = vsel %vm2995_vm10, %v2545_v39, %v756_v47  ;;  %v919_v59 = vrot.slane %v908_v50, %v2966_v13  ;;  %v928_v62 = vcombine.high %v909_v56, %v909_v56  ;;  %v2579_v39 = vld [vmem:[%s2964_s23 + $0x8] sm:$0x6] }
  0x27   : > { %v935_v63 = vrot.slane %v909_v56, %v2966_v13  ;;  %v1016_v0 = vunpack.c.l.bf16 %v2561_v51  ;;  %v779_v2 = vand.u32 %v2547_v54, %v2943_v5  ;;  %v926_v4 = vrot.slane %v912_v58, %v2966_v13  ;;  %v2566_v56 = vld [vmem:[%s3403_s1 + $0x14] sm:$0x3] }
  0x28   : > { %v761_v61 = vsel %vm2995_vm10, %v2546_v44, %v760_v55  ;;  %v927_v6 = vcombine.high %v919_v59, %v919_v59  ;;  %v678_v7 = vrot.slane %v671_v42, %v2966_v13  ;;  %v835_v8 = vrot.slane %v825_v48, %v2966_v13  ;;  %v2574_v44 = vld [vmem:[%s2964_s23 + $0x8] sm:$0x2]  ;;  %v2575_v48 = vld [vmem:[%s2964_s23 + $0xc] sm:$0x2]  ;;  %v2562_v55 = vld [vmem:[%s3403_s1 + $0x12] sm:$0x3] }
  0x29   : > { %v762_v3 = vcombine.low %v757_v57, %v761_v61  ;;  %v942_v9 = vrot.slane %v928_v62, %v2966_v13  ;;  %v943_v10 = vcombine.high %v935_v63, %v935_v63  ;;  %v843_v14 = vrot.slane %v826_v49, %v2966_v13 }
  0x2a   : > { %v2556_v15 = vrot.slane %v927_v6, 9  ;;  %v946_v16 = vrot.slane %v926_v4, 7  ;;  %v1019_v20 = vcombine.high %v1015_v60, %v1015_v60  ;;  %v1027_v21 = vcombine.high %v1016_v0, %v1016_v0 }
  0x2b   : > { %2713 = vmatmul.mubr.msk.bf16.vlgmr.msra.gmra.mrb[4].mxu1 %vm241_vm5, %v529_v52  ;;  %2719 = vmatmul.mubr.msk.bf16.vlgmr.msra.gmra.mrb[8].mxu0 %vm241_vm5, %v612_v53  ;;  %v769_v12 = vrot.slane %v762_v3, %v2966_v13  ;;  %v2557_v18 = vrot.slane %v943_v10, 9  ;;  %v950_v19 = vrot.slane %v942_v9, 7  ;;  %v1166_v24 = vunpack.c.l.bf16 %v2568_v11 }
  0x2c   : > { %2723 = vmatpush3.bf16.msra.mxu1 %v688_v41  ;;  %2724 = vmatprep.mubr.msk.bf16.mxu1 %vm2897_vm2, %v2895_v1  ;;  %v947_v23 = vsel %vm2995_vm10, %v2556_v15, %v946_v16  ;;  %v680_v25 = vpack.c.bf16 %v678_v7, %v678_v7  ;;  %v1167_v30 = vunpack.c.l.bf16 %v2569_v17  ;;  %v2551_v32 = vcombine.high %v835_v8, %v843_v14  ;;  %v2586_v8 = vld [vmem:[%s2964_s23 + $0xc] sm:$0x4] }
  0x2d   : > { %2729 = vmatpush3.bf16.msra.mxu0 %v779_v2  ;;  %2730 = vmatprep.mubr.msk.bf16.mxu0 %vm2897_vm2, %v2895_v1  ;;  %v951_v27 = vsel %vm2995_vm10, %v2557_v18, %v950_v19  ;;  %v771_v31 = vpack.c.bf16 %v769_v12, %v769_v12  ;;  %v1176_v34 = vrot.slane %v1166_v24, %v2966_v13  ;;  %v1099_v41 = vunpack.c.l.bf16 %v2564_v28  ;;  %v2585_v2 = vld [vmem:[%s2964_s23 + $0x8] sm:$0x4]  ;;  %v2593_v18 = vld [vmem:[%s2964_s23 + $0xc] sm:$0x3] }
  0x2e   : > { %2734 = vmatprep.subr.bf16.mxu1 %v2895_v1  ;;  %2740 = vmatprep.subr.bf16.mxu0 %v2895_v1  ;;  %v952_v33 = vcombine.low %v947_v23, %v951_v27  ;;  %v862_v35 = vand.u32 %v2552_v22, %v2943_v5  ;;  %v1026_v36 = vrot.slane %v1019_v20, %v2966_v13  ;;  %v1100_v42 = vunpack.c.l.bf16 %v2565_v29  ;;  %v2594_v23 = vld [vmem:[%s2964_s23 + $0x10] sm:$0x3]  ;;  %v2572_v29 = vld [vmem:[%s3403_s1 + $0x16] sm:$0x3] }
  0x2f   : > { %v1034_v37 = vrot.slane %v1027_v21, %v2966_v13  ;;  %v1184_v38 = vrot.slane %v1167_v30, %v2966_v13  ;;  %v969_v40 = vand.u32 %v2558_v26, %v2943_v5  ;;  %v1177_v43 = vcombine.high %v1176_v34, %v1176_v34 }
  0x30   : > { %v852_v49 = vrot.slane %v2551_v32, %v2966_v13  ;;  %v959_v50 = vrot.slane %v952_v33, %v2966_v13  ;;  %v1340_v51 = vunpack.c.l.bf16 %v2579_v39  ;;  %v1257_v53 = vunpack.c.l.bf16 %v2574_v44  ;;  %v2577_v33 = vld [vmem:[%s3403_s1 + $0x18] sm:$0x3] }
  0x31   : > { %v1185_v47 = vcombine.high %v1184_v38, %v1184_v38  ;;  %v1035_v52 = vcombine.low %v1026_v36, %v1034_v37  ;;  %v1341_v54 = vunpack.c.l.bf16 %v2580_v46  ;;  %v1103_v57 = vcombine.low %v1099_v41, %v1100_v42 }
  0x32   : > { %v2570_v58 = vrot.slane %v1176_v34, 9  ;;  %v1188_v59 = vrot.slane %v1177_v43, 7  ;;  %v1258_v60 = vunpack.c.l.bf16 %v2575_v48  ;;  %v2571_v61 = vrot.slane %v1184_v38, 9  ;;  %v2604_v43 = vld [vmem:[%s2964_s23 + $0xc] sm:$0x6] }
  0x33   : > { %2725 = vmatmul.mubr.msk.bf16.vlgmr.msra.gmra.mrb[8].mxu1 %vm241_vm5, %v680_v25  ;;  %2731 = vmatmul.mubr.msk.bf16.vlgmr.msra.gmra.mrb[12].mxu0 %vm241_vm5, %v771_v31  ;;  %v1192_v62 = vrot.slane %v1185_v47, 7  ;;  %v1344_v63 = vcombine.high %v1340_v51, %v1340_v51  ;;  %v1351_v0 = vrot.slane %v1340_v51, %v2966_v13  ;;  %v854_v3 = vpack.c.bf16 %v852_v49, %v852_v49  ;;  %v2605_v47 = vld [vmem:[%s2964_s23 + $0x10] sm:$0x6] }
  0x34   : > { %2735 = vmatpush3.bf16.msra.mxu1 %v862_v35  ;;  %2736 = vmatprep.mubr.msk.bf16.mxu1 %vm2897_vm2, %v2895_v1  ;;  %v961_v4 = vpack.c.bf16 %v959_v50, %v959_v50  ;;  %v1360_v6 = vcombine.high %v1341_v54, %v1341_v54  ;;  %v1367_v7 = vrot.slane %v1341_v54, %v2966_v13  ;;  %v1447_v17 = vunpack.c.l.bf16 %v2585_v2  ;;  %v2590_v2 = vld [vmem:[%s2964_s23 + $0x10] sm:$0x1] }
  0x35   : > { %2741 = vmatpush3.bf16.msra.mxu0 %v969_v40  ;;  %2742 = vmatprep.mubr.msk.bf16.mxu0 %vm2897_vm2, %v2895_v1  ;;  %v1052_v9 = vand.u32 %v2562_v55, %v2943_v5  ;;  %v1042_v10 = vrot.slane %v1035_v52, %v2966_v13  ;;  %v1120_v11 = vand.u32 %v2566_v56, %v2943_v5  ;;  %v1448_v22 = vunpack.c.l.bf16 %v2586_v8 }
  0x36   : > { %2746 = vmatprep.subr.bf16.mxu1 %v2895_v1  ;;  %2752 = vmatprep.subr.bf16.mxu0 %v2895_v1  ;;  %v1267_v12 = vrot.slane %v1257_v53, %v2966_v13  ;;  %v1110_v14 = vrot.slane %v1103_v57, %v2966_v13  ;;  %v1189_v15 = vsel %vm2995_vm10, %v2570_v58, %v1188_v59  ;;  %v1598_v27 = vunpack.c.l.bf16 %v2593_v18  ;;  %v2583_v58 = vld [vmem:[%s3403_s1 + $0x1a] sm:$0x3] }
  0x37   : > { %v1275_v16 = vrot.slane %v1258_v60, %v2966_v13  ;;  %v1193_v19 = vsel %vm2995_vm10, %v2571_v61, %v1192_v62  ;;  %v1358_v20 = vrot.slane %v1344_v63, %v2966_v13  ;;  %v1359_v21 = vcombine.high %v1351_v0, %v1351_v0  ;;  %v2587_v61 = vld [vmem:[%s3403_s1 + $0x1c] sm:$0x3]  ;;  %v2589_v63 = vld [vmem:[%s2964_s23 + $0xc] sm:$0x1] }
  0x38   : > { %v1374_v24 = vrot.slane %v1360_v6, %v2966_v13  ;;  %v1375_v25 = vcombine.high %v1367_v7, %v1367_v7  ;;  %v1044_v26 = vpack.c.bf16 %v1042_v10, %v1042_v10  ;;  %v1112_v28 = vpack.c.bf16 %v1110_v14, %v1110_v14 }
  0x39   : > { %v1194_v30 = vcombine.low %v1189_v15, %v1193_v19  ;;  %v2576_v31 = vcombine.high %v1267_v12, %v1275_v16  ;;  %v1599_v32 = vunpack.c.l.bf16 %v2594_v23  ;;  %v2581_v34 = vrot.slane %v1359_v21, 9  ;;  %v2600_v21 = vld [vmem:[%s2964_s23 + $0x10] sm:$0x2]  ;;  %v2591_v23 = vld [vmem:[%s3403_s1 + $0x1e] sm:$0x3] }
  0x3a   : > { %v1378_v35 = vrot.slane %v1358_v20, 7  ;;  %v1451_v36 = vcombine.high %v1447_v17, %v1447_v17  ;;  %v1459_v37 = vcombine.high %v1448_v22, %v1448_v22  ;;  %v2582_v38 = vrot.slane %v1375_v25, 9  ;;  %v2599_v20 = vld [vmem:[%s2964_s23 + $0xc] sm:$0x2] }
  0x3b   : > { %2737 = vmatmul.mubr.msk.bf16.vlgmr.msra.gmra.mrb[12].mxu1 %vm241_vm5, %v854_v3  ;;  %2743 = vmatmul.mubr.msk.bf16.vlgmr.msra.gmra.mrb[16].mxu0 %vm241_vm5, %v961_v4  ;;  %v1382_v39 = vrot.slane %v1374_v24, 7  ;;  %v1608_v40 = vrot.slane %v1598_v27, %v2966_v13  ;;  %v1616_v41 = vrot.slane %v1599_v32, %v2966_v13  ;;  %v1211_v42 = vand.u32 %v2572_v29, %v2943_v5 }
  0x3c   : > { %2747 = vmatpush3.bf16.msra.mxu1 %v1052_v9  ;;  %2748 = vmatprep.mubr.msk.bf16.mxu1 %vm2897_vm2, %v2895_v1  ;;  %v1294_v44 = vand.u32 %v2577_v33, %v2943_v5  ;;  %v1284_v46 = vrot.slane %v2576_v31, %v2966_v13  ;;  %v1201_v48 = vrot.slane %v1194_v30, %v2966_v13  ;;  %v1772_v55 = vunpack.c.l.bf16 %v2604_v43  ;;  %v2619_v43 = vld [vmem:[%s2964_s23 + $0x14] sm:$0x3] }
  0x3d   : > { %2753 = vmatpush3.bf16.msra.mxu0 %v1120_v11  ;;  %2754 = vmatprep.mubr.msk.bf16.mxu0 %vm2897_vm2, %v2895_v1  ;;  %v1379_v49 = vsel %vm2995_vm10, %v2581_v34, %v1378_v35  ;;  %v1458_v50 = vrot.slane %v1451_v36, %v2966_v13  ;;  %v1466_v51 = vrot.slane %v1459_v37, %v2966_v13  ;;  %v1773_v56 = vunpack.c.l.bf16 %v2605_v47  ;;  %v2610_v35 = vld [vmem:[%s2964_s23 + $0xc] sm:$0x4] }
  0x3e   : > { %2758 = vmatprep.subr.bf16.mxu1 %v2895_v1  ;;  %2764 = vmatprep.subr.bf16.mxu0 %v2895_v1  ;;  %v1383_v52 = vsel %vm2995_vm10, %v2582_v38, %v1382_v39  ;;  %v1609_v53 = vcombine.high %v1608_v40, %v1608_v40  ;;  %v1617_v54 = vcombine.high %v1616_v41, %v1616_v41  ;;  %v2595_v0 = vrot.slane %v1608_v40, 9  ;;  %v2611_v40 = vld [vmem:[%s2964_s23 + $0x10] sm:$0x4] }
  0x3f   : > { %v1286_v57 = vpack.c.bf16 %v1284_v46, %v1284_v46  ;;  %v1203_v59 = vpack.c.bf16 %v1201_v48, %v1201_v48  ;;  %v1384_v60 = vcombine.low %v1379_v49, %v1383_v52  ;;  %v1467_v62 = vcombine.low %v1458_v50, %v1466_v51 }
  0x40   : > { %v1620_v3 = vrot.slane %v1609_v53, 7  ;;  %v2596_v4 = vrot.slane %v1616_v41, 9  ;;  %v1624_v6 = vrot.slane %v1617_v54, 7  ;;  %v1776_v7 = vcombine.high %v1772_v55, %v1772_v55 }
  0x41   : > { %v1401_v8 = vand.u32 %v2583_v58, %v2943_v5  ;;  %v1783_v9 = vrot.slane %v1772_v55, %v2966_v13  ;;  %v1792_v10 = vcombine.high %v1773_v56, %v1773_v56  ;;  %v1799_v11 = vrot.slane %v1773_v56, %v2966_v13  ;;  %v2602_v55 = vld [vmem:[%s3403_s1 + $0x22] sm:$0x3]  ;;  %v2608_v58 = vld [vmem:[%s3403_s1 + $0x24] sm:$0x3] }
  0x42   : > { %v1484_v12 = vand.u32 %v2587_v61, %v2943_v5  ;;  %v1391_v14 = vrot.slane %v1384_v60, %v2966_v13  ;;  %v1474_v15 = vrot.slane %v1467_v62, %v2966_v13  ;;  %v1531_v16 = vunpack.c.l.bf16 %v2589_v63  ;;  %v2614_v63 = vld [vmem:[%s2964_s23 + $0x10] sm:$0x1] }
  0x43   : > { %2749 = vmatmul.mubr.msk.bf16.vlgmr.msra.gmra.mrb[16].mxu1 %vm241_vm5, %v1044_v26  ;;  %2755 = vmatmul.mubr.msk.bf16.vlgmr.msra.gmra.mrb[20].mxu0 %vm241_vm5, %v1112_v28  ;;  %v1532_v17 = vunpack.c.l.bf16 %v2590_v2  ;;  %v1621_v18 = vsel %vm2995_vm10, %v2595_v0, %v1620_v3  ;;  %v1625_v19 = vsel %vm2995_vm10, %v2596_v4, %v1624_v6  ;;  %v1790_v22 = vrot.slane %v1776_v7, %v2966_v13  ;;  %v2597_v28 = vld [vmem:[%s3403_s1 + $0x20] sm:$0x3]  ;;  %v2615_v2 = vld [vmem:[%s2964_s23 + $0x14] sm:$0x1] }
  0x44   : > { %2759 = vmatpush3.bf16.msra.mxu1 %v1211_v42  ;;  %2760 = vmatprep.mubr.msk.bf16.mxu1 %vm2897_vm2, %v2895_v1  ;;  %v1791_v24 = vcombine.high %v1783_v9, %v1783_v9  ;;  %v1806_v25 = vrot.slane %v1792_v10, %v2966_v13  ;;  %v1807_v26 = vcombine.high %v1799_v11, %v1799_v11  ;;  %v1689_v29 = vunpack.c.l.bf16 %v2599_v20  ;;  %v2618_v42 = vld [vmem:[%s2964_s23 + $0x10] sm:$0x3]  ;;  %v2612_v10 = vld [vmem:[%s3403_s1 + $0x26] sm:$0x3] }
  0x45   : > { %2765 = vmatpush3.bf16.msra.mxu0 %v1294_v44  ;;  %2766 = vmatprep.mubr.msk.bf16.mxu0 %vm2897_vm2, %v2895_v1  ;;  %v1535_v27 = vcombine.low %v1531_v16, %v1532_v17  ;;  %v1690_v30 = vunpack.c.l.bf16 %v2600_v21  ;;  %v1393_v31 = vpack.c.bf16 %v1391_v14, %v1391_v14  ;;  %v1476_v32 = vpack.c.bf16 %v1474_v15, %v1474_v15 }
  0x46   : > { %2770 = vmatprep.subr.bf16.mxu1 %v2895_v1  ;;  %2776 = vmatprep.subr.bf16.mxu0 %v2895_v1  ;;  %v1552_v33 = vand.u32 %v2591_v23, %v2943_v5  ;;  %v1626_v34 = vcombine.low %v1621_v18, %v1625_v19  ;;  %v2606_v36 = vrot.slane %v1791_v24, 9  ;;  %v1810_v37 = vrot.slane %v1790_v22, 7  ;;  %v2616_v18 = vld [vmem:[%s3403_s1 + $0x28] sm:$0x3] }
  0x47   : > { %v2607_v38 = vrot.slane %v1807_v26, 9  ;;  %v1814_v39 = vrot.slane %v1806_v25, 7  ;;  %v1643_v41 = vand.u32 %v2597_v28, %v2943_v5  ;;  %v1542_v44 = vrot.slane %v1535_v27, %v2966_v13 }
  0x48   : > { %v1699_v46 = vrot.slane %v1689_v29, %v2966_v13  ;;  %v1707_v47 = vrot.slane %v1690_v30, %v2966_v13  ;;  %v1633_v48 = vrot.slane %v1626_v34, %v2966_v13  ;;  %v1879_v49 = vunpack.c.l.bf16 %v2610_v35 }
  0x49   : > { %v1880_v50 = vunpack.c.l.bf16 %v2611_v40  ;;  %v1811_v51 = vsel %vm2995_vm10, %v2606_v36, %v1810_v37  ;;  %v1815_v52 = vsel %vm2995_vm10, %v2607_v38, %v1814_v39  ;;  %v2030_v53 = vunpack.c.l.bf16 %v2618_v42  ;;  %v2624_v37 = vld [vmem:[%s2964_s23 + $0x10] sm:$0x2]  ;;  %v2625_v38 = vld [vmem:[%s2964_s23 + $0x14] sm:$0x2] }
  0x4a   : > { %v2031_v54 = vunpack.c.l.bf16 %v2619_v43  ;;  %v1544_v56 = vpack.c.bf16 %v1542_v44, %v1542_v44  ;;  %v1816_v60 = vcombine.low %v1811_v51, %v1815_v52  ;;  %v1883_v61 = vcombine.high %v1879_v49, %v1879_v49  ;;  %v2630_v49 = vld [vmem:[%s2964_s23 + $0x14] sm:$0x6] }
  0x4b   : > { %2761 = vmatmul.mubr.msk.bf16.vlgmr.msra.gmra.mrb[20].mxu1 %vm241_vm5, %v1203_v59  ;;  %2767 = vmatmul.mubr.msk.bf16.vlgmr.msra.gmra.mrb[24].mxu0 %vm241_vm5, %v1286_v57  ;;  %v2601_v57 = vcombine.high %v1699_v46, %v1707_v47  ;;  %v1635_v59 = vpack.c.bf16 %v1633_v48, %v1633_v48  ;;  %v1891_v62 = vcombine.high %v1880_v50, %v1880_v50  ;;  %v1964_v14 = vunpack.c.l.bf16 %v2615_v2  ;;  %v2627_v46 = vld [vmem:[%s3403_s1 + $0x2c] sm:$0x3]  ;;  %v2629_v48 = vld [vmem:[%s2964_s23 + $0x10] sm:$0x6] }
  0x4c   : > { %2771 = vmatpush3.bf16.msra.mxu1 %v1401_v8  ;;  %2772 = vmatprep.mubr.msk.bf16.mxu1 %vm2897_vm2, %v2895_v1  ;;  %v1726_v0 = vand.u32 %v2602_v55, %v2943_v5  ;;  %v2040_v3 = vrot.slane %v2030_v53, %v2966_v13  ;;  %v2048_v4 = vrot.slane %v2031_v54, %v2966_v13  ;;  %v1963_v8 = vunpack.c.l.bf16 %v2614_v63 }
  0x4d   : > { %2777 = vmatpush3.bf16.msra.mxu0 %v1484_v12  ;;  %2778 = vmatprep.mubr.msk.bf16.mxu0 %vm2897_vm2, %v2895_v1  ;;  %v1833_v6 = vand.u32 %v2608_v58, %v2943_v5  ;;  %v1716_v7 = vrot.slane %v2601_v57, %v2966_v13  ;;  %v1823_v9 = vrot.slane %v1816_v60, %v2966_v13  ;;  %v2121_v40 = vunpack.c.l.bf16 %v2624_v37 }
  0x4e   : > { %2782 = vmatprep.subr.bf16.mxu1 %v2895_v1  ;;  %2788 = vmatprep.subr.bf16.mxu0 %v2895_v1  ;;  %v1890_v11 = vrot.slane %v1883_v61, %v2966_v13  ;;  %v1898_v12 = vrot.slane %v1891_v62, %v2966_v13  ;;  %v2041_v15 = vcombine.high %v2040_v3, %v2040_v3  ;;  %v2620_v23 = vrot.slane %v2040_v3, 9 }
  0x4f   : > { %v2049_v16 = vcombine.high %v2048_v4, %v2048_v4  ;;  %v1916_v17 = vand.u32 %v2612_v10, %v2943_v5  ;;  %v1718_v19 = vpack.c.bf16 %v1716_v7, %v1716_v7  ;;  %v1825_v20 = vpack.c.bf16 %v1823_v9, %v1823_v9  ;;  %v2633_v7 = vld [vmem:[%s3403_s1 + $0x2e] sm:$0x3] }
  0x50   : > { %v1899_v21 = vcombine.low %v1890_v11, %v1898_v12  ;;  %v1967_v22 = vcombine.low %v1963_v8, %v1964_v14  ;;  %v2052_v24 = vrot.slane %v2041_v15, 7  ;;  %v2621_v25 = vrot.slane %v2048_v4, 9  ;;  %v2635_v11 = vld [vmem:[%s2964_s23 + $0x10] sm:$0x4]  ;;  %v2636_v12 = vld [vmem:[%s2964_s23 + $0x14] sm:$0x4] }
  0x51   : > { %v2056_v26 = vrot.slane %v2049_v16, 7  ;;  %v1984_v27 = vand.u32 %v2616_v18, %v2943_v5  ;;  %v2131_v42 = vrot.slane %v2121_v40, %v2966_v13  ;;  %v2158_v50 = vand.u32 %v2627_v46, %v2943_v5 }
  0x52   : > { %v1906_v28 = vrot.slane %v1899_v21, %v2966_v13  ;;  %v1974_v29 = vrot.slane %v1967_v22, %v2966_v13  ;;  %v2053_v30 = vsel %vm2995_vm10, %v2620_v23, %v2052_v24  ;;  %v2204_v51 = vunpack.c.l.bf16 %v2629_v48  ;;  %v239_v24 = vld [vmem:[#allocation2] sm:$0xf] }
  0x53   : > { %2773 = vmatmul.mubr.msk.bf16.vlgmr.msra.gmra.mrb[24].mxu1 %vm241_vm5, %v1393_v31  ;;  %2779 = vmatmul.mubr.msk.bf16.vlgmr.msra.gmra.mrb[28].mxu0 %vm241_vm5, %v1476_v32  ;;  %v2057_v31 = vsel %vm2995_vm10, %v2621_v25, %v2056_v26  ;;  %v2622_v32 = vld [vmem:[%s3403_s1 + $0x2a] sm:$0x3]  ;;  %v2205_v52 = vunpack.c.l.bf16 %v2630_v49  ;;  %v2265_v9 = vand.u32 %v2633_v7, %v2943_v5  ;;  %v2312_v15 = vunpack.c.l.bf16 %v2636_v12 }
  0x54   : > { %2783 = vmatpush3.bf16.msra.mxu1 %v1552_v33  ;;  %2784 = vmatprep.mubr.msk.bf16.mxu1 %vm2897_vm2, %v2895_v1  ;;  %v1908_v33 = vpack.c.bf16 %v1906_v28, %v1906_v28  ;;  %v1976_v34 = vpack.c.bf16 %v1974_v29, %v1974_v29  ;;  %v2058_v35 = vcombine.low %v2053_v30, %v2057_v31 }
  0x55   : > { %2789 = vmatpush3.bf16.msra.mxu0 %v1643_v41  ;;  %2790 = vmatprep.mubr.msk.bf16.mxu0 %vm2897_vm2, %v2895_v1  ;;  %v2075_v36 = vand.u32 %v2622_v32, %v2943_v5  ;;  %v2122_v41 = vunpack.c.l.bf16 %v2625_v38  ;;  %v2208_v54 = vcombine.high %v2204_v51, %v2204_v51  ;;  %v2215_v55 = vrot.slane %v2204_v51, %v2966_v13 }
  0x56   : > { %2794 = vmatprep.subr.bf16.mxu1 %v2895_v1  ;;  %2800 = vmatprep.subr.bf16.mxu0 %v2895_v1  ;;  %v2065_v39 = vrot.slane %v2058_v35, %v2966_v13  ;;  %v2231_v57 = vrot.slane %v2205_v52, %v2966_v13  ;;  %v2323_v45 = vcombine.high %v2312_v15, %v2312_v15 }
  0x57   : > { %v2139_v43 = vrot.slane %v2122_v41, %v2966_v13  ;;  %v2223_v60 = vcombine.high %v2215_v55, %v2215_v55 }
  0x58   : > { %v2067_v44 = vpack.c.bf16 %v2065_v39, %v2065_v39  ;;  %v2239_v62 = vcombine.high %v2231_v57, %v2231_v57  ;;  %v2330_v18 = vrot.slane %v2323_v45, %v2966_v13 }
  0x59   : > { %v2626_v47 = vcombine.high %v2131_v42, %v2139_v43  ;;  %v2631_v63 = vrot.slane %v2223_v60, 9 }
  0x5a   : > { %v2632_v2 = vrot.slane %v2239_v62, 9 }
  0x5b   : > { %2785 = vmatmul.mubr.msk.bf16.vlgmr.msra.gmra.mrb[28].mxu1 %vm241_vm5, %v1544_v56  ;;  %2791 = vmatmul.mubr.msk.bf16.vlgmr.msra.gmra.mrb[32].mxu0 %vm241_vm5, %v1635_v59  ;;  %v2148_v53 = vrot.slane %v2626_v47, %v2966_v13  ;;  %v2224_v56 = vcombine.high %v2205_v52, %v2205_v52  ;;  %v2222_v59 = vrot.slane %v2208_v54, %v2966_v13 }
  0x5c   : > { %2795 = vmatpush3.bf16.msra.mxu1 %v1726_v0  ;;  %2796 = vmatprep.mubr.msk.bf16.mxu1 %vm2897_vm2, %v2895_v1 }
  0x5d   : > { %2801 = vmatpush3.bf16.msra.mxu0 %v1833_v6  ;;  %2802 = vmatprep.mubr.msk.bf16.mxu0 %vm2897_vm2, %v2895_v1  ;;  %v2150_v58 = vpack.c.bf16 %v2148_v53, %v2148_v53  ;;  %v2238_v61 = vrot.slane %v2224_v56, %v2966_v13  ;;  %v2242_v0 = vrot.slane %v2222_v59, 7 }
  0x5e   : > { %2806 = vmatprep.subr.bf16.mxu1 %v2895_v1  ;;  %2812 = vmatprep.subr.bf16.mxu0 %v2895_v1 }
  0x5f   : > { %v2246_v3 = vrot.slane %v2238_v61, 7  ;;  %v2243_v4 = vsel %vm2995_vm10, %v2631_v63, %v2242_v0 }
  0x61   : > { %v2247_v6 = vsel %vm2995_vm10, %v2632_v2, %v2246_v3 }
  0x62   : > { %v2248_v8 = vcombine.low %v2243_v4, %v2247_v6 }
  0x63   : > { %2797 = vmatmul.mubr.msk.bf16.vlgmr.msra.gmra.mrb[32].mxu1 %vm241_vm5, %v1718_v19  ;;  %2803 = vmatmul.mubr.msk.bf16.vlgmr.msra.gmra.mrb[36].mxu0 %vm241_vm5, %v1825_v20  ;;  %v2637_v19 = vld [vmem:[%s3403_s1 + $0x30] sm:$0x3] }
  0x64   : > { %2807 = vmatpush3.bf16.msra.mxu1 %v1916_v17  ;;  %2808 = vmatprep.mubr.msk.bf16.mxu1 %vm2897_vm2, %v2895_v1  ;;  %v2255_v10 = vrot.slane %v2248_v8, %v2966_v13  ;;  %v2348_v21 = vand.u32 %v2637_v19, %v2943_v5 }
  0x65   : > { %2813 = vmatpush3.bf16.msra.mxu0 %v1984_v27  ;;  %2814 = vmatprep.mubr.msk.bf16.mxu0 %vm2897_vm2, %v2895_v1 }
  0x66   : > { %2818 = vmatprep.subr.bf16.mxu1 %v2895_v1  ;;  %2824 = vmatprep.subr.bf16.mxu0 %v2895_v1  ;;  %v2257_v14 = vpack.c.bf16 %v2255_v10, %v2255_v10 }
  0x6b   : > { %2809 = vmatmul.mubr.msk.bf16.vlgmr.msra.gmra.mrb[36].mxu1 %vm241_vm5, %v1908_v33  ;;  %2815 = vmatmul.mubr.msk.bf16.vlgmr.msra.gmra.mrb[40].mxu0 %vm241_vm5, %v1976_v34 }
  0x6c   : > { %2819 = vmatpush3.bf16.msra.mxu1 %v2075_v36  ;;  %2820 = vmatprep.mubr.msk.bf16.mxu1 %vm2897_vm2, %v2895_v1 }
  0x6d   : > { %2826 = vmatprep.mubr.msk.bf16.mxu0 %vm2897_vm2, %v2895_v1  ;;  %2830 = vmatprep.subr.bf16.mxu1 %v2895_v1 }
  0x6e   : > { %2825 = vmatpush3.bf16.msra.mxu0 %v2158_v50 }
  0x6f   : > { %2836 = vmatprep.subr.bf16.mxu0 %v2895_v1 }
  0x73   : > { %2821 = vmatmul.mubr.msk.bf16.vlgmr.msra.gmra.mrb[40].mxu1 %vm241_vm5, %v2067_v44  ;;  %2827 = vmatmul.mubr.msk.bf16.vlgmr.msra.gmra.mrb[44].mxu0 %vm241_vm5, %v2150_v58 }
  0x74   : > { %2832 = vmatprep.mubr.msk.bf16.mxu1 %vm2897_vm2, %v2895_v1  ;;  %2838 = vmatprep.mubr.msk.bf16.mxu0 %vm2897_vm2, %v2895_v1  ;;  %v2311_v1 = vunpack.c.l.bf16 %v2635_v11 }
  0x75   : > { %2831 = vmatpush3.bf16.msra.mxu1 %v2265_v9  ;;  %2837 = vmatpush3.bf16.msra.mxu0 %v2348_v21 }
  0x76   : > { %v2315_v16 = vcombine.high %v2311_v1, %v2311_v1 }
  0x78   : > { %v2322_v17 = vrot.slane %v2315_v16, %v2966_v13 }
  0x7a   : > { %v2331_v20 = vcombine.low %v2322_v17, %v2330_v18 }
  0x7b   : > { %2833 = vmatmul.mubr.msk.bf16.vlgmr.msra.gmra.mrb[44].mxu1 %vm241_vm5, %v2257_v14 }
  0x7c   : > { %v2338_v22 = vrot.slane %v2331_v20, %v2966_v13 }
  0x7e   : > { %v2340_v23 = vpack.c.bf16 %v2338_v22, %v2338_v22 }
  0x80   : > { %2839 = vmatmul.mubr.msk.bf16.vlgmr.msra.gmra.mrb[48].mxu0 %vm241_vm5, %v2340_v23 }
  0xee   : > { %v286_v25 = vpop.f32.mrb[0].mxu0 }
  0xef   : > { %v292_v26 = vadd.f32 %v286_v25, %v239_v24  ;;  %v2696_v27 = vpop.f32.mrb[1].mxu0 }
  0xf0   : > { %v289_v28 = vpop.f32.mrb[2].mxu0 }
  0xf1   : > { %293 = vst.msk [vmem:[#allocation2] sm:$0xf] %vm221_vm4, %v292_v26  ;;  %v2697_v29 = vpop.f32.mrb[3].mxu0 }
  0xf6   : > { %v383_v30 = vpop.f32.mrb[0].mxu1  ;;  %v466_v31 = vpop.f32.mrb[4].mxu0 }
  0xf7   : > { %v2702_v32 = vpop.f32.mrb[1].mxu1  ;;  %v2708_v33 = vpop.f32.mrb[5].mxu0 }
  0xf8   : > { %v340_v34 = vld [vmem:[#allocation2] sm:$0xf]  ;;  %v386_v5 = vpop.f32.mrb[2].mxu1  ;;  %v469_v35 = vpop.f32.mrb[6].mxu0 }
  0xf9   : > { %v389_v36 = vadd.f32 %v383_v30, %v340_v34  ;;  %v2703_v37 = vpop.f32.mrb[3].mxu1  ;;  %v2709_v38 = vpop.f32.mrb[7].mxu0 }
  0xfb   : > { %390 = vst.msk [vmem:[#allocation2] sm:$0xf] %vm221_vm4, %v389_v36 }
  0xfe   : > { %v573_v39 = vpop.f32.mrb[4].mxu1  ;;  %v656_v40 = vpop.f32.mrb[8].mxu0 }
  0xff   : > { %v2714_v41 = vpop.f32.mrb[5].mxu1  ;;  %v2720_v42 = vpop.f32.mrb[9].mxu0 }
 0x100   : > { %v576_v43 = vpop.f32.mrb[6].mxu1  ;;  %v659_v44 = vpop.f32.mrb[10].mxu0 }
 0x101   : > { %v2715_v46 = vpop.f32.mrb[7].mxu1  ;;  %v2721_v47 = vpop.f32.mrb[11].mxu0 }
 0x102   : > { %v423_v48 = vld [vmem:[#allocation2] sm:$0xf] }
 0x103   : > { %v472_v49 = vadd.f32 %v466_v31, %v423_v48 }
 0x105   : > { %473 = vst.msk [vmem:[#allocation2] sm:$0xf] %vm221_vm4, %v472_v49 }
 0x106   : > { %v724_v50 = vpop.f32.mrb[8].mxu1  ;;  %v815_v51 = vpop.f32.mrb[12].mxu0 }
 0x107   : > { %v2726_v52 = vpop.f32.mrb[9].mxu1  ;;  %v2732_v53 = vpop.f32.mrb[13].mxu0 }
 0x108   : > { %v727_v54 = vpop.f32.mrb[10].mxu1  ;;  %v818_v55 = vpop.f32.mrb[14].mxu0 }
 0x109   : > { %v2727_v56 = vpop.f32.mrb[11].mxu1  ;;  %v2733_v57 = vpop.f32.mrb[15].mxu0 }
 0x10c   : > { %v530_v58 = vld [vmem:[#allocation2] sm:$0xf] }
 0x10d   : > { %v579_v59 = vadd.f32 %v573_v39, %v530_v58 }
 0x10e   : > { %v898_v60 = vpop.f32.mrb[12].mxu1  ;;  %v3333_v61 = vpop.f32.mrb[16].mxu0 }
 0x10f   : > { %580 = vst.msk [vmem:[#allocation2] sm:$0xf] %vm221_vm4, %v579_v59  ;;  %v2738_v62 = vpop.f32.mrb[13].mxu1  ;;  %v2744_v63 = vpop.f32.mrb[17].mxu0 }
 0x110   : > { %v901_v0 = vpop.f32.mrb[14].mxu1  ;;  %v1008_v2 = vpop.f32.mrb[18].mxu0 }
 0x111   : > { %v2739_v3 = vpop.f32.mrb[15].mxu1  ;;  %v2745_v4 = vpop.f32.mrb[19].mxu0 }
 0x116   : > { %v613_v6 = vld [vmem:[#allocation2] sm:$0xf]  ;;  %v3336_v7 = vpop.f32.mrb[16].mxu1  ;;  %v3338_v8 = vpop.f32.mrb[20].mxu0 }
 0x117   : > { %v662_v9 = vadd.f32 %v656_v40, %v613_v6  ;;  %v2750_v10 = vpop.f32.mrb[17].mxu1  ;;  %v2756_v11 = vpop.f32.mrb[21].mxu0 }
 0x118   : > { %v1091_v12 = vpop.f32.mrb[18].mxu1  ;;  %v1159_v14 = vpop.f32.mrb[22].mxu0 }
 0x119   : > { %663 = vst.msk [vmem:[#allocation2] sm:$0xf] %vm221_vm4, %v662_v9  ;;  %v2751_v1 = vpop.f32.mrb[19].mxu1  ;;  %v2757_v15 = vpop.f32.mrb[23].mxu0 }
 0x11e   : > { %v3341_v16 = vpop.f32.mrb[20].mxu1  ;;  %v3343_v45 = vpop.f32.mrb[24].mxu0 }
 0x11f   : > { %v2762_v17 = vpop.f32.mrb[21].mxu1  ;;  %v2768_v18 = vpop.f32.mrb[25].mxu0 }
 0x120   : > { %v681_v19 = vld [vmem:[#allocation2] sm:$0xf]  ;;  %v1250_v20 = vpop.f32.mrb[22].mxu1  ;;  %v1333_v21 = vpop.f32.mrb[26].mxu0 }
 0x121   : > { %v730_v22 = vadd.f32 %v724_v50, %v681_v19  ;;  %v2763_v23 = vpop.f32.mrb[23].mxu1  ;;  %v2769_v24 = vpop.f32.mrb[27].mxu0 }
 0x123   : > { %731 = vst.msk [vmem:[#allocation2] sm:$0xf] %vm221_vm4, %v730_v22 }
 0x126   : > { %v3346_v25 = vpop.f32.mrb[24].mxu1  ;;  %v3348_v26 = vpop.f32.mrb[28].mxu0 }
 0x127   : > { %v2774_v27 = vpop.f32.mrb[25].mxu1  ;;  %v2780_v28 = vpop.f32.mrb[29].mxu0 }
 0x128   : > { %v1440_v29 = vpop.f32.mrb[26].mxu1  ;;  %v1523_v30 = vpop.f32.mrb[30].mxu0 }
 0x129   : > { %v2775_v31 = vpop.f32.mrb[27].mxu1  ;;  %v2781_v32 = vpop.f32.mrb[31].mxu0 }
 0x12a   : > { %v772_v33 = vld [vmem:[#allocation2] sm:$0xf] }
 0x12b   : > { %v821_v34 = vadd.f32 %v815_v51, %v772_v33 }
 0x12d   : > { %822 = vst.msk [vmem:[#allocation2] sm:$0xf] %vm221_vm4, %v821_v34 }
 0x12e   : > { %v3351_v5 = vpop.f32.mrb[28].mxu1  ;;  %v3353_v35 = vpop.f32.mrb[32].mxu0 }
 0x12f   : > { %v2786_v36 = vpop.f32.mrb[29].mxu1  ;;  %v2792_v37 = vpop.f32.mrb[33].mxu0 }
 0x130   : > { %v1591_v38 = vpop.f32.mrb[30].mxu1  ;;  %v1682_v39 = vpop.f32.mrb[34].mxu0 }
 0x131   : > { %v2787_v40 = vpop.f32.mrb[31].mxu1  ;;  %v2793_v41 = vpop.f32.mrb[35].mxu0 }
 0x134   : > { %v855_v42 = vld [vmem:[#allocation2] sm:$0xf] }
 0x135   : > { %v904_v43 = vadd.f32 %v898_v60, %v855_v42 }
 0x136   : > { %v1762_v44 = vpop.f32.mrb[32].mxu1  ;;  %v3355_v46 = vpop.f32.mrb[36].mxu0 }
 0x137   : > { %905 = vst.msk [vmem:[#allocation2] sm:$0xf] %vm221_vm4, %v904_v43  ;;  %v2798_v47 = vpop.f32.mrb[33].mxu1  ;;  %v2804_v48 = vpop.f32.mrb[37].mxu0 }
 0x138   : > { %v1765_v49 = vpop.f32.mrb[34].mxu1  ;;  %v1872_v50 = vpop.f32.mrb[38].mxu0  ;;  %v2639_v48 = vld [vmem:[%s3404_s2] ss:$0 sm:$0xff] }
 0x139   : > { %v2799_v51 = vpop.f32.mrb[35].mxu1  ;;  %v2805_v52 = vpop.f32.mrb[39].mxu0 }
 0x13e   : > { %v962_v53 = vld [vmem:[#allocation2] sm:$0xf]  ;;  %v1952_v54 = vpop.f32.mrb[36].mxu1  ;;  %v2020_v55 = vpop.f32.mrb[40].mxu0 }
 0x13f   : > { %v1011_v56 = vadd.f32 %v3333_v61, %v962_v53  ;;  %v2810_v57 = vpop.f32.mrb[37].mxu1  ;;  %v2816_v58 = vpop.f32.mrb[41].mxu0 }
 0x140   : > { %v1955_v59 = vpop.f32.mrb[38].mxu1  ;;  %v2023_v60 = vpop.f32.mrb[42].mxu0 }
 0x141   : > { %1012 = vst.msk [vmem:[#allocation2] sm:$0xf] %vm221_vm4, %v1011_v56  ;;  %v2811_v62 = vpop.f32.mrb[39].mxu1  ;;  %v2817_v63 = vpop.f32.mrb[43].mxu0 }
 0x146   : > { %v2111_v0 = vpop.f32.mrb[40].mxu1  ;;  %v2194_v6 = vpop.f32.mrb[44].mxu0 }
 0x147   : > { %v2822_v2 = vpop.f32.mrb[41].mxu1  ;;  %v2828_v11 = vpop.f32.mrb[45].mxu0 }
 0x148   : > { %v1045_v3 = vld [vmem:[#allocation2] sm:$0xf]  ;;  %v2114_v4 = vpop.f32.mrb[42].mxu1  ;;  %v2197_v12 = vpop.f32.mrb[46].mxu0 }
 0x149   : > { %v1094_v9 = vadd.f32 %v3336_v7, %v1045_v3  ;;  %v2823_v10 = vpop.f32.mrb[43].mxu1  ;;  %v2829_v61 = vpop.f32.mrb[47].mxu0 }
 0x14b   : > { %1095 = vst.msk [vmem:[#allocation2] sm:$0xf] %vm221_vm4, %v1094_v9 }
 0x14e   : > { %v2301_v1 = vpop.f32.mrb[44].mxu1 }
 0x14f   : > { %v2834_v17 = vpop.f32.mrb[45].mxu1 }
 0x150   : > { %v2304_v18 = vpop.f32.mrb[46].mxu1 }
 0x151   : > { %v2835_v19 = vpop.f32.mrb[47].mxu1 }
 0x152   : > { %v1113_v14 = vld [vmem:[#allocation2] sm:$0xf] }
 0x153   : > { %v1162_v15 = vadd.f32 %v3338_v8, %v1113_v14  ;;  %v2384_v21 = vpop.f32.mrb[48].mxu0 }
 0x154   : > { %v2840_v7 = vpop.f32.mrb[49].mxu0 }
 0x155   : > { %1163 = vst.msk [vmem:[#allocation2] sm:$0xf] %vm221_vm4, %v1162_v15  ;;  %v2387_v23 = vpop.f32.mrb[50].mxu0 }
 0x156   : > { %v2841_v24 = vpop.f32.mrb[51].mxu0 }
 0x15c   : > { %v1204_v20 = vld [vmem:[#allocation2] sm:$0xf] }
 0x15d   : > { %v1253_v22 = vadd.f32 %v3341_v16, %v1204_v20 }
 0x15f   : > { %1254 = vst.msk [vmem:[#allocation2] sm:$0xf] %vm221_vm4, %v1253_v22 }
 0x166   : > { %v1287_v27 = vld [vmem:[#allocation2] sm:$0xf] }
 0x167   : > { %v1336_v28 = vadd.f32 %v3343_v45, %v1287_v27 }
 0x169   : > { %1337 = vst.msk [vmem:[#allocation2] sm:$0xf] %vm221_vm4, %v1336_v28 }
 0x170   : > { %v1394_v8 = vld [vmem:[#allocation2] sm:$0xf] }
 0x171   : > { %v1443_v29 = vadd.f32 %v3346_v25, %v1394_v8 }
 0x173   : > { %1444 = vst.msk [vmem:[#allocation2] sm:$0xf] %vm221_vm4, %v1443_v29 }
 0x17a   : > { %v1477_v30 = vld [vmem:[#allocation2] sm:$0xf] }
 0x17b   : > { %v1526_v31 = vadd.f32 %v3348_v26, %v1477_v30 }
 0x17d   : > { %1527 = vst.msk [vmem:[#allocation2] sm:$0xf] %vm221_vm4, %v1526_v31 }
 0x184   : > { %v1545_v16 = vld [vmem:[#allocation2] sm:$0xf] }
 0x185   : > { %v1594_v32 = vadd.f32 %v3351_v5, %v1545_v16 }
 0x187   : > { %1595 = vst.msk [vmem:[#allocation2] sm:$0xf] %vm221_vm4, %v1594_v32 }
 0x18e   : > { %v1636_v33 = vld [vmem:[#allocation2] sm:$0xf] }
 0x18f   : > { %v1685_v45 = vadd.f32 %v3353_v35, %v1636_v33 }
 0x191   : > { %1686 = vst.msk [vmem:[#allocation2] sm:$0xf] %vm221_vm4, %v1685_v45 }
 0x198   : > { %v1719_v34 = vld [vmem:[#allocation2] sm:$0xf] }
 0x199   : > { %v1768_v36 = vadd.f32 %v1762_v44, %v1719_v34 }
 0x19b   : > { %1769 = vst.msk [vmem:[#allocation2] sm:$0xf] %vm221_vm4, %v1768_v36 }
 0x1a2   : > { %v1826_v25 = vld [vmem:[#allocation2] sm:$0xf] }
 0x1a3   : > { %v1875_v37 = vadd.f32 %v3355_v46, %v1826_v25 }
 0x1a5   : > { %1876 = vst.msk [vmem:[#allocation2] sm:$0xf] %vm221_vm4, %v1875_v37 }
 0x1ac   : > { %v1909_v26 = vld [vmem:[#allocation2] sm:$0xf] }
 0x1ad   : > { %v1958_v38 = vadd.f32 %v1952_v54, %v1909_v26 }
 0x1af   : > { %1959 = vst.msk [vmem:[#allocation2] sm:$0xf] %vm221_vm4, %v1958_v38 }
 0x1b6   : > { %v1977_v5 = vld [vmem:[#allocation2] sm:$0xf] }
 0x1b7   : > { %v2026_v39 = vadd.f32 %v2020_v55, %v1977_v5 }
 0x1b9   : > { %2027 = vst.msk [vmem:[#allocation2] sm:$0xf] %vm221_vm4, %v2026_v39 }
 0x1c0   : > { %v2068_v35 = vld [vmem:[#allocation2] sm:$0xf] }
 0x1c1   : > { %v2117_v40 = vadd.f32 %v2111_v0, %v2068_v35 }
 0x1c3   : > { %2118 = vst.msk [vmem:[#allocation2] sm:$0xf] %vm221_vm4, %v2117_v40 }
 0x1ca   : > { %v2151_v41 = vld [vmem:[#allocation2] sm:$0xf] }
 0x1cb   : > { %v2200_v42 = vadd.f32 %v2194_v6, %v2151_v41 }
 0x1cd   : > { %2201 = vst.msk [vmem:[#allocation2] sm:$0xf] %vm221_vm4, %v2200_v42 }
 0x1d4   : > { %v2258_v43 = vld [vmem:[#allocation2] sm:$0xf] }
 0x1d5   : > { %v2307_v44 = vadd.f32 %v2301_v1, %v2258_v43 }
 0x1d7   : > { %2308 = vst.msk [vmem:[#allocation2] sm:$0xf] %vm221_vm4, %v2307_v44 }
 0x1de   : > { %v2341_v46 = vld [vmem:[#allocation2] sm:$0xf] }
 0x1df   : > { %v2390_v47 = vadd.f32 %v2384_v21, %v2341_v46 }
 0x1e1   : > { %2391 = vst.msk [vmem:[#allocation2] sm:$0xf] %vm221_vm4, %v2390_v47 }
 0x1e8   : > { %v2392_v49 = vld [vmem:[#allocation2] sm:$0xf] }
 0x1e9   : > { %v2400_v50 = vadd.f32 %v2639_v48, %v2392_v49 }
 0x1eb   : > { %v2408_v51 = vrot.slane %v2400_v50, %v2966_v13 }
 0x1ed   : > { %v2409_v52 = vcombine.high %v2408_v51, %v2408_v51  ;;  %v2412_v53 = vpack.c.bf16 %v2408_v51, %v2408_v51 }
 0x1ef   : > { %v2413_v54 = vpack.c.bf16 %v2409_v52, %v2409_v52  ;;  %2415 = vst.msk [vmem:[%s219_s30] sm:$0x1] %vm2414_vm11, %v2412_v53 }
 0x1f1   : > { %2416 = vst.msk [vmem:[%s219_s30 + $0x1] sm:$0x1] %vm2414_vm11, %v2413_v54 }
 0x1f2 PF: > { %s13_s14 = sadd.s32 1, %s2893_s14   ;;  %s3410_s12 = smov %s2889_s13 }
 0x1f3   : > { %p10_p5 = scmp.ge.s32.totalorder %s13_s14, 4   ;;  %s3411_s13 = smov %s3413_s15 }
 0x1f5   :  { %12 = sbr.rel (!%p10_p5) target bundleno = 2 (0x2), region = 96 }

// kernel: fbnetv2_block_forward.3
= control target key start
LH: loop header
LB: loop body
LE: loop exit
PB: predicated region body
PF: predicated region fallthrough
CT: control target
= control target key end

     0   :  { %s5735_s12 = smov 0   ;;  %s5737_s13 = smov 0   ;;  %s6853_s0 = inlined_call_operand.vmem [shape: bf16[2,12,12,3], index: 0, kind: input, shape index: {}]   ;;  %s6854_s1 = inlined_call_operand.vmem [shape: bf16[5,5,3,8], index: 1, kind: input, shape index: {}]   ;;  %s6855_s2 = inlined_call_operand.vmem [shape: f32[1,8], index: 2, kind: input, shape index: {}]   ;;  %s6856_s3 = inlined_call_operand.vmem [shape: bf16[2,8,8,8], index: 3, kind: output, shape index: {}]  }
   0x1   :  { %s5739_s14 = smov 0  }
   0x2 LB: > { %s25_s15 = sadd.s32 1, %s5707_s13  ;;  %p4825_p0 = scmp.ge.s32.totalorder %s5711_s14, 1  ;;  %s5711_s14 = sphi %s5739_s14, %s13_s14   ;;  %s5707_s13 = sphi %s5737_s13, %s6858_s13   ;;  %s5703_s12 = sphi %s5735_s12, %s6857_s12  }
   0x3   : > { %p27_p1 = scmp.ge.s32.totalorder %s25_s15, 2  ;;  %p168_p2 = scmp.lt.s32.totalorder %s5711_s14, 3 }
   0x5   : > { %s6860_s15 = smov (%p27_p1, %s25_s15), 0  ;;  %p169_p3 = pnand %p4825_p0, %p168_p2 }
   0x6   : > { %v260_v0 = vld [vmem:[%s6854_s1] sm:$0x3] (!%p169_p3)  ;;  %vm274_vm0 = vcmask (!%p169_p3), 1040384   ;;  %vm275_vm1 = vcmask (!%p169_p3), 1041408   ;;  %p202_p4 = scmp.lt.s32.totalorder (!%p169_p3), %s5703_s12, 1  ;;  %v5713_v1 = vmov (!%p169_p3), 65535  }
   0x7   : > { %172 = sbr.rel (%p169_p3) target bundleno = 501 (0x1f5), region = 32  ;;  %v276_v2 = vsel (!%p169_p3), %vm274_vm0, 4294967295, %v5713_v1  ;;  %v4837_v3 = vld [vmem:[%s6854_s1 + $0x2] sm:$0x3] (!%p169_p3)  ;;  %v4842_v5 = vld [vmem:[%s6854_s1 + $0x4] sm:$0x3] (!%p169_p3) }
   0x8   : > { %v5759_v4 = vsel (!%p169_p3), %vm275_vm1, %v276_v2, 0  ;;  %vm261_vm2 = vcmask (!%p169_p3), 23552   ;;  %v4847_v9 = vld [vmem:[%s6854_s1 + $0x6] sm:$0x3] (!%p169_p3)  ;;  %v4852_v10 = vld [vmem:[%s6854_s1 + $0x8] sm:$0x3] (!%p169_p3) }
   0x9   : > { %v279_v6 = vand.u32 (!%p169_p3), %v5759_v4, %v260_v0  ;;  %v470_v7 = vand.u32 (!%p169_p3), %v4837_v3, %v5759_v4  ;;  %v661_v8 = vand.u32 (!%p169_p3), %v4842_v5, %v5759_v4  ;;  %v4869_v11 = vld [vmem:[%s6854_s1 + $0xa] sm:$0x3] (!%p169_p3)  ;;  %vm410_vm3 = vcmask (!%p169_p3), 1046528   ;;  %v4890_v12 = vld [vmem:[%s6854_s1 + $0xc] sm:$0x3] (!%p169_p3) }
   0xa   : > { %v4911_v13 = vld [vmem:[%s6854_s1 + $0xe] sm:$0x3] (!%p169_p3)  ;;  %v4932_v14 = vld [vmem:[%s6854_s1 + $0x10] sm:$0x3] (!%p169_p3)  ;;  %v4953_v15 = vld [vmem:[%s6854_s1 + $0x12] sm:$0x3] (!%p169_p3)  ;;  %v5813_v23 = vand.u32 (!%p169_p3), %v4847_v9, %v5759_v4  ;;  %v5816_v24 = vand.u32 (!%p169_p3), %v4852_v10, %v5759_v4  ;;  %v5819_v25 = vand.u32 (!%p169_p3), %v4869_v11, %v5759_v4  ;;  %v5824_v27 = vand.u32 (!%p169_p3), %v4890_v12, %v5759_v4 }
   0xb   : > { %5640 = vmatprep.subr.bf16.mxu1 (!%p169_p3), %v279_v6  ;;  %5390 = vmatprep.subr.bf16.mxu0 (!%p169_p3), %v279_v6  ;;  %v4970_v16 = vld [vmem:[%s6854_s1 + $0x14] sm:$0x3] (!%p169_p3)  ;;  %v4991_v17 = vld [vmem:[%s6854_s1 + $0x16] sm:$0x3] (!%p169_p3)  ;;  %v5012_v18 = vld [vmem:[%s6854_s1 + $0x18] sm:$0x3] (!%p169_p3)  ;;  %v5827_v28 = vand.u32 (!%p169_p3), %v4911_v13, %v5759_v4  ;;  %v5830_v29 = vand.u32 (!%p169_p3), %v4932_v14, %v5759_v4  ;;  %v5833_v30 = vand.u32 (!%p169_p3), %v4953_v15, %v5759_v4 }
   0xc   : > { %5641 = vmatpush3.bf16.msra.mxu1 (!%p169_p3), %v279_v6  ;;  %5391 = vmatpush3.bf16.msra.mxu0 (!%p169_p3), %v279_v6  ;;  %v5033_v19 = vld [vmem:[%s6854_s1 + $0x1a] sm:$0x3] (!%p169_p3)  ;;  %vm601_vm4 = vcmask (!%p169_p3), 1045504   ;;  %v5840_v34 = vand.u32 (!%p169_p3), %v4970_v16, %v5759_v4  ;;  %v5843_v35 = vand.u32 (!%p169_p3), %v4991_v17, %v5759_v4  ;;  %v5846_v36 = vand.u32 (!%p169_p3), %v5012_v18, %v5759_v4 }
   0xd   : > { %5400 = vmatprep.subr.bf16.mxu1 (!%p169_p3), %v470_v7  ;;  %5410 = vmatprep.subr.bf16.mxu0 (!%p169_p3), %v661_v8  ;;  %v5849_v37 = vand.u32 (!%p169_p3), %v5033_v19, %v5759_v4  ;;  %vm792_vm5 = vcmask (!%p169_p3), 1044480   ;;  %vm983_vm6 = vcmask (!%p169_p3), 1043456   ;;  %vm223_vm7 = vcmask (!%p169_p3), 64512  }
   0xe   : > { %s6862_s12 = smov (!%p202_p4, %s5703_s12), 1  ;;  %vm4705_vm8 = vcmask 60416  }
   0xf   : > { %s5642_s22 = smul.u32 96, %s6862_s12  ;;  %s5264_s26 = sshll.u32 %s6862_s12, 5 }
  0x10   : > { %s6823_s29 = scalar_lea.vmem %s6856_s3, %s5264_s26 }
  0x11   : > { %s5794_s16 = scalar_lea.vmem %s6853_s0, %s5642_s22 }
  0x12   : > { %v5669_v20 = vld [vmem:[%s5794_s16] ss:$8 sps:$4 sm:$0xff]   ;;  %v5671_v22 = vld [vmem:[%s5794_s16 + $0x10] ss:$8 sps:$4 sm:$0xff]   ;;  %v363_v32 = vld [vmem:[%s5794_s16 + $0x4] sm:$0x1] }
  0x13   : > { %v5670_v21 = vld [vmem:[%s5794_s16 + $0x20] ss:$8 sps:$4 sm:$0xff]   ;;  %5392 = vmatprep.mubr.msk.bf16.mxu0 %vm261_vm2, %v5669_v20  ;;  %v5672_v26 = vld [vmem:[%s5794_s16 + $0x30] ss:$8 sps:$4 sm:$0xff]   ;;  %v365_v33 = vld [vmem:[%s5794_s16 + $0xc] sm:$0x1]  ;;  %v379_v39 = vunpack.c.l.bf16 %v363_v32 }
  0x14   : > { %5396 = vmatprep.mubr.msk.bf16.mxu1 %vm261_vm2, %v5670_v21  ;;  %5393 = vmatmul.mubr.msk.bf16.vlgmr.msra.gmra.mrb[0].mxu0 %vm261_vm2, %v5671_v22  ;;  %v362_v31 = vld [vmem:[%s5794_s16] ss:$8 sps:$4 sm:$0xff]   ;;  %v381_v41 = vunpack.c.l.bf16 %v365_v33  ;;  %v366_v42 = vld [vmem:[%s5794_s16 + $0x10] ss:$8 sps:$4 sm:$0xff]   ;;  %v367_v43 = vld [vmem:[%s5794_s16 + $0x14] sm:$0x1] }
  0x15   : > { %5397 = vmatmul.mubr.msk.bf16.vlgmr.msra.gmra.mrb[0].mxu1 %vm261_vm2, %v5672_v26  ;;  %v378_v38 = vunpack.c.l.bf16 %v362_v31  ;;  %v380_v40 = vunpack.c.h.bf16 %v362_v31  ;;  %v369_v44 = vld [vmem:[%s5794_s16 + $0x1c] sm:$0x1]  ;;  %5411 = vmatpush3.bf16.msra.mxu0 %v661_v8  ;;  %v382_v45 = vunpack.c.l.bf16 %v366_v42  ;;  %v383_v46 = vunpack.c.l.bf16 %v367_v43  ;;  %v553_v49 = vld [vmem:[%s5794_s16] sm:$0xe]  ;;  %v554_v50 = vld [vmem:[%s5794_s16 + $0x4] sm:$0x1] }
  0x16   : > { %5401 = vmatpush3.bf16.msra.mxu1 %v470_v7  ;;  %v384_v47 = vunpack.c.h.bf16 %v366_v42  ;;  %v385_v48 = vunpack.c.l.bf16 %v369_v44  ;;  %5430 = vmatprep.subr.bf16.mxu0 %v5816_v24  ;;  %v412_v52 = vrot.slane %v379_v39, 1  ;;  %v415_v54 = vrot.slane %v381_v41, 1  ;;  %v555_v55 = vld [vmem:[%s5794_s16 + $0x8] sm:$0xe]  ;;  %v556_v60 = vld [vmem:[%s5794_s16 + $0xc] sm:$0x1] }
  0x17   : > { %v411_v51 = vrot.slane %v378_v38, 1  ;;  %v414_v53 = vrot.slane %v380_v40, 1  ;;  %5420 = vmatprep.subr.bf16.mxu1 %v5813_v23  ;;  %v417_v56 = vrot.slane %v382_v45, 1  ;;  %v418_v57 = vrot.slane %v383_v46, 1  ;;  %v370_v1 = vld [vmem:[%s5794_s16 + $0x20] ss:$8 sps:$4 sm:$0xff]  }
  0x18   : > { %v420_v58 = vrot.slane %v384_v47, 1  ;;  %v421_v59 = vrot.slane %v385_v48, 1  ;;  %v569_v63 = vunpack.c.l.bf16 %v553_v49  ;;  %v570_v0 = vunpack.c.l.bf16 %v554_v50  ;;  %v371_v2 = vld [vmem:[%s5794_s16 + $0x24] sm:$0x1]  ;;  %v373_v8 = vld [vmem:[%s5794_s16 + $0x2c] sm:$0x1] }
  0x19   : > { %v413_v61 = vsel %vm410_vm3, %v411_v51, %v412_v52  ;;  %v416_v62 = vsel %vm410_vm3, %v414_v53, %v415_v54  ;;  %v419_v5 = vsel %vm410_vm3, %v417_v56, %v418_v57  ;;  %v571_v7 = vunpack.c.l.bf16 %v555_v55  ;;  %v557_v9 = vld [vmem:[%s5794_s16 + $0x10] sm:$0xe]  ;;  %v558_v14 = vld [vmem:[%s5794_s16 + $0x14] sm:$0x1]  ;;  %v559_v19 = vld [vmem:[%s5794_s16 + $0x18] sm:$0xe] }
  0x1a   : > { %v443_v3 = vpack.c.bf16 %v416_v62, %v413_v61  ;;  %v422_v6 = vsel %vm410_vm3, %v420_v58, %v421_v59  ;;  %v572_v11 = vunpack.c.l.bf16 %v556_v60  ;;  %v602_v12 = vrot.slane %v569_v63, 2  ;;  %v560_v20 = vld [vmem:[%s5794_s16 + $0x1c] sm:$0x1]  ;;  %v374_v40 = vld [vmem:[%s5794_s16 + $0x30] ss:$8 sps:$4 sm:$0xff]  }
  0x1b   : > { %v444_v10 = vpack.c.bf16 %v422_v6, %v419_v5  ;;  %v603_v13 = vrot.slane %v570_v0, 2  ;;  %v605_v15 = vrot.slane %v571_v7, 2  ;;  %v386_v16 = vunpack.c.l.bf16 %v370_v1  ;;  %v375_v45 = vld [vmem:[%s5794_s16 + $0x34] sm:$0x1]  ;;  %v377_v49 = vld [vmem:[%s5794_s16 + $0x3c] sm:$0x1] }
  0x1c   : > { %5402 = vmatprep.mubr.msk.bf16.mxu1 %vm261_vm2, %v443_v3  ;;  %v387_v17 = vunpack.c.l.bf16 %v371_v2  ;;  %v388_v18 = vunpack.c.h.bf16 %v370_v1  ;;  %v606_v22 = vrot.slane %v572_v11, 2  ;;  %v389_v26 = vunpack.c.l.bf16 %v373_v8  ;;  %v561_v50 = vld [vmem:[%s5794_s16 + $0x20] sm:$0xe]  ;;  %v562_v55 = vld [vmem:[%s5794_s16 + $0x24] sm:$0x1] }
  0x1d   : > { %5403 = vmatmul.mubr.msk.bf16.vlgmr.msra.gmra.mrb[4].mxu1 %vm261_vm2, %v444_v10  ;;  %v604_v21 = vsel %vm601_vm4, %v602_v12, %v603_v13  ;;  %v573_v31 = vunpack.c.l.bf16 %v557_v9  ;;  %v423_v32 = vrot.slane %v386_v16, 1  ;;  %v574_v39 = vunpack.c.l.bf16 %v558_v14  ;;  %v563_v60 = vld [vmem:[%s5794_s16 + $0x28] sm:$0xe]  ;;  %v564_v61 = vld [vmem:[%s5794_s16 + $0x2c] sm:$0x1] }
  0x1e   : > { %5421 = vmatpush3.bf16.msra.mxu1 %v5813_v23  ;;  %v424_v33 = vrot.slane %v387_v17, 1  ;;  %v426_v38 = vrot.slane %v388_v18, 1  ;;  %v607_v41 = vsel %vm601_vm4, %v605_v15, %v606_v22  ;;  %v427_v42 = vrot.slane %v389_v26, 1  ;;  %v565_v2 = vld [vmem:[%s5794_s16 + $0x30] sm:$0xe] }
  0x1f   : > { %v575_v43 = vunpack.c.l.bf16 %v559_v19  ;;  %v576_v44 = vunpack.c.l.bf16 %v560_v20  ;;  %5440 = vmatprep.subr.bf16.mxu1 %v5819_v25  ;;  %v634_v46 = vpack.c.bf16 %v607_v41, %v604_v21  ;;  %v608_v47 = vrot.slane %v573_v31, 2  ;;  %v566_v3 = vld [vmem:[%s5794_s16 + $0x34] sm:$0x1]  ;;  %v567_v9 = vld [vmem:[%s5794_s16 + $0x38] sm:$0xe] }
  0x20   : > { %v425_v23 = vsel %vm410_vm3, %v423_v32, %v424_v33  ;;  %v609_v48 = vrot.slane %v574_v39, 2  ;;  %v428_v51 = vsel %vm410_vm3, %v426_v38, %v427_v42  ;;  %v390_v54 = vunpack.c.l.bf16 %v374_v40  ;;  %v568_v14 = vld [vmem:[%s5794_s16 + $0x3c] sm:$0x1]  ;;  %v744_v19 = vld [vmem:[%s5794_s16] sm:$0xe] }
  0x21   : > { %v611_v52 = vrot.slane %v575_v43, 2  ;;  %v612_v53 = vrot.slane %v576_v44, 2  ;;  %5412 = vmatprep.mubr.msk.bf16.mxu0 %vm261_vm2, %v634_v46  ;;  %v445_v56 = vpack.c.bf16 %v428_v51, %v425_v23  ;;  %v391_v58 = vunpack.c.l.bf16 %v375_v45  ;;  %v745_v31 = vld [vmem:[%s5794_s16 + $0x4] sm:$0x3]  ;;  %v746_v32 = vld [vmem:[%s5794_s16 + $0x8] sm:$0xe] }
  0x22   : > { %v610_v57 = vsel %vm601_vm4, %v608_v47, %v609_v48  ;;  %v392_v59 = vunpack.c.h.bf16 %v374_v40  ;;  %v393_v63 = vunpack.c.l.bf16 %v377_v49  ;;  %v429_v0 = vrot.slane %v390_v54, 1  ;;  %v747_v41 = vld [vmem:[%s5794_s16 + $0xc] sm:$0x3]  ;;  %v748_v42 = vld [vmem:[%s5794_s16 + $0x10] sm:$0xe] }
  0x23   : > { %v613_v62 = vsel %vm601_vm4, %v611_v52, %v612_v53  ;;  %v577_v1 = vunpack.c.l.bf16 %v561_v50  ;;  %5406 = vmatprep.mubr.msk.bf16.mxu1 %vm261_vm2, %v445_v56  ;;  %v430_v6 = vrot.slane %v391_v58, 1  ;;  %v578_v8 = vunpack.c.l.bf16 %v562_v55  ;;  %v749_v46 = vld [vmem:[%s5794_s16 + $0x14] sm:$0x3]  ;;  %v750_v50 = vld [vmem:[%s5794_s16 + $0x18] sm:$0xe] }
  0x24   : > { %v635_v5 = vpack.c.bf16 %v613_v62, %v610_v57  ;;  %v432_v7 = vrot.slane %v392_v59, 1  ;;  %v433_v10 = vrot.slane %v393_v63, 1  ;;  %v579_v11 = vunpack.c.l.bf16 %v563_v60  ;;  %v751_v51 = vld [vmem:[%s5794_s16 + $0x1c] sm:$0x3]  ;;  %v752_v56 = vld [vmem:[%s5794_s16 + $0x20] sm:$0xe] }
  0x25   : > { %v580_v12 = vunpack.c.l.bf16 %v564_v61  ;;  %v614_v13 = vrot.slane %v577_v1, 2  ;;  %v431_v15 = vsel %vm410_vm3, %v429_v0, %v430_v6  ;;  %v615_v16 = vrot.slane %v578_v8, 2  ;;  %v753_v57 = vld [vmem:[%s5794_s16 + $0x24] sm:$0x3]  ;;  %v754_v62 = vld [vmem:[%s5794_s16 + $0x28] sm:$0xe] }
  0x26   : > { %5413 = vmatmul.mubr.msk.bf16.vlgmr.msra.gmra.mrb[4].mxu0 %vm261_vm2, %v635_v5  ;;  %v581_v17 = vunpack.c.l.bf16 %v565_v2  ;;  %v582_v18 = vunpack.c.l.bf16 %v566_v3  ;;  %v434_v20 = vsel %vm410_vm3, %v432_v7, %v433_v10  ;;  %v617_v21 = vrot.slane %v579_v11, 2  ;;  %v755_v63 = vld [vmem:[%s5794_s16 + $0x2c] sm:$0x3]  ;;  %v756_v5 = vld [vmem:[%s5794_s16 + $0x30] sm:$0xe] }
  0x27   : > { %v618_v22 = vrot.slane %v580_v12, 2  ;;  %5431 = vmatpush3.bf16.msra.mxu0 %v5816_v24  ;;  %v583_v26 = vunpack.c.l.bf16 %v567_v9  ;;  %v446_v33 = vpack.c.bf16 %v434_v20, %v431_v15  ;;  %v616_v38 = vsel %vm601_vm4, %v614_v13, %v615_v16  ;;  %v757_v6 = vld [vmem:[%s5794_s16 + $0x34] sm:$0x3]  ;;  %v758_v11 = vld [vmem:[%s5794_s16 + $0x38] sm:$0xe] }
  0x28   : > { %v584_v39 = vunpack.c.l.bf16 %v568_v14  ;;  %v620_v40 = vrot.slane %v581_v17, 2  ;;  %5450 = vmatprep.subr.bf16.mxu0 %v5824_v27  ;;  %v621_v44 = vrot.slane %v582_v18, 2  ;;  %v760_v45 = vunpack.c.l.bf16 %v744_v19  ;;  %v759_v12 = vld [vmem:[%s5794_s16 + $0x3c] sm:$0x3]  ;;  %v935_v17 = vld [vmem:[%s5794_s16] sm:$0xc] }
  0x29   : > { %v619_v43 = vsel %vm601_vm4, %v617_v21, %v618_v22  ;;  %v623_v24 = vrot.slane %v583_v26, 2  ;;  %5407 = vmatmul.mubr.msk.bf16.gmra.mrb[8].mxu1 %vm261_vm2, %v446_v33  ;;  %v761_v48 = vunpack.c.l.bf16 %v745_v31  ;;  %v762_v49 = vunpack.c.l.bf16 %v746_v32  ;;  %v936_v18 = vld [vmem:[%s5794_s16 + $0x4] sm:$0x3]  ;;  %v937_v26 = vld [vmem:[%s5794_s16 + $0x8] sm:$0xc] }
  0x2a   : > { %v636_v23 = vpack.c.bf16 %v619_v43, %v616_v38  ;;  %v624_v47 = vrot.slane %v584_v39, 2  ;;  %v622_v52 = vsel %vm601_vm4, %v620_v40, %v621_v44  ;;  %v763_v53 = vunpack.c.l.bf16 %v747_v41  ;;  %v938_v39 = vld [vmem:[%s5794_s16 + $0xc] sm:$0x3]  ;;  %v939_v44 = vld [vmem:[%s5794_s16 + $0x10] sm:$0xc] }
  0x2b   : > { %v793_v54 = vrot.slane %v760_v45, 3  ;;  %v764_v55 = vunpack.c.l.bf16 %v748_v42  ;;  %v794_v59 = vrot.slane %v761_v48, 3  ;;  %v796_v60 = vrot.slane %v762_v49, 3 }
  0x2c   : > { %5416 = vmatprep.mubr.msk.bf16.mxu0 %vm261_vm2, %v636_v23  ;;  %v625_v58 = vsel %vm601_vm4, %v623_v24, %v624_v47  ;;  %v765_v61 = vunpack.c.l.bf16 %v749_v46  ;;  %v797_v1 = vrot.slane %v763_v53, 3  ;;  %v766_v2 = vunpack.c.l.bf16 %v750_v50 }
  0x2d   : > { %v637_v0 = vpack.c.bf16 %v625_v58, %v622_v52  ;;  %v767_v3 = vunpack.c.l.bf16 %v751_v51  ;;  %v795_v7 = vsel %vm792_vm5, %v793_v54, %v794_v59  ;;  %v799_v8 = vrot.slane %v764_v55, 3  ;;  %v940_v51 = vld [vmem:[%s5794_s16 + $0x14] sm:$0x3] }
  0x2e   : > { %v800_v9 = vrot.slane %v765_v61, 3  ;;  %v768_v10 = vunpack.c.l.bf16 %v752_v56  ;;  %v798_v13 = vsel %vm792_vm5, %v796_v60, %v797_v1  ;;  %v802_v14 = vrot.slane %v766_v2, 3  ;;  %v941_v56 = vld [vmem:[%s5794_s16 + $0x18] sm:$0xc]  ;;  %v942_v61 = vld [vmem:[%s5794_s16 + $0x1c] sm:$0x3] }
  0x2f   : > { %5417 = vmatmul.mubr.msk.bf16.gmra.mrb[8].mxu0 %vm261_vm2, %v637_v0  ;;  %v803_v15 = vrot.slane %v767_v3, 3  ;;  %v769_v16 = vunpack.c.l.bf16 %v753_v57  ;;  %v825_v19 = vpack.c.bf16 %v798_v13, %v795_v7  ;;  %v770_v21 = vunpack.c.l.bf16 %v754_v62  ;;  %v943_v62 = vld [vmem:[%s5794_s16 + $0x20] sm:$0xc]  ;;  %v944_v2 = vld [vmem:[%s5794_s16 + $0x24] sm:$0x3] }
  0x30   : > { %v801_v20 = vsel %vm792_vm5, %v799_v8, %v800_v9  ;;  %v771_v22 = vunpack.c.l.bf16 %v755_v63  ;;  %v805_v32 = vrot.slane %v768_v10, 3  ;;  %v772_v38 = vunpack.c.l.bf16 %v756_v5  ;;  %v945_v3 = vld [vmem:[%s5794_s16 + $0x28] sm:$0xc]  ;;  %v946_v9 = vld [vmem:[%s5794_s16 + $0x2c] sm:$0x3] }
  0x31   : > { %v804_v31 = vsel %vm792_vm5, %v802_v14, %v803_v15  ;;  %v806_v33 = vrot.slane %v769_v16, 3  ;;  %5422 = vmatprep.mubr.msk.bf16.mxu1 %vm261_vm2, %v825_v19  ;;  %v808_v41 = vrot.slane %v770_v21, 3  ;;  %v773_v43 = vunpack.c.l.bf16 %v757_v6  ;;  %v947_v14 = vld [vmem:[%s5794_s16 + $0x30] sm:$0xc]  ;;  %v949_v21 = vld [vmem:[%s5794_s16 + $0x38] sm:$0xc] }
  0x32   : > { %v826_v40 = vpack.c.bf16 %v804_v31, %v801_v20  ;;  %v809_v42 = vrot.slane %v771_v22, 3  ;;  %v774_v45 = vunpack.c.l.bf16 %v758_v11  ;;  %v775_v46 = vunpack.c.l.bf16 %v759_v12  ;;  %v5673_v15 = vld [vmem:[%s5794_s16 + $0x8] ss:$8 sps:$4 sm:$0xff]   ;;  %v948_v20 = vld [vmem:[%s5794_s16 + $0x34] sm:$0x3] }
  0x33   : > { %v807_v24 = vsel %vm792_vm5, %v805_v32, %v806_v33  ;;  %v811_v23 = vrot.slane %v772_v38, 3  ;;  %v812_v48 = vrot.slane %v773_v43, 3  ;;  %v951_v49 = vunpack.c.l.bf16 %v935_v17  ;;  %v950_v33 = vld [vmem:[%s5794_s16 + $0x3c] sm:$0x3] }
  0x34   : > { %5423 = vmatmul.mubr.msk.bf16.vlgmr.msra.gmra.mrb[12].mxu1 %vm261_vm2, %v826_v40  ;;  %v810_v47 = vsel %vm792_vm5, %v808_v41, %v809_v42  ;;  %v952_v50 = vunpack.c.l.bf16 %v936_v18  ;;  %v814_v53 = vrot.slane %v774_v45, 3  ;;  %v815_v54 = vrot.slane %v775_v46, 3  ;;  %v4874_v42 = vld [vmem:[%s5794_s16 + $0x8] ss:$8 sps:$4 sm:$0xff]   ;;  %v4875_v46 = vld [vmem:[%s5794_s16 + $0xc] sm:$0x1] }
  0x35   : > { %v827_v52 = vpack.c.bf16 %v810_v47, %v807_v24  ;;  %5441 = vmatpush3.bf16.msra.mxu1 %v5819_v25  ;;  %v953_v55 = vunpack.c.l.bf16 %v937_v26  ;;  %v813_v57 = vsel %vm792_vm5, %v811_v23, %v812_v48  ;;  %v954_v58 = vunpack.c.l.bf16 %v938_v39 }
  0x36   : > { %v984_v59 = vrot.slane %v951_v49, 4  ;;  %v985_v60 = vrot.slane %v952_v50, 4  ;;  %5460 = vmatprep.subr.bf16.mxu1 %v5827_v28  ;;  %v816_v25 = vsel %vm792_vm5, %v814_v53, %v815_v54  ;;  %v955_v0 = vunpack.c.l.bf16 %v939_v44  ;;  %v4877_v50 = vld [vmem:[%s5794_s16 + $0x14] sm:$0x1] }
  0x37   : > { %5426 = vmatprep.mubr.msk.bf16.mxu1 %vm261_vm2, %v827_v52  ;;  %v987_v63 = vrot.slane %v953_v55, 4  ;;  %v956_v1 = vunpack.c.l.bf16 %v940_v51  ;;  %v828_v5 = vpack.c.bf16 %v816_v25, %v813_v57  ;;  %v988_v7 = vrot.slane %v954_v58, 4  ;;  %v4878_v51 = vld [vmem:[%s5794_s16 + $0x18] ss:$8 sps:$4 sm:$0xff]  }
  0x38   : > { %v986_v6 = vsel %vm983_vm6, %v984_v59, %v985_v60  ;;  %v957_v8 = vunpack.c.l.bf16 %v941_v56  ;;  %v958_v10 = vunpack.c.l.bf16 %v942_v61  ;;  %v990_v11 = vrot.slane %v955_v0, 4  ;;  %v4879_v56 = vld [vmem:[%s5794_s16 + $0x1c] sm:$0x1]  ;;  %v5674_v59 = vld [vmem:[%s5794_s16 + $0x18] ss:$8 sps:$4 sm:$0xff]  }
  0x39   : > { %v991_v12 = vrot.slane %v956_v1, 4  ;;  %v959_v13 = vunpack.c.l.bf16 %v943_v62  ;;  %v989_v16 = vsel %vm983_vm6, %v987_v63, %v988_v7  ;;  %v960_v18 = vunpack.c.l.bf16 %v944_v2  ;;  %v4881_v62 = vld [vmem:[%s5794_s16 + $0x24] sm:$0x1]  ;;  %v5675_v63 = vld [vmem:[%s5794_s16 + $0x28] ss:$8 sps:$4 sm:$0xff]  }
  0x3a   : > { %v993_v17 = vrot.slane %v957_v8, 4  ;;  %v961_v19 = vunpack.c.l.bf16 %v945_v3  ;;  %v1016_v22 = vpack.c.bf16 %v989_v16, %v986_v6  ;;  %v994_v31 = vrot.slane %v958_v10, 4  ;;  %v4882_v3 = vld [vmem:[%s5794_s16 + $0x28] ss:$8 sps:$4 sm:$0xff]  }
  0x3b   : > { %v992_v26 = vsel %vm983_vm6, %v990_v11, %v991_v12  ;;  %v962_v32 = vunpack.c.l.bf16 %v946_v9  ;;  %v996_v38 = vrot.slane %v959_v13, 4  ;;  %v997_v39 = vrot.slane %v960_v18, 4  ;;  %v4883_v9 = vld [vmem:[%s5794_s16 + $0x2c] sm:$0x1]  ;;  %v4885_v13 = vld [vmem:[%s5794_s16 + $0x34] sm:$0x1] }
  0x3c   : > { %5427 = vmatmul.mubr.msk.bf16.gmra.mrb[16].mxu1 %vm261_vm2, %v828_v5  ;;  %v999_v40 = vrot.slane %v961_v19, 4  ;;  %v963_v41 = vunpack.c.l.bf16 %v947_v14  ;;  %5432 = vmatprep.mubr.msk.bf16.mxu0 %vm261_vm2, %v1016_v22  ;;  %v995_v43 = vsel %vm983_vm6, %v993_v17, %v994_v31  ;;  %v964_v24 = vunpack.c.l.bf16 %v948_v20  ;;  %v4886_v18 = vld [vmem:[%s5794_s16 + $0x38] ss:$8 sps:$4 sm:$0xff]  }
  0x3d   : > { %v1000_v44 = vrot.slane %v962_v32, 4  ;;  %v965_v45 = vunpack.c.l.bf16 %v949_v21  ;;  %5442 = vmatprep.mubr.msk.bf16.mxu1 %vm261_vm2, %v5673_v15  ;;  %v1017_v23 = vpack.c.bf16 %v995_v43, %v992_v26  ;;  %v998_v47 = vsel %vm983_vm6, %v996_v38, %v997_v39  ;;  %v4887_v26 = vld [vmem:[%s5794_s16 + $0x3c] sm:$0x1]  ;;  %v4889_v39 = vld [vmem:[%s5794_s16 + $0x44] sm:$0x1] }
  0x3e   : > { %v966_v48 = vunpack.c.l.bf16 %v950_v33  ;;  %v1002_v49 = vrot.slane %v963_v41, 4  ;;  %v1003_v53 = vrot.slane %v964_v24, 4  ;;  %v1269_v55 = vunpack.c.l.bf16 %v4874_v42  ;;  %v4895_v43 = vld [vmem:[%s5794_s16 + $0x8] sm:$0xe]  ;;  %v5676_v24 = vld [vmem:[%s5794_s16 + $0x38] ss:$8 sps:$4 sm:$0xff]  }
  0x3f   : > { %v1001_v52 = vsel %vm983_vm6, %v999_v40, %v1000_v44  ;;  %v1005_v54 = vrot.slane %v965_v45, 4  ;;  %5433 = vmatmul.mubr.msk.bf16.vlgmr.msra.gmra.mrb[12].mxu0 %vm261_vm2, %v1017_v23  ;;  %v1270_v60 = vunpack.c.l.bf16 %v4875_v46  ;;  %v1271_v61 = vunpack.c.h.bf16 %v4874_v42  ;;  %v4896_v44 = vld [vmem:[%s5794_s16 + $0xc] sm:$0x1] }
  0x40   : > { %v1018_v57 = vpack.c.bf16 %v1001_v52, %v998_v47  ;;  %v1006_v58 = vrot.slane %v966_v48, 4  ;;  %5451 = vmatpush3.bf16.msra.mxu0 %v5824_v27  ;;  %v1004_v25 = vsel %vm983_vm6, %v1002_v49, %v1003_v53  ;;  %v1272_v0 = vunpack.c.l.bf16 %v4877_v50  ;;  %v4897_v48 = vld [vmem:[%s5794_s16 + $0x10] sm:$0xe]  ;;  %v4898_v53 = vld [vmem:[%s5794_s16 + $0x14] sm:$0x1] }
  0x41   : > { %v1301_v1 = vrot.slane %v1269_v55, 1  ;;  %v1273_v2 = vunpack.c.l.bf16 %v4878_v51  ;;  %v1302_v6 = vrot.slane %v1270_v60, 1  ;;  %v1304_v7 = vrot.slane %v1271_v61, 1  ;;  %5470 = vmatprep.subr.bf16.mxu0 %v5830_v29 }
  0x42   : > { %5436 = vmatprep.mubr.msk.bf16.mxu0 %vm261_vm2, %v1018_v57  ;;  %v1007_v5 = vsel %vm983_vm6, %v1005_v54, %v1006_v58  ;;  %v1274_v8 = vunpack.c.l.bf16 %v4879_v56  ;;  %v1305_v10 = vrot.slane %v1272_v0, 1  ;;  %v1275_v11 = vunpack.c.h.bf16 %v4878_v51  ;;  %v4899_v58 = vld [vmem:[%s5794_s16 + $0x18] sm:$0xe] }
  0x43   : > { %v1019_v27 = vpack.c.bf16 %v1007_v5, %v1004_v25  ;;  %v1276_v12 = vunpack.c.l.bf16 %v4881_v62  ;;  %v1303_v14 = vsel %vm410_vm3, %v1301_v1, %v1302_v6  ;;  %v1307_v15 = vrot.slane %v1273_v2, 1  ;;  %v4902_v5 = vld [vmem:[%s5794_s16 + $0x24] sm:$0x1]  ;;  %v4903_v6 = vld [vmem:[%s5794_s16 + $0x28] sm:$0xe] }
  0x44   : > { %5443 = vmatmul.mubr.msk.bf16.vlgmr.msra.gmra.mrb[20].mxu1 %vm261_vm2, %v5674_v59  ;;  %v1308_v16 = vrot.slane %v1274_v8, 1  ;;  %v1277_v17 = vunpack.c.l.bf16 %v4882_v3  ;;  %v1306_v19 = vsel %vm410_vm3, %v1304_v7, %v1305_v10  ;;  %v1310_v20 = vrot.slane %v1275_v11, 1  ;;  %v4900_v59 = vld [vmem:[%s5794_s16 + $0x1c] sm:$0x1]  ;;  %v4904_v10 = vld [vmem:[%s5794_s16 + $0x2c] sm:$0x1] }
  0x45   : > { %5446 = vmatprep.mubr.msk.bf16.mxu1 %vm261_vm2, %v5675_v63  ;;  %5461 = vmatpush3.bf16.msra.mxu1 %v5827_v28  ;;  %v1311_v21 = vrot.slane %v1276_v12, 1  ;;  %v1278_v22 = vunpack.c.l.bf16 %v4883_v9  ;;  %v1333_v31 = vpack.c.bf16 %v1306_v19, %v1303_v14  ;;  %v1279_v33 = vunpack.c.h.bf16 %v4882_v3  ;;  %v4901_v63 = vld [vmem:[%s5794_s16 + $0x20] sm:$0xe]  ;;  %v4905_v11 = vld [vmem:[%s5794_s16 + $0x30] sm:$0xe] }
  0x46   : > { %v1309_v32 = vsel %vm410_vm3, %v1307_v15, %v1308_v16  ;;  %v1280_v38 = vunpack.c.l.bf16 %v4885_v13  ;;  %5480 = vmatprep.subr.bf16.mxu1 %v5833_v30  ;;  %v1313_v40 = vrot.slane %v1277_v17, 1  ;;  %v1281_v42 = vunpack.c.l.bf16 %v4886_v18  ;;  %v4906_v16 = vld [vmem:[%s5794_s16 + $0x34] sm:$0x1]  ;;  %v4907_v17 = vld [vmem:[%s5794_s16 + $0x38] sm:$0xe] }
  0x47   : > { %v1312_v28 = vsel %vm410_vm3, %v1310_v20, %v1311_v21  ;;  %v1314_v41 = vrot.slane %v1278_v22, 1  ;;  %5437 = vmatmul.mubr.msk.bf16.gmra.mrb[16].mxu0 %vm261_vm2, %v1019_v27  ;;  %v1316_v46 = vrot.slane %v1279_v33, 1  ;;  %v1282_v47 = vunpack.c.l.bf16 %v4887_v26  ;;  %v4908_v22 = vld [vmem:[%s5794_s16 + $0x3c] sm:$0x1]  ;;  %v4909_v26 = vld [vmem:[%s5794_s16 + $0x40] sm:$0xe] }
  0x48   : > { %v1334_v45 = vpack.c.bf16 %v1312_v28, %v1309_v32  ;;  %v1317_v23 = vrot.slane %v1280_v38, 1  ;;  %5452 = vmatprep.mubr.msk.bf16.mxu0 %vm261_vm2, %v1333_v31  ;;  %v1283_v50 = vunpack.c.h.bf16 %v4886_v18  ;;  %v1284_v51 = vunpack.c.l.bf16 %v4889_v39  ;;  %v4910_v39 = vld [vmem:[%s5794_s16 + $0x44] sm:$0x1]  ;;  %v4916_v28 = vld [vmem:[%s5794_s16 + $0x8] sm:$0xe] }
  0x49   : > { %v1315_v49 = vsel %vm410_vm3, %v1313_v40, %v1314_v41  ;;  %v1319_v52 = vrot.slane %v1281_v42, 1  ;;  %v1320_v55 = vrot.slane %v1282_v47, 1  ;;  %v1459_v56 = vunpack.c.l.bf16 %v4895_v43 }
  0x4a   : > { %v1318_v54 = vsel %vm410_vm3, %v1316_v46, %v1317_v23  ;;  %v1460_v57 = vunpack.c.l.bf16 %v4896_v44  ;;  %v1322_v61 = vrot.slane %v1283_v50, 1  ;;  %v1323_v62 = vrot.slane %v1284_v51, 1  ;;  %v4917_v44 = vld [vmem:[%s5794_s16 + $0xc] sm:$0x3] }
  0x4b   : > { %v1335_v60 = vpack.c.bf16 %v1318_v54, %v1315_v49  ;;  %v1461_v25 = vunpack.c.l.bf16 %v4897_v48  ;;  %v6004_v0 = vsel %vm410_vm3, %v1319_v52, %v1320_v55  ;;  %v1462_v1 = vunpack.c.l.bf16 %v4898_v53  ;;  %v4919_v48 = vld [vmem:[%s5794_s16 + $0x14] sm:$0x3]  ;;  %v4920_v52 = vld [vmem:[%s5794_s16 + $0x18] sm:$0xe]  ;;  %v4921_v53 = vld [vmem:[%s5794_s16 + $0x1c] sm:$0x3] }
  0x4c   : > { %5447 = vmatmul.mubr.msk.bf16.gmra.mrb[24].mxu1 %vm261_vm2, %v5676_v24  ;;  %v1491_v2 = vrot.slane %v1459_v56, 2  ;;  %v1492_v3 = vrot.slane %v1460_v57, 2  ;;  %v6009_v7 = vsel %vm410_vm3, %v1322_v61, %v1323_v62  ;;  %v1463_v9 = vunpack.c.l.bf16 %v4899_v58  ;;  %v4918_v24 = vld [vmem:[%s5794_s16 + $0x10] sm:$0xe]  ;;  %v4922_v58 = vld [vmem:[%s5794_s16 + $0x20] sm:$0xe] }
  0x4d   : > { %v1494_v8 = vrot.slane %v1461_v25, 2  ;;  %v1464_v27 = vunpack.c.l.bf16 %v4900_v59  ;;  %v1336_v12 = vpack.c.bf16 %v6009_v7, %v6004_v0  ;;  %v1495_v14 = vrot.slane %v1462_v1, 2  ;;  %v4923_v59 = vld [vmem:[%s5794_s16 + $0x24] sm:$0x3] }
  0x4e   : > { %v1493_v13 = vsel %vm601_vm4, %v1491_v2, %v1492_v3  ;;  %v1465_v15 = vunpack.c.l.bf16 %v4901_v63  ;;  %v1466_v18 = vunpack.c.l.bf16 %v4902_v5  ;;  %v1497_v19 = vrot.slane %v1463_v9, 2  ;;  %v4924_v63 = vld [vmem:[%s5794_s16 + $0x28] sm:$0xe] }
  0x4f   : > { %v1498_v20 = vrot.slane %v1464_v27, 2  ;;  %v1467_v21 = vunpack.c.l.bf16 %v4903_v6  ;;  %5453 = vmatmul.mubr.msk.bf16.vlgmr.msra.gmra.mrb[20].mxu0 %vm261_vm2, %v1334_v45  ;;  %v1496_v31 = vsel %vm601_vm4, %v1494_v8, %v1495_v14  ;;  %v1468_v33 = vunpack.c.l.bf16 %v4904_v10  ;;  %v4925_v6 = vld [vmem:[%s5794_s16 + $0x2c] sm:$0x3] }
  0x50   : > { %v1500_v32 = vrot.slane %v1465_v15, 2  ;;  %v1469_v38 = vunpack.c.l.bf16 %v4905_v11  ;;  %5456 = vmatprep.mubr.msk.bf16.mxu0 %vm261_vm2, %v1335_v60  ;;  %5471 = vmatpush3.bf16.msra.mxu0 %v5830_v29  ;;  %v1523_v40 = vpack.c.bf16 %v1496_v31, %v1493_v13  ;;  %v1501_v42 = vrot.slane %v1466_v18, 2  ;;  %v4926_v11 = vld [vmem:[%s5794_s16 + $0x30] sm:$0xe] }
  0x51   : > { %v1499_v41 = vsel %vm601_vm4, %v1497_v19, %v1498_v20  ;;  %v1470_v43 = vunpack.c.l.bf16 %v4906_v16  ;;  %v1503_v45 = vrot.slane %v1467_v21, 2  ;;  %v1504_v46 = vrot.slane %v1468_v33, 2  ;;  %5490 = vmatprep.subr.bf16.mxu0 %v5840_v34 }
  0x52   : > { %v1506_v23 = vrot.slane %v1469_v38, 2  ;;  %v1471_v47 = vunpack.c.l.bf16 %v4907_v17  ;;  %5462 = vmatprep.mubr.msk.bf16.mxu1 %vm261_vm2, %v1523_v40  ;;  %v1502_v29 = vsel %vm601_vm4, %v1500_v32, %v1501_v42  ;;  %v1472_v50 = vunpack.c.l.bf16 %v4908_v22  ;;  %v4928_v22 = vld [vmem:[%s5794_s16 + $0x38] sm:$0xe]  ;;  %v4929_v38 = vld [vmem:[%s5794_s16 + $0x3c] sm:$0x3] }
  0x53   : > { %v1507_v49 = vrot.slane %v1470_v43, 2  ;;  %v1473_v51 = vunpack.c.l.bf16 %v4909_v26  ;;  %v1524_v54 = vpack.c.bf16 %v1502_v29, %v1499_v41  ;;  %v1505_v55 = vsel %vm601_vm4, %v1503_v45, %v1504_v46  ;;  %v4930_v42 = vld [vmem:[%s5794_s16 + $0x40] sm:$0xe]  ;;  %v4931_v43 = vld [vmem:[%s5794_s16 + $0x44] sm:$0x3] }
  0x54   : > { %v1474_v56 = vunpack.c.l.bf16 %v4910_v39  ;;  %v1509_v57 = vrot.slane %v1471_v47, 2  ;;  %v1510_v61 = vrot.slane %v1472_v50, 2  ;;  %v1649_v25 = vunpack.c.l.bf16 %v4916_v28  ;;  %v4938_v47 = vld [vmem:[%s5794_s16 + $0xc] sm:$0x3] }
  0x55   : > { %v1508_v60 = vsel %vm601_vm4, %v1506_v23, %v1507_v49  ;;  %v1512_v62 = vrot.slane %v1473_v51, 2  ;;  %5463 = vmatmul.mubr.msk.bf16.vlgmr.msra.gmra.mrb[28].mxu1 %vm261_vm2, %v1524_v54  ;;  %v1650_v3 = vunpack.c.l.bf16 %v4917_v44  ;;  %v1651_v5 = vunpack.c.l.bf16 %v4918_v24  ;;  %v4937_v23 = vld [vmem:[%s5794_s16 + $0x8] sm:$0xc]  ;;  %v4939_v51 = vld [vmem:[%s5794_s16 + $0x10] sm:$0xc] }
  0x56   : > { %v1525_v1 = vpack.c.bf16 %v1508_v60, %v1505_v55  ;;  %v1513_v2 = vrot.slane %v1474_v56, 2  ;;  %5481 = vmatpush3.bf16.msra.mxu1 %v5833_v30  ;;  %v1511_v8 = vsel %vm601_vm4, %v1509_v57, %v1510_v61  ;;  %v1652_v9 = vunpack.c.l.bf16 %v4919_v48  ;;  %v4927_v30 = vld [vmem:[%s5794_s16 + $0x34] sm:$0x3]  ;;  %v4941_v61 = vld [vmem:[%s5794_s16 + $0x18] sm:$0xc] }
  0x57   : > { %v1681_v27 = vrot.slane %v1649_v25, 3  ;;  %v1653_v10 = vunpack.c.l.bf16 %v4920_v52  ;;  %5457 = vmatmul.mubr.msk.bf16.gmra.mrb[24].mxu0 %vm261_vm2, %v1336_v12  ;;  %v1682_v14 = vrot.slane %v1650_v3, 3  ;;  %v1684_v15 = vrot.slane %v1651_v5, 3  ;;  %5500 = vmatprep.subr.bf16.mxu1 %v5843_v35  ;;  %v4940_v56 = vld [vmem:[%s5794_s16 + $0x14] sm:$0x3] }
  0x58   : > { %5466 = vmatprep.mubr.msk.bf16.mxu1 %vm261_vm2, %v1525_v1  ;;  %v1514_v13 = vsel %vm601_vm4, %v1512_v62, %v1513_v2  ;;  %v1654_v16 = vunpack.c.l.bf16 %v4921_v53  ;;  %v1685_v18 = vrot.slane %v1652_v9, 3  ;;  %v1655_v19 = vunpack.c.l.bf16 %v4922_v58  ;;  %v4942_v62 = vld [vmem:[%s5794_s16 + $0x1c] sm:$0x3]  ;;  %v4943_v3 = vld [vmem:[%s5794_s16 + $0x20] sm:$0xc] }
  0x59   : > { %v1526_v17 = vpack.c.bf16 %v1514_v13, %v1511_v8  ;;  %v1656_v20 = vunpack.c.l.bf16 %v4923_v59  ;;  %v1683_v0 = vsel %vm792_vm5, %v1681_v27, %v1682_v14  ;;  %v1687_v7 = vrot.slane %v1653_v10, 3  ;;  %v4944_v27 = vld [vmem:[%s5794_s16 + $0x24] sm:$0x3]  ;;  %v4945_v10 = vld [vmem:[%s5794_s16 + $0x28] sm:$0xc] }
  0x5a   : > { %v1688_v12 = vrot.slane %v1654_v16, 3  ;;  %v1657_v21 = vunpack.c.l.bf16 %v4924_v63  ;;  %v1686_v26 = vsel %vm792_vm5, %v1684_v15, %v1685_v18  ;;  %v1690_v31 = vrot.slane %v1655_v19, 3  ;;  %v4946_v15 = vld [vmem:[%s5794_s16 + $0x2c] sm:$0x3]  ;;  %v4947_v16 = vld [vmem:[%s5794_s16 + $0x30] sm:$0xc] }
  0x5b   : > { %v1691_v32 = vrot.slane %v1656_v20, 3  ;;  %v1658_v33 = vunpack.c.l.bf16 %v4925_v6  ;;  %v1713_v39 = vpack.c.bf16 %v1686_v26, %v1683_v0  ;;  %v1659_v40 = vunpack.c.l.bf16 %v4926_v11  ;;  %v4948_v20 = vld [vmem:[%s5794_s16 + $0x34] sm:$0x3]  ;;  %v5677_v26 = vld [vmem:[%s5794_s16 + $0x10] ss:$8 sps:$4 sm:$0xff]  }
  0x5c   : > { %v1689_v28 = vsel %vm792_vm5, %v1687_v7, %v1688_v12  ;;  %v1660_v41 = vunpack.c.l.bf16 %v4927_v30  ;;  %v1693_v24 = vrot.slane %v1657_v21, 3  ;;  %v1661_v46 = vunpack.c.l.bf16 %v4928_v22  ;;  %v4949_v22 = vld [vmem:[%s5794_s16 + $0x38] sm:$0xc] }
  0x5d   : > { %v1692_v44 = vsel %vm792_vm5, %v1690_v31, %v1691_v32  ;;  %v1694_v45 = vrot.slane %v1658_v33, 3  ;;  %5467 = vmatmul.mubr.msk.bf16.gmra.mrb[32].mxu1 %vm261_vm2, %v1526_v17  ;;  %5472 = vmatprep.mubr.msk.bf16.mxu0 %vm261_vm2, %v1713_v39  ;;  %v1696_v29 = vrot.slane %v1659_v40, 3  ;;  %v1662_v50 = vunpack.c.l.bf16 %v4929_v38  ;;  %v4950_v39 = vld [vmem:[%s5794_s16 + $0x3c] sm:$0x3] }
  0x5e   : > { %v1714_v48 = vpack.c.bf16 %v1692_v44, %v1689_v28  ;;  %v1697_v49 = vrot.slane %v1660_v41, 3  ;;  %v1663_v53 = vunpack.c.l.bf16 %v4930_v42  ;;  %v1664_v54 = vunpack.c.l.bf16 %v4931_v43  ;;  %v4951_v28 = vld [vmem:[%s5794_s16 + $0x40] sm:$0xc]  ;;  %v4952_v44 = vld [vmem:[%s5794_s16 + $0x44] sm:$0x3] }
  0x5f   : > { %v1695_v52 = vsel %vm792_vm5, %v1693_v24, %v1694_v45  ;;  %v1699_v55 = vrot.slane %v1661_v46, 3  ;;  %v1700_v58 = vrot.slane %v1662_v50, 3  ;;  %v1839_v59 = vunpack.c.l.bf16 %v4937_v23 }
  0x60   : > { %5473 = vmatmul.mubr.msk.bf16.vlgmr.msra.gmra.mrb[28].mxu0 %vm261_vm2, %v1714_v48  ;;  %v1698_v57 = vsel %vm792_vm5, %v1696_v29, %v1697_v49  ;;  %v1840_v60 = vunpack.c.l.bf16 %v4938_v47  ;;  %v1702_v63 = vrot.slane %v1663_v53, 3  ;;  %v1703_v1 = vrot.slane %v1664_v54, 3  ;;  %v4975_v47 = vld [vmem:[%s5794_s16 + $0x10] ss:$8 sps:$4 sm:$0xff]  }
  0x61   : > { %v1715_v25 = vpack.c.bf16 %v1698_v57, %v1695_v52  ;;  %5491 = vmatpush3.bf16.msra.mxu0 %v5840_v34  ;;  %v1841_v2 = vunpack.c.l.bf16 %v4939_v51  ;;  %v1701_v5 = vsel %vm792_vm5, %v1699_v55, %v1700_v58  ;;  %v1842_v6 = vunpack.c.l.bf16 %v4940_v56  ;;  %v4976_v51 = vld [vmem:[%s5794_s16 + $0x14] sm:$0x1]  ;;  %v4978_v56 = vld [vmem:[%s5794_s16 + $0x1c] sm:$0x1]  ;;  %v4979_v57 = vld [vmem:[%s5794_s16 + $0x20] ss:$8 sps:$4 sm:$0xff]  }
  0x62   : > { %v1871_v8 = vrot.slane %v1839_v59, 4  ;;  %v1872_v9 = vrot.slane %v1840_v60, 4  ;;  %5510 = vmatprep.subr.bf16.mxu0 %v5846_v36  ;;  %v1704_v34 = vsel %vm792_vm5, %v1702_v63, %v1703_v1  ;;  %v1843_v13 = vunpack.c.l.bf16 %v4941_v61  ;;  %v5678_v1 = vld [vmem:[%s5794_s16 + $0x20] ss:$8 sps:$4 sm:$0xff]  }
  0x63   : > { %5476 = vmatprep.mubr.msk.bf16.mxu0 %vm261_vm2, %v1715_v25  ;;  %v1874_v11 = vrot.slane %v1841_v2, 4  ;;  %v1844_v14 = vunpack.c.l.bf16 %v4942_v62  ;;  %v1716_v30 = vpack.c.bf16 %v1704_v34, %v1701_v5  ;;  %v1875_v18 = vrot.slane %v1842_v6, 4  ;;  %v4980_v62 = vld [vmem:[%s5794_s16 + $0x24] sm:$0x1]  ;;  %v4982_v5 = vld [vmem:[%s5794_s16 + $0x2c] sm:$0x1] }
  0x64   : > { %v1873_v17 = vsel %vm983_vm6, %v1871_v8, %v1872_v9  ;;  %v1845_v19 = vunpack.c.l.bf16 %v4943_v3  ;;  %v1846_v0 = vunpack.c.l.bf16 %v4944_v27  ;;  %v1877_v7 = vrot.slane %v1843_v13, 4  ;;  %v5679_v8 = vld [vmem:[%s5794_s16 + $0x30] ss:$8 sps:$4 sm:$0xff]  }
  0x65   : > { %v1878_v12 = vrot.slane %v1844_v14, 4  ;;  %v1847_v21 = vunpack.c.l.bf16 %v4945_v10  ;;  %v1876_v31 = vsel %vm983_vm6, %v1874_v11, %v1875_v18  ;;  %v1848_v33 = vunpack.c.l.bf16 %v4946_v15  ;;  %v4983_v34 = vld [vmem:[%s5794_s16 + $0x30] ss:$8 sps:$4 sm:$0xff]  }
  0x66   : > { %v1880_v32 = vrot.slane %v1845_v19, 4  ;;  %v1849_v38 = vunpack.c.l.bf16 %v4947_v16  ;;  %v1903_v40 = vpack.c.bf16 %v1876_v31, %v1873_v17  ;;  %v1881_v42 = vrot.slane %v1846_v0, 4  ;;  %v4984_v16 = vld [vmem:[%s5794_s16 + $0x34] sm:$0x1]  ;;  %v4986_v19 = vld [vmem:[%s5794_s16 + $0x3c] sm:$0x1] }
  0x67   : > { %v1879_v41 = vsel %vm983_vm6, %v1877_v7, %v1878_v12  ;;  %v1850_v43 = vunpack.c.l.bf16 %v4948_v20  ;;  %v1883_v24 = vrot.slane %v1847_v21, 4  ;;  %v1884_v45 = vrot.slane %v1848_v33, 4  ;;  %v4987_v21 = vld [vmem:[%s5794_s16 + $0x40] ss:$8 sps:$4 sm:$0xff]   ;;  %v4988_v33 = vld [vmem:[%s5794_s16 + $0x44] sm:$0x1] }
  0x68   : > { %5477 = vmatmul.mubr.msk.bf16.gmra.mrb[32].mxu0 %vm261_vm2, %v1716_v30  ;;  %v1886_v46 = vrot.slane %v1849_v38, 4  ;;  %v1851_v23 = vunpack.c.l.bf16 %v4949_v22  ;;  %5482 = vmatprep.mubr.msk.bf16.mxu1 %vm261_vm2, %v1903_v40  ;;  %v1882_v48 = vsel %vm983_vm6, %v1880_v32, %v1881_v42  ;;  %v1852_v49 = vunpack.c.l.bf16 %v4950_v39  ;;  %v5680_v38 = vld [vmem:[%s5794_s16 + $0x40] ss:$8 sps:$4 sm:$0xff]   ;;  %v4990_v42 = vld [vmem:[%s5794_s16 + $0x4c] sm:$0x1] }
  0x69   : > { %v1887_v29 = vrot.slane %v1850_v43, 4  ;;  %v1853_v50 = vunpack.c.l.bf16 %v4951_v28  ;;  %5492 = vmatprep.mubr.msk.bf16.mxu0 %vm261_vm2, %v5677_v26  ;;  %v1904_v52 = vpack.c.bf16 %v1882_v48, %v1879_v41  ;;  %v1885_v53 = vsel %vm983_vm6, %v1883_v24, %v1884_v45  ;;  %v4996_v45 = vld [vmem:[%s5794_s16 + $0x10] sm:$0xe] }
  0x6a   : > { %v1854_v54 = vunpack.c.l.bf16 %v4952_v44  ;;  %v1889_v55 = vrot.slane %v1851_v23, 4  ;;  %v1890_v59 = vrot.slane %v1852_v49, 4  ;;  %v2156_v61 = vunpack.c.l.bf16 %v4975_v47  ;;  %v4998_v49 = vld [vmem:[%s5794_s16 + $0x18] sm:$0xe] }
  0x6b   : > { %v1888_v58 = vsel %vm983_vm6, %v1886_v46, %v1887_v29  ;;  %v1892_v60 = vrot.slane %v1853_v50, 4  ;;  %5483 = vmatmul.mubr.msk.bf16.vlgmr.msra.gmra.mrb[36].mxu1 %vm261_vm2, %v1904_v52  ;;  %v2157_v2 = vunpack.c.l.bf16 %v4976_v51  ;;  %v2158_v3 = vunpack.c.h.bf16 %v4975_v47  ;;  %v4997_v46 = vld [vmem:[%s5794_s16 + $0x14] sm:$0x1]  ;;  %v4999_v50 = vld [vmem:[%s5794_s16 + $0x1c] sm:$0x1] }
  0x6c   : > { %v1905_v25 = vpack.c.bf16 %v1888_v58, %v1885_v53  ;;  %v1893_v63 = vrot.slane %v1854_v54, 4  ;;  %5501 = vmatpush3.bf16.msra.mxu1 %v5843_v35  ;;  %v1891_v6 = vsel %vm983_vm6, %v1889_v55, %v1890_v59  ;;  %v2159_v9 = vunpack.c.l.bf16 %v4978_v56  ;;  %v5000_v55 = vld [vmem:[%s5794_s16 + $0x20] sm:$0xe]  ;;  %v5001_v56 = vld [vmem:[%s5794_s16 + $0x24] sm:$0x1] }
  0x6d   : > { %v2188_v27 = vrot.slane %v2156_v61, 1  ;;  %v2160_v10 = vunpack.c.l.bf16 %v4979_v57  ;;  %v2189_v13 = vrot.slane %v2157_v2, 1  ;;  %v2191_v14 = vrot.slane %v2158_v3, 1  ;;  %5520 = vmatprep.subr.bf16.mxu1 %v5849_v37  ;;  %v5002_v61 = vld [vmem:[%s5794_s16 + $0x28] sm:$0xe] }
  0x6e   : > { %5486 = vmatprep.mubr.msk.bf16.mxu1 %vm261_vm2, %v1905_v25  ;;  %v1894_v11 = vsel %vm983_vm6, %v1892_v60, %v1893_v63  ;;  %v2161_v15 = vunpack.c.l.bf16 %v4980_v62  ;;  %v2192_v30 = vrot.slane %v2159_v9, 1  ;;  %v2162_v17 = vunpack.c.h.bf16 %v4979_v57  ;;  %v5003_v62 = vld [vmem:[%s5794_s16 + $0x2c] sm:$0x1]  ;;  %v5054_v3 = vld [vmem:[%s6854_s1 + $0x1c] sm:$0x3] }
  0x6f   : > { %v1906_v35 = vpack.c.bf16 %v1894_v11, %v1891_v6  ;;  %v2163_v18 = vunpack.c.l.bf16 %v4982_v5  ;;  %v2190_v20 = vsel %vm410_vm3, %v2188_v27, %v2189_v13  ;;  %v2194_v0 = vrot.slane %v2160_v10, 1  ;;  %v5004_v5 = vld [vmem:[%s5794_s16 + $0x30] sm:$0xe]  ;;  %v5005_v10 = vld [vmem:[%s5794_s16 + $0x34] sm:$0x1] }
  0x70   : > { %5493 = vmatmul.mubr.msk.bf16.vlgmr.msra.gmra.mrb[36].mxu0 %vm261_vm2, %v5678_v1  ;;  %v2195_v7 = vrot.slane %v2161_v15, 1  ;;  %v2164_v12 = vunpack.c.l.bf16 %v4983_v34  ;;  %v2193_v22 = vsel %vm410_vm3, %v2191_v14, %v2192_v30  ;;  %v2197_v26 = vrot.slane %v2162_v17, 1 }
  0x71   : > { %5496 = vmatprep.mubr.msk.bf16.mxu0 %vm261_vm2, %v5679_v8  ;;  %5511 = vmatpush3.bf16.msra.mxu0 %v5846_v36  ;;  %v2198_v31 = vrot.slane %v2163_v18, 1  ;;  %v2165_v32 = vunpack.c.l.bf16 %v4984_v16  ;;  %v2220_v39 = vpack.c.bf16 %v2193_v22, %v2190_v20  ;;  %v2166_v40 = vunpack.c.h.bf16 %v4983_v34  ;;  %v5006_v34 = vld [vmem:[%s5794_s16 + $0x38] sm:$0xe]  ;;  %v5007_v16 = vld [vmem:[%s5794_s16 + $0x3c] sm:$0x1] }
  0x72   : > { %v2196_v28 = vsel %vm410_vm3, %v2194_v0, %v2195_v7  ;;  %v2167_v41 = vunpack.c.l.bf16 %v4986_v19  ;;  %v2200_v36 = vrot.slane %v2164_v12, 1  ;;  %v2168_v24 = vunpack.c.l.bf16 %v4987_v21  ;;  %v5009_v20 = vld [vmem:[%s5794_s16 + $0x44] sm:$0x1]  ;;  %v5010_v0 = vld [vmem:[%s5794_s16 + $0x48] sm:$0xe] }
  0x73   : > { %v2199_v43 = vsel %vm410_vm3, %v2197_v26, %v2198_v31  ;;  %v2201_v44 = vrot.slane %v2165_v32, 1  ;;  %5487 = vmatmul.mubr.msk.bf16.gmra.mrb[40].mxu1 %vm261_vm2, %v1906_v35  ;;  %v2203_v47 = vrot.slane %v2166_v40, 1  ;;  %v2169_v29 = vunpack.c.l.bf16 %v4988_v33  ;;  %v5008_v35 = vld [vmem:[%s5794_s16 + $0x40] sm:$0xe] }
  0x74   : > { %v2221_v23 = vpack.c.bf16 %v2199_v43, %v2196_v28  ;;  %v2204_v48 = vrot.slane %v2167_v41, 1  ;;  %5502 = vmatprep.mubr.msk.bf16.mxu1 %vm261_vm2, %v2220_v39  ;;  %v2170_v52 = vunpack.c.h.bf16 %v4987_v21  ;;  %v2171_v53 = vunpack.c.l.bf16 %v4990_v42  ;;  %v5017_v39 = vld [vmem:[%s5794_s16 + $0x10] sm:$0xe] }
  0x75   : > { %v2202_v51 = vsel %vm410_vm3, %v2200_v36, %v2201_v44  ;;  %v2206_v54 = vrot.slane %v2168_v24, 1  ;;  %v2207_v58 = vrot.slane %v2169_v29, 1  ;;  %v2346_v59 = vunpack.c.l.bf16 %v4996_v45  ;;  %v5018_v45 = vld [vmem:[%s5794_s16 + $0x14] sm:$0x3] }
  0x76   : > { %v2205_v57 = vsel %vm410_vm3, %v2203_v47, %v2204_v48  ;;  %v2347_v60 = vunpack.c.l.bf16 %v4997_v46  ;;  %v2209_v63 = vrot.slane %v2170_v52, 1  ;;  %v2210_v1 = vrot.slane %v2171_v53, 1  ;;  %v5019_v48 = vld [vmem:[%s5794_s16 + $0x18] sm:$0xe]  ;;  %v5020_v52 = vld [vmem:[%s5794_s16 + $0x1c] sm:$0x3] }
  0x77   : > { %v2222_v25 = vpack.c.bf16 %v2205_v57, %v2202_v51  ;;  %v2348_v2 = vunpack.c.l.bf16 %v4998_v49  ;;  %v6143_v6 = vsel %vm410_vm3, %v2206_v54, %v2207_v58  ;;  %v2349_v8 = vunpack.c.l.bf16 %v4999_v50  ;;  %v5021_v57 = vld [vmem:[%s5794_s16 + $0x20] sm:$0xe] }
  0x78   : > { %5497 = vmatmul.mubr.msk.bf16.gmra.mrb[40].mxu0 %vm261_vm2, %v5680_v38  ;;  %v2378_v9 = vrot.slane %v2346_v59, 2  ;;  %v2379_v27 = vrot.slane %v2347_v60, 2  ;;  %v6148_v11 = vsel %vm410_vm3, %v2209_v63, %v2210_v1  ;;  %v2350_v14 = vunpack.c.l.bf16 %v5000_v55  ;;  %v5011_v38 = vld [vmem:[%s5794_s16 + $0x4c] sm:$0x1] }
  0x79   : > { %v2381_v13 = vrot.slane %v2348_v2, 2  ;;  %v2351_v15 = vunpack.c.l.bf16 %v5001_v56  ;;  %v2223_v30 = vpack.c.bf16 %v6148_v11, %v6143_v6  ;;  %v2382_v18 = vrot.slane %v2349_v8, 2  ;;  %v5071_v6 = vld [vmem:[%s6854_s1 + $0x1e] sm:$0x3] }
  0x7a   : > { %v2380_v17 = vsel %vm601_vm4, %v2378_v9, %v2379_v27  ;;  %v2352_v19 = vunpack.c.l.bf16 %v5002_v61  ;;  %v2353_v7 = vunpack.c.l.bf16 %v5003_v62  ;;  %v2384_v12 = vrot.slane %v2350_v14, 2  ;;  %v5022_v62 = vld [vmem:[%s5794_s16 + $0x24] sm:$0x3] }
  0x7b   : > { %v2385_v21 = vrot.slane %v2351_v15, 2  ;;  %v2817_v22 = vand.u32 %v5054_v3, %v5759_v4  ;;  %5503 = vmatmul.mubr.msk.bf16.vlgmr.msra.gmra.mrb[44].mxu1 %vm261_vm2, %v2221_v23  ;;  %v2383_v26 = vsel %vm601_vm4, %v2381_v13, %v2382_v18  ;;  %v2354_v32 = vunpack.c.l.bf16 %v5004_v5  ;;  %v5024_v5 = vld [vmem:[%s5794_s16 + $0x2c] sm:$0x3] }
  0x7c   : > { %v2387_v31 = vrot.slane %v2352_v19, 2  ;;  %v2355_v33 = vunpack.c.l.bf16 %v5005_v10  ;;  %5506 = vmatprep.mubr.msk.bf16.mxu1 %vm261_vm2, %v2222_v25  ;;  %5521 = vmatpush3.bf16.msra.mxu1 %v5849_v37  ;;  %v2410_v28 = vpack.c.bf16 %v2383_v26, %v2380_v17  ;;  %v2388_v41 = vrot.slane %v2353_v7, 2  ;;  %v5023_v25 = vld [vmem:[%s5794_s16 + $0x28] sm:$0xe]  ;;  %v5030_v26 = vld [vmem:[%s5794_s16 + $0x44] sm:$0x3] }
  0x7d   : > { %v2386_v40 = vsel %vm601_vm4, %v2384_v12, %v2385_v21  ;;  %v2356_v42 = vunpack.c.l.bf16 %v5006_v34  ;;  %5530 = vmatprep.subr.bf16.mxu0 %v2817_v22  ;;  %v2357_v43 = vunpack.c.l.bf16 %v5007_v16  ;;  %v2390_v36 = vrot.slane %v2354_v32, 2  ;;  %v5025_v34 = vld [vmem:[%s5794_s16 + $0x30] sm:$0xe]  ;;  %v5026_v16 = vld [vmem:[%s5794_s16 + $0x34] sm:$0x3] }
  0x7e   : > { %v2391_v44 = vrot.slane %v2355_v33, 2  ;;  %v2358_v24 = vunpack.c.l.bf16 %v5008_v35  ;;  %5512 = vmatprep.mubr.msk.bf16.mxu0 %vm261_vm2, %v2410_v28  ;;  %v2389_v46 = vsel %vm601_vm4, %v2387_v31, %v2388_v41  ;;  %v2359_v37 = vunpack.c.l.bf16 %v5009_v20  ;;  %v5027_v35 = vld [vmem:[%s5794_s16 + $0x38] sm:$0xe]  ;;  %v5028_v20 = vld [vmem:[%s5794_s16 + $0x3c] sm:$0x3] }
  0x7f   : > { %v2393_v23 = vrot.slane %v2356_v42, 2  ;;  %v2360_v47 = vunpack.c.l.bf16 %v5010_v0  ;;  %v2411_v29 = vpack.c.bf16 %v2389_v46, %v2386_v40  ;;  %v2394_v50 = vrot.slane %v2357_v43, 2  ;;  %v5029_v0 = vld [vmem:[%s5794_s16 + $0x40] sm:$0xe]  ;;  %v5032_v28 = vld [vmem:[%s5794_s16 + $0x4c] sm:$0x3] }
  0x80   : > { %v2392_v49 = vsel %vm601_vm4, %v2390_v36, %v2391_v44  ;;  %v2361_v51 = vunpack.c.l.bf16 %v5011_v38  ;;  %v2396_v53 = vrot.slane %v2358_v24, 2  ;;  %v2397_v54 = vrot.slane %v2359_v37, 2  ;;  %v5038_v36 = vld [vmem:[%s5794_s16 + $0x10] sm:$0xc] }
  0x81   : > { %v2399_v55 = vrot.slane %v2360_v47, 2  ;;  %v2536_v56 = vunpack.c.l.bf16 %v5017_v39  ;;  %5513 = vmatmul.mubr.msk.bf16.vlgmr.msra.gmra.mrb[44].mxu0 %vm261_vm2, %v2411_v29  ;;  %v2395_v58 = vsel %vm601_vm4, %v2393_v23, %v2394_v50  ;;  %v2537_v60 = vunpack.c.l.bf16 %v5018_v45  ;;  %v5031_v39 = vld [vmem:[%s5794_s16 + $0x48] sm:$0xe]  ;;  %v5039_v23 = vld [vmem:[%s5794_s16 + $0x14] sm:$0x3] }
  0x82   : > { %v2400_v59 = vrot.slane %v2361_v51, 2  ;;  %v2538_v61 = vunpack.c.l.bf16 %v5019_v48  ;;  %v2412_v63 = vpack.c.bf16 %v2395_v58, %v2392_v49  ;;  %5531 = vmatpush3.bf16.msra.mxu0 %v2817_v22  ;;  %v2398_v1 = vsel %vm601_vm4, %v2396_v53, %v2397_v54  ;;  %v5040_v49 = vld [vmem:[%s5794_s16 + $0x18] sm:$0xc]  ;;  %v5041_v50 = vld [vmem:[%s5794_s16 + $0x1c] sm:$0x3] }
  0x83   : > { %v2539_v2 = vunpack.c.l.bf16 %v5020_v52  ;;  %v2568_v3 = vrot.slane %v2536_v56, 3  ;;  %5507 = vmatmul.mubr.msk.bf16.gmra.mrb[48].mxu1 %vm261_vm2, %v2223_v30  ;;  %v2569_v9 = vrot.slane %v2537_v60, 3  ;;  %v2540_v10 = vunpack.c.l.bf16 %v5021_v57  ;;  %v5043_v60 = vld [vmem:[%s5794_s16 + $0x24] sm:$0x3] }
  0x84   : > { %v2401_v8 = vsel %vm601_vm4, %v2399_v55, %v2400_v59  ;;  %v2571_v27 = vrot.slane %v2538_v61, 3  ;;  %5516 = vmatprep.mubr.msk.bf16.mxu0 %vm261_vm2, %v2412_v63  ;;  %v2541_v14 = vunpack.c.l.bf16 %v5022_v62  ;;  %v2542_v15 = vunpack.c.l.bf16 %v5023_v25  ;;  %v5042_v55 = vld [vmem:[%s5794_s16 + $0x20] sm:$0xc] }
  0x85   : > { %v2413_v11 = vpack.c.bf16 %v2401_v8, %v2398_v1  ;;  %v2572_v13 = vrot.slane %v2539_v2, 3  ;;  %v2570_v17 = vsel %vm792_vm5, %v2568_v3, %v2569_v9  ;;  %v2543_v30 = vunpack.c.l.bf16 %v5024_v5  ;;  %v5044_v1 = vld [vmem:[%s5794_s16 + $0x28] sm:$0xc]  ;;  %v5045_v2 = vld [vmem:[%s5794_s16 + $0x2c] sm:$0x3] }
  0x86   : > { %v2574_v18 = vrot.slane %v2540_v10, 3  ;;  %v2944_v19 = vand.u32 %v5071_v6, %v5759_v4  ;;  %v2575_v12 = vrot.slane %v2541_v14, 3  ;;  %v2577_v21 = vrot.slane %v2542_v15, 3  ;;  %v5092_v9 = vld [vmem:[%s6854_s1 + $0x20] sm:$0x3] }
  0x87   : > { %v2573_v7 = vsel %vm792_vm5, %v2571_v27, %v2572_v13  ;;  %v2544_v22 = vunpack.c.l.bf16 %v5025_v34  ;;  %v2578_v32 = vrot.slane %v2543_v30, 3  ;;  %v2545_v33 = vunpack.c.l.bf16 %v5026_v16  ;;  %v5046_v27 = vld [vmem:[%s5794_s16 + $0x30] sm:$0xc]  ;;  %v5047_v14 = vld [vmem:[%s5794_s16 + $0x34] sm:$0x3] }
  0x88   : > { %v2600_v31 = vpack.c.bf16 %v2573_v7, %v2570_v17  ;;  %5540 = vmatprep.subr.bf16.mxu1 %v2944_v19  ;;  %v2546_v38 = vunpack.c.l.bf16 %v5027_v35  ;;  %v2576_v40 = vsel %vm792_vm5, %v2574_v18, %v2575_v12  ;;  %v2547_v41 = vunpack.c.l.bf16 %v5028_v20  ;;  %v5048_v15 = vld [vmem:[%s5794_s16 + $0x38] sm:$0xc]  ;;  %v5049_v18 = vld [vmem:[%s5794_s16 + $0x3c] sm:$0x3] }
  0x89   : > { %v2580_v42 = vrot.slane %v2544_v22, 3  ;;  %v2548_v43 = vunpack.c.l.bf16 %v5029_v0  ;;  %5517 = vmatmul.mubr.msk.bf16.gmra.mrb[48].mxu0 %vm261_vm2, %v2413_v11  ;;  %v2579_v44 = vsel %vm792_vm5, %v2577_v21, %v2578_v32  ;;  %v2581_v24 = vrot.slane %v2545_v33, 3  ;;  %v5051_v21 = vld [vmem:[%s5794_s16 + $0x44] sm:$0x3]  ;;  %v5681_v22 = vld [vmem:[%s5794_s16 + $0x18] ss:$8 sps:$4 sm:$0xff]  }
  0x8a   : > { %5522 = vmatprep.mubr.msk.bf16.mxu1 %vm261_vm2, %v2600_v31  ;;  %v2583_v45 = vrot.slane %v2546_v38, 3  ;;  %v2549_v46 = vunpack.c.l.bf16 %v5030_v26  ;;  %v2601_v37 = vpack.c.bf16 %v2579_v44, %v2576_v40  ;;  %v2584_v47 = vrot.slane %v2547_v41, 3  ;;  %v5052_v38 = vld [vmem:[%s5794_s16 + $0x48] sm:$0xc] }
  0x8b   : > { %v2550_v48 = vunpack.c.l.bf16 %v5031_v39  ;;  %v2551_v29 = vunpack.c.l.bf16 %v5032_v28  ;;  %v2582_v51 = vsel %vm792_vm5, %v2580_v42, %v2581_v24  ;;  %v2586_v52 = vrot.slane %v2548_v43, 3  ;;  %v5053_v42 = vld [vmem:[%s5794_s16 + $0x4c] sm:$0x3] }
  0x8c   : > { %v2587_v53 = vrot.slane %v2549_v46, 3  ;;  %v2726_v54 = vunpack.c.l.bf16 %v5038_v36  ;;  %5523 = vmatmul.mubr.msk.bf16.vlgmr.msra.gmra.mrb[52].mxu1 %vm261_vm2, %v2601_v37  ;;  %v2585_v56 = vsel %vm792_vm5, %v2583_v45, %v2584_v47  ;;  %v2727_v59 = vunpack.c.l.bf16 %v5039_v23  ;;  %v5113_v45 = vld [vmem:[%s6854_s1 + $0x22] sm:$0x3] }
  0x8d   : > { %v2589_v57 = vrot.slane %v2550_v48, 3  ;;  %v2590_v58 = vrot.slane %v2551_v29, 3  ;;  %v2602_v61 = vpack.c.bf16 %v2585_v56, %v2582_v51  ;;  %5541 = vmatpush3.bf16.msra.mxu1 %v2944_v19  ;;  %v2728_v25 = vunpack.c.l.bf16 %v5040_v49  ;;  %v5050_v19 = vld [vmem:[%s5794_s16 + $0x40] sm:$0xc]  ;;  %v5077_v29 = vld [vmem:[%s5794_s16 + $0x1c] sm:$0x1] }
  0x8e   : > { %v2588_v62 = vsel %vm792_vm5, %v2586_v52, %v2587_v53  ;;  %v2729_v63 = vunpack.c.l.bf16 %v5041_v50  ;;  %v2758_v5 = vrot.slane %v2726_v54, 4  ;;  %v2759_v6 = vrot.slane %v2727_v59, 4  ;;  %v5076_v46 = vld [vmem:[%s5794_s16 + $0x18] ss:$8 sps:$4 sm:$0xff]   ;;  %v5079_v53 = vld [vmem:[%s5794_s16 + $0x24] sm:$0x1] }
  0x8f   : > { %v2591_v3 = vsel %vm792_vm5, %v2589_v57, %v2590_v58  ;;  %v2730_v8 = vunpack.c.l.bf16 %v5042_v55  ;;  %5526 = vmatprep.mubr.msk.bf16.mxu1 %vm261_vm2, %v2602_v61  ;;  %v2761_v34 = vrot.slane %v2728_v25, 4  ;;  %v2731_v13 = vunpack.c.l.bf16 %v5043_v60  ;;  %v5080_v54 = vld [vmem:[%s5794_s16 + $0x28] ss:$8 sps:$4 sm:$0xff]   ;;  %v5081_v59 = vld [vmem:[%s5794_s16 + $0x2c] sm:$0x1] }
  0x90   : > { %v2603_v10 = vpack.c.bf16 %v2591_v3, %v2588_v62  ;;  %v2762_v11 = vrot.slane %v2729_v63, 4  ;;  %v2760_v16 = vsel %vm983_vm6, %v2758_v5, %v2759_v6  ;;  %v2732_v35 = vunpack.c.l.bf16 %v5044_v1  ;;  %v5682_v25 = vld [vmem:[%s5794_s16 + $0x28] ss:$8 sps:$4 sm:$0xff]   ;;  %v5083_v1 = vld [vmem:[%s5794_s16 + $0x34] sm:$0x1] }
  0x91   : > { %v2733_v17 = vunpack.c.l.bf16 %v5045_v2  ;;  %v2764_v30 = vrot.slane %v2730_v8, 4  ;;  %v2765_v0 = vrot.slane %v2731_v13, 4  ;;  %v3134_v7 = vand.u32 %v5092_v9, %v5759_v4  ;;  %v5683_v2 = vld [vmem:[%s5794_s16 + $0x38] ss:$8 sps:$4 sm:$0xff]  }
  0x92   : > { %v2763_v20 = vsel %vm983_vm6, %v2761_v34, %v2762_v11  ;;  %v2734_v12 = vunpack.c.l.bf16 %v5046_v27  ;;  %v2767_v31 = vrot.slane %v2732_v35, 4  ;;  %v2735_v33 = vunpack.c.l.bf16 %v5047_v14  ;;  %v5134_v11 = vld [vmem:[%s6854_s1 + $0x24] sm:$0x3]  ;;  %v5084_v13 = vld [vmem:[%s5794_s16 + $0x38] ss:$8 sps:$4 sm:$0xff]  }
  0x93   : > { %v2790_v26 = vpack.c.bf16 %v2763_v20, %v2760_v16  ;;  %v2768_v32 = vrot.slane %v2733_v17, 4  ;;  %v2766_v39 = vsel %vm983_vm6, %v2764_v30, %v2765_v0  ;;  %5550 = vmatprep.subr.bf16.mxu0 %v3134_v7  ;;  %v2736_v28 = vunpack.c.l.bf16 %v5048_v15  ;;  %v5085_v17 = vld [vmem:[%s5794_s16 + $0x3c] sm:$0x1]  ;;  %v5087_v30 = vld [vmem:[%s5794_s16 + $0x44] sm:$0x1] }
  0x94   : > { %v2737_v40 = vunpack.c.l.bf16 %v5049_v18  ;;  %v2770_v41 = vrot.slane %v2734_v12, 4  ;;  %5527 = vmatmul.mubr.msk.bf16.gmra.mrb[56].mxu1 %vm261_vm2, %v2603_v10  ;;  %v2771_v36 = vrot.slane %v2735_v33, 4  ;;  %v2738_v44 = vunpack.c.l.bf16 %v5050_v19  ;;  %v5684_v33 = vld [vmem:[%s5794_s16 + $0x48] ss:$8 sps:$4 sm:$0xff]  }
  0x95   : > { %5532 = vmatprep.mubr.msk.bf16.mxu0 %vm261_vm2, %v2790_v26  ;;  %v2769_v43 = vsel %vm983_vm6, %v2767_v31, %v2768_v32  ;;  %v2739_v24 = vunpack.c.l.bf16 %v5051_v21  ;;  %v2773_v37 = vrot.slane %v2736_v28, 4  ;;  %v2740_v48 = vunpack.c.l.bf16 %v5052_v38  ;;  %5542 = vmatprep.mubr.msk.bf16.mxu1 %vm261_vm2, %v5681_v22  ;;  %v5089_v31 = vld [vmem:[%s5794_s16 + $0x4c] sm:$0x1]  ;;  %v5091_v32 = vld [vmem:[%s5794_s16 + $0x54] sm:$0x1] }
  0x96   : > { %v2791_v23 = vpack.c.bf16 %v2769_v43, %v2766_v39  ;;  %v2774_v47 = vrot.slane %v2737_v40, 4  ;;  %v2772_v49 = vsel %vm983_vm6, %v2770_v41, %v2771_v36  ;;  %v2741_v50 = vunpack.c.l.bf16 %v5053_v42  ;;  %v5097_v41 = vld [vmem:[%s5794_s16 + $0x18] sm:$0xe]  ;;  %v5098_v42 = vld [vmem:[%s5794_s16 + $0x1c] sm:$0x1] }
  0x97   : > { %v2776_v51 = vrot.slane %v2738_v44, 4  ;;  %v2777_v52 = vrot.slane %v2739_v24, 4  ;;  %v2779_v56 = vrot.slane %v2740_v48, 4  ;;  %v3324_v57 = vand.u32 %v5113_v45, %v5759_v4  ;;  %v5099_v43 = vld [vmem:[%s5794_s16 + $0x20] sm:$0xe] }
  0x98   : > { %5533 = vmatmul.mubr.msk.bf16.vlgmr.msra.gmra.mrb[52].mxu0 %vm261_vm2, %v2791_v23  ;;  %v2775_v55 = vsel %vm983_vm6, %v2773_v37, %v2774_v47  ;;  %v3043_v58 = vunpack.c.l.bf16 %v5076_v46  ;;  %v2780_v62 = vrot.slane %v2741_v50, 4  ;;  %v3044_v63 = vunpack.c.l.bf16 %v5077_v29  ;;  %v5101_v29 = vld [vmem:[%s5794_s16 + $0x28] sm:$0xe] }
  0x99   : > { %v2792_v60 = vpack.c.bf16 %v2775_v55, %v2772_v49  ;;  %5551 = vmatpush3.bf16.msra.mxu0 %v3134_v7  ;;  %v2778_v61 = vsel %vm983_vm6, %v2776_v51, %v2777_v52  ;;  %5560 = vmatprep.subr.bf16.mxu1 %v3324_v57  ;;  %v3045_v3 = vunpack.c.h.bf16 %v5076_v46  ;;  %v3046_v5 = vunpack.c.l.bf16 %v5079_v53  ;;  %v5088_v7 = vld [vmem:[%s5794_s16 + $0x48] ss:$8 sps:$4 sm:$0xff]   ;;  %v5100_v46 = vld [vmem:[%s5794_s16 + $0x24] sm:$0x1]  ;;  %v5102_v53 = vld [vmem:[%s5794_s16 + $0x2c] sm:$0x1] }
  0x9a   : > { %v3075_v6 = vrot.slane %v3043_v58, 1  ;;  %v3047_v8 = vunpack.c.l.bf16 %v5080_v54  ;;  %v2781_v9 = vsel %vm983_vm6, %v2779_v56, %v2780_v62  ;;  %v3076_v27 = vrot.slane %v3044_v63, 1  ;;  %v5155_v63 = vld [vmem:[%s6854_s1 + $0x26] sm:$0x3] }
  0x9b   : > { %5536 = vmatprep.mubr.msk.bf16.mxu0 %vm261_vm2, %v2792_v60  ;;  %v3048_v10 = vunpack.c.l.bf16 %v5081_v59  ;;  %v3049_v34 = vunpack.c.h.bf16 %v5080_v54  ;;  %v2793_v14 = vpack.c.bf16 %v2781_v9, %v2778_v61  ;;  %v3078_v15 = vrot.slane %v3045_v3, 1  ;;  %v5103_v54 = vld [vmem:[%s5794_s16 + $0x30] sm:$0xe]  ;;  %v5104_v59 = vld [vmem:[%s5794_s16 + $0x34] sm:$0x1] }
  0x9c   : > { %v3079_v16 = vrot.slane %v3046_v5, 1  ;;  %v3050_v35 = vunpack.c.l.bf16 %v5083_v1  ;;  %5543 = vmatmul.mubr.msk.bf16.vlgmr.msra.gmra.mrb[60].mxu1 %vm261_vm2, %v5682_v25  ;;  %v3077_v18 = vsel %vm410_vm3, %v3075_v6, %v3076_v27  ;;  %v3081_v19 = vrot.slane %v3047_v8, 1 }
  0x9d   : > { %v3082_v20 = vrot.slane %v3048_v10, 1  ;;  %v3084_v0 = vrot.slane %v3049_v34, 1  ;;  %5546 = vmatprep.mubr.msk.bf16.mxu1 %vm261_vm2, %v5683_v2  ;;  %5561 = vmatpush3.bf16.msra.mxu1 %v3324_v57  ;;  %v6263_v22 = vand.u32 %v5134_v11, %v5759_v4  ;;  %v3051_v26 = vunpack.c.l.bf16 %v5084_v13  ;;  %v5105_v10 = vld [vmem:[%s5794_s16 + $0x38] sm:$0xe] }
  0x9e   : > { %v3080_v12 = vsel %vm410_vm3, %v3078_v15, %v3079_v16  ;;  %v3085_v21 = vrot.slane %v3050_v35, 1  ;;  %v3052_v28 = vunpack.c.l.bf16 %v5085_v17  ;;  %v3053_v40 = vunpack.c.h.bf16 %v5084_v13  ;;  %v5106_v15 = vld [vmem:[%s5794_s16 + $0x3c] sm:$0x1]  ;;  %v5107_v16 = vld [vmem:[%s5794_s16 + $0x40] sm:$0xe] }
  0x9f   : > { %v3107_v38 = vpack.c.bf16 %v3080_v12, %v3077_v18  ;;  %v3083_v39 = vsel %vm410_vm3, %v3081_v19, %v3082_v20  ;;  %5570 = vmatprep.subr.bf16.mxu0 %v6263_v22  ;;  %v3054_v44 = vunpack.c.l.bf16 %v5087_v30  ;;  %v3087_v24 = vrot.slane %v3051_v26, 1  ;;  %v5108_v19 = vld [vmem:[%s5794_s16 + $0x44] sm:$0x1]  ;;  %v5109_v20 = vld [vmem:[%s5794_s16 + $0x48] sm:$0xe] }
  0xa0   : > { %5537 = vmatmul.mubr.msk.bf16.gmra.mrb[56].mxu0 %vm261_vm2, %v2793_v14  ;;  %v3086_v36 = vsel %vm410_vm3, %v3084_v0, %v3085_v21  ;;  %v3055_v45 = vunpack.c.l.bf16 %v5088_v7  ;;  %v3088_v37 = vrot.slane %v3052_v28, 1  ;;  %v3090_v47 = vrot.slane %v3053_v40, 1  ;;  %v5110_v26 = vld [vmem:[%s5794_s16 + $0x4c] sm:$0x1]  ;;  %v5112_v28 = vld [vmem:[%s5794_s16 + $0x54] sm:$0x1] }
  0xa1   : > { %5552 = vmatprep.mubr.msk.bf16.mxu0 %vm261_vm2, %v3107_v38  ;;  %v3108_v23 = vpack.c.bf16 %v3086_v36, %v3083_v39  ;;  %v3056_v48 = vunpack.c.l.bf16 %v5089_v31  ;;  %v3091_v49 = vrot.slane %v3054_v44, 1  ;;  %v3057_v50 = vunpack.c.h.bf16 %v5088_v7  ;;  %v5111_v39 = vld [vmem:[%s5794_s16 + $0x50] sm:$0xe] }
  0xa2   : > { %v3058_v51 = vunpack.c.l.bf16 %v5091_v32  ;;  %v3093_v52 = vrot.slane %v3055_v45, 1  ;;  %v3089_v55 = vsel %vm410_vm3, %v3087_v24, %v3088_v37  ;;  %v3233_v57 = vunpack.c.l.bf16 %v5097_v41 }
  0xa3   : > { %v3094_v56 = vrot.slane %v3056_v48, 1  ;;  %v3234_v58 = vunpack.c.l.bf16 %v5098_v42  ;;  %v3092_v60 = vsel %vm410_vm3, %v3090_v47, %v3091_v49  ;;  %v3096_v61 = vrot.slane %v3057_v50, 1  ;;  %v5121_v49 = vld [vmem:[%s5794_s16 + $0x24] sm:$0x3] }
  0xa4   : > { %v3097_v62 = vrot.slane %v3058_v51, 1  ;;  %v3235_v25 = vunpack.c.l.bf16 %v5099_v43  ;;  %5547 = vmatmul.mubr.msk.bf16.gmra.mrb[64].mxu1 %vm261_vm2, %v5684_v33  ;;  %v3109_v1 = vpack.c.bf16 %v3092_v60, %v3089_v55  ;;  %v3236_v3 = vunpack.c.l.bf16 %v5100_v46  ;;  %v5118_v43 = vld [vmem:[%s5794_s16 + $0x18] sm:$0xe]  ;;  %v5119_v46 = vld [vmem:[%s5794_s16 + $0x1c] sm:$0x3] }
  0xa5   : > { %v6288_v2 = vsel %vm410_vm3, %v3093_v52, %v3094_v56  ;;  %v3265_v5 = vrot.slane %v3233_v57, 2  ;;  %v3266_v8 = vrot.slane %v3234_v58, 2  ;;  %v3237_v27 = vunpack.c.l.bf16 %v5101_v29  ;;  %v5120_v29 = vld [vmem:[%s5794_s16 + $0x20] sm:$0xe] }
  0xa6   : > { %v3098_v6 = vsel %vm410_vm3, %v3096_v61, %v3097_v62  ;;  %v3268_v9 = vrot.slane %v3235_v25, 2  ;;  %v3269_v11 = vrot.slane %v3236_v3, 2  ;;  %v3238_v13 = vunpack.c.l.bf16 %v5102_v53 }
  0xa7   : > { %v3110_v34 = vpack.c.bf16 %v3098_v6, %v6288_v2  ;;  %v3239_v14 = vunpack.c.l.bf16 %v5103_v54  ;;  %v3267_v35 = vsel %vm601_vm4, %v3265_v5, %v3266_v8  ;;  %v3240_v17 = vunpack.c.l.bf16 %v5104_v59  ;;  %v5122_v54 = vld [vmem:[%s5794_s16 + $0x28] sm:$0xe]  ;;  %v5123_v59 = vld [vmem:[%s5794_s16 + $0x2c] sm:$0x3] }
  0xa8   : > { %5553 = vmatmul.mubr.msk.bf16.vlgmr.msra.gmra.mrb[60].mxu0 %vm261_vm2, %v3108_v23  ;;  %v3271_v30 = vrot.slane %v3237_v27, 2  ;;  %v3704_v18 = vand.u32 %v5155_v63, %v5759_v4  ;;  %v3270_v0 = vsel %vm601_vm4, %v3268_v9, %v3269_v11  ;;  %v3272_v7 = vrot.slane %v3238_v13, 2  ;;  %v5124_v63 = vld [vmem:[%s5794_s16 + $0x30] sm:$0xe]  ;;  %v5172_v8 = vld [vmem:[%s6854_s1 + $0x28] sm:$0x3] }
  0xa9   : > { %5556 = vmatprep.mubr.msk.bf16.mxu0 %vm261_vm2, %v3109_v1  ;;  %5571 = vmatpush3.bf16.msra.mxu0 %v6263_v22  ;;  %v3274_v12 = vrot.slane %v3239_v14, 2  ;;  %v3241_v21 = vunpack.c.l.bf16 %v5105_v10  ;;  %v3297_v31 = vpack.c.bf16 %v3270_v0, %v3267_v35  ;;  %v3275_v32 = vrot.slane %v3240_v17, 2  ;;  %v5125_v1 = vld [vmem:[%s5794_s16 + $0x34] sm:$0x3]  ;;  %v5126_v9 = vld [vmem:[%s5794_s16 + $0x38] sm:$0xe] }
  0xaa   : > { %5580 = vmatprep.subr.bf16.mxu1 %v3704_v18  ;;  %v3242_v33 = vunpack.c.l.bf16 %v5106_v15  ;;  %v3243_v38 = vunpack.c.l.bf16 %v5107_v16  ;;  %v3273_v40 = vsel %vm601_vm4, %v3271_v30, %v3272_v7  ;;  %v3244_v22 = vunpack.c.l.bf16 %v5108_v19  ;;  %v5127_v13 = vld [vmem:[%s5794_s16 + $0x3c] sm:$0x3]  ;;  %v5128_v17 = vld [vmem:[%s5794_s16 + $0x40] sm:$0xe]  ;;  %v5129_v30 = vld [vmem:[%s5794_s16 + $0x44] sm:$0x3] }
  0xab   : > { %v3277_v41 = vrot.slane %v3241_v21, 2  ;;  %v3245_v42 = vunpack.c.l.bf16 %v5109_v20  ;;  %5562 = vmatprep.mubr.msk.bf16.mxu1 %vm261_vm2, %v3297_v31  ;;  %v3276_v36 = vsel %vm601_vm4, %v3274_v12, %v3275_v32  ;;  %v3246_v45 = vunpack.c.l.bf16 %v5110_v26  ;;  %v5130_v7 = vld [vmem:[%s5794_s16 + $0x48] sm:$0xe]  ;;  %v5131_v12 = vld [vmem:[%s5794_s16 + $0x4c] sm:$0x3] }
  0xac   : > { %v3278_v44 = vrot.slane %v3242_v33, 2  ;;  %v3280_v24 = vrot.slane %v3243_v38, 2  ;;  %v3298_v23 = vpack.c.bf16 %v3276_v36, %v3273_v40  ;;  %v3281_v37 = vrot.slane %v3244_v22, 2  ;;  %v5132_v33 = vld [vmem:[%s5794_s16 + $0x50] sm:$0xe] }
  0xad   : > { %v3247_v47 = vunpack.c.l.bf16 %v5111_v39  ;;  %v3248_v48 = vunpack.c.l.bf16 %v5112_v28  ;;  %v3283_v51 = vrot.slane %v3245_v42, 2  ;;  %v3284_v52 = vrot.slane %v3246_v45, 2  ;;  %v5133_v22 = vld [vmem:[%s5794_s16 + $0x54] sm:$0x3] }
  0xae   : > { %v3279_v50 = vsel %vm601_vm4, %v3277_v41, %v3278_v44  ;;  %v3423_v53 = vunpack.c.l.bf16 %v5118_v43  ;;  %5563 = vmatmul.mubr.msk.bf16.vlgmr.msra.gmra.mrb[68].mxu1 %vm261_vm2, %v3298_v23  ;;  %v3282_v55 = vsel %vm601_vm4, %v3280_v24, %v3281_v37  ;;  %v3424_v58 = vunpack.c.l.bf16 %v5119_v46  ;;  %v5139_v44 = vld [vmem:[%s5794_s16 + $0x18] sm:$0xc]  ;;  %v5140_v24 = vld [vmem:[%s5794_s16 + $0x1c] sm:$0x3] }
  0xaf   : > { %v3286_v56 = vrot.slane %v3247_v47, 2  ;;  %v3287_v57 = vrot.slane %v3248_v48, 2  ;;  %v3299_v60 = vpack.c.bf16 %v3282_v55, %v3279_v50  ;;  %5581 = vmatpush3.bf16.msra.mxu1 %v3704_v18  ;;  %v3285_v61 = vsel %vm601_vm4, %v3283_v51, %v3284_v52  ;;  %v5141_v47 = vld [vmem:[%s5794_s16 + $0x20] sm:$0xc]  ;;  %v5142_v51 = vld [vmem:[%s5794_s16 + $0x24] sm:$0x3] }
  0xb0   : > { %5557 = vmatmul.mubr.msk.bf16.gmra.mrb[64].mxu0 %vm261_vm2, %v3110_v34  ;;  %v3425_v62 = vunpack.c.l.bf16 %v5120_v29  ;;  %v3426_v25 = vunpack.c.l.bf16 %v5121_v49  ;;  %v3455_v3 = vrot.slane %v3423_v53, 3  ;;  %v3456_v5 = vrot.slane %v3424_v58, 3  ;;  %v5143_v52 = vld [vmem:[%s5794_s16 + $0x28] sm:$0xc]  ;;  %v5145_v58 = vld [vmem:[%s5794_s16 + $0x30] sm:$0xc] }
  0xb1   : > { %v3288_v2 = vsel %vm601_vm4, %v3286_v56, %v3287_v57  ;;  %v3427_v6 = vunpack.c.l.bf16 %v5122_v54  ;;  %5566 = vmatprep.mubr.msk.bf16.mxu1 %vm261_vm2, %v3299_v60  ;;  %v3428_v11 = vunpack.c.l.bf16 %v5123_v59  ;;  %v3429_v15 = vunpack.c.l.bf16 %v5124_v63  ;;  %v5144_v57 = vld [vmem:[%s5794_s16 + $0x2c] sm:$0x3] }
  0xb2   : > { %v3300_v27 = vpack.c.bf16 %v3288_v2, %v3285_v61  ;;  %v3458_v10 = vrot.slane %v3425_v62, 3  ;;  %v3459_v34 = vrot.slane %v3426_v25, 3  ;;  %v3457_v14 = vsel %vm792_vm5, %v3455_v3, %v3456_v5  ;;  %v5146_v25 = vld [vmem:[%s5794_s16 + $0x34] sm:$0x3]  ;;  %v5193_v5 = vld [vmem:[%s6854_s1 + $0x2a] sm:$0x3] }
  0xb3   : > { %v3430_v16 = vunpack.c.l.bf16 %v5125_v1  ;;  %v3461_v35 = vrot.slane %v3427_v6, 3  ;;  %v3462_v19 = vrot.slane %v3428_v11, 3  ;;  %v3831_v20 = vand.u32 %v5172_v8, %v5759_v4  ;;  %v5147_v6 = vld [vmem:[%s5794_s16 + $0x38] sm:$0xc]  ;;  %v5149_v11 = vld [vmem:[%s5794_s16 + $0x40] sm:$0xc] }
  0xb4   : > { %v3460_v18 = vsel %vm792_vm5, %v3458_v10, %v3459_v34  ;;  %v3431_v0 = vunpack.c.l.bf16 %v5126_v9  ;;  %v3464_v26 = vrot.slane %v3429_v15, 3  ;;  %v3432_v32 = vunpack.c.l.bf16 %v5127_v13  ;;  %v5148_v34 = vld [vmem:[%s5794_s16 + $0x3c] sm:$0x3] }
  0xb5   : > { %v3487_v21 = vpack.c.bf16 %v3460_v18, %v3457_v14  ;;  %v3465_v31 = vrot.slane %v3430_v16, 3  ;;  %v3463_v38 = vsel %vm792_vm5, %v3461_v35, %v3462_v19  ;;  %5590 = vmatprep.subr.bf16.mxu0 %v3831_v20  ;;  %v3433_v39 = vunpack.c.l.bf16 %v5128_v17  ;;  %v5150_v35 = vld [vmem:[%s5794_s16 + $0x44] sm:$0x3]  ;;  %v5151_v17 = vld [vmem:[%s5794_s16 + $0x48] sm:$0xc] }
  0xb6   : > { %v3434_v28 = vunpack.c.l.bf16 %v5129_v30  ;;  %v3467_v40 = vrot.slane %v3431_v0, 3  ;;  %5567 = vmatmul.mubr.msk.bf16.gmra.mrb[72].mxu1 %vm261_vm2, %v3300_v27  ;;  %v3468_v42 = vrot.slane %v3432_v32, 3  ;;  %v3435_v43 = vunpack.c.l.bf16 %v5130_v7  ;;  %v5685_v0 = vld [vmem:[%s5794_s16 + $0x20] ss:$8 sps:$4 sm:$0xff]  }
  0xb7   : > { %5572 = vmatprep.mubr.msk.bf16.mxu0 %vm261_vm2, %v3487_v21  ;;  %v3466_v41 = vsel %vm792_vm5, %v3464_v26, %v3465_v31  ;;  %v3436_v36 = vunpack.c.l.bf16 %v5131_v12  ;;  %v3470_v46 = vrot.slane %v3433_v39, 3  ;;  %v3437_v37 = vunpack.c.l.bf16 %v5132_v33  ;;  %v5152_v31 = vld [vmem:[%s5794_s16 + $0x4c] sm:$0x3] }
  0xb8   : > { %v3488_v45 = vpack.c.bf16 %v3466_v41, %v3463_v38  ;;  %v3471_v23 = vrot.slane %v3434_v28, 3  ;;  %v3469_v48 = vsel %vm792_vm5, %v3467_v40, %v3468_v42  ;;  %v3438_v29 = vunpack.c.l.bf16 %v5133_v22  ;;  %v5153_v28 = vld [vmem:[%s5794_s16 + $0x50] sm:$0xc]  ;;  %v5154_v40 = vld [vmem:[%s5794_s16 + $0x54] sm:$0x3] }
  0xb9   : > { %v3473_v49 = vrot.slane %v3435_v43, 3  ;;  %v3474_v50 = vrot.slane %v3436_v36, 3  ;;  %v3476_v54 = vrot.slane %v3437_v37, 3  ;;  %v3613_v55 = vunpack.c.l.bf16 %v5139_v44  ;;  %v5214_v36 = vld [vmem:[%s6854_s1 + $0x2c] sm:$0x3] }
  0xba   : > { %5573 = vmatmul.mubr.msk.bf16.vlgmr.msra.gmra.mrb[68].mxu0 %vm261_vm2, %v3488_v45  ;;  %v3472_v53 = vsel %vm792_vm5, %v3470_v46, %v3471_v23  ;;  %v3614_v56 = vunpack.c.l.bf16 %v5140_v24  ;;  %v3477_v61 = vrot.slane %v3438_v29, 3  ;;  %v3615_v62 = vunpack.c.l.bf16 %v5141_v47  ;;  %v5177_v44 = vld [vmem:[%s5794_s16 + $0x20] ss:$8 sps:$4 sm:$0xff]   ;;  %v5178_v37 = vld [vmem:[%s5794_s16 + $0x24] sm:$0x1] }
  0xbb   : > { %v3489_v59 = vpack.c.bf16 %v3472_v53, %v3469_v48  ;;  %5591 = vmatpush3.bf16.msra.mxu0 %v3831_v20  ;;  %v3475_v60 = vsel %vm792_vm5, %v3473_v49, %v3474_v50  ;;  %v3616_v63 = vunpack.c.l.bf16 %v5142_v51  ;;  %v3645_v1 = vrot.slane %v3613_v55, 4  ;;  %v5180_v50 = vld [vmem:[%s5794_s16 + $0x2c] sm:$0x1]  ;;  %v5181_v55 = vld [vmem:[%s5794_s16 + $0x30] ss:$8 sps:$4 sm:$0xff]  }
  0xbc   : > { %v3646_v2 = vrot.slane %v3614_v56, 4  ;;  %v3617_v3 = vunpack.c.l.bf16 %v5143_v52  ;;  %v3478_v8 = vsel %vm792_vm5, %v3476_v54, %v3477_v61  ;;  %v3648_v9 = vrot.slane %v3615_v62, 4  ;;  %v5182_v56 = vld [vmem:[%s5794_s16 + $0x34] sm:$0x1] }
  0xbd   : > { %5576 = vmatprep.mubr.msk.bf16.mxu0 %vm261_vm2, %v3489_v59  ;;  %v3618_v27 = vunpack.c.l.bf16 %v5144_v57  ;;  %v3619_v10 = vunpack.c.l.bf16 %v5145_v58  ;;  %v3490_v13 = vpack.c.bf16 %v3478_v8, %v3475_v60  ;;  %v3649_v15 = vrot.slane %v3616_v63, 4  ;;  %v5686_v60 = vld [vmem:[%s5794_s16 + $0x30] ss:$8 sps:$4 sm:$0xff]  }
  0xbe   : > { %v3647_v14 = vsel %vm983_vm6, %v3645_v1, %v3646_v2  ;;  %v3620_v16 = vunpack.c.l.bf16 %v5146_v25  ;;  %v3651_v30 = vrot.slane %v3617_v3, 4  ;;  %v4021_v20 = vand.u32 %v5193_v5, %v5759_v4  ;;  %v5687_v25 = vld [vmem:[%s5794_s16 + $0x40] ss:$8 sps:$4 sm:$0xff]   ;;  %v5184_v3 = vld [vmem:[%s5794_s16 + $0x3c] sm:$0x1] }
  0xbf   : > { %v3652_v18 = vrot.slane %v3618_v27, 4  ;;  %v3654_v19 = vrot.slane %v3619_v10, 4  ;;  %v3650_v7 = vsel %vm983_vm6, %v3648_v9, %v3649_v15  ;;  %v3621_v21 = vunpack.c.l.bf16 %v5147_v6  ;;  %v5235_v27 = vld [vmem:[%s6854_s1 + $0x2e] sm:$0x3]  ;;  %v5186_v15 = vld [vmem:[%s5794_s16 + $0x44] sm:$0x1] }
  0xc0   : > { %v3655_v12 = vrot.slane %v3620_v16, 4  ;;  %v3622_v26 = vunpack.c.l.bf16 %v5148_v34  ;;  %v3677_v32 = vpack.c.bf16 %v3650_v7, %v3647_v14  ;;  %5600 = vmatprep.subr.bf16.mxu1 %v4021_v20  ;;  %v3623_v38 = vunpack.c.l.bf16 %v5149_v11  ;;  %v5185_v14 = vld [vmem:[%s5794_s16 + $0x40] ss:$8 sps:$4 sm:$0xff]   ;;  %v5190_v7 = vld [vmem:[%s5794_s16 + $0x54] sm:$0x1] }
  0xc1   : > { %v3653_v33 = vsel %vm983_vm6, %v3651_v30, %v3652_v18  ;;  %v3624_v39 = vunpack.c.l.bf16 %v5150_v35  ;;  %v3657_v41 = vrot.slane %v3621_v21, 4  ;;  %v3625_v43 = vunpack.c.l.bf16 %v5151_v17  ;;  %v5188_v18 = vld [vmem:[%s5794_s16 + $0x4c] sm:$0x1] }
  0xc2   : > { %5577 = vmatmul.mubr.msk.bf16.gmra.mrb[72].mxu0 %vm261_vm2, %v3490_v13  ;;  %v3656_v22 = vsel %vm983_vm6, %v3654_v19, %v3655_v12  ;;  %v3658_v42 = vrot.slane %v3622_v26, 4  ;;  %5582 = vmatprep.mubr.msk.bf16.mxu1 %vm261_vm2, %v3677_v32  ;;  %v3660_v45 = vrot.slane %v3623_v38, 4  ;;  %v3626_v23 = vunpack.c.l.bf16 %v5152_v31  ;;  %v5189_v19 = vld [vmem:[%s5794_s16 + $0x50] ss:$8 sps:$4 sm:$0xff]  }
  0xc3   : > { %v3678_v24 = vpack.c.bf16 %v3656_v22, %v3653_v33  ;;  %v3661_v46 = vrot.slane %v3624_v39, 4  ;;  %5592 = vmatprep.mubr.msk.bf16.mxu0 %vm261_vm2, %v5685_v0  ;;  %v3627_v48 = vunpack.c.l.bf16 %v5153_v28  ;;  %v3628_v29 = vunpack.c.l.bf16 %v5154_v40  ;;  %v5192_v40 = vld [vmem:[%s5794_s16 + $0x5c] sm:$0x1]  ;;  %v5688_v22 = vld [vmem:[%s5794_s16 + $0x50] ss:$8 sps:$4 sm:$0xff]  }
  0xc4   : > { %v3659_v47 = vsel %vm983_vm6, %v3657_v41, %v3658_v42  ;;  %v3663_v49 = vrot.slane %v3625_v43, 4  ;;  %v3664_v52 = vrot.slane %v3626_v23, 4  ;;  %v4211_v53 = vand.u32 %v5214_v36, %v5759_v4 }
  0xc5   : > { %5583 = vmatmul.mubr.msk.bf16.vlgmr.msra.gmra.mrb[76].mxu1 %vm261_vm2, %v3678_v24  ;;  %v3662_v51 = vsel %vm983_vm6, %v3660_v45, %v3661_v46  ;;  %v3930_v54 = vunpack.c.l.bf16 %v5177_v44  ;;  %v3666_v58 = vrot.slane %v3627_v48, 4  ;;  %v3667_v59 = vrot.slane %v3628_v29, 4  ;;  %v5199_v24 = vld [vmem:[%s5794_s16 + $0x24] sm:$0x1] }
  0xc6   : > { %v3679_v57 = vpack.c.bf16 %v3662_v51, %v3659_v47  ;;  %5601 = vmatpush3.bf16.msra.mxu1 %v4021_v20  ;;  %v3931_v61 = vunpack.c.l.bf16 %v5178_v37  ;;  %v3665_v62 = vsel %vm983_vm6, %v3663_v49, %v3664_v52  ;;  %5610 = vmatprep.subr.bf16.mxu0 %v4211_v53  ;;  %v3932_v63 = vunpack.c.h.bf16 %v5177_v44  ;;  %v5198_v44 = vld [vmem:[%s5794_s16 + $0x20] sm:$0xe]  ;;  %v5200_v47 = vld [vmem:[%s5794_s16 + $0x28] sm:$0xe]  ;;  %v5201_v51 = vld [vmem:[%s5794_s16 + $0x2c] sm:$0x1] }
  0xc7   : > { %v3933_v1 = vunpack.c.l.bf16 %v5180_v50  ;;  %v3962_v2 = vrot.slane %v3930_v54, 1  ;;  %v3668_v5 = vsel %vm983_vm6, %v3666_v58, %v3667_v59  ;;  %v3934_v8 = vunpack.c.l.bf16 %v5181_v55 }
  0xc8   : > { %5586 = vmatprep.mubr.msk.bf16.mxu1 %vm261_vm2, %v3679_v57  ;;  %v3963_v6 = vrot.slane %v3931_v61, 1  ;;  %v3935_v9 = vunpack.c.l.bf16 %v5182_v56  ;;  %v3680_v10 = vpack.c.bf16 %v3668_v5, %v3665_v62  ;;  %v3965_v34 = vrot.slane %v3932_v63, 1  ;;  %v5202_v56 = vld [vmem:[%s5794_s16 + $0x30] sm:$0xe]  ;;  %v5203_v57 = vld [vmem:[%s5794_s16 + $0x34] sm:$0x1] }
  0xc9   : > { %v3966_v11 = vrot.slane %v3933_v1, 1  ;;  %v3936_v13 = vunpack.c.h.bf16 %v5181_v55  ;;  %v3937_v35 = vunpack.c.l.bf16 %v5184_v3  ;;  %v3968_v17 = vrot.slane %v3934_v8, 1  ;;  %v5204_v62 = vld [vmem:[%s5794_s16 + $0x38] sm:$0xe]  ;;  %v5205_v3 = vld [vmem:[%s5794_s16 + $0x3c] sm:$0x1] }
  0xca   : > { %5593 = vmatmul.mubr.msk.bf16.vlgmr.msra.gmra.mrb[76].mxu0 %vm261_vm2, %v5686_v60  ;;  %v3964_v16 = vsel %vm410_vm3, %v3962_v2, %v3963_v6  ;;  %v3969_v30 = vrot.slane %v3935_v9, 1  ;;  %v5714_v31 = vmov 0.0   ;;  %v4401_v32 = vand.u32 %v5235_v27, %v5759_v4  ;;  %v5256_v5 = vld [vmem:[%s6854_s1 + $0x30] sm:$0x3] }
  0xcb   : > { %5596 = vmatprep.mubr.msk.bf16.mxu0 %vm261_vm2, %v5687_v25  ;;  %5611 = vmatpush3.bf16.msra.mxu0 %v4211_v53  ;;  %v3967_v20 = vsel %vm410_vm3, %v3965_v34, %v3966_v11  ;;  %v3971_v0 = vrot.slane %v3936_v13, 1  ;;  %v3972_v26 = vrot.slane %v3937_v35, 1  ;;  %226 = vst.msk [vmem:[#allocation2 + $0x10] sm:$0xff] %vm223_vm7, %v5714_v31  ;;  %224 = vst.msk [vmem:[#allocation2] sm:$0xff] %vm223_vm7, %v5714_v31  ;;  %v3938_v33 = vunpack.c.l.bf16 %v5185_v14  ;;  %v5207_v34 = vld [vmem:[%s5794_s16 + $0x44] sm:$0x1] }
  0xcc   : > { %v3994_v12 = vpack.c.bf16 %v3967_v20, %v3964_v16  ;;  %v3970_v21 = vsel %vm410_vm3, %v3968_v17, %v3969_v30  ;;  %225 = vst.msk [vmem:[#allocation2 + $0x8] sm:$0xff] %vm223_vm7, %v5714_v31  ;;  %227 = vst.msk [vmem:[#allocation2 + $0x18] sm:$0xff] %vm223_vm7, %v5714_v31  ;;  %v3939_v38 = vunpack.c.l.bf16 %v5186_v15  ;;  %v3940_v39 = vunpack.c.h.bf16 %v5185_v14  ;;  %5620 = vmatprep.subr.bf16.mxu1 %v4401_v32  ;;  %v5208_v16 = vld [vmem:[%s5794_s16 + $0x48] sm:$0xe]  ;;  %v5210_v20 = vld [vmem:[%s5794_s16 + $0x50] sm:$0xe] }
  0xcd   : > { %228 = vst.msk [vmem:[#allocation2 + $0x20] sm:$0xff] %vm223_vm7, %v5714_v31  ;;  %229 = vst.msk [vmem:[#allocation2 + $0x28] sm:$0xff] %vm223_vm7, %v5714_v31  ;;  %5587 = vmatmul.mubr.msk.bf16.gmra.mrb[80].mxu1 %vm261_vm2, %v3680_v10  ;;  %v3941_v28 = vunpack.c.l.bf16 %v5188_v18  ;;  %v3973_v41 = vsel %vm410_vm3, %v3971_v0, %v3972_v26  ;;  %v3942_v42 = vunpack.c.l.bf16 %v5189_v19  ;;  %v3943_v43 = vunpack.c.l.bf16 %v5190_v7  ;;  %v5206_v10 = vld [vmem:[%s5794_s16 + $0x40] sm:$0xe]  ;;  %v5211_v26 = vld [vmem:[%s5794_s16 + $0x54] sm:$0x1] }
  0xce   : > { %230 = vst.msk [vmem:[#allocation2 + $0x30] sm:$0xff] %vm223_vm7, %v5714_v31  ;;  %231 = vst.msk [vmem:[#allocation2 + $0x38] sm:$0xff] %vm223_vm7, %v5714_v31  ;;  %5602 = vmatprep.mubr.msk.bf16.mxu1 %vm261_vm2, %v3994_v12  ;;  %v3944_v36 = vunpack.c.h.bf16 %v5189_v19  ;;  %v3995_v45 = vpack.c.bf16 %v3973_v41, %v3970_v21  ;;  %v3974_v46 = vrot.slane %v3938_v33, 1  ;;  %v3975_v23 = vrot.slane %v3939_v38, 1  ;;  %v5209_v19 = vld [vmem:[%s5794_s16 + $0x4c] sm:$0x1] }
  0xcf   : > { %v3977_v37 = vrot.slane %v3940_v39, 1  ;;  %v3978_v48 = vrot.slane %v3941_v28, 1  ;;  %v3945_v29 = vunpack.c.l.bf16 %v5192_v40  ;;  %v3980_v49 = vrot.slane %v3942_v42, 1  ;;  %v5212_v31 = vld [vmem:[%s5794_s16 + $0x58] sm:$0xe] }
  0xd0   : > { %v3981_v50 = vrot.slane %v3943_v43, 1  ;;  %v3976_v52 = vsel %vm410_vm3, %v3974_v46, %v3975_v23  ;;  %v3983_v53 = vrot.slane %v3944_v36, 1  ;;  %v4120_v54 = vunpack.c.l.bf16 %v5198_v44  ;;  %v5213_v28 = vld [vmem:[%s5794_s16 + $0x5c] sm:$0x1]  ;;  %v5219_v42 = vld [vmem:[%s5794_s16 + $0x20] sm:$0xe] }
  0xd1   : > { %v4121_v55 = vunpack.c.l.bf16 %v5199_v24  ;;  %v3979_v58 = vsel %vm410_vm3, %v3977_v37, %v3978_v48  ;;  %v3984_v60 = vrot.slane %v3945_v29, 1  ;;  %v4122_v61 = vunpack.c.l.bf16 %v5200_v47  ;;  %v5221_v46 = vld [vmem:[%s5794_s16 + $0x28] sm:$0xe]  ;;  %v5222_v29 = vld [vmem:[%s5794_s16 + $0x2c] sm:$0x3] }
  0xd2   : > { %5597 = vmatmul.mubr.msk.bf16.gmra.mrb[80].mxu0 %vm261_vm2, %v5688_v22  ;;  %v6431_v59 = vsel %vm410_vm3, %v3980_v49, %v3981_v50  ;;  %v3996_v25 = vpack.c.bf16 %v3979_v58, %v3976_v52  ;;  %v4123_v63 = vunpack.c.l.bf16 %v5201_v51  ;;  %v4152_v1 = vrot.slane %v4120_v54, 2  ;;  %v5224_v58 = vld [vmem:[%s5794_s16 + $0x34] sm:$0x3] }
  0xd3   : > { %v4153_v2 = vrot.slane %v4121_v55, 2  ;;  %v3985_v6 = vsel %vm410_vm3, %v3983_v53, %v3984_v60  ;;  %v4155_v8 = vrot.slane %v4122_v61, 2  ;;  %v4124_v9 = vunpack.c.l.bf16 %v5202_v56  ;;  %v5223_v53 = vld [vmem:[%s5794_s16 + $0x30] sm:$0xe] }
  0xd4   : > { %v4125_v27 = vunpack.c.l.bf16 %v5203_v57  ;;  %v3997_v11 = vpack.c.bf16 %v3985_v6, %v6431_v59  ;;  %v4156_v14 = vrot.slane %v4123_v63, 2  ;;  %v4126_v15 = vunpack.c.l.bf16 %v5204_v62  ;;  %v5225_v59 = vld [vmem:[%s5794_s16 + $0x38] sm:$0xe]  ;;  %v5226_v63 = vld [vmem:[%s5794_s16 + $0x3c] sm:$0x3] }
  0xd5   : > { %5603 = vmatmul.mubr.msk.bf16.vlgmr.msra.gmra.mrb[84].mxu1 %vm261_vm2, %v3995_v45  ;;  %v4154_v13 = vsel %vm601_vm4, %v4152_v1, %v4153_v2  ;;  %v4127_v35 = vunpack.c.l.bf16 %v5205_v3  ;;  %v4158_v17 = vrot.slane %v4124_v9, 2  ;;  %v4591_v18 = vand.u32 %v5256_v5, %v5759_v4  ;;  %v5220_v45 = vld [vmem:[%s5794_s16 + $0x24] sm:$0x3]  ;;  %v5227_v1 = vld [vmem:[%s5794_s16 + $0x40] sm:$0xe] }
  0xd6   : > { %5606 = vmatprep.mubr.msk.bf16.mxu1 %vm261_vm2, %v3996_v25  ;;  %5621 = vmatpush3.bf16.msra.mxu1 %v4401_v32  ;;  %v4159_v30 = vrot.slane %v4125_v27, 2  ;;  %v4157_v0 = vsel %vm601_vm4, %v4155_v8, %v4156_v14  ;;  %v4161_v7 = vrot.slane %v4126_v15, 2  ;;  %v4128_v12 = vunpack.c.l.bf16 %v5206_v10  ;;  %v5228_v8 = vld [vmem:[%s5794_s16 + $0x44] sm:$0x3] }
  0xd7   : > { %v4129_v21 = vunpack.c.l.bf16 %v5207_v34  ;;  %v4184_v33 = vpack.c.bf16 %v4157_v0, %v4154_v13  ;;  %v4162_v38 = vrot.slane %v4127_v35, 2  ;;  %5630 = vmatprep.subr.bf16.mxu0 %v4591_v18  ;;  %v4130_v39 = vunpack.c.l.bf16 %v5208_v16  ;;  %v5230_v13 = vld [vmem:[%s5794_s16 + $0x4c] sm:$0x3]  ;;  %v5232_v0 = vld [vmem:[%s5794_s16 + $0x54] sm:$0x3] }
  0xd8   : > { %v4160_v32 = vsel %vm601_vm4, %v4158_v17, %v4159_v30  ;;  %v4131_v4 = vunpack.c.l.bf16 %v5209_v19  ;;  %v4164_v40 = vrot.slane %v4128_v12, 2  ;;  %v4132_v41 = vunpack.c.l.bf16 %v5210_v20  ;;  %v5231_v17 = vld [vmem:[%s5794_s16 + $0x50] sm:$0xe] }
  0xd9   : > { %v4165_v22 = vrot.slane %v4129_v21, 2  ;;  %5612 = vmatprep.mubr.msk.bf16.mxu0 %vm261_vm2, %v4184_v33  ;;  %v4163_v43 = vsel %vm601_vm4, %v4161_v7, %v4162_v38  ;;  %v4167_v36 = vrot.slane %v4130_v39, 2  ;;  %v4133_v44 = vunpack.c.l.bf16 %v5211_v26  ;;  %v5234_v33 = vld [vmem:[%s5794_s16 + $0x5c] sm:$0x3] }
  0xda   : > { %v4134_v24 = vunpack.c.l.bf16 %v5212_v31  ;;  %v4185_v23 = vpack.c.bf16 %v4163_v43, %v4160_v32  ;;  %v4168_v47 = vrot.slane %v4131_v4, 2  ;;  %v4135_v48 = vunpack.c.l.bf16 %v5213_v28  ;;  %v5233_v31 = vld [vmem:[%s5794_s16 + $0x58] sm:$0xe]  ;;  %v6483_v4 = vld [vmem:[%s5794_s16 + $0x20] sm:$0xc] }
  0xdb   : > { %v4166_v37 = vsel %vm601_vm4, %v4164_v40, %v4165_v22  ;;  %v4170_v49 = vrot.slane %v4132_v41, 2  ;;  %v4171_v50 = vrot.slane %v4133_v44, 2  ;;  %v4310_v52 = vunpack.c.l.bf16 %v5219_v42  ;;  %v6486_v40 = vld [vmem:[%s5794_s16 + $0x24] sm:$0x3]  ;;  %v254_v22 = vld [vmem:[#allocation2 + $0x10] sm:$0xff] }
  0xdc   : > { %v4173_v51 = vrot.slane %v4134_v24, 2  ;;  %5613 = vmatmul.mubr.msk.bf16.vlgmr.msra.gmra.mrb[84].mxu0 %vm261_vm2, %v4185_v23  ;;  %v4169_v54 = vsel %vm601_vm4, %v4167_v36, %v4168_v47  ;;  %v4174_v55 = vrot.slane %v4135_v48, 2  ;;  %v4311_v56 = vunpack.c.l.bf16 %v5220_v45  ;;  %v5242_v44 = vld [vmem:[%s5794_s16 + $0x28] sm:$0xc]  ;;  %v258_v24 = vld [vmem:[#allocation2 + $0x30] sm:$0xff]  ;;  %v252_v45 = vld [vmem:[#allocation2] sm:$0xff] }
  0xdd   : > { %5607 = vmatmul.mubr.msk.bf16.gmra.mrb[88].mxu1 %vm261_vm2, %v3997_v11  ;;  %v4312_v57 = vunpack.c.l.bf16 %v5221_v46  ;;  %v4186_v60 = vpack.c.bf16 %v4169_v54, %v4166_v37  ;;  %5631 = vmatpush3.bf16.msra.mxu0 %v4591_v18  ;;  %v4172_v61 = vsel %vm601_vm4, %v4170_v49, %v4171_v50  ;;  %v4313_v62 = vunpack.c.l.bf16 %v5222_v29  ;;  %v5229_v11 = vld [vmem:[%s5794_s16 + $0x48] sm:$0xe]  ;;  %v5243_v48 = vld [vmem:[%s5794_s16 + $0x2c] sm:$0x3]  ;;  %v256_v49 = vld [vmem:[#allocation2 + $0x20] sm:$0xff] }
  0xde   : > { %v4342_v25 = vrot.slane %v4310_v52, 3  ;;  %v4175_v2 = vsel %vm601_vm4, %v4173_v51, %v4174_v55  ;;  %v4343_v3 = vrot.slane %v4311_v56, 3  ;;  %v4314_v6 = vunpack.c.l.bf16 %v5223_v53  ;;  %v255_v50 = vld [vmem:[#allocation2 + $0x18] sm:$0xff] }
  0xdf   : > { %v4345_v5 = vrot.slane %v4312_v57, 3  ;;  %5616 = vmatprep.mubr.msk.bf16.mxu0 %vm261_vm2, %v4186_v60  ;;  %v4187_v9 = vpack.c.bf16 %v4175_v2, %v4172_v61  ;;  %v4346_v27 = vrot.slane %v4313_v62, 3  ;;  %v4315_v10 = vunpack.c.l.bf16 %v5224_v58  ;;  %v259_v58 = vld [vmem:[#allocation2 + $0x38] sm:$0xff] }
  0xe0   : > { %v4316_v34 = vunpack.c.l.bf16 %v5225_v59  ;;  %v4344_v14 = vsel %vm792_vm5, %v4342_v25, %v4343_v3  ;;  %v4317_v15 = vunpack.c.l.bf16 %v5226_v63  ;;  %v4348_v16 = vrot.slane %v4314_v6, 3  ;;  %v253_v59 = vld [vmem:[#allocation2 + $0x8] sm:$0xff]  ;;  %v5244_v25 = vld [vmem:[%s5794_s16 + $0x30] sm:$0xc] }
  0xe1   : > { %v4318_v35 = vunpack.c.l.bf16 %v5227_v1  ;;  %v4347_v30 = vsel %vm792_vm5, %v4345_v5, %v4346_v27  ;;  %v4349_v18 = vrot.slane %v4315_v10, 3  ;;  %v4319_v20 = vunpack.c.l.bf16 %v5228_v8  ;;  %v257_v5 = vld [vmem:[#allocation2 + $0x28] sm:$0xff] }
  0xe2   : > { %v4351_v19 = vrot.slane %v4316_v34, 3  ;;  %v4374_v7 = vpack.c.bf16 %v4347_v30, %v4344_v14  ;;  %v4352_v12 = vrot.slane %v4317_v15, 3  ;;  %v4320_v21 = vunpack.c.l.bf16 %v5229_v11  ;;  %v5246_v15 = vld [vmem:[%s5794_s16 + $0x38] sm:$0xc] }
  0xe3   : > { %v4321_v26 = vunpack.c.l.bf16 %v5230_v13  ;;  %v4350_v32 = vsel %vm792_vm5, %v4348_v16, %v4349_v18  ;;  %v4354_v38 = vrot.slane %v4318_v35, 3  ;;  %v4355_v39 = vrot.slane %v4319_v20, 3  ;;  %v5247_v16 = vld [vmem:[%s5794_s16 + $0x3c] sm:$0x3]  ;;  %v5248_v20 = vld [vmem:[%s5794_s16 + $0x40] sm:$0xc] }
  0xe4   : > { %v4322_v28 = vunpack.c.l.bf16 %v5231_v17  ;;  %5617 = vmatmul.mubr.msk.bf16.gmra.mrb[88].mxu0 %vm261_vm2, %v4187_v9  ;;  %5622 = vmatprep.mubr.msk.bf16.mxu1 %vm261_vm2, %v4374_v7  ;;  %v4353_v41 = vsel %vm792_vm5, %v4351_v19, %v4352_v12  ;;  %v4357_v42 = vrot.slane %v4320_v21, 3  ;;  %v4323_v36 = vunpack.c.l.bf16 %v5232_v0  ;;  %v5245_v9 = vld [vmem:[%s5794_s16 + $0x34] sm:$0x3]  ;;  %v5249_v0 = vld [vmem:[%s5794_s16 + $0x44] sm:$0x3] }
  0xe5   : > { %v4358_v43 = vrot.slane %v4321_v26, 3  ;;  %v4375_v46 = vpack.c.bf16 %v4353_v41, %v4350_v32  ;;  %v4356_v23 = vsel %vm792_vm5, %v4354_v38, %v4355_v39  ;;  %v4324_v37 = vunpack.c.l.bf16 %v5233_v31  ;;  %v5250_v39 = vld [vmem:[%s5794_s16 + $0x48] sm:$0xc] }
  0xe6   : > { %v4325_v47 = vunpack.c.l.bf16 %v5234_v33  ;;  %v4360_v52 = vrot.slane %v4322_v28, 3  ;;  %v4361_v53 = vrot.slane %v4323_v36, 3  ;;  %v4500_v54 = vunpack.c.l.bf16 %v6483_v4  ;;  %v5251_v28 = vld [vmem:[%s5794_s16 + $0x4c] sm:$0x3] }
  0xe7   : > { %v5394_v29 = vpop.f32.mrb[0].mxu0  ;;  %v4359_v51 = vsel %vm792_vm5, %v4357_v42, %v4358_v43  ;;  %5623 = vmatmul.mubr.msk.bf16.vlgmr.msra.gmra.mrb[92].mxu1 %vm261_vm2, %v4375_v46  ;;  %v4363_v61 = vrot.slane %v4324_v37, 3  ;;  %v4501_v8 = vunpack.c.l.bf16 %v6486_v40  ;;  %v4502_v14 = vunpack.c.l.bf16 %v5242_v44  ;;  %v5252_v42 = vld [vmem:[%s5794_s16 + $0x50] sm:$0xc] }
  0xe8   : > { %v348_v55 = vadd.f32 %v5394_v29, %v254_v22  ;;  %v5398_v56 = vpop.f32.mrb[0].mxu1  ;;  %v315_v57 = vpop.f32.mrb[1].mxu0  ;;  %v4376_v60 = vpack.c.bf16 %v4359_v51, %v4356_v23  ;;  %v4364_v62 = vrot.slane %v4325_v47, 3  ;;  %v4362_v6 = vsel %vm792_vm5, %v4360_v52, %v4361_v53  ;;  %v5254_v29 = vld [vmem:[%s5794_s16 + $0x58] sm:$0xc] }
  0xe9   : > { %v352_v63 = vadd.f32 %v5398_v56, %v258_v24  ;;  %v346_v1 = vadd.f32 %v315_v57, %v252_v45  ;;  %v331_v2 = vpop.f32.mrb[1].mxu1  ;;  %v5395_v3 = vpop.f32.mrb[2].mxu0  ;;  %v4503_v19 = vunpack.c.l.bf16 %v5243_v48  ;;  %v4532_v12 = vrot.slane %v4500_v54, 4  ;;  %v5253_v48 = vld [vmem:[%s5794_s16 + $0x54] sm:$0x3] }
  0xea   : > { %356 = vst.msk [vmem:[#allocation2 + $0x10] sm:$0xff] %vm223_vm7, %v348_v55  ;;  %v350_v27 = vadd.f32 %v331_v2, %v256_v49  ;;  %v349_v10 = vadd.f32 %v5395_v3, %v255_v50  ;;  %v5399_v34 = vpop.f32.mrb[2].mxu1  ;;  %v318_v11 = vpop.f32.mrb[3].mxu0  ;;  %5626 = vmatprep.mubr.msk.bf16.mxu1 %vm261_vm2, %v4376_v60  ;;  %v4365_v13 = vsel %vm792_vm5, %v4363_v61, %v4364_v62  ;;  %v4533_v21 = vrot.slane %v4501_v8, 4  ;;  %v5255_v54 = vld [vmem:[%s5794_s16 + $0x5c] sm:$0x3] }
  0xeb   : > { %360 = vst.msk [vmem:[#allocation2 + $0x30] sm:$0xff] %vm223_vm7, %v352_v63  ;;  %354 = vst.msk [vmem:[#allocation2] sm:$0xff] %vm223_vm7, %v346_v1  ;;  %v353_v35 = vadd.f32 %v5399_v34, %v259_v58  ;;  %v347_v17 = vadd.f32 %v318_v11, %v253_v59  ;;  %v334_v30 = vpop.f32.mrb[3].mxu1  ;;  %v4377_v18 = vpack.c.bf16 %v4365_v13, %v4362_v6  ;;  %v4535_v26 = vrot.slane %v4502_v14, 4 }
  0xec   : > { %358 = vst.msk [vmem:[#allocation2 + $0x20] sm:$0xff] %vm223_vm7, %v350_v27  ;;  %357 = vst.msk [vmem:[#allocation2 + $0x18] sm:$0xff] %vm223_vm7, %v349_v10  ;;  %v351_v7 = vadd.f32 %v334_v30, %v257_v5  ;;  %v4536_v31 = vrot.slane %v4503_v19, 4  ;;  %v4504_v33 = vunpack.c.l.bf16 %v5244_v25  ;;  %v4505_v32 = vunpack.c.l.bf16 %v5245_v9 }
  0xed   : > { %361 = vst.msk [vmem:[#allocation2 + $0x38] sm:$0xff] %vm223_vm7, %v353_v35  ;;  %355 = vst.msk [vmem:[#allocation2 + $0x8] sm:$0xff] %vm223_vm7, %v347_v17  ;;  %v4506_v38 = vunpack.c.l.bf16 %v5246_v15  ;;  %v4534_v4 = vsel %vm983_vm6, %v4532_v12, %v4533_v21  ;;  %v4507_v40 = vunpack.c.l.bf16 %v5247_v16  ;;  %v4508_v22 = vunpack.c.l.bf16 %v5248_v20 }
  0xee   : > { %359 = vst.msk [vmem:[#allocation2 + $0x28] sm:$0xff] %vm223_vm7, %v351_v7  ;;  %v4509_v41 = vunpack.c.l.bf16 %v5249_v0  ;;  %v4537_v43 = vsel %vm983_vm6, %v4535_v26, %v4536_v31  ;;  %v4538_v36 = vrot.slane %v4504_v33, 4  ;;  %v4539_v44 = vrot.slane %v4505_v32, 4 }
  0xef   : > { %v4541_v24 = vrot.slane %v4506_v38, 4  ;;  %5627 = vmatmul.mubr.msk.bf16.gmra.mrb[96].mxu1 %vm261_vm2, %v4377_v18  ;;  %v4564_v46 = vpack.c.bf16 %v4537_v43, %v4534_v4  ;;  %v4542_v23 = vrot.slane %v4507_v40, 4  ;;  %v4510_v37 = vunpack.c.l.bf16 %v5250_v39 }
  0xf0   : > { %v5404_v45 = vpop.f32.mrb[4].mxu1  ;;  %v4511_v47 = vunpack.c.l.bf16 %v5251_v28  ;;  %v4540_v51 = vsel %vm983_vm6, %v4538_v36, %v4539_v44  ;;  %v4544_v52 = vrot.slane %v4508_v22, 4  ;;  %v4545_v53 = vrot.slane %v4509_v41, 4 }
  0xf1   : > { %v449_v49 = vld [vmem:[#allocation2 + $0x10] sm:$0xff]  ;;  %v506_v50 = vpop.f32.mrb[5].mxu1  ;;  %v4512_v55 = vunpack.c.l.bf16 %v5252_v42  ;;  %5632 = vmatprep.mubr.msk.bf16.mxu0 %vm261_vm2, %v4564_v46  ;;  %v4543_v59 = vsel %vm983_vm6, %v4541_v24, %v4542_v23  ;;  %v4547_v60 = vrot.slane %v4510_v37, 4  ;;  %v4513_v3 = vunpack.c.l.bf16 %v5253_v48 }
  0xf2   : > { %v539_v56 = vadd.f32 %v5404_v45, %v449_v49  ;;  %v447_v57 = vld [vmem:[#allocation2] sm:$0xff]  ;;  %v5405_v58 = vpop.f32.mrb[6].mxu1  ;;  %v4548_v61 = vrot.slane %v4511_v47, 4  ;;  %v4565_v1 = vpack.c.bf16 %v4543_v59, %v4540_v51  ;;  %v4546_v2 = vsel %vm983_vm6, %v4544_v52, %v4545_v53  ;;  %v453_v21 = vld [vmem:[#allocation2 + $0x30] sm:$0xff] }
  0xf3   : > { %v537_v62 = vadd.f32 %v506_v50, %v447_v57  ;;  %v450_v25 = vld [vmem:[#allocation2 + $0x18] sm:$0xff]  ;;  %v509_v63 = vpop.f32.mrb[7].mxu1  ;;  %v4514_v9 = vunpack.c.l.bf16 %v5254_v29  ;;  %v4515_v27 = vunpack.c.l.bf16 %v5255_v54  ;;  %v4550_v11 = vrot.slane %v4512_v55, 4  ;;  %v451_v38 = vld [vmem:[#allocation2 + $0x20] sm:$0xff] }
  0xf4   : > { %547 = vst.msk [vmem:[#allocation2 + $0x10] sm:$0xff] %vm223_vm7, %v539_v56  ;;  %v540_v5 = vadd.f32 %v5405_v58, %v450_v25  ;;  %v448_v6 = vld [vmem:[#allocation2 + $0x8] sm:$0xff]  ;;  %v4549_v8 = vsel %vm983_vm6, %v4547_v60, %v4548_v61  ;;  %5633 = vmatmul.mubr.msk.bf16.vlgmr.msra.gmra.mrb[92].mxu0 %vm261_vm2, %v4565_v1  ;;  %v4551_v13 = vrot.slane %v4513_v3, 4  ;;  %v454_v22 = vld [vmem:[#allocation2 + $0x38] sm:$0xff] }
  0xf5   : > { %545 = vst.msk [vmem:[#allocation2] sm:$0xff] %vm223_vm7, %v537_v62  ;;  %v538_v10 = vadd.f32 %v509_v63, %v448_v6  ;;  %v4566_v34 = vpack.c.bf16 %v4549_v8, %v4546_v2  ;;  %v4553_v14 = vrot.slane %v4514_v9, 4  ;;  %v4554_v15 = vrot.slane %v4515_v27, 4  ;;  %v452_v36 = vld [vmem:[#allocation2 + $0x28] sm:$0xff] }
  0xf6   : > { %548 = vst.msk [vmem:[#allocation2 + $0x18] sm:$0xff] %vm223_vm7, %v540_v5  ;;  %v4552_v16 = vsel %vm983_vm6, %v4550_v11, %v4551_v13 }
  0xf7   : > { %546 = vst.msk [vmem:[#allocation2 + $0x8] sm:$0xff] %vm223_vm7, %v538_v10  ;;  %5636 = vmatprep.mubr.msk.bf16.mxu0 %vm261_vm2, %v4566_v34  ;;  %v4555_v35 = vsel %vm983_vm6, %v4553_v14, %v4554_v15 }
  0xf8   : > { %v4567_v30 = vpack.c.bf16 %v4555_v35, %v4552_v16 }
  0xf9   : > { %v5414_v17 = vpop.f32.mrb[4].mxu0 }
  0xfa   : > { %v697_v18 = vpop.f32.mrb[5].mxu0 }
  0xfb   : > { %v640_v19 = vld [vmem:[#allocation2 + $0x10] sm:$0xff]  ;;  %v5415_v20 = vpop.f32.mrb[6].mxu0 }
  0xfc   : > { %v730_v0 = vadd.f32 %v5414_v17, %v640_v19  ;;  %v638_v7 = vld [vmem:[#allocation2] sm:$0xff]  ;;  %v700_v12 = vpop.f32.mrb[7].mxu0  ;;  %v5408_v26 = vpop.f32.mrb[8].mxu1  ;;  %5637 = vmatmul.mubr.msk.bf16.gmra.mrb[96].mxu0 %vm261_vm2, %v4567_v30 }
  0xfd   : > { %v728_v31 = vadd.f32 %v697_v18, %v638_v7  ;;  %v641_v33 = vld [vmem:[#allocation2 + $0x18] sm:$0xff]  ;;  %v543_v32 = vadd.f32 %v5408_v26, %v453_v21  ;;  %v522_v39 = vpop.f32.mrb[9].mxu1 }
  0xfe   : > { %738 = vst.msk [vmem:[#allocation2 + $0x10] sm:$0xff] %vm223_vm7, %v730_v0  ;;  %v731_v28 = vadd.f32 %v5415_v20, %v641_v33  ;;  %v639_v4 = vld [vmem:[#allocation2 + $0x8] sm:$0xff]  ;;  %v541_v40 = vadd.f32 %v522_v39, %v451_v38  ;;  %v5409_v41 = vpop.f32.mrb[10].mxu1 }
  0xff   : > { %736 = vst.msk [vmem:[#allocation2] sm:$0xff] %vm223_vm7, %v728_v31  ;;  %v729_v42 = vadd.f32 %v700_v12, %v639_v4  ;;  %551 = vst.msk [vmem:[#allocation2 + $0x30] sm:$0xff] %vm223_vm7, %v543_v32  ;;  %v544_v43 = vadd.f32 %v5409_v41, %v454_v22  ;;  %v525_v44 = vpop.f32.mrb[11].mxu1 }
 0x100   : > { %739 = vst.msk [vmem:[#allocation2 + $0x18] sm:$0xff] %vm223_vm7, %v731_v28  ;;  %549 = vst.msk [vmem:[#allocation2 + $0x20] sm:$0xff] %vm223_vm7, %v541_v40  ;;  %v542_v24 = vadd.f32 %v525_v44, %v452_v36 }
 0x101   : > { %737 = vst.msk [vmem:[#allocation2 + $0x8] sm:$0xff] %vm223_vm7, %v729_v42  ;;  %552 = vst.msk [vmem:[#allocation2 + $0x38] sm:$0xff] %vm223_vm7, %v544_v43 }
 0x102   : > { %v5418_v45 = vpop.f32.mrb[8].mxu0  ;;  %550 = vst.msk [vmem:[#allocation2 + $0x28] sm:$0xff] %vm223_vm7, %v542_v24 }
 0x103   : > { %v713_v46 = vpop.f32.mrb[9].mxu0 }
 0x104   : > { %v5419_v23 = vpop.f32.mrb[10].mxu0 }
 0x105   : > { %v831_v37 = vld [vmem:[#allocation2 + $0x10] sm:$0xff]  ;;  %v716_v47 = vpop.f32.mrb[11].mxu0 }
 0x106   : > { %v829_v48 = vld [vmem:[#allocation2] sm:$0xff]  ;;  %v644_v29 = vld [vmem:[#allocation2 + $0x30] sm:$0xff] }
 0x107   : > { %v5424_v49 = vpop.f32.mrb[12].mxu1  ;;  %v832_v50 = vld [vmem:[#allocation2 + $0x18] sm:$0xff]  ;;  %v734_v51 = vadd.f32 %v5418_v45, %v644_v29  ;;  %v642_v52 = vld [vmem:[#allocation2 + $0x20] sm:$0xff] }
 0x108   : > { %v921_v53 = vadd.f32 %v5424_v49, %v831_v37  ;;  %v888_v54 = vpop.f32.mrb[13].mxu1  ;;  %v830_v55 = vld [vmem:[#allocation2 + $0x8] sm:$0xff]  ;;  %v732_v56 = vadd.f32 %v713_v46, %v642_v52  ;;  %v645_v57 = vld [vmem:[#allocation2 + $0x38] sm:$0xff] }
 0x109   : > { %v919_v58 = vadd.f32 %v888_v54, %v829_v48  ;;  %v5425_v59 = vpop.f32.mrb[14].mxu1  ;;  %742 = vst.msk [vmem:[#allocation2 + $0x30] sm:$0xff] %vm223_vm7, %v734_v51  ;;  %v735_v60 = vadd.f32 %v5419_v23, %v645_v57  ;;  %v643_v61 = vld [vmem:[#allocation2 + $0x28] sm:$0xff] }
 0x10a   : > { %929 = vst.msk [vmem:[#allocation2 + $0x10] sm:$0xff] %vm223_vm7, %v921_v53  ;;  %v922_v62 = vadd.f32 %v5425_v59, %v832_v50  ;;  %v891_v25 = vpop.f32.mrb[15].mxu1  ;;  %740 = vst.msk [vmem:[#allocation2 + $0x20] sm:$0xff] %vm223_vm7, %v732_v56  ;;  %v733_v63 = vadd.f32 %v716_v47, %v643_v61 }
 0x10b   : > { %927 = vst.msk [vmem:[#allocation2] sm:$0xff] %vm223_vm7, %v919_v58  ;;  %v920_v1 = vadd.f32 %v891_v25, %v830_v55  ;;  %743 = vst.msk [vmem:[#allocation2 + $0x38] sm:$0xff] %vm223_vm7, %v735_v60 }
 0x10c   : > { %930 = vst.msk [vmem:[#allocation2 + $0x18] sm:$0xff] %vm223_vm7, %v922_v62  ;;  %741 = vst.msk [vmem:[#allocation2 + $0x28] sm:$0xff] %vm223_vm7, %v733_v63 }
 0x10d   : > { %928 = vst.msk [vmem:[#allocation2 + $0x8] sm:$0xff] %vm223_vm7, %v920_v1 }
 0x10f   : > { %v5428_v2 = vpop.f32.mrb[16].mxu1 }
 0x110   : > { %v904_v3 = vpop.f32.mrb[17].mxu1  ;;  %v835_v5 = vld [vmem:[#allocation2 + $0x30] sm:$0xff] }
 0x111   : > { %v5429_v6 = vpop.f32.mrb[18].mxu1  ;;  %v1022_v8 = vld [vmem:[#allocation2 + $0x10] sm:$0xff]  ;;  %v925_v9 = vadd.f32 %v5428_v2, %v835_v5  ;;  %v833_v27 = vld [vmem:[#allocation2 + $0x20] sm:$0xff] }
 0x112   : > { %v907_v10 = vpop.f32.mrb[19].mxu1  ;;  %v1020_v34 = vld [vmem:[#allocation2] sm:$0xff]  ;;  %v923_v11 = vadd.f32 %v904_v3, %v833_v27  ;;  %v836_v13 = vld [vmem:[#allocation2 + $0x38] sm:$0xff]  ;;  %v5434_v14 = vpop.f32.mrb[12].mxu0 }
 0x113   : > { %v1023_v15 = vld [vmem:[#allocation2 + $0x18] sm:$0xff]  ;;  %933 = vst.msk [vmem:[#allocation2 + $0x30] sm:$0xff] %vm223_vm7, %v925_v9  ;;  %v926_v16 = vadd.f32 %v5429_v6, %v836_v13  ;;  %v1112_v35 = vadd.f32 %v5434_v14, %v1022_v8  ;;  %v834_v17 = vld [vmem:[#allocation2 + $0x28] sm:$0xff]  ;;  %v1079_v30 = vpop.f32.mrb[13].mxu0 }
 0x114   : > { %v1021_v18 = vld [vmem:[#allocation2 + $0x8] sm:$0xff]  ;;  %931 = vst.msk [vmem:[#allocation2 + $0x20] sm:$0xff] %vm223_vm7, %v923_v11  ;;  %v924_v19 = vadd.f32 %v907_v10, %v834_v17  ;;  %v1110_v20 = vadd.f32 %v1079_v30, %v1020_v34  ;;  %v5435_v0 = vpop.f32.mrb[14].mxu0 }
 0x115   : > { %934 = vst.msk [vmem:[#allocation2 + $0x38] sm:$0xff] %vm223_vm7, %v926_v16  ;;  %1120 = vst.msk [vmem:[#allocation2 + $0x10] sm:$0xff] %vm223_vm7, %v1112_v35  ;;  %v1113_v7 = vadd.f32 %v5435_v0, %v1023_v15  ;;  %v1082_v12 = vpop.f32.mrb[15].mxu0 }
 0x116   : > { %932 = vst.msk [vmem:[#allocation2 + $0x28] sm:$0xff] %vm223_vm7, %v924_v19  ;;  %1118 = vst.msk [vmem:[#allocation2] sm:$0xff] %vm223_vm7, %v1110_v20  ;;  %v1111_v21 = vadd.f32 %v1082_v12, %v1021_v18 }
 0x117   : > { %v5444_v26 = vpop.f32.mrb[20].mxu1  ;;  %1121 = vst.msk [vmem:[#allocation2 + $0x18] sm:$0xff] %vm223_vm7, %v1113_v7 }
 0x118   : > { %v1206_v31 = vpop.f32.mrb[21].mxu1  ;;  %1119 = vst.msk [vmem:[#allocation2 + $0x8] sm:$0xff] %vm223_vm7, %v1111_v21 }
 0x119   : > { %v5445_v33 = vpop.f32.mrb[22].mxu1 }
 0x11a   : > { %v1209_v32 = vpop.f32.mrb[23].mxu1  ;;  %v1026_v38 = vld [vmem:[#allocation2 + $0x30] sm:$0xff]  ;;  %v5438_v39 = vpop.f32.mrb[16].mxu0 }
 0x11b   : > { %v1116_v28 = vadd.f32 %v5438_v39, %v1026_v38  ;;  %v1024_v4 = vld [vmem:[#allocation2 + $0x20] sm:$0xff]  ;;  %v1095_v40 = vpop.f32.mrb[17].mxu0 }
 0x11c   : > { %v1114_v22 = vadd.f32 %v1095_v40, %v1024_v4  ;;  %v1027_v41 = vld [vmem:[#allocation2 + $0x38] sm:$0xff]  ;;  %v5439_v42 = vpop.f32.mrb[18].mxu0  ;;  %v1149_v43 = vld [vmem:[#allocation2 + $0x10] sm:$0xff] }
 0x11d   : > { %1124 = vst.msk [vmem:[#allocation2 + $0x30] sm:$0xff] %vm223_vm7, %v1116_v28  ;;  %v1117_v36 = vadd.f32 %v5439_v42, %v1027_v41  ;;  %v1239_v44 = vadd.f32 %v5444_v26, %v1149_v43  ;;  %v1025_v24 = vld [vmem:[#allocation2 + $0x28] sm:$0xff]  ;;  %v1098_v45 = vpop.f32.mrb[19].mxu0  ;;  %v1147_v46 = vld [vmem:[#allocation2] sm:$0xff] }
 0x11e   : > { %1122 = vst.msk [vmem:[#allocation2 + $0x20] sm:$0xff] %vm223_vm7, %v1114_v22  ;;  %v1115_v23 = vadd.f32 %v1098_v45, %v1025_v24  ;;  %v1237_v37 = vadd.f32 %v1206_v31, %v1147_v46  ;;  %v1150_v47 = vld [vmem:[#allocation2 + $0x18] sm:$0xff] }
 0x11f   : > { %v5448_v48 = vpop.f32.mrb[24].mxu1  ;;  %1125 = vst.msk [vmem:[#allocation2 + $0x38] sm:$0xff] %vm223_vm7, %v1117_v36  ;;  %1247 = vst.msk [vmem:[#allocation2 + $0x10] sm:$0xff] %vm223_vm7, %v1239_v44  ;;  %v1240_v29 = vadd.f32 %v5445_v33, %v1150_v47  ;;  %v1148_v49 = vld [vmem:[#allocation2 + $0x8] sm:$0xff] }
 0x120   : > { %v1222_v50 = vpop.f32.mrb[25].mxu1  ;;  %1123 = vst.msk [vmem:[#allocation2 + $0x28] sm:$0xff] %vm223_vm7, %v1115_v23  ;;  %1245 = vst.msk [vmem:[#allocation2] sm:$0xff] %vm223_vm7, %v1237_v37  ;;  %v1238_v51 = vadd.f32 %v1209_v32, %v1148_v49 }
 0x121   : > { %v5449_v52 = vpop.f32.mrb[26].mxu1  ;;  %1248 = vst.msk [vmem:[#allocation2 + $0x18] sm:$0xff] %vm223_vm7, %v1240_v29 }
 0x122   : > { %v1225_v53 = vpop.f32.mrb[27].mxu1  ;;  %1246 = vst.msk [vmem:[#allocation2 + $0x8] sm:$0xff] %vm223_vm7, %v1238_v51  ;;  %v5454_v54 = vpop.f32.mrb[20].mxu0 }
 0x123   : > { %v1396_v55 = vpop.f32.mrb[21].mxu0 }
 0x124   : > { %v1153_v56 = vld [vmem:[#allocation2 + $0x30] sm:$0xff]  ;;  %v5455_v57 = vpop.f32.mrb[22].mxu0 }
 0x125   : > { %v1243_v58 = vadd.f32 %v5448_v48, %v1153_v56  ;;  %v1151_v59 = vld [vmem:[#allocation2 + $0x20] sm:$0xff]  ;;  %v1399_v60 = vpop.f32.mrb[23].mxu0 }
 0x126   : > { %v1241_v61 = vadd.f32 %v1222_v50, %v1151_v59  ;;  %v1154_v62 = vld [vmem:[#allocation2 + $0x38] sm:$0xff]  ;;  %v1339_v25 = vld [vmem:[#allocation2 + $0x10] sm:$0xff] }
 0x127   : > { %1251 = vst.msk [vmem:[#allocation2 + $0x30] sm:$0xff] %vm223_vm7, %v1243_v58  ;;  %v1244_v63 = vadd.f32 %v5449_v52, %v1154_v62  ;;  %v1429_v1 = vadd.f32 %v5454_v54, %v1339_v25  ;;  %v1152_v2 = vld [vmem:[#allocation2 + $0x28] sm:$0xff]  ;;  %v1337_v3 = vld [vmem:[#allocation2] sm:$0xff] }
 0x128   : > { %1249 = vst.msk [vmem:[#allocation2 + $0x20] sm:$0xff] %vm223_vm7, %v1241_v61  ;;  %v1242_v5 = vadd.f32 %v1225_v53, %v1152_v2  ;;  %v1427_v6 = vadd.f32 %v1396_v55, %v1337_v3  ;;  %v1340_v8 = vld [vmem:[#allocation2 + $0x18] sm:$0xff]  ;;  %v5464_v9 = vpop.f32.mrb[28].mxu1 }
 0x129   : > { %1252 = vst.msk [vmem:[#allocation2 + $0x38] sm:$0xff] %vm223_vm7, %v1244_v63  ;;  %1437 = vst.msk [vmem:[#allocation2 + $0x10] sm:$0xff] %vm223_vm7, %v1429_v1  ;;  %v1430_v27 = vadd.f32 %v5455_v57, %v1340_v8  ;;  %v1338_v10 = vld [vmem:[#allocation2 + $0x8] sm:$0xff]  ;;  %v1586_v34 = vpop.f32.mrb[29].mxu1 }
 0x12a   : > { %1250 = vst.msk [vmem:[#allocation2 + $0x28] sm:$0xff] %vm223_vm7, %v1242_v5  ;;  %1435 = vst.msk [vmem:[#allocation2] sm:$0xff] %vm223_vm7, %v1427_v6  ;;  %v1428_v11 = vadd.f32 %v1399_v60, %v1338_v10  ;;  %v5458_v13 = vpop.f32.mrb[24].mxu0  ;;  %v5465_v14 = vpop.f32.mrb[30].mxu1 }
 0x12b   : > { %1438 = vst.msk [vmem:[#allocation2 + $0x18] sm:$0xff] %vm223_vm7, %v1430_v27  ;;  %v1412_v15 = vpop.f32.mrb[25].mxu0  ;;  %v1589_v16 = vpop.f32.mrb[31].mxu1 }
 0x12c   : > { %1436 = vst.msk [vmem:[#allocation2 + $0x8] sm:$0xff] %vm223_vm7, %v1428_v11  ;;  %v5459_v35 = vpop.f32.mrb[26].mxu0 }
 0x12d   : > { %v1415_v17 = vpop.f32.mrb[27].mxu0 }
 0x12e   : > { %v1343_v30 = vld [vmem:[#allocation2 + $0x30] sm:$0xff] }
 0x12f   : > { %v1433_v18 = vadd.f32 %v5458_v13, %v1343_v30  ;;  %v1341_v19 = vld [vmem:[#allocation2 + $0x20] sm:$0xff] }
 0x130   : > { %v1431_v20 = vadd.f32 %v1412_v15, %v1341_v19  ;;  %v1344_v0 = vld [vmem:[#allocation2 + $0x38] sm:$0xff]  ;;  %v1529_v7 = vld [vmem:[#allocation2 + $0x10] sm:$0xff]  ;;  %v5468_v12 = vpop.f32.mrb[32].mxu1 }
 0x131   : > { %1441 = vst.msk [vmem:[#allocation2 + $0x30] sm:$0xff] %vm223_vm7, %v1433_v18  ;;  %v1434_v21 = vadd.f32 %v5459_v35, %v1344_v0  ;;  %v1619_v26 = vadd.f32 %v5464_v9, %v1529_v7  ;;  %v1342_v31 = vld [vmem:[#allocation2 + $0x28] sm:$0xff]  ;;  %v1527_v33 = vld [vmem:[#allocation2] sm:$0xff]  ;;  %v1602_v32 = vpop.f32.mrb[33].mxu1 }
 0x132   : > { %1439 = vst.msk [vmem:[#allocation2 + $0x20] sm:$0xff] %vm223_vm7, %v1431_v20  ;;  %v1432_v38 = vadd.f32 %v1415_v17, %v1342_v31  ;;  %v1617_v39 = vadd.f32 %v1586_v34, %v1527_v33  ;;  %v1530_v28 = vld [vmem:[#allocation2 + $0x18] sm:$0xff]  ;;  %v5469_v4 = vpop.f32.mrb[34].mxu1 }
 0x133   : > { %v5474_v40 = vpop.f32.mrb[28].mxu0  ;;  %1442 = vst.msk [vmem:[#allocation2 + $0x38] sm:$0xff] %vm223_vm7, %v1434_v21  ;;  %1627 = vst.msk [vmem:[#allocation2 + $0x10] sm:$0xff] %vm223_vm7, %v1619_v26  ;;  %v1620_v22 = vadd.f32 %v5465_v14, %v1530_v28  ;;  %v1528_v41 = vld [vmem:[#allocation2 + $0x8] sm:$0xff]  ;;  %v1605_v42 = vpop.f32.mrb[35].mxu1 }
 0x134   : > { %v1776_v43 = vpop.f32.mrb[29].mxu0  ;;  %1440 = vst.msk [vmem:[#allocation2 + $0x28] sm:$0xff] %vm223_vm7, %v1432_v38  ;;  %1625 = vst.msk [vmem:[#allocation2] sm:$0xff] %vm223_vm7, %v1617_v39  ;;  %v1618_v36 = vadd.f32 %v1589_v16, %v1528_v41 }
 0x135   : > { %v5475_v44 = vpop.f32.mrb[30].mxu0  ;;  %1628 = vst.msk [vmem:[#allocation2 + $0x18] sm:$0xff] %vm223_vm7, %v1620_v22 }
 0x136   : > { %v1779_v24 = vpop.f32.mrb[31].mxu0  ;;  %1626 = vst.msk [vmem:[#allocation2 + $0x8] sm:$0xff] %vm223_vm7, %v1618_v36 }
 0x138   : > { %v1533_v45 = vld [vmem:[#allocation2 + $0x30] sm:$0xff] }
 0x139   : > { %v1623_v46 = vadd.f32 %v5468_v12, %v1533_v45  ;;  %v1531_v23 = vld [vmem:[#allocation2 + $0x20] sm:$0xff] }
 0x13a   : > { %v1621_v37 = vadd.f32 %v1602_v32, %v1531_v23  ;;  %v1534_v47 = vld [vmem:[#allocation2 + $0x38] sm:$0xff]  ;;  %v1719_v48 = vld [vmem:[#allocation2 + $0x10] sm:$0xff] }
 0x13b   : > { %v5478_v29 = vpop.f32.mrb[32].mxu0  ;;  %1631 = vst.msk [vmem:[#allocation2 + $0x30] sm:$0xff] %vm223_vm7, %v1623_v46  ;;  %v1624_v49 = vadd.f32 %v5469_v4, %v1534_v47  ;;  %v1809_v50 = vadd.f32 %v5474_v40, %v1719_v48  ;;  %v1532_v51 = vld [vmem:[#allocation2 + $0x28] sm:$0xff]  ;;  %v1717_v52 = vld [vmem:[#allocation2] sm:$0xff] }
 0x13c   : > { %v1792_v53 = vpop.f32.mrb[33].mxu0  ;;  %1629 = vst.msk [vmem:[#allocation2 + $0x20] sm:$0xff] %vm223_vm7, %v1621_v37  ;;  %v1622_v54 = vadd.f32 %v1605_v42, %v1532_v51  ;;  %v1807_v55 = vadd.f32 %v1776_v43, %v1717_v52  ;;  %v1720_v56 = vld [vmem:[#allocation2 + $0x18] sm:$0xff] }
 0x13d   : > { %v5479_v57 = vpop.f32.mrb[34].mxu0  ;;  %1632 = vst.msk [vmem:[#allocation2 + $0x38] sm:$0xff] %vm223_vm7, %v1624_v49  ;;  %1817 = vst.msk [vmem:[#allocation2 + $0x10] sm:$0xff] %vm223_vm7, %v1809_v50  ;;  %v1810_v58 = vadd.f32 %v5475_v44, %v1720_v56  ;;  %v1718_v59 = vld [vmem:[#allocation2 + $0x8] sm:$0xff] }
 0x13e   : > { %v1795_v60 = vpop.f32.mrb[35].mxu0  ;;  %1630 = vst.msk [vmem:[#allocation2 + $0x28] sm:$0xff] %vm223_vm7, %v1622_v54  ;;  %1815 = vst.msk [vmem:[#allocation2] sm:$0xff] %vm223_vm7, %v1807_v55  ;;  %v1808_v61 = vadd.f32 %v1779_v24, %v1718_v59  ;;  %v5484_v62 = vpop.f32.mrb[36].mxu1 }
 0x13f   : > { %1818 = vst.msk [vmem:[#allocation2 + $0x18] sm:$0xff] %vm223_vm7, %v1810_v58  ;;  %v1966_v25 = vpop.f32.mrb[37].mxu1 }
 0x140   : > { %1816 = vst.msk [vmem:[#allocation2 + $0x8] sm:$0xff] %vm223_vm7, %v1808_v61  ;;  %v5485_v63 = vpop.f32.mrb[38].mxu1 }
 0x141   : > { %v1969_v1 = vpop.f32.mrb[39].mxu1 }
 0x142   : > { %v1723_v2 = vld [vmem:[#allocation2 + $0x30] sm:$0xff] }
 0x143   : > { %v5494_v3 = vpop.f32.mrb[36].mxu0  ;;  %v1813_v5 = vadd.f32 %v5478_v29, %v1723_v2  ;;  %v1721_v6 = vld [vmem:[#allocation2 + $0x20] sm:$0xff] }
 0x144   : > { %v2093_v8 = vpop.f32.mrb[37].mxu0  ;;  %v1811_v9 = vadd.f32 %v1792_v53, %v1721_v6  ;;  %v1724_v27 = vld [vmem:[#allocation2 + $0x38] sm:$0xff]  ;;  %v1909_v10 = vld [vmem:[#allocation2 + $0x10] sm:$0xff] }
 0x145   : > { %v5495_v34 = vpop.f32.mrb[38].mxu0  ;;  %1821 = vst.msk [vmem:[#allocation2 + $0x30] sm:$0xff] %vm223_vm7, %v1813_v5  ;;  %v1814_v11 = vadd.f32 %v5479_v57, %v1724_v27  ;;  %v1999_v13 = vadd.f32 %v5484_v62, %v1909_v10  ;;  %v1722_v14 = vld [vmem:[#allocation2 + $0x28] sm:$0xff]  ;;  %v1907_v15 = vld [vmem:[#allocation2] sm:$0xff] }
 0x146   : > { %v2096_v16 = vpop.f32.mrb[39].mxu0  ;;  %1819 = vst.msk [vmem:[#allocation2 + $0x20] sm:$0xff] %vm223_vm7, %v1811_v9  ;;  %v1812_v35 = vadd.f32 %v1795_v60, %v1722_v14  ;;  %v1997_v17 = vadd.f32 %v1966_v25, %v1907_v15  ;;  %v1910_v30 = vld [vmem:[#allocation2 + $0x18] sm:$0xff]  ;;  %v5488_v18 = vpop.f32.mrb[40].mxu1 }
 0x147   : > { %1822 = vst.msk [vmem:[#allocation2 + $0x38] sm:$0xff] %vm223_vm7, %v1814_v11  ;;  %2007 = vst.msk [vmem:[#allocation2 + $0x10] sm:$0xff] %vm223_vm7, %v1999_v13  ;;  %v2000_v19 = vadd.f32 %v5485_v63, %v1910_v30  ;;  %v1908_v20 = vld [vmem:[#allocation2 + $0x8] sm:$0xff]  ;;  %v1982_v0 = vpop.f32.mrb[41].mxu1 }
 0x148   : > { %1820 = vst.msk [vmem:[#allocation2 + $0x28] sm:$0xff] %vm223_vm7, %v1812_v35  ;;  %2005 = vst.msk [vmem:[#allocation2] sm:$0xff] %vm223_vm7, %v1997_v17  ;;  %v1998_v7 = vadd.f32 %v1969_v1, %v1908_v20  ;;  %v5489_v12 = vpop.f32.mrb[42].mxu1 }
 0x149   : > { %2008 = vst.msk [vmem:[#allocation2 + $0x18] sm:$0xff] %vm223_vm7, %v2000_v19  ;;  %v1985_v21 = vpop.f32.mrb[43].mxu1 }
 0x14a   : > { %2006 = vst.msk [vmem:[#allocation2 + $0x8] sm:$0xff] %vm223_vm7, %v1998_v7 }
 0x14b   : > { %v5498_v26 = vpop.f32.mrb[40].mxu0 }
 0x14c   : > { %v2109_v31 = vpop.f32.mrb[41].mxu0  ;;  %v1913_v33 = vld [vmem:[#allocation2 + $0x30] sm:$0xff] }
 0x14d   : > { %v5499_v32 = vpop.f32.mrb[42].mxu0  ;;  %v2003_v38 = vadd.f32 %v5488_v18, %v1913_v33  ;;  %v1911_v39 = vld [vmem:[#allocation2 + $0x20] sm:$0xff] }
 0x14e   : > { %v2112_v28 = vpop.f32.mrb[43].mxu0  ;;  %v2001_v4 = vadd.f32 %v1982_v0, %v1911_v39  ;;  %v1914_v40 = vld [vmem:[#allocation2 + $0x38] sm:$0xff]  ;;  %v2036_v22 = vld [vmem:[#allocation2 + $0x10] sm:$0xff]  ;;  %v5504_v41 = vpop.f32.mrb[44].mxu1 }
 0x14f   : > { %2011 = vst.msk [vmem:[#allocation2 + $0x30] sm:$0xff] %vm223_vm7, %v2003_v38  ;;  %v2004_v42 = vadd.f32 %v5489_v12, %v1914_v40  ;;  %v2126_v43 = vadd.f32 %v5494_v3, %v2036_v22  ;;  %v1912_v36 = vld [vmem:[#allocation2 + $0x28] sm:$0xff]  ;;  %v2034_v44 = vld [vmem:[#allocation2] sm:$0xff]  ;;  %v2283_v24 = vpop.f32.mrb[45].mxu1 }
 0x150   : > { %2009 = vst.msk [vmem:[#allocation2 + $0x20] sm:$0xff] %vm223_vm7, %v2001_v4  ;;  %v2002_v45 = vadd.f32 %v1985_v21, %v1912_v36  ;;  %v2124_v46 = vadd.f32 %v2093_v8, %v2034_v44  ;;  %v2037_v23 = vld [vmem:[#allocation2 + $0x18] sm:$0xff]  ;;  %v5505_v37 = vpop.f32.mrb[46].mxu1 }
 0x151   : > { %2012 = vst.msk [vmem:[#allocation2 + $0x38] sm:$0xff] %vm223_vm7, %v2004_v42  ;;  %2134 = vst.msk [vmem:[#allocation2 + $0x10] sm:$0xff] %vm223_vm7, %v2126_v43  ;;  %v2127_v47 = vadd.f32 %v5495_v34, %v2037_v23  ;;  %v2035_v48 = vld [vmem:[#allocation2 + $0x8] sm:$0xff]  ;;  %v2286_v29 = vpop.f32.mrb[47].mxu1 }
 0x152   : > { %2010 = vst.msk [vmem:[#allocation2 + $0x28] sm:$0xff] %vm223_vm7, %v2002_v45  ;;  %2132 = vst.msk [vmem:[#allocation2] sm:$0xff] %vm223_vm7, %v2124_v46  ;;  %v2125_v49 = vadd.f32 %v2096_v16, %v2035_v48 }
 0x153   : > { %2135 = vst.msk [vmem:[#allocation2 + $0x18] sm:$0xff] %vm223_vm7, %v2127_v47 }
 0x154   : > { %2133 = vst.msk [vmem:[#allocation2 + $0x8] sm:$0xff] %vm223_vm7, %v2125_v49  ;;  %v5514_v50 = vpop.f32.mrb[44].mxu0 }
 0x155   : > { %v2473_v51 = vpop.f32.mrb[45].mxu0 }
 0x156   : > { %v2040_v52 = vld [vmem:[#allocation2 + $0x30] sm:$0xff]  ;;  %v5508_v53 = vpop.f32.mrb[48].mxu1  ;;  %v5515_v54 = vpop.f32.mrb[46].mxu0 }
 0x157   : > { %v2130_v55 = vadd.f32 %v5498_v26, %v2040_v52  ;;  %v2038_v56 = vld [vmem:[#allocation2 + $0x20] sm:$0xff]  ;;  %v2299_v57 = vpop.f32.mrb[49].mxu1  ;;  %v2476_v58 = vpop.f32.mrb[47].mxu0 }
 0x158   : > { %v2128_v59 = vadd.f32 %v2109_v31, %v2038_v56  ;;  %v2041_v60 = vld [vmem:[#allocation2 + $0x38] sm:$0xff]  ;;  %v2226_v61 = vld [vmem:[#allocation2 + $0x10] sm:$0xff]  ;;  %v5509_v62 = vpop.f32.mrb[50].mxu1 }
 0x159   : > { %2138 = vst.msk [vmem:[#allocation2 + $0x30] sm:$0xff] %vm223_vm7, %v2130_v55  ;;  %v2131_v25 = vadd.f32 %v5499_v32, %v2041_v60  ;;  %v2316_v63 = vadd.f32 %v5504_v41, %v2226_v61  ;;  %v2039_v1 = vld [vmem:[#allocation2 + $0x28] sm:$0xff]  ;;  %v2224_v2 = vld [vmem:[#allocation2] sm:$0xff]  ;;  %v2302_v3 = vpop.f32.mrb[51].mxu1 }
 0x15a   : > { %2136 = vst.msk [vmem:[#allocation2 + $0x20] sm:$0xff] %vm223_vm7, %v2128_v59  ;;  %v2129_v5 = vadd.f32 %v2112_v28, %v2039_v1  ;;  %v2314_v6 = vadd.f32 %v2283_v24, %v2224_v2  ;;  %v2227_v8 = vld [vmem:[#allocation2 + $0x18] sm:$0xff] }
 0x15b   : > { %2139 = vst.msk [vmem:[#allocation2 + $0x38] sm:$0xff] %vm223_vm7, %v2131_v25  ;;  %2324 = vst.msk [vmem:[#allocation2 + $0x10] sm:$0xff] %vm223_vm7, %v2316_v63  ;;  %v2317_v9 = vadd.f32 %v5505_v37, %v2227_v8  ;;  %v2225_v27 = vld [vmem:[#allocation2 + $0x8] sm:$0xff] }
 0x15c   : > { %2137 = vst.msk [vmem:[#allocation2 + $0x28] sm:$0xff] %vm223_vm7, %v2129_v5  ;;  %2322 = vst.msk [vmem:[#allocation2] sm:$0xff] %vm223_vm7, %v2314_v6  ;;  %v2315_v10 = vadd.f32 %v2286_v29, %v2225_v27  ;;  %v5518_v34 = vpop.f32.mrb[48].mxu0 }
 0x15d   : > { %2325 = vst.msk [vmem:[#allocation2 + $0x18] sm:$0xff] %vm223_vm7, %v2317_v9  ;;  %v2489_v11 = vpop.f32.mrb[49].mxu0 }
 0x15e   : > { %2323 = vst.msk [vmem:[#allocation2 + $0x8] sm:$0xff] %vm223_vm7, %v2315_v10  ;;  %v5519_v13 = vpop.f32.mrb[50].mxu0 }
 0x15f   : > { %v5524_v14 = vpop.f32.mrb[52].mxu1  ;;  %v2492_v15 = vpop.f32.mrb[51].mxu0 }
 0x160   : > { %v2230_v16 = vld [vmem:[#allocation2 + $0x30] sm:$0xff]  ;;  %v2663_v35 = vpop.f32.mrb[53].mxu1 }
 0x161   : > { %v2320_v17 = vadd.f32 %v5508_v53, %v2230_v16  ;;  %v2228_v30 = vld [vmem:[#allocation2 + $0x20] sm:$0xff]  ;;  %v5525_v18 = vpop.f32.mrb[54].mxu1 }
 0x162   : > { %v2318_v19 = vadd.f32 %v2299_v57, %v2228_v30  ;;  %v2231_v20 = vld [vmem:[#allocation2 + $0x38] sm:$0xff]  ;;  %v2416_v0 = vld [vmem:[#allocation2 + $0x10] sm:$0xff]  ;;  %v2666_v7 = vpop.f32.mrb[55].mxu1 }
 0x163   : > { %2328 = vst.msk [vmem:[#allocation2 + $0x30] sm:$0xff] %vm223_vm7, %v2320_v17  ;;  %v2321_v12 = vadd.f32 %v5509_v62, %v2231_v20  ;;  %v2506_v21 = vadd.f32 %v5514_v50, %v2416_v0  ;;  %v2229_v26 = vld [vmem:[#allocation2 + $0x28] sm:$0xff]  ;;  %v2414_v31 = vld [vmem:[#allocation2] sm:$0xff] }
 0x164   : > { %2326 = vst.msk [vmem:[#allocation2 + $0x20] sm:$0xff] %vm223_vm7, %v2318_v19  ;;  %v2319_v33 = vadd.f32 %v2302_v3, %v2229_v26  ;;  %v2504_v32 = vadd.f32 %v2473_v51, %v2414_v31  ;;  %v2417_v38 = vld [vmem:[#allocation2 + $0x18] sm:$0xff] }
 0x165   : > { %2329 = vst.msk [vmem:[#allocation2 + $0x38] sm:$0xff] %vm223_vm7, %v2321_v12  ;;  %2514 = vst.msk [vmem:[#allocation2 + $0x10] sm:$0xff] %vm223_vm7, %v2506_v21  ;;  %v2507_v39 = vadd.f32 %v5515_v54, %v2417_v38  ;;  %v2415_v28 = vld [vmem:[#allocation2 + $0x8] sm:$0xff] }
 0x166   : > { %2327 = vst.msk [vmem:[#allocation2 + $0x28] sm:$0xff] %vm223_vm7, %v2319_v33  ;;  %2512 = vst.msk [vmem:[#allocation2] sm:$0xff] %vm223_vm7, %v2504_v32  ;;  %v2505_v4 = vadd.f32 %v2476_v58, %v2415_v28 }
 0x167   : > { %2515 = vst.msk [vmem:[#allocation2 + $0x18] sm:$0xff] %vm223_vm7, %v2507_v39  ;;  %v5528_v40 = vpop.f32.mrb[56].mxu1 }
 0x168   : > { %2513 = vst.msk [vmem:[#allocation2 + $0x8] sm:$0xff] %vm223_vm7, %v2505_v4  ;;  %v2679_v22 = vpop.f32.mrb[57].mxu1 }
 0x169   : > { %v5529_v41 = vpop.f32.mrb[58].mxu1 }
 0x16a   : > { %v2420_v42 = vld [vmem:[#allocation2 + $0x30] sm:$0xff]  ;;  %v2682_v36 = vpop.f32.mrb[59].mxu1 }
 0x16b   : > { %v5534_v43 = vpop.f32.mrb[52].mxu0  ;;  %v2510_v44 = vadd.f32 %v5518_v34, %v2420_v42  ;;  %v2418_v24 = vld [vmem:[#allocation2 + $0x20] sm:$0xff] }
 0x16c   : > { %v2853_v45 = vpop.f32.mrb[53].mxu0  ;;  %v2508_v46 = vadd.f32 %v2489_v11, %v2418_v24  ;;  %v2421_v23 = vld [vmem:[#allocation2 + $0x38] sm:$0xff]  ;;  %v2606_v37 = vld [vmem:[#allocation2 + $0x10] sm:$0xff] }
 0x16d   : > { %v5535_v47 = vpop.f32.mrb[54].mxu0  ;;  %2518 = vst.msk [vmem:[#allocation2 + $0x30] sm:$0xff] %vm223_vm7, %v2510_v44  ;;  %v2511_v48 = vadd.f32 %v5519_v13, %v2421_v23  ;;  %v2696_v29 = vadd.f32 %v5524_v14, %v2606_v37  ;;  %v2419_v49 = vld [vmem:[#allocation2 + $0x28] sm:$0xff]  ;;  %v2604_v50 = vld [vmem:[#allocation2] sm:$0xff] }
 0x16e   : > { %v2856_v51 = vpop.f32.mrb[55].mxu0  ;;  %2516 = vst.msk [vmem:[#allocation2 + $0x20] sm:$0xff] %vm223_vm7, %v2508_v46  ;;  %v2509_v52 = vadd.f32 %v2492_v15, %v2419_v49  ;;  %v2694_v53 = vadd.f32 %v2663_v35, %v2604_v50  ;;  %v2607_v54 = vld [vmem:[#allocation2 + $0x18] sm:$0xff] }
 0x16f   : > { %2519 = vst.msk [vmem:[#allocation2 + $0x38] sm:$0xff] %vm223_vm7, %v2511_v48  ;;  %2704 = vst.msk [vmem:[#allocation2 + $0x10] sm:$0xff] %vm223_vm7, %v2696_v29  ;;  %v2697_v55 = vadd.f32 %v5525_v18, %v2607_v54  ;;  %v2605_v56 = vld [vmem:[#allocation2 + $0x8] sm:$0xff]  ;;  %v5544_v57 = vpop.f32.mrb[60].mxu1 }
 0x170   : > { %2517 = vst.msk [vmem:[#allocation2 + $0x28] sm:$0xff] %vm223_vm7, %v2509_v52  ;;  %2702 = vst.msk [vmem:[#allocation2] sm:$0xff] %vm223_vm7, %v2694_v53  ;;  %v2695_v58 = vadd.f32 %v2666_v7, %v2605_v56  ;;  %v2980_v59 = vpop.f32.mrb[61].mxu1 }
 0x171   : > { %2705 = vst.msk [vmem:[#allocation2 + $0x18] sm:$0xff] %vm223_vm7, %v2697_v55  ;;  %v5545_v60 = vpop.f32.mrb[62].mxu1 }
 0x172   : > { %2703 = vst.msk [vmem:[#allocation2 + $0x8] sm:$0xff] %vm223_vm7, %v2695_v58  ;;  %v2983_v62 = vpop.f32.mrb[63].mxu1 }
 0x173   : > { %v5538_v61 = vpop.f32.mrb[56].mxu0 }
 0x174   : > { %v2869_v25 = vpop.f32.mrb[57].mxu0  ;;  %v2610_v63 = vld [vmem:[#allocation2 + $0x30] sm:$0xff] }
 0x175   : > { %v5539_v1 = vpop.f32.mrb[58].mxu0  ;;  %v2700_v2 = vadd.f32 %v5528_v40, %v2610_v63  ;;  %v2608_v3 = vld [vmem:[#allocation2 + $0x20] sm:$0xff] }
 0x176   : > { %v2872_v5 = vpop.f32.mrb[59].mxu0  ;;  %v2698_v6 = vadd.f32 %v2679_v22, %v2608_v3  ;;  %v2611_v8 = vld [vmem:[#allocation2 + $0x38] sm:$0xff]  ;;  %v2796_v9 = vld [vmem:[#allocation2 + $0x10] sm:$0xff] }
 0x177   : > { %2708 = vst.msk [vmem:[#allocation2 + $0x30] sm:$0xff] %vm223_vm7, %v2700_v2  ;;  %v2701_v27 = vadd.f32 %v5529_v41, %v2611_v8  ;;  %v2886_v10 = vadd.f32 %v5534_v43, %v2796_v9  ;;  %v2609_v34 = vld [vmem:[#allocation2 + $0x28] sm:$0xff]  ;;  %v2794_v11 = vld [vmem:[#allocation2] sm:$0xff]  ;;  %v5548_v13 = vpop.f32.mrb[64].mxu1 }
 0x178   : > { %2706 = vst.msk [vmem:[#allocation2 + $0x20] sm:$0xff] %vm223_vm7, %v2698_v6  ;;  %v2699_v14 = vadd.f32 %v2682_v36, %v2609_v34  ;;  %v2884_v15 = vadd.f32 %v2853_v45, %v2794_v11  ;;  %v2797_v16 = vld [vmem:[#allocation2 + $0x18] sm:$0xff]  ;;  %v2996_v35 = vpop.f32.mrb[65].mxu1 }
 0x179   : > { %2709 = vst.msk [vmem:[#allocation2 + $0x38] sm:$0xff] %vm223_vm7, %v2701_v27  ;;  %2894 = vst.msk [vmem:[#allocation2 + $0x10] sm:$0xff] %vm223_vm7, %v2886_v10  ;;  %v2887_v17 = vadd.f32 %v5535_v47, %v2797_v16  ;;  %v2795_v30 = vld [vmem:[#allocation2 + $0x8] sm:$0xff]  ;;  %v5549_v18 = vpop.f32.mrb[66].mxu1 }
 0x17a   : > { %2707 = vst.msk [vmem:[#allocation2 + $0x28] sm:$0xff] %vm223_vm7, %v2699_v14  ;;  %2892 = vst.msk [vmem:[#allocation2] sm:$0xff] %vm223_vm7, %v2884_v15  ;;  %v2885_v19 = vadd.f32 %v2856_v51, %v2795_v30  ;;  %v2999_v0 = vpop.f32.mrb[67].mxu1 }
 0x17b   : > { %v5554_v20 = vpop.f32.mrb[60].mxu0  ;;  %2895 = vst.msk [vmem:[#allocation2 + $0x18] sm:$0xff] %vm223_vm7, %v2887_v17 }
 0x17c   : > { %v3170_v7 = vpop.f32.mrb[61].mxu0  ;;  %2893 = vst.msk [vmem:[#allocation2 + $0x8] sm:$0xff] %vm223_vm7, %v2885_v19 }
 0x17d   : > { %v5555_v12 = vpop.f32.mrb[62].mxu0 }
 0x17e   : > { %v3173_v21 = vpop.f32.mrb[63].mxu0  ;;  %v2800_v26 = vld [vmem:[#allocation2 + $0x30] sm:$0xff] }
 0x17f   : > { %v2890_v31 = vadd.f32 %v5538_v61, %v2800_v26  ;;  %v2798_v33 = vld [vmem:[#allocation2 + $0x20] sm:$0xff] }
 0x180   : > { %v2888_v32 = vadd.f32 %v2869_v25, %v2798_v33  ;;  %v2801_v38 = vld [vmem:[#allocation2 + $0x38] sm:$0xff]  ;;  %v2923_v39 = vld [vmem:[#allocation2 + $0x10] sm:$0xff] }
 0x181   : > { %2898 = vst.msk [vmem:[#allocation2 + $0x30] sm:$0xff] %vm223_vm7, %v2890_v31  ;;  %v2891_v28 = vadd.f32 %v5539_v1, %v2801_v38  ;;  %v3013_v4 = vadd.f32 %v5544_v57, %v2923_v39  ;;  %v2799_v40 = vld [vmem:[#allocation2 + $0x28] sm:$0xff]  ;;  %v2921_v22 = vld [vmem:[#allocation2] sm:$0xff]  ;;  %v5564_v41 = vpop.f32.mrb[68].mxu1 }
 0x182   : > { %2896 = vst.msk [vmem:[#allocation2 + $0x20] sm:$0xff] %vm223_vm7, %v2888_v32  ;;  %v2889_v42 = vadd.f32 %v2872_v5, %v2799_v40  ;;  %v3011_v43 = vadd.f32 %v2980_v59, %v2921_v22  ;;  %v2924_v36 = vld [vmem:[#allocation2 + $0x18] sm:$0xff]  ;;  %v3360_v24 = vpop.f32.mrb[69].mxu1 }
 0x183   : > { %v5558_v44 = vpop.f32.mrb[64].mxu0  ;;  %2899 = vst.msk [vmem:[#allocation2 + $0x38] sm:$0xff] %vm223_vm7, %v2891_v28  ;;  %3021 = vst.msk [vmem:[#allocation2 + $0x10] sm:$0xff] %vm223_vm7, %v3013_v4  ;;  %v3014_v45 = vadd.f32 %v5545_v60, %v2924_v36  ;;  %v2922_v46 = vld [vmem:[#allocation2 + $0x8] sm:$0xff]  ;;  %v5565_v37 = vpop.f32.mrb[70].mxu1 }
 0x184   : > { %v3186_v23 = vpop.f32.mrb[65].mxu0  ;;  %2897 = vst.msk [vmem:[#allocation2 + $0x28] sm:$0xff] %vm223_vm7, %v2889_v42  ;;  %3019 = vst.msk [vmem:[#allocation2] sm:$0xff] %vm223_vm7, %v3011_v43  ;;  %v3012_v47 = vadd.f32 %v2983_v62, %v2922_v46  ;;  %v3363_v29 = vpop.f32.mrb[71].mxu1 }
 0x185   : > { %v5559_v48 = vpop.f32.mrb[66].mxu0  ;;  %3022 = vst.msk [vmem:[#allocation2 + $0x18] sm:$0xff] %vm223_vm7, %v3014_v45 }
 0x186   : > { %v3189_v49 = vpop.f32.mrb[67].mxu0  ;;  %3020 = vst.msk [vmem:[#allocation2 + $0x8] sm:$0xff] %vm223_vm7, %v3012_v47 }
 0x188   : > { %v2927_v50 = vld [vmem:[#allocation2 + $0x30] sm:$0xff] }
 0x189   : > { %v3017_v51 = vadd.f32 %v5548_v13, %v2927_v50  ;;  %v2925_v52 = vld [vmem:[#allocation2 + $0x20] sm:$0xff]  ;;  %v6650_v53 = vpop.f32.mrb[72].mxu1 }
 0x18a   : > { %v3015_v54 = vadd.f32 %v2996_v35, %v2925_v52  ;;  %v2928_v55 = vld [vmem:[#allocation2 + $0x38] sm:$0xff]  ;;  %v3113_v56 = vld [vmem:[#allocation2 + $0x10] sm:$0xff]  ;;  %v3376_v57 = vpop.f32.mrb[73].mxu1 }
 0x18b   : > { %3025 = vst.msk [vmem:[#allocation2 + $0x30] sm:$0xff] %vm223_vm7, %v3017_v51  ;;  %v3018_v58 = vadd.f32 %v5549_v18, %v2928_v55  ;;  %v3203_v59 = vadd.f32 %v5554_v20, %v3113_v56  ;;  %v2926_v60 = vld [vmem:[#allocation2 + $0x28] sm:$0xff]  ;;  %v3111_v61 = vld [vmem:[#allocation2] sm:$0xff]  ;;  %v5569_v62 = vpop.f32.mrb[74].mxu1 }
 0x18c   : > { %3023 = vst.msk [vmem:[#allocation2 + $0x20] sm:$0xff] %vm223_vm7, %v3015_v54  ;;  %v3016_v25 = vadd.f32 %v2999_v0, %v2926_v60  ;;  %v3201_v63 = vadd.f32 %v3170_v7, %v3111_v61  ;;  %v3114_v1 = vld [vmem:[#allocation2 + $0x18] sm:$0xff]  ;;  %v3379_v3 = vpop.f32.mrb[75].mxu1 }
 0x18d   : > { %v5574_v2 = vpop.f32.mrb[68].mxu0  ;;  %3026 = vst.msk [vmem:[#allocation2 + $0x38] sm:$0xff] %vm223_vm7, %v3018_v58  ;;  %3211 = vst.msk [vmem:[#allocation2 + $0x10] sm:$0xff] %vm223_vm7, %v3203_v59  ;;  %v3204_v5 = vadd.f32 %v5555_v12, %v3114_v1  ;;  %v3112_v6 = vld [vmem:[#allocation2 + $0x8] sm:$0xff] }
 0x18e   : > { %v3550_v8 = vpop.f32.mrb[69].mxu0  ;;  %3024 = vst.msk [vmem:[#allocation2 + $0x28] sm:$0xff] %vm223_vm7, %v3016_v25  ;;  %3209 = vst.msk [vmem:[#allocation2] sm:$0xff] %vm223_vm7, %v3201_v63  ;;  %v3202_v9 = vadd.f32 %v3173_v21, %v3112_v6 }
 0x18f   : > { %v5575_v27 = vpop.f32.mrb[70].mxu0  ;;  %3212 = vst.msk [vmem:[#allocation2 + $0x18] sm:$0xff] %vm223_vm7, %v3204_v5 }
 0x190   : > { %v3553_v10 = vpop.f32.mrb[71].mxu0  ;;  %3210 = vst.msk [vmem:[#allocation2 + $0x8] sm:$0xff] %vm223_vm7, %v3202_v9 }
 0x192   : > { %v3117_v34 = vld [vmem:[#allocation2 + $0x30] sm:$0xff] }
 0x193   : > { %v3207_v11 = vadd.f32 %v5558_v44, %v3117_v34  ;;  %v3115_v13 = vld [vmem:[#allocation2 + $0x20] sm:$0xff] }
 0x194   : > { %v3205_v14 = vadd.f32 %v3186_v23, %v3115_v13  ;;  %v3118_v15 = vld [vmem:[#allocation2 + $0x38] sm:$0xff]  ;;  %v3303_v16 = vld [vmem:[#allocation2 + $0x10] sm:$0xff] }
 0x195   : > { %v5578_v35 = vpop.f32.mrb[72].mxu0  ;;  %3215 = vst.msk [vmem:[#allocation2 + $0x30] sm:$0xff] %vm223_vm7, %v3207_v11  ;;  %v3208_v17 = vadd.f32 %v5559_v48, %v3118_v15  ;;  %v3393_v30 = vadd.f32 %v5564_v41, %v3303_v16  ;;  %v3116_v18 = vld [vmem:[#allocation2 + $0x28] sm:$0xff]  ;;  %v3301_v19 = vld [vmem:[#allocation2] sm:$0xff] }
 0x196   : > { %v3566_v20 = vpop.f32.mrb[73].mxu0  ;;  %3213 = vst.msk [vmem:[#allocation2 + $0x20] sm:$0xff] %vm223_vm7, %v3205_v14  ;;  %v3206_v0 = vadd.f32 %v3189_v49, %v3116_v18  ;;  %v3391_v7 = vadd.f32 %v3360_v24, %v3301_v19  ;;  %v3304_v12 = vld [vmem:[#allocation2 + $0x18] sm:$0xff] }
 0x197   : > { %v5579_v21 = vpop.f32.mrb[74].mxu0  ;;  %3216 = vst.msk [vmem:[#allocation2 + $0x38] sm:$0xff] %vm223_vm7, %v3208_v17  ;;  %3401 = vst.msk [vmem:[#allocation2 + $0x10] sm:$0xff] %vm223_vm7, %v3393_v30  ;;  %v3394_v26 = vadd.f32 %v5565_v37, %v3304_v12  ;;  %v3302_v31 = vld [vmem:[#allocation2 + $0x8] sm:$0xff] }
 0x198   : > { %v5584_v33 = vpop.f32.mrb[76].mxu1  ;;  %v3569_v32 = vpop.f32.mrb[75].mxu0  ;;  %3214 = vst.msk [vmem:[#allocation2 + $0x28] sm:$0xff] %vm223_vm7, %v3206_v0  ;;  %3399 = vst.msk [vmem:[#allocation2] sm:$0xff] %vm223_vm7, %v3391_v7  ;;  %v3392_v38 = vadd.f32 %v3363_v29, %v3302_v31 }
 0x199   : > { %v3740_v39 = vpop.f32.mrb[77].mxu1  ;;  %3402 = vst.msk [vmem:[#allocation2 + $0x18] sm:$0xff] %vm223_vm7, %v3394_v26 }
 0x19a   : > { %v5585_v28 = vpop.f32.mrb[78].mxu1  ;;  %3400 = vst.msk [vmem:[#allocation2 + $0x8] sm:$0xff] %vm223_vm7, %v3392_v38 }
 0x19b   : > { %v3743_v4 = vpop.f32.mrb[79].mxu1 }
 0x19c   : > { %v3307_v40 = vld [vmem:[#allocation2 + $0x30] sm:$0xff] }
 0x19d   : > { %v6668_v22 = vpop.f32.mrb[76].mxu0  ;;  %v3397_v41 = vadd.f32 %v6650_v53, %v3307_v40  ;;  %v3305_v42 = vld [vmem:[#allocation2 + $0x20] sm:$0xff] }
 0x19e   : > { %v6671_v43 = vpop.f32.mrb[77].mxu0  ;;  %v3395_v36 = vadd.f32 %v3376_v57, %v3305_v42  ;;  %v3308_v44 = vld [vmem:[#allocation2 + $0x38] sm:$0xff]  ;;  %v3493_v24 = vld [vmem:[#allocation2 + $0x10] sm:$0xff] }
 0x19f   : > { %v6673_v45 = vpop.f32.mrb[78].mxu0  ;;  %3405 = vst.msk [vmem:[#allocation2 + $0x30] sm:$0xff] %vm223_vm7, %v3397_v41  ;;  %v3398_v46 = vadd.f32 %v5569_v62, %v3308_v44  ;;  %v3583_v23 = vadd.f32 %v5574_v2, %v3493_v24  ;;  %v3306_v37 = vld [vmem:[#allocation2 + $0x28] sm:$0xff]  ;;  %v3491_v47 = vld [vmem:[#allocation2] sm:$0xff] }
 0x1a0   : > { %v5588_v48 = vpop.f32.mrb[80].mxu1  ;;  %v6676_v29 = vpop.f32.mrb[79].mxu0  ;;  %3403 = vst.msk [vmem:[#allocation2 + $0x20] sm:$0xff] %vm223_vm7, %v3395_v36  ;;  %v3396_v49 = vadd.f32 %v3379_v3, %v3306_v37  ;;  %v3581_v50 = vadd.f32 %v3550_v8, %v3491_v47  ;;  %v3494_v51 = vld [vmem:[#allocation2 + $0x18] sm:$0xff] }
 0x1a1   : > { %v3756_v52 = vpop.f32.mrb[81].mxu1  ;;  %3406 = vst.msk [vmem:[#allocation2 + $0x38] sm:$0xff] %vm223_vm7, %v3398_v46  ;;  %3591 = vst.msk [vmem:[#allocation2 + $0x10] sm:$0xff] %vm223_vm7, %v3583_v23  ;;  %v3584_v53 = vadd.f32 %v5575_v27, %v3494_v51  ;;  %v3492_v54 = vld [vmem:[#allocation2 + $0x8] sm:$0xff] }
 0x1a2   : > { %v5589_v55 = vpop.f32.mrb[82].mxu1  ;;  %3404 = vst.msk [vmem:[#allocation2 + $0x28] sm:$0xff] %vm223_vm7, %v3396_v49  ;;  %3589 = vst.msk [vmem:[#allocation2] sm:$0xff] %vm223_vm7, %v3581_v50  ;;  %v3582_v56 = vadd.f32 %v3553_v10, %v3492_v54 }
 0x1a3   : > { %v3759_v57 = vpop.f32.mrb[83].mxu1  ;;  %3592 = vst.msk [vmem:[#allocation2 + $0x18] sm:$0xff] %vm223_vm7, %v3584_v53 }
 0x1a4   : > { %3590 = vst.msk [vmem:[#allocation2 + $0x8] sm:$0xff] %vm223_vm7, %v3582_v56 }
 0x1a5   : > { %v6685_v58 = vpop.f32.mrb[80].mxu0 }
 0x1a6   : > { %v6687_v59 = vpop.f32.mrb[81].mxu0  ;;  %v3497_v60 = vld [vmem:[#allocation2 + $0x30] sm:$0xff] }
 0x1a7   : > { %v6689_v61 = vpop.f32.mrb[82].mxu0  ;;  %v3587_v62 = vadd.f32 %v5578_v35, %v3497_v60  ;;  %v3495_v25 = vld [vmem:[#allocation2 + $0x20] sm:$0xff] }
 0x1a8   : > { %v6691_v63 = vpop.f32.mrb[84].mxu1  ;;  %v6693_v1 = vpop.f32.mrb[83].mxu0  ;;  %v3585_v2 = vadd.f32 %v3566_v20, %v3495_v25  ;;  %v3498_v3 = vld [vmem:[#allocation2 + $0x38] sm:$0xff]  ;;  %v3683_v5 = vld [vmem:[#allocation2 + $0x10] sm:$0xff] }
 0x1a9   : > { %v6695_v6 = vpop.f32.mrb[85].mxu1  ;;  %3595 = vst.msk [vmem:[#allocation2 + $0x30] sm:$0xff] %vm223_vm7, %v3587_v62  ;;  %v3588_v8 = vadd.f32 %v5579_v21, %v3498_v3  ;;  %v3773_v9 = vadd.f32 %v5584_v33, %v3683_v5  ;;  %v3496_v27 = vld [vmem:[#allocation2 + $0x28] sm:$0xff]  ;;  %v3681_v10 = vld [vmem:[#allocation2] sm:$0xff] }
 0x1aa   : > { %v6698_v34 = vpop.f32.mrb[86].mxu1  ;;  %3593 = vst.msk [vmem:[#allocation2 + $0x20] sm:$0xff] %vm223_vm7, %v3585_v2  ;;  %v3586_v11 = vadd.f32 %v3569_v32, %v3496_v27  ;;  %v3771_v13 = vadd.f32 %v3740_v39, %v3681_v10  ;;  %v3684_v14 = vld [vmem:[#allocation2 + $0x18] sm:$0xff] }
 0x1ab   : > { %v6701_v15 = vpop.f32.mrb[87].mxu1  ;;  %3596 = vst.msk [vmem:[#allocation2 + $0x38] sm:$0xff] %vm223_vm7, %v3588_v8  ;;  %3781 = vst.msk [vmem:[#allocation2 + $0x10] sm:$0xff] %vm223_vm7, %v3773_v9  ;;  %v3774_v16 = vadd.f32 %v5585_v28, %v3684_v14  ;;  %v3682_v35 = vld [vmem:[#allocation2 + $0x8] sm:$0xff] }
 0x1ac   : > { %3594 = vst.msk [vmem:[#allocation2 + $0x28] sm:$0xff] %vm223_vm7, %v3586_v11  ;;  %3779 = vst.msk [vmem:[#allocation2] sm:$0xff] %vm223_vm7, %v3771_v13  ;;  %v3772_v17 = vadd.f32 %v3743_v4, %v3682_v35 }
 0x1ad   : > { %3782 = vst.msk [vmem:[#allocation2 + $0x18] sm:$0xff] %vm223_vm7, %v3774_v16 }
 0x1ae   : > { %3780 = vst.msk [vmem:[#allocation2 + $0x8] sm:$0xff] %vm223_vm7, %v3772_v17 }
 0x1af   : > { %v6711_v18 = vpop.f32.mrb[84].mxu0 }
 0x1b0   : > { %v6709_v30 = vpop.f32.mrb[88].mxu1  ;;  %v3687_v19 = vld [vmem:[#allocation2 + $0x30] sm:$0xff]  ;;  %v6715_v0 = vpop.f32.mrb[85].mxu0 }
 0x1b1   : > { %v6713_v20 = vpop.f32.mrb[89].mxu1  ;;  %v3777_v7 = vadd.f32 %v5588_v48, %v3687_v19  ;;  %v3685_v12 = vld [vmem:[#allocation2 + $0x20] sm:$0xff]  ;;  %v6719_v26 = vpop.f32.mrb[86].mxu0 }
 0x1b2   : > { %v6717_v21 = vpop.f32.mrb[90].mxu1  ;;  %v3775_v31 = vadd.f32 %v3756_v52, %v3685_v12  ;;  %v3688_v33 = vld [vmem:[#allocation2 + $0x38] sm:$0xff]  ;;  %v3810_v32 = vld [vmem:[#allocation2 + $0x10] sm:$0xff]  ;;  %v6723_v39 = vpop.f32.mrb[87].mxu0 }
 0x1b3   : > { %v6721_v38 = vpop.f32.mrb[91].mxu1  ;;  %3785 = vst.msk [vmem:[#allocation2 + $0x30] sm:$0xff] %vm223_vm7, %v3777_v7  ;;  %v3778_v28 = vadd.f32 %v5589_v55, %v3688_v33  ;;  %v3900_v4 = vadd.f32 %v6668_v22, %v3810_v32  ;;  %v3686_v40 = vld [vmem:[#allocation2 + $0x28] sm:$0xff]  ;;  %v3808_v41 = vld [vmem:[#allocation2] sm:$0xff] }
 0x1b4   : > { %3783 = vst.msk [vmem:[#allocation2 + $0x20] sm:$0xff] %vm223_vm7, %v3775_v31  ;;  %v3776_v42 = vadd.f32 %v3759_v57, %v3686_v40  ;;  %v3898_v36 = vadd.f32 %v6671_v43, %v3808_v41  ;;  %v3811_v44 = vld [vmem:[#allocation2 + $0x18] sm:$0xff] }
 0x1b5   : > { %3786 = vst.msk [vmem:[#allocation2 + $0x38] sm:$0xff] %vm223_vm7, %v3778_v28  ;;  %3908 = vst.msk [vmem:[#allocation2 + $0x10] sm:$0xff] %vm223_vm7, %v3900_v4  ;;  %v3901_v24 = vadd.f32 %v6673_v45, %v3811_v44  ;;  %v3809_v46 = vld [vmem:[#allocation2 + $0x8] sm:$0xff] }
 0x1b6   : > { %3784 = vst.msk [vmem:[#allocation2 + $0x28] sm:$0xff] %vm223_vm7, %v3776_v42  ;;  %3906 = vst.msk [vmem:[#allocation2] sm:$0xff] %vm223_vm7, %v3898_v36  ;;  %v3899_v22 = vadd.f32 %v6676_v29, %v3809_v46 }
 0x1b7   : > { %3909 = vst.msk [vmem:[#allocation2 + $0x18] sm:$0xff] %vm223_vm7, %v3901_v24  ;;  %v6736_v23 = vpop.f32.mrb[88].mxu0 }
 0x1b8   : > { %3907 = vst.msk [vmem:[#allocation2 + $0x8] sm:$0xff] %vm223_vm7, %v3899_v22  ;;  %v6739_v43 = vpop.f32.mrb[89].mxu0 }
 0x1b9   : > { %v6741_v37 = vpop.f32.mrb[90].mxu0 }
 0x1ba   : > { %v3814_v47 = vld [vmem:[#allocation2 + $0x30] sm:$0xff]  ;;  %v6743_v48 = vpop.f32.mrb[92].mxu1  ;;  %v6745_v45 = vpop.f32.mrb[91].mxu0 }
 0x1bb   : > { %v3904_v49 = vadd.f32 %v6685_v58, %v3814_v47  ;;  %v3812_v50 = vld [vmem:[#allocation2 + $0x20] sm:$0xff]  ;;  %v6748_v51 = vpop.f32.mrb[93].mxu1 }
 0x1bc   : > { %v3902_v29 = vadd.f32 %v6687_v59, %v3812_v50  ;;  %v3815_v52 = vld [vmem:[#allocation2 + $0x38] sm:$0xff]  ;;  %v4000_v53 = vld [vmem:[#allocation2 + $0x10] sm:$0xff]  ;;  %v6751_v54 = vpop.f32.mrb[94].mxu1 }
 0x1bd   : > { %3912 = vst.msk [vmem:[#allocation2 + $0x30] sm:$0xff] %vm223_vm7, %v3904_v49  ;;  %v3905_v55 = vadd.f32 %v6689_v61, %v3815_v52  ;;  %v4090_v56 = vadd.f32 %v6691_v63, %v4000_v53  ;;  %v3813_v57 = vld [vmem:[#allocation2 + $0x28] sm:$0xff]  ;;  %v3998_v60 = vld [vmem:[#allocation2] sm:$0xff]  ;;  %v6756_v62 = vpop.f32.mrb[95].mxu1 }
 0x1be   : > { %3910 = vst.msk [vmem:[#allocation2 + $0x20] sm:$0xff] %vm223_vm7, %v3902_v29  ;;  %v3903_v58 = vadd.f32 %v6693_v1, %v3813_v57  ;;  %v4088_v59 = vadd.f32 %v6695_v6, %v3998_v60  ;;  %v4001_v25 = vld [vmem:[#allocation2 + $0x18] sm:$0xff] }
 0x1bf   : > { %3913 = vst.msk [vmem:[#allocation2 + $0x38] sm:$0xff] %vm223_vm7, %v3905_v55  ;;  %4098 = vst.msk [vmem:[#allocation2 + $0x10] sm:$0xff] %vm223_vm7, %v4090_v56  ;;  %v4091_v2 = vadd.f32 %v6698_v34, %v4001_v25  ;;  %v3999_v61 = vld [vmem:[#allocation2 + $0x8] sm:$0xff]  ;;  %v5261_v25 = vld [vmem:[%s6855_s2] ss:$0 sm:$0xff] }
 0x1c0   : > { %3911 = vst.msk [vmem:[#allocation2 + $0x28] sm:$0xff] %vm223_vm7, %v3903_v58  ;;  %4096 = vst.msk [vmem:[#allocation2] sm:$0xff] %vm223_vm7, %v4088_v59  ;;  %v4089_v63 = vadd.f32 %v6701_v15, %v3999_v61 }
 0x1c1   : > { %4099 = vst.msk [vmem:[#allocation2 + $0x18] sm:$0xff] %vm223_vm7, %v4091_v2 }
 0x1c2   : > { %4097 = vst.msk [vmem:[#allocation2 + $0x8] sm:$0xff] %vm223_vm7, %v4089_v63  ;;  %v5628_v1 = vpop.f32.mrb[96].mxu1 }
 0x1c3   : > { %v4453_v3 = vpop.f32.mrb[97].mxu1 }
 0x1c4   : > { %v4004_v5 = vld [vmem:[#allocation2 + $0x30] sm:$0xff]  ;;  %v6769_v6 = vpop.f32.mrb[98].mxu1 }
 0x1c5   : > { %v4094_v8 = vadd.f32 %v6709_v30, %v4004_v5  ;;  %v4002_v9 = vld [vmem:[#allocation2 + $0x20] sm:$0xff]  ;;  %v6772_v27 = vpop.f32.mrb[99].mxu1 }
 0x1c6   : > { %v4092_v10 = vadd.f32 %v6713_v20, %v4002_v9  ;;  %v4005_v34 = vld [vmem:[#allocation2 + $0x38] sm:$0xff]  ;;  %v4190_v11 = vld [vmem:[#allocation2 + $0x10] sm:$0xff] }
 0x1c7   : > { %4102 = vst.msk [vmem:[#allocation2 + $0x30] sm:$0xff] %vm223_vm7, %v4094_v8  ;;  %v4095_v13 = vadd.f32 %v6717_v21, %v4005_v34  ;;  %v4280_v14 = vadd.f32 %v6711_v18, %v4190_v11  ;;  %v4003_v15 = vld [vmem:[#allocation2 + $0x28] sm:$0xff]  ;;  %v4188_v16 = vld [vmem:[#allocation2] sm:$0xff]  ;;  %v5634_v35 = vpop.f32.mrb[92].mxu0 }
 0x1c8   : > { %4100 = vst.msk [vmem:[#allocation2 + $0x20] sm:$0xff] %vm223_vm7, %v4092_v10  ;;  %v4093_v17 = vadd.f32 %v6721_v38, %v4003_v15  ;;  %v4278_v30 = vadd.f32 %v6715_v0, %v4188_v16  ;;  %v4191_v19 = vld [vmem:[#allocation2 + $0x18] sm:$0xff]  ;;  %v4627_v7 = vpop.f32.mrb[93].mxu0 }
 0x1c9   : > { %4103 = vst.msk [vmem:[#allocation2 + $0x38] sm:$0xff] %vm223_vm7, %v4095_v13  ;;  %4288 = vst.msk [vmem:[#allocation2 + $0x10] sm:$0xff] %vm223_vm7, %v4280_v14  ;;  %v4281_v20 = vadd.f32 %v6719_v26, %v4191_v19  ;;  %v4189_v12 = vld [vmem:[#allocation2 + $0x8] sm:$0xff]  ;;  %v5635_v21 = vpop.f32.mrb[94].mxu0 }
 0x1ca   : > { %4101 = vst.msk [vmem:[#allocation2 + $0x28] sm:$0xff] %vm223_vm7, %v4093_v17  ;;  %4286 = vst.msk [vmem:[#allocation2] sm:$0xff] %vm223_vm7, %v4278_v30  ;;  %v4279_v18 = vadd.f32 %v6723_v39, %v4189_v12  ;;  %v4630_v31 = vpop.f32.mrb[95].mxu0 }
 0x1cb   : > { %4289 = vst.msk [vmem:[#allocation2 + $0x18] sm:$0xff] %vm223_vm7, %v4281_v20 }
 0x1cc   : > { %4287 = vst.msk [vmem:[#allocation2 + $0x8] sm:$0xff] %vm223_vm7, %v4279_v18 }
 0x1ce   : > { %v4194_v0 = vld [vmem:[#allocation2 + $0x30] sm:$0xff] }
 0x1cf   : > { %v4284_v33 = vadd.f32 %v6736_v23, %v4194_v0  ;;  %v4192_v32 = vld [vmem:[#allocation2 + $0x20] sm:$0xff]  ;;  %v5638_v38 = vpop.f32.mrb[96].mxu0 }
 0x1d0   : > { %v4282_v26 = vadd.f32 %v6739_v43, %v4192_v32  ;;  %v4195_v28 = vld [vmem:[#allocation2 + $0x38] sm:$0xff]  ;;  %v4380_v4 = vld [vmem:[#allocation2 + $0x10] sm:$0xff]  ;;  %v4643_v40 = vpop.f32.mrb[97].mxu0 }
 0x1d1   : > { %4292 = vst.msk [vmem:[#allocation2 + $0x30] sm:$0xff] %vm223_vm7, %v4284_v33  ;;  %v4285_v41 = vadd.f32 %v6741_v37, %v4195_v28  ;;  %v4470_v39 = vadd.f32 %v6743_v48, %v4380_v4  ;;  %v4193_v42 = vld [vmem:[#allocation2 + $0x28] sm:$0xff]  ;;  %v4378_v36 = vld [vmem:[#allocation2] sm:$0xff]  ;;  %v5639_v44 = vpop.f32.mrb[98].mxu0 }
 0x1d2   : > { %4290 = vst.msk [vmem:[#allocation2 + $0x20] sm:$0xff] %vm223_vm7, %v4282_v26  ;;  %v4283_v24 = vadd.f32 %v6745_v45, %v4193_v42  ;;  %v4468_v46 = vadd.f32 %v6748_v51, %v4378_v36  ;;  %v4381_v22 = vld [vmem:[#allocation2 + $0x18] sm:$0xff]  ;;  %v4646_v23 = vpop.f32.mrb[99].mxu0 }
 0x1d3   : > { %4293 = vst.msk [vmem:[#allocation2 + $0x38] sm:$0xff] %vm223_vm7, %v4285_v41  ;;  %4478 = vst.msk [vmem:[#allocation2 + $0x10] sm:$0xff] %vm223_vm7, %v4470_v39  ;;  %v4471_v43 = vadd.f32 %v6751_v54, %v4381_v22  ;;  %v4379_v37 = vld [vmem:[#allocation2 + $0x8] sm:$0xff] }
 0x1d4   : > { %4291 = vst.msk [vmem:[#allocation2 + $0x28] sm:$0xff] %vm223_vm7, %v4283_v24  ;;  %4476 = vst.msk [vmem:[#allocation2] sm:$0xff] %vm223_vm7, %v4468_v46  ;;  %v4469_v47 = vadd.f32 %v6756_v62, %v4379_v37 }
 0x1d5   : > { %4479 = vst.msk [vmem:[#allocation2 + $0x18] sm:$0xff] %vm223_vm7, %v4471_v43 }
 0x1d6   : > { %4477 = vst.msk [vmem:[#allocation2 + $0x8] sm:$0xff] %vm223_vm7, %v4469_v47 }
 0x1d8   : > { %v4384_v48 = vld [vmem:[#allocation2 + $0x30] sm:$0xff] }
 0x1d9   : > { %v4474_v45 = vadd.f32 %v5628_v1, %v4384_v48  ;;  %v4382_v49 = vld [vmem:[#allocation2 + $0x20] sm:$0xff] }
 0x1da   : > { %v4472_v50 = vadd.f32 %v4453_v3, %v4382_v49  ;;  %v4385_v51 = vld [vmem:[#allocation2 + $0x38] sm:$0xff]  ;;  %v4570_v29 = vld [vmem:[#allocation2 + $0x10] sm:$0xff] }
 0x1db   : > { %4482 = vst.msk [vmem:[#allocation2 + $0x30] sm:$0xff] %vm223_vm7, %v4474_v45  ;;  %v4475_v52 = vadd.f32 %v6769_v6, %v4385_v51  ;;  %v4660_v53 = vadd.f32 %v5634_v35, %v4570_v29  ;;  %v4383_v54 = vld [vmem:[#allocation2 + $0x28] sm:$0xff]  ;;  %v4568_v55 = vld [vmem:[#allocation2] sm:$0xff] }
 0x1dc   : > { %4480 = vst.msk [vmem:[#allocation2 + $0x20] sm:$0xff] %vm223_vm7, %v4472_v50  ;;  %v4473_v56 = vadd.f32 %v6772_v27, %v4383_v54  ;;  %v4658_v57 = vadd.f32 %v4627_v7, %v4568_v55  ;;  %v4571_v60 = vld [vmem:[#allocation2 + $0x18] sm:$0xff] }
 0x1dd   : > { %4483 = vst.msk [vmem:[#allocation2 + $0x38] sm:$0xff] %vm223_vm7, %v4475_v52  ;;  %4668 = vst.msk [vmem:[#allocation2 + $0x10] sm:$0xff] %vm223_vm7, %v4660_v53  ;;  %v4661_v62 = vadd.f32 %v5635_v21, %v4571_v60  ;;  %v4569_v58 = vld [vmem:[#allocation2 + $0x8] sm:$0xff] }
 0x1de   : > { %4481 = vst.msk [vmem:[#allocation2 + $0x28] sm:$0xff] %vm223_vm7, %v4473_v56  ;;  %4666 = vst.msk [vmem:[#allocation2] sm:$0xff] %vm223_vm7, %v4658_v57  ;;  %v4659_v59 = vadd.f32 %v4630_v31, %v4569_v58 }
 0x1df   : > { %4669 = vst.msk [vmem:[#allocation2 + $0x18] sm:$0xff] %vm223_vm7, %v4661_v62 }
 0x1e0   : > { %4667 = vst.msk [vmem:[#allocation2 + $0x8] sm:$0xff] %vm223_vm7, %v4659_v59 }
 0x1e2   : > { %v4574_v2 = vld [vmem:[#allocation2 + $0x30] sm:$0xff] }
 0x1e3   : > { %v4664_v61 = vadd.f32 %v5638_v38, %v4574_v2  ;;  %v4572_v63 = vld [vmem:[#allocation2 + $0x20] sm:$0xff] }
 0x1e4   : > { %v4676_v1 = vld [vmem:[#allocation2 + $0x10] sm:$0xff]  ;;  %v4662_v3 = vadd.f32 %v4643_v40, %v4572_v63  ;;  %v4575_v5 = vld [vmem:[#allocation2 + $0x38] sm:$0xff] }
 0x1e5   : > { %v4691_v6 = vadd.f32 %v5261_v25, %v4676_v1  ;;  %v4674_v8 = vld [vmem:[#allocation2] sm:$0xff]  ;;  %4672 = vst.msk [vmem:[#allocation2 + $0x30] sm:$0xff] %vm223_vm7, %v4664_v61  ;;  %v4665_v9 = vadd.f32 %v5639_v44, %v4575_v5  ;;  %v4573_v27 = vld [vmem:[#allocation2 + $0x28] sm:$0xff] }
 0x1e6   : > { %v4689_v10 = vadd.f32 %v5261_v25, %v4674_v8  ;;  %v4677_v34 = vld [vmem:[#allocation2 + $0x18] sm:$0xff]  ;;  %4670 = vst.msk [vmem:[#allocation2 + $0x20] sm:$0xff] %vm223_vm7, %v4662_v3  ;;  %v4663_v11 = vadd.f32 %v4646_v23, %v4573_v27 }
 0x1e7   : > { %v4699_v13 = vpack.c.bf16 %v4691_v6, %v4691_v6  ;;  %v4692_v14 = vadd.f32 %v5261_v25, %v4677_v34  ;;  %v4675_v15 = vld [vmem:[#allocation2 + $0x8] sm:$0xff]  ;;  %4673 = vst.msk [vmem:[#allocation2 + $0x38] sm:$0xff] %vm223_vm7, %v4665_v9 }
 0x1e8   : > { %v4697_v16 = vpack.c.bf16 %v4689_v10, %v4689_v10  ;;  %v4690_v35 = vadd.f32 %v5261_v25, %v4675_v15  ;;  %4671 = vst.msk [vmem:[#allocation2 + $0x28] sm:$0xff] %vm223_vm7, %v4663_v11 }
 0x1e9   : > { %4708 = vst.msk [vmem:[%s6823_s29 + $0x8] sm:$0xf] %vm4705_vm8, %v4699_v13  ;;  %v4700_v17 = vpack.c.bf16 %v4692_v14, %v4692_v14 }
 0x1ea   : > { %4706 = vst.msk [vmem:[%s6823_s29] sm:$0xf] %vm4705_vm8, %v4697_v16  ;;  %v4698_v30 = vpack.c.bf16 %v4690_v35, %v4690_v35 }
 0x1eb   : > { %4709 = vst.msk [vmem:[%s6823_s29 + $0xc] sm:$0xf] %vm4705_vm8, %v4700_v17 }
 0x1ec   : > { %4707 = vst.msk [vmem:[%s6823_s29 + $0x4] sm:$0xf] %vm4705_vm8, %v4698_v30  ;;  %v4680_v19 = vld [vmem:[#allocation2 + $0x30] sm:$0xff] }
 0x1ed   : > { %v4695_v7 = vadd.f32 %v5261_v25, %v4680_v19  ;;  %v4678_v20 = vld [vmem:[#allocation2 + $0x20] sm:$0xff] }
 0x1ee   : > { %v4693_v12 = vadd.f32 %v5261_v25, %v4678_v20  ;;  %v4681_v21 = vld [vmem:[#allocation2 + $0x38] sm:$0xff] }
 0x1ef   : > { %v4703_v18 = vpack.c.bf16 %v4695_v7, %v4695_v7  ;;  %v4696_v31 = vadd.f32 %v5261_v25, %v4681_v21  ;;  %v4679_v0 = vld [vmem:[#allocation2 + $0x28] sm:$0xff] }
 0x1f0   : > { %v4701_v33 = vpack.c.bf16 %v4693_v12, %v4693_v12  ;;  %v4694_v32 = vadd.f32 %v5261_v25, %v4679_v0 }
 0x1f1   : > { %4712 = vst.msk [vmem:[%s6823_s29 + $0x18] sm:$0xf] %vm4705_vm8, %v4703_v18  ;;  %v4704_v38 = vpack.c.bf16 %v4696_v31, %v4696_v31 }
 0x1f2   : > { %4710 = vst.msk [vmem:[%s6823_s29 + $0x10] sm:$0xf] %vm4705_vm8, %v4701_v33  ;;  %v4702_v26 = vpack.c.bf16 %v4694_v32, %v4694_v32 }
 0x1f3   : > { %4713 = vst.msk [vmem:[%s6823_s29 + $0x1c] sm:$0xf] %vm4705_vm8, %v4704_v38 }
 0x1f4   : > { %4711 = vst.msk [vmem:[%s6823_s29 + $0x14] sm:$0xf] %vm4705_vm8, %v4702_v26 }
 0x1f5 PF: > { %s13_s14 = sadd.s32 1, %s5711_s14   ;;  %s6857_s12 = smov %s5707_s13 }
 0x1f6   : > { %p10_p5 = scmp.ge.s32.totalorder %s13_s14, 4   ;;  %s6858_s13 = smov %s6860_s15 }
 0x1f8   :  { %12 = sbr.rel (!%p10_p5) target bundleno = 2 (0x2), region = 96 }

</bundles_post_ra>
